<compile_context>
chip_gen: v7x
topology: tpu7x:2x2x1
jax: 0.10.0
libtpu: 0.0.40
codegen_flags: <defaults>
</compile_context>

<pallas_src>
import jax
import jax.numpy as jnp
from jax.experimental import pallas as pl
from jax.experimental.pallas import tpu as pltpu


# ----------------------------------------------------------------------------
# Fused 5x5 conv (stride 1, "same") + bias + ReLU + 2x2/2 max-pool
# ----------------------------------------------------------------------------
def _conv_relu_pool_kernel(p_ref, w_ref, b_ref, o_ref):
    # p_ref: (4, Ho*Wo, K)   im2col patches; axis 0 = position inside the 2x2
    #                        pool window, so max-pool == elementwise max of the
    #                        4 per-position conv results (ReLU is monotone, so
    #                        pool(relu(y+b)) == relu(max(y)+b)).
    # w_ref: (K, Cout)       K = KH*KW*Cin (25 for conv1, 800 for conv2)
    # b_ref: (1, Cout)
    # o_ref: (Ho*Wo, Cout)   pooled output for one image
    w = w_ref[...]
    m = jnp.dot(p_ref[0], w, preferred_element_type=jnp.float32)
    for p in range(1, 4):
        m = jnp.maximum(m, jnp.dot(p_ref[p], w, preferred_element_type=jnp.float32))
    o_ref[...] = jnp.maximum(m + b_ref[...], 0.0)


def conv_relu_pool(x_nhwc, w, b):
    """5x5 conv, stride 1, pad 2, + bias + ReLU + 2x2/2 max-pool (fused).

    x: (B, H, W, Cin) f32;  w: (KH, KW, Cin, Cout);  b: (Cout,)
    Returns (B, H//2, W//2, Cout) f32.
    """
    B, H, W, Cin = x_nhwc.shape
    KH, KW, _, Cout = w.shape
    pad = (KH - 1) // 2
    Ho, Wo = H // 2, W // 2
    K = KH * KW * Cin

    # im2col + pool-window grouping is cheap layout glue (XLA); the matmuls,
    # bias, ReLU and pool-max all run in the Pallas kernel.
    xp = jnp.pad(x_nhwc, ((0, 0), (pad, pad), (pad, pad), (0, 0)))
    taps = [xp[:, kh:kh + H, kw:kw + W, :] for kh in range(KH) for kw in range(KW)]
    pat = jnp.stack(taps, axis=3).reshape(B, H, W, K)          # (kh,kw,cin) order
    pat = pat.reshape(B, Ho, 2, Wo, 2, K).transpose(0, 2, 4, 1, 3, 5)
    pat = pat.reshape(B, 4, Ho * Wo, K).astype(jnp.float32)

    w2 = w.reshape(K, Cout).astype(jnp.float32)
    b2 = b.reshape(1, Cout).astype(jnp.float32)

    out = pl.pallas_call(
        _conv_relu_pool_kernel,
        out_shape=jax.ShapeDtypeStruct((B, Ho * Wo, Cout), jnp.float32),
        grid_spec=pltpu.PrefetchScalarGridSpec(
            num_scalar_prefetch=0,
            grid=(B,),  # one whole image per grid step
            in_specs=[
                pl.BlockSpec((pl.Squeezed(), 4, Ho * Wo, K), lambda bi: (bi, 0, 0, 0)),
                pl.BlockSpec((K, Cout), lambda bi: (0, 0)),
                pl.BlockSpec((1, Cout), lambda bi: (0, 0)),
            ],
            out_specs=pl.BlockSpec(
                (pl.Squeezed(), Ho * Wo, Cout), lambda bi: (bi, 0, 0)
            ),
        ),
        compiler_params=pltpu.CompilerParams(
            dimension_semantics=("parallel",),
        ),
    )(pat, w2, b2)
    return out.reshape(B, Ho, Wo, Cout)


# ----------------------------------------------------------------------------
# Linear: y = x @ W + b, tiled over output features (weights streamed as-is,
# e.g. bf16 for fc1; accumulation in f32)
# ----------------------------------------------------------------------------
def _linear_kernel(x_ref, w_ref, b_ref, o_ref):
    x = x_ref[...].astype(w_ref.dtype)  # tiny tile; cast in-register
    o_ref[...] = (
        jnp.dot(x, w_ref[...], preferred_element_type=jnp.float32) + b_ref[...]
    )


def linear(x, w, b, tn):
    """x: (M, K); w: (K, N) in its stored dtype; b: (N,). Tiles N by `tn`."""
    M, K = x.shape
    _, N = w.shape
    n_pad = (-N) % tn
    if n_pad:
        w = jnp.pad(w, ((0, 0), (0, n_pad)))
        b = jnp.pad(b, (0, n_pad))
    Np = N + n_pad
    b2 = b.reshape(1, Np).astype(jnp.float32)

    out = pl.pallas_call(
        _linear_kernel,
        out_shape=jax.ShapeDtypeStruct((M, Np), jnp.float32),
        grid_spec=pltpu.PrefetchScalarGridSpec(
            num_scalar_prefetch=0,
            grid=(Np // tn,),
            in_specs=[
                pl.BlockSpec((M, K), lambda j: (0, 0)),
                pl.BlockSpec((K, tn), lambda j: (0, j)),
                pl.BlockSpec((1, tn), lambda j: (0, j)),
            ],
            out_specs=pl.BlockSpec((M, tn), lambda j: (0, j)),
        ),
        compiler_params=pltpu.CompilerParams(
            dimension_semantics=("parallel",),        # distinct output block per step
            vmem_limit_bytes=32 * 1024 * 1024,        # fits v7x's 64 MiB physical VMEM
        ),
    )(x.astype(jnp.float32), w, b2)
    return out if n_pad == 0 else out[:, :N]


# ----------------------------------------------------------------------------
# DeepNet forward
# ----------------------------------------------------------------------------
def deepnet_forward(x_nchw, params):
    # Convert PyTorch NCHW input to the kernel's NHWC layout.
    x = jnp.transpose(x_nchw.astype(jnp.float32), (0, 2, 3, 1))       # (B, 28, 28, 1)

    out = conv_relu_pool(x, params["conv1_w"], params["conv1_b"])     # (B, 14, 14, 32)
    out = conv_relu_pool(out, params["conv2_w"], params["conv2_b"])   # (B, 7, 7, 64)

    # Flatten in PyTorch (B, C, H, W) order: 7*7*64 = 3136 features.
    B = out.shape[0]
    out = jnp.transpose(out, (0, 3, 1, 2)).reshape(B, 7 * 7 * 64)

    # TODO(synk): nn.Dropout() is applied as identity (eval mode); train-mode
    # stochastic masking/scaling is not implemented here.

    out = linear(out, params["fc1_w"], params["fc1_b"], tn=1024)      # (B, 10000)

    # fc2 stays in plain XLA: 400 KB of weights and N=10 outputs — a Pallas
    # call (padding N to 128) would cost more than the matmul itself.
    out = (
        jnp.dot(out, params["fc2_w"].astype(jnp.float32),
                preferred_element_type=jnp.float32)
        + params["fc2_b"]
    )
    return out


def init_params(key):
    ks = jax.random.split(key, 8)
    s = 0.02
    return {
        "conv1_w": s * jax.random.normal(ks[0], (5, 5, 1, 32), jnp.float32),
        "conv1_b": s * jax.random.normal(ks[1], (32,), jnp.float32),
        "conv2_w": s * jax.random.normal(ks[2], (5, 5, 32, 64), jnp.float32),
        "conv2_b": s * jax.random.normal(ks[3], (64,), jnp.float32),
        "fc1_w": s * jax.random.normal(ks[4], (7 * 7 * 64, 10000), jnp.float32),
        "fc1_b": s * jax.random.normal(ks[5], (10000,), jnp.float32),
        "fc2_w": s * jax.random.normal(ks[6], (10000, 10), jnp.float32),
        "fc2_b": s * jax.random.normal(ks[7], (10,), jnp.float32),
    }


def prepare_params(params):
    """One-time inference prep: fc1 (3136x10000) dominates HBM traffic, so
    store/stream its weights in bf16 (f32 accumulation in the kernel)."""
    p = dict(params)
    p["fc1_w"] = params["fc1_w"].astype(jnp.bfloat16)
    return p


# ----------------------------------------------------------------------------
# Plain-XLA reference (uses the same bf16 fc1 weights) for a correctness check
# ----------------------------------------------------------------------------
def _reference_forward(x_nchw, params):
    x = jnp.transpose(x_nchw.astype(jnp.float32), (0, 2, 3, 1))

    def conv_block(x, w, b):
        y = jax.lax.conv_general_dilated(
            x, w.astype(jnp.float32), window_strides=(1, 1), padding="SAME",
            dimension_numbers=("NHWC", "HWIO", "NHWC"))
        y = jnp.maximum(y + b, 0.0)
        B, H, W, C = y.shape
        return y.reshape(B, H // 2, 2, W // 2, 2, C).max(axis=(2, 4))

    out = conv_block(x, params["conv1_w"], params["conv1_b"])
    out = conv_block(out, params["conv2_w"], params["conv2_b"])
    B = out.shape[0]
    out = jnp.transpose(out, (0, 3, 1, 2)).reshape(B, -1)
    out = out @ params["fc1_w"].astype(jnp.float32) + params["fc1_b"]
    out = out @ params["fc2_w"].astype(jnp.float32) + params["fc2_b"]
    return out


if __name__ == "__main__":
    key = jax.random.PRNGKey(0)
    pkey, xkey = jax.random.split(key)
    params = prepare_params(init_params(pkey))

    # MNIST-shaped input implied by fc1 (7*7*64): batch=2, 1 channel, 28x28.
    x = jax.random.normal(xkey, (2, 1, 28, 28), jnp.float32)

    fwd = jax.jit(deepnet_forward)
    y = jax.block_until_ready(fwd(x, params))

    assert y.shape == (2, 10), y.shape
    assert bool(jnp.all(jnp.isfinite(y)))

    # Cross-check against the plain-XLA reference (same bf16 fc1 weights).
    y_ref = jax.block_until_ready(jax.jit(_reference_forward)(x, params))
    assert bool(jnp.allclose(y, y_ref, rtol=3e-2, atol=3e-2)), (
        float(jnp.max(jnp.abs(y - y_ref))))

    print("KERNEL_OK")
</pallas_src>

<mosaic_0001>
module attributes {stable_mosaic.version = 11 : i64} {
  func.func @_conv_relu_pool_kernel(%arg0: i32, %arg1: memref<1x4x196x25xf32, #tpu.memory_space<vmem>>, %arg2: memref<25x32xf32, #tpu.memory_space<vmem>>, %arg3: memref<1x32xf32, #tpu.memory_space<vmem>>, %arg4: memref<1x196x32xf32, #tpu.memory_space<vmem>>) attributes {dimension_semantics = [#tpu.dimension_semantics<parallel>], iteration_bounds = array<i64: 2>, scalar_prefetch = 0 : i64, scratch_operands = 0 : i64, tpu.core_type = #tpu.core_type<tc>, window_params = [{transform_indices = @transform_0, window_bounds = array<i64: 1, 4, 196, 25>}, {pipeline_mode = #tpu.pipeline_mode<synchronous>, transform_indices = @transform_1, window_bounds = array<i64: 25, 32>}, {pipeline_mode = #tpu.pipeline_mode<synchronous>, transform_indices = @transform_2, window_bounds = array<i64: 1, 32>}, {transform_indices = @transform_3, window_bounds = array<i64: 1, 196, 32>}]} {
    %c0 = arith.constant 0 : index
    %c0_0 = arith.constant 0 : index
    %0 = vector.load %arg2[%c0, %c0_0] : memref<25x32xf32, #tpu.memory_space<vmem>>, vector<25x32xf32>
    %c0_1 = arith.constant 0 : index
    %c0_2 = arith.constant 0 : index
    %c0_3 = arith.constant 0 : index
    %c0_4 = arith.constant 0 : index
    %1 = vector.load %arg1[%c0_1, %c0_2, %c0_3, %c0_4] : memref<1x4x196x25xf32, #tpu.memory_space<vmem>>, vector<1x1x196x25xf32>
    %2 = vector.shape_cast %1 : vector<1x1x196x25xf32> to vector<196x25xf32>
    %cst = arith.constant dense<0.000000e+00> : vector<196x32xf32>
    %3 = tpu.matmul %2, %0, %cst {dimension_numbers = #tpu.dot_dimension_numbers<[1], [0], [0], [1], [0, 0, 1, 1], [], []>} : vector<196x25xf32>, vector<25x32xf32>, vector<196x32xf32> -> vector<196x32xf32>
    %c0_5 = arith.constant 0 : index
    %c1 = arith.constant 1 : index
    %c0_6 = arith.constant 0 : index
    %c0_7 = arith.constant 0 : index
    %4 = vector.load %arg1[%c0_5, %c1, %c0_6, %c0_7] : memref<1x4x196x25xf32, #tpu.memory_space<vmem>>, vector<1x1x196x25xf32>
    %5 = vector.shape_cast %4 : vector<1x1x196x25xf32> to vector<196x25xf32>
    %cst_8 = arith.constant dense<0.000000e+00> : vector<196x32xf32>
    %6 = tpu.matmul %5, %0, %cst_8 {dimension_numbers = #tpu.dot_dimension_numbers<[1], [0], [0], [1], [0, 0, 1, 1], [], []>} : vector<196x25xf32>, vector<25x32xf32>, vector<196x32xf32> -> vector<196x32xf32>
    %7 = arith.maximumf %3, %6 : vector<196x32xf32>
    %c0_9 = arith.constant 0 : index
    %c2 = arith.constant 2 : index
    %c0_10 = arith.constant 0 : index
    %c0_11 = arith.constant 0 : index
    %8 = vector.load %arg1[%c0_9, %c2, %c0_10, %c0_11] : memref<1x4x196x25xf32, #tpu.memory_space<vmem>>, vector<1x1x196x25xf32>
    %9 = vector.shape_cast %8 : vector<1x1x196x25xf32> to vector<196x25xf32>
    %cst_12 = arith.constant dense<0.000000e+00> : vector<196x32xf32>
    %10 = tpu.matmul %9, %0, %cst_12 {dimension_numbers = #tpu.dot_dimension_numbers<[1], [0], [0], [1], [0, 0, 1, 1], [], []>} : vector<196x25xf32>, vector<25x32xf32>, vector<196x32xf32> -> vector<196x32xf32>
    %11 = arith.maximumf %7, %10 : vector<196x32xf32>
    %c0_13 = arith.constant 0 : index
    %c3 = arith.constant 3 : index
    %c0_14 = arith.constant 0 : index
    %c0_15 = arith.constant 0 : index
    %12 = vector.load %arg1[%c0_13, %c3, %c0_14, %c0_15] : memref<1x4x196x25xf32, #tpu.memory_space<vmem>>, vector<1x1x196x25xf32>
    %13 = vector.shape_cast %12 : vector<1x1x196x25xf32> to vector<196x25xf32>
    %cst_16 = arith.constant dense<0.000000e+00> : vector<196x32xf32>
    %14 = tpu.matmul %13, %0, %cst_16 {dimension_numbers = #tpu.dot_dimension_numbers<[1], [0], [0], [1], [0, 0, 1, 1], [], []>} : vector<196x25xf32>, vector<25x32xf32>, vector<196x32xf32> -> vector<196x32xf32>
    %15 = arith.maximumf %11, %14 : vector<196x32xf32>
    %c0_17 = arith.constant 0 : index
    %c0_18 = arith.constant 0 : index
    %16 = vector.load %arg3[%c0_17, %c0_18] : memref<1x32xf32, #tpu.memory_space<vmem>>, vector<1x32xf32>
    %17 = vector.broadcast %16 : vector<1x32xf32> to vector<196x32xf32>
    %18 = arith.addf %15, %17 : vector<196x32xf32>
    %cst_19 = arith.constant 0.000000e+00 : f32
    %19 = vector.broadcast %cst_19 : f32 to vector<196x32xf32>
    %20 = arith.maximumf %18, %19 : vector<196x32xf32>
    %c0_20 = arith.constant 0 : index
    %c0_21 = arith.constant 0 : index
    %c0_22 = arith.constant 0 : index
    %21 = vector.load %arg4[%c0_20, %c0_21, %c0_22] : memref<1x196x32xf32, #tpu.memory_space<vmem>>, vector<1x196x32xf32>
    %22 = vector.shape_cast %21 : vector<1x196x32xf32> to vector<196x32xf32>
    %23 = vector.shape_cast %20 : vector<196x32xf32> to vector<1x196x32xf32>
    tpu.vector_store %arg4[%c0_20, %c0_21, %c0_22], %23 {strides = array<i32>} : memref<1x196x32xf32, #tpu.memory_space<vmem>>, vector<1x196x32xf32>,
    return
  }
  func.func @transform_0(%arg0: i32) -> (i32, i32, i32, i32) {
    %c0_i32 = arith.constant 0 : i32
    %c0_i32_0 = arith.constant 0 : i32
    %c0_i32_1 = arith.constant 0 : i32
    %c0_i32_2 = arith.constant 0 : i32
    return %arg0, %c0_i32, %c0_i32_0, %c0_i32_1 : i32, i32, i32, i32
  }
  func.func @transform_1(%arg0: i32) -> (i32, i32) {
    %c0_i32 = arith.constant 0 : i32
    %c0_i32_0 = arith.constant 0 : i32
    %c0_i32_1 = arith.constant 0 : i32
    return %c0_i32, %c0_i32_0 : i32, i32
  }
  func.func @transform_2(%arg0: i32) -> (i32, i32) {
    %c0_i32 = arith.constant 0 : i32
    %c0_i32_0 = arith.constant 0 : i32
    %c0_i32_1 = arith.constant 0 : i32
    return %c0_i32, %c0_i32_0 : i32, i32
  }
  func.func @transform_3(%arg0: i32) -> (i32, i32, i32) {
    %c0_i32 = arith.constant 0 : i32
    %c0_i32_0 = arith.constant 0 : i32
    %c0_i32_1 = arith.constant 0 : i32
    return %arg0, %c0_i32, %c0_i32_0 : i32, i32, i32
  }
}

module attributes {stable_mosaic.version = 11 : i64} {
  func.func @_conv_relu_pool_kernel(%arg0: i32, %arg1: memref<1x4x49x800xf32, #tpu.memory_space<vmem>>, %arg2: memref<800x64xf32, #tpu.memory_space<vmem>>, %arg3: memref<1x64xf32, #tpu.memory_space<vmem>>, %arg4: memref<1x49x64xf32, #tpu.memory_space<vmem>>) attributes {dimension_semantics = [#tpu.dimension_semantics<parallel>], iteration_bounds = array<i64: 2>, scalar_prefetch = 0 : i64, scratch_operands = 0 : i64, tpu.core_type = #tpu.core_type<tc>, window_params = [{transform_indices = @transform_0, window_bounds = array<i64: 1, 4, 49, 800>}, {pipeline_mode = #tpu.pipeline_mode<synchronous>, transform_indices = @transform_1, window_bounds = array<i64: 800, 64>}, {pipeline_mode = #tpu.pipeline_mode<synchronous>, transform_indices = @transform_2, window_bounds = array<i64: 1, 64>}, {transform_indices = @transform_3, window_bounds = array<i64: 1, 49, 64>}]} {
    %c0 = arith.constant 0 : index
    %c0_0 = arith.constant 0 : index
    %0 = vector.load %arg2[%c0, %c0_0] : memref<800x64xf32, #tpu.memory_space<vmem>>, vector<800x64xf32>
    %c0_1 = arith.constant 0 : index
    %c0_2 = arith.constant 0 : index
    %c0_3 = arith.constant 0 : index
    %c0_4 = arith.constant 0 : index
    %1 = vector.load %arg1[%c0_1, %c0_2, %c0_3, %c0_4] : memref<1x4x49x800xf32, #tpu.memory_space<vmem>>, vector<1x1x49x800xf32>
    %2 = vector.shape_cast %1 : vector<1x1x49x800xf32> to vector<49x800xf32>
    %cst = arith.constant dense<0.000000e+00> : vector<49x64xf32>
    %3 = tpu.matmul %2, %0, %cst {dimension_numbers = #tpu.dot_dimension_numbers<[1], [0], [0], [1], [0, 0, 1, 1], [], []>} : vector<49x800xf32>, vector<800x64xf32>, vector<49x64xf32> -> vector<49x64xf32>
    %c0_5 = arith.constant 0 : index
    %c1 = arith.constant 1 : index
    %c0_6 = arith.constant 0 : index
    %c0_7 = arith.constant 0 : index
    %4 = vector.load %arg1[%c0_5, %c1, %c0_6, %c0_7] : memref<1x4x49x800xf32, #tpu.memory_space<vmem>>, vector<1x1x49x800xf32>
    %5 = vector.shape_cast %4 : vector<1x1x49x800xf32> to vector<49x800xf32>
    %cst_8 = arith.constant dense<0.000000e+00> : vector<49x64xf32>
    %6 = tpu.matmul %5, %0, %cst_8 {dimension_numbers = #tpu.dot_dimension_numbers<[1], [0], [0], [1], [0, 0, 1, 1], [], []>} : vector<49x800xf32>, vector<800x64xf32>, vector<49x64xf32> -> vector<49x64xf32>
    %7 = arith.maximumf %3, %6 : vector<49x64xf32>
    %c0_9 = arith.constant 0 : index
    %c2 = arith.constant 2 : index
    %c0_10 = arith.constant 0 : index
    %c0_11 = arith.constant 0 : index
    %8 = vector.load %arg1[%c0_9, %c2, %c0_10, %c0_11] : memref<1x4x49x800xf32, #tpu.memory_space<vmem>>, vector<1x1x49x800xf32>
    %9 = vector.shape_cast %8 : vector<1x1x49x800xf32> to vector<49x800xf32>
    %cst_12 = arith.constant dense<0.000000e+00> : vector<49x64xf32>
    %10 = tpu.matmul %9, %0, %cst_12 {dimension_numbers = #tpu.dot_dimension_numbers<[1], [0], [0], [1], [0, 0, 1, 1], [], []>} : vector<49x800xf32>, vector<800x64xf32>, vector<49x64xf32> -> vector<49x64xf32>
    %11 = arith.maximumf %7, %10 : vector<49x64xf32>
    %c0_13 = arith.constant 0 : index
    %c3 = arith.constant 3 : index
    %c0_14 = arith.constant 0 : index
    %c0_15 = arith.constant 0 : index
    %12 = vector.load %arg1[%c0_13, %c3, %c0_14, %c0_15] : memref<1x4x49x800xf32, #tpu.memory_space<vmem>>, vector<1x1x49x800xf32>
    %13 = vector.shape_cast %12 : vector<1x1x49x800xf32> to vector<49x800xf32>
    %cst_16 = arith.constant dense<0.000000e+00> : vector<49x64xf32>
    %14 = tpu.matmul %13, %0, %cst_16 {dimension_numbers = #tpu.dot_dimension_numbers<[1], [0], [0], [1], [0, 0, 1, 1], [], []>} : vector<49x800xf32>, vector<800x64xf32>, vector<49x64xf32> -> vector<49x64xf32>
    %15 = arith.maximumf %11, %14 : vector<49x64xf32>
    %c0_17 = arith.constant 0 : index
    %c0_18 = arith.constant 0 : index
    %16 = vector.load %arg3[%c0_17, %c0_18] : memref<1x64xf32, #tpu.memory_space<vmem>>, vector<1x64xf32>
    %17 = vector.broadcast %16 : vector<1x64xf32> to vector<49x64xf32>
    %18 = arith.addf %15, %17 : vector<49x64xf32>
    %cst_19 = arith.constant 0.000000e+00 : f32
    %19 = vector.broadcast %cst_19 : f32 to vector<49x64xf32>
    %20 = arith.maximumf %18, %19 : vector<49x64xf32>
    %c0_20 = arith.constant 0 : index
    %c0_21 = arith.constant 0 : index
    %c0_22 = arith.constant 0 : index
    %21 = vector.load %arg4[%c0_20, %c0_21, %c0_22] : memref<1x49x64xf32, #tpu.memory_space<vmem>>, vector<1x49x64xf32>
    %22 = vector.shape_cast %21 : vector<1x49x64xf32> to vector<49x64xf32>
    %23 = vector.shape_cast %20 : vector<49x64xf32> to vector<1x49x64xf32>
    tpu.vector_store %arg4[%c0_20, %c0_21, %c0_22], %23 {strides = array<i32>} : memref<1x49x64xf32, #tpu.memory_space<vmem>>, vector<1x49x64xf32>,
    return
  }
  func.func @transform_0(%arg0: i32) -> (i32, i32, i32, i32) {
    %c0_i32 = arith.constant 0 : i32
    %c0_i32_0 = arith.constant 0 : i32
    %c0_i32_1 = arith.constant 0 : i32
    %c0_i32_2 = arith.constant 0 : i32
    return %arg0, %c0_i32, %c0_i32_0, %c0_i32_1 : i32, i32, i32, i32
  }
  func.func @transform_1(%arg0: i32) -> (i32, i32) {
    %c0_i32 = arith.constant 0 : i32
    %c0_i32_0 = arith.constant 0 : i32
    %c0_i32_1 = arith.constant 0 : i32
    return %c0_i32, %c0_i32_0 : i32, i32
  }
  func.func @transform_2(%arg0: i32) -> (i32, i32) {
    %c0_i32 = arith.constant 0 : i32
    %c0_i32_0 = arith.constant 0 : i32
    %c0_i32_1 = arith.constant 0 : i32
    return %c0_i32, %c0_i32_0 : i32, i32
  }
  func.func @transform_3(%arg0: i32) -> (i32, i32, i32) {
    %c0_i32 = arith.constant 0 : i32
    %c0_i32_0 = arith.constant 0 : i32
    %c0_i32_1 = arith.constant 0 : i32
    return %arg0, %c0_i32, %c0_i32_0 : i32, i32, i32
  }
}

module attributes {stable_mosaic.version = 11 : i64} {
  func.func @_linear_kernel(%arg0: i32, %arg1: memref<2x3136xf32, #tpu.memory_space<vmem>>, %arg2: memref<3136x1024xbf16, #tpu.memory_space<vmem>>, %arg3: memref<1x1024xf32, #tpu.memory_space<vmem>>, %arg4: memref<2x1024xf32, #tpu.memory_space<vmem>>) attributes {dimension_semantics = [#tpu.dimension_semantics<parallel>], iteration_bounds = array<i64: 10>, scalar_prefetch = 0 : i64, scratch_operands = 0 : i64, tpu.core_type = #tpu.core_type<tc>, window_params = [{pipeline_mode = #tpu.pipeline_mode<synchronous>, transform_indices = @transform_0, window_bounds = array<i64: 2, 3136>}, {transform_indices = @transform_1, window_bounds = array<i64: 3136, 1024>}, {transform_indices = @transform_2, window_bounds = array<i64: 1, 1024>}, {transform_indices = @transform_3, window_bounds = array<i64: 2, 1024>}]} {
    %c0 = arith.constant 0 : index
    %c0_0 = arith.constant 0 : index
    %0 = vector.load %arg1[%c0, %c0_0] : memref<2x3136xf32, #tpu.memory_space<vmem>>, vector<2x3136xf32>
    %1 = arith.truncf %0 : vector<2x3136xf32> to vector<2x3136xbf16>
    %c0_1 = arith.constant 0 : index
    %c0_2 = arith.constant 0 : index
    %2 = vector.load %arg2[%c0_1, %c0_2] : memref<3136x1024xbf16, #tpu.memory_space<vmem>>, vector<3136x1024xbf16>
    %cst = arith.constant dense<0.000000e+00> : vector<2x1024xf32>
    %3 = tpu.matmul %1, %2, %cst {dimension_numbers = #tpu.dot_dimension_numbers<[1], [0], [0], [1], [0, 0, 1, 1], [], []>} : vector<2x3136xbf16>, vector<3136x1024xbf16>, vector<2x1024xf32> -> vector<2x1024xf32>
    %c0_3 = arith.constant 0 : index
    %c0_4 = arith.constant 0 : index
    %4 = vector.load %arg3[%c0_3, %c0_4] : memref<1x1024xf32, #tpu.memory_space<vmem>>, vector<1x1024xf32>
    %5 = vector.broadcast %4 : vector<1x1024xf32> to vector<2x1024xf32>
    %6 = arith.addf %3, %5 : vector<2x1024xf32>
    %c0_5 = arith.constant 0 : index
    %c0_6 = arith.constant 0 : index
    %7 = vector.load %arg4[%c0_5, %c0_6] : memref<2x1024xf32, #tpu.memory_space<vmem>>, vector<2x1024xf32>
    tpu.vector_store %arg4[%c0_5, %c0_6], %6 {strides = array<i32>} : memref<2x1024xf32, #tpu.memory_space<vmem>>, vector<2x1024xf32>,
    return
  }
  func.func @transform_0(%arg0: i32) -> (i32, i32) {
    %c0_i32 = arith.constant 0 : i32
    %c0_i32_0 = arith.constant 0 : i32
    %c0_i32_1 = arith.constant 0 : i32
    return %c0_i32, %c0_i32_0 : i32, i32
  }
  func.func @transform_1(%arg0: i32) -> (i32, i32) {
    %c0_i32 = arith.constant 0 : i32
    %c0_i32_0 = arith.constant 0 : i32
    return %c0_i32, %arg0 : i32, i32
  }
  func.func @transform_2(%arg0: i32) -> (i32, i32) {
    %c0_i32 = arith.constant 0 : i32
    %c0_i32_0 = arith.constant 0 : i32
    return %c0_i32, %arg0 : i32, i32
  }
  func.func @transform_3(%arg0: i32) -> (i32, i32) {
    %c0_i32 = arith.constant 0 : i32
    %c0_i32_0 = arith.constant 0 : i32
    return %c0_i32, %arg0 : i32, i32
  }
}

</mosaic_0001>

<bundles_post_ra>
// kernel: deepnet_forward.3
= control target key start
LH: loop header
LB: loop body
LE: loop exit
PB: predicated region body
PF: predicated region fallthrough
CT: control target
= control target key end

     0   :  { %s2268_s12 = smov 0   ;;  %s3022_s0 = inlined_call_operand.vmem [shape: f32[2,4,196,25], index: 0, kind: input, shape index: {}]   ;;  %s3023_s1 = inlined_call_operand.vmem [shape: f32[25,32], index: 1, kind: input, shape index: {}]   ;;  %s3024_s2 = inlined_call_operand.vmem [shape: f32[1,32], index: 2, kind: input, shape index: {}]   ;;  %s3025_s3 = inlined_call_operand.vmem [shape: f32[2,196,32], index: 3, kind: output, shape index: {}]  }
   0x1 LB: > { %s1557_s13 = sadd.s32 4294967295, %s2242_s12   ;;  %p1561_p0 = scmp.ge.s32.totalorder %s2242_s12, 1  ;;  %s2242_s12 = sphi %s2268_s12, %s13_s12  }
   0x2   : > { %p137_p1 = scmp.lt.s32.totalorder %s2242_s12, 3 }
   0x4   : > { %p138_p2 = pnand %p1561_p0, %p137_p1 }
   0x5   : > { %v171_v0 = vld [vmem:[%s3023_s1] sm:$0xff] (!%p138_p2)  ;;  %v172_v1 = vld [vmem:[%s3023_s1 + $0x8] sm:$0xff] (!%p138_p2)  ;;  %v173_v2 = vld [vmem:[%s3023_s1 + $0x10] sm:$0xff] (!%p138_p2)  ;;  %vm276_vm0 = vcmask (!%p138_p2), 1040384   ;;  %v2244_v3 = vmov (!%p138_p2), 0.0|0.0   ;;  %p161_p3 = scmp.lt.s32.totalorder (!%p138_p2), %s1557_s13, 1 }
   0x6   : > { %141 = sbr.rel (%p138_p2) target bundleno = 435 (0x1b3), region = 32  ;;  %2194 = vmatprep.subr.bf16.mxu0 (!%p138_p2), %v2244_v3  ;;  %v2195_v4 = vpack.c.bf16 (!%p138_p2), %v172_v1, %v171_v0  ;;  %2201 = vmatprep.subr.bf16.mxu1 (!%p138_p2), %v2244_v3  ;;  %v174_v5 = vld [vmem:[%s3023_s1 + $0x18] sm:$0x1] (!%p138_p2)  ;;  %vm2245_vm1 = vmmov (!%p138_p2), 0   ;;  %v2246_v6 = vmov (!%p138_p2), 0.0   ;;  %vm2247_vm2 = vmmov (!%p138_p2), 1  }
   0x7   : > { %1870 = vmatprep.mubr.msk.f32.mxu0 (!%p138_p2), %vm2245_vm1, %v2246_v6  ;;  %1953 = vmatprep.mubr.msk.f32.mxu1 (!%p138_p2), %vm2245_vm1, %v2246_v6  ;;  %v2198_v7 = vpack.c.bf16 (!%p138_p2), %v174_v5, %v173_v2  ;;  %vm2295_vm3 = vmpackc.low (!%p138_p2), %vm276_vm0, %vm2247_vm2  ;;  %vm200_vm4 = vcmask (!%p138_p2), 203776   ;;  %vm1475_vm5 = vcmask (!%p138_p2), 261120   ;;  %vm1500_vm6 = vcmask (!%p138_p2), 257024  }
   0x8   : > { %2196 = vmatpush3.bf16.msra.mxu0 (!%p138_p2), %v2195_v4  ;;  %2203 = vmatpush3.bf16.msra.mxu1 (!%p138_p2), %v2195_v4 }
   0x9   : > { %2197 = vmatprep.subr.bf16.mxu0 (!%p138_p2), %v2244_v3  ;;  %2204 = vmatprep.subr.bf16.mxu1 (!%p138_p2), %v2244_v3 }
   0xc   : > { %2200 = vmatpush3.bf16.msk.msra.mxu0 (!%p138_p2), %vm2295_vm3, %v2198_v7  ;;  %2207 = vmatpush3.bf16.msk.msra.mxu1 (!%p138_p2), %vm2295_vm3, %v2198_v7 }
   0xd   : > { %s3052_s13 = smov (!%p161_p3, %s1557_s13), 1  ;;  %2208 = vmatprep.subr.bf16.mxu0 %v2244_v3  ;;  %2215 = vmatprep.subr.bf16.mxu1 %v2244_v3 }
   0xe   : > { %s2222_s22 = smul.u32 800, %s3052_s13 }
   0xf   : > { %s2223_s26 = smul.u32 200, %s3052_s13 }
  0x10   : > { %s2307_s25 = scalar_lea.vmem %s3022_s0, %s2222_s22 }
  0x11   : > { %v175_v9 = vld [vmem:[%s2307_s25] sm:$0xff]  ;;  %v1590_v10 = vld [vmem:[%s2307_s25 + $0xc8] sm:$0xff]  ;;  %v1591_v12 = vld [vmem:[%s2307_s25 + $0xd0] sm:$0xff]  ;;  %s2875_s4 = scalar_lea.vmem %s3025_s3, %s2223_s26 }
  0x12   : > { %1871 = vmatmul.mubr.msk.f32.vlgmr.msra.gmra.mrb[0].mxu0 %vm200_vm4, %v175_v9  ;;  %1954 = vmatmul.mubr.msk.f32.vlgmr.msra.gmra.mrb[0].mxu1 %vm200_vm4, %v1590_v10  ;;  %v176_v11 = vld [vmem:[%s2307_s25 + $0x8] sm:$0xff]  ;;  %v177_v13 = vld [vmem:[%s2307_s25 + $0x10] sm:$0xff]  ;;  %v1592_v14 = vld [vmem:[%s2307_s25 + $0xd8] sm:$0xff] }
  0x13   : > { %2210 = vmatpush3.bf16.msra.mxu0 %v2195_v4  ;;  %1873 = vmatprep.mubr.msk.f32.mxu0 %vm2245_vm1, %v2246_v6  ;;  %v178_v15 = vld [vmem:[%s2307_s25 + $0x18] sm:$0xff]  ;;  %v1593_v16 = vld [vmem:[%s2307_s25 + $0xe0] sm:$0xff]  ;;  %v1594_v18 = vld [vmem:[%s2307_s25 + $0xe8] sm:$0xff] }
  0x14   : > { %2217 = vmatpush3.bf16.msra.mxu1 %v2195_v4  ;;  %1956 = vmatprep.mubr.msk.f32.mxu1 %vm2245_vm1, %v2246_v6  ;;  %v179_v17 = vld [vmem:[%s2307_s25 + $0x20] sm:$0xff]  ;;  %v180_v19 = vld [vmem:[%s2307_s25 + $0x28] sm:$0xff]  ;;  %v1595_v20 = vld [vmem:[%s2307_s25 + $0xf0] sm:$0xff] }
  0x15   : > { %2211 = vmatprep.subr.bf16.mxu0 %v2244_v3  ;;  %2218 = vmatprep.subr.bf16.mxu1 %v2244_v3  ;;  %v181_v21 = vld [vmem:[%s2307_s25 + $0x30] sm:$0xff]  ;;  %v1596_v22 = vld [vmem:[%s2307_s25 + $0xf8] sm:$0xff]  ;;  %v1597_v24 = vld [vmem:[%s2307_s25 + $0x100] sm:$0xff] }
  0x16   : > { %1874 = vmatmul.mubr.msk.f32.gmra.mrb[2].mxu0 %vm200_vm4, %v176_v11  ;;  %1957 = vmatmul.mubr.msk.f32.gmra.mrb[2].mxu1 %vm200_vm4, %v1591_v12  ;;  %v182_v23 = vld [vmem:[%s2307_s25 + $0x38] sm:$0xff]  ;;  %v183_v25 = vld [vmem:[%s2307_s25 + $0x40] sm:$0xff]  ;;  %v1598_v26 = vld [vmem:[%s2307_s25 + $0x108] sm:$0xff] }
  0x17   : > { %1876 = vmatprep.mubr.msk.f32.mxu0 %vm2245_vm1, %v2246_v6  ;;  %1959 = vmatprep.mubr.msk.f32.mxu1 %vm2245_vm1, %v2246_v6  ;;  %v184_v27 = vld [vmem:[%s2307_s25 + $0x48] sm:$0xff]  ;;  %v1599_v28 = vld [vmem:[%s2307_s25 + $0x110] sm:$0xff]  ;;  %v1600_v30 = vld [vmem:[%s2307_s25 + $0x118] sm:$0xff] }
  0x18   : > { %2214 = vmatpush3.bf16.msk.msra.mxu0 %vm2295_vm3, %v2198_v7  ;;  %2221 = vmatpush3.bf16.msk.msra.mxu1 %vm2295_vm3, %v2198_v7  ;;  %v185_v29 = vld [vmem:[%s2307_s25 + $0x50] sm:$0xff]  ;;  %v186_v31 = vld [vmem:[%s2307_s25 + $0x58] sm:$0xff]  ;;  %v1601_v32 = vld [vmem:[%s2307_s25 + $0x120] sm:$0xff] }
  0x19   : > { %v187_v33 = vld [vmem:[%s2307_s25 + $0x60] sm:$0xff]  ;;  %v1602_v34 = vld [vmem:[%s2307_s25 + $0x128] sm:$0xff]  ;;  %v1603_v36 = vld [vmem:[%s2307_s25 + $0x130] sm:$0xff] }
  0x1a   : > { %1877 = vmatmul.mubr.msk.f32.gmra.mrb[4].mxu0 %vm200_vm4, %v177_v13  ;;  %1960 = vmatmul.mubr.msk.f32.gmra.mrb[4].mxu1 %vm200_vm4, %v1592_v14  ;;  %v188_v35 = vld [vmem:[%s2307_s25 + $0x68] sm:$0xff]  ;;  %v189_v37 = vld [vmem:[%s2307_s25 + $0x70] sm:$0xff]  ;;  %v1604_v38 = vld [vmem:[%s2307_s25 + $0x138] sm:$0xff] }
  0x1b   : > { %1879 = vmatprep.mubr.msk.f32.mxu0 %vm2245_vm1, %v2246_v6  ;;  %1962 = vmatprep.mubr.msk.f32.mxu1 %vm2245_vm1, %v2246_v6  ;;  %v190_v39 = vld [vmem:[%s2307_s25 + $0x78] sm:$0xff]  ;;  %v1605_v40 = vld [vmem:[%s2307_s25 + $0x140] sm:$0xff]  ;;  %v1606_v42 = vld [vmem:[%s2307_s25 + $0x148] sm:$0xff] }
  0x1c   : > { %v191_v41 = vld [vmem:[%s2307_s25 + $0x80] sm:$0xff]  ;;  %v192_v43 = vld [vmem:[%s2307_s25 + $0x88] sm:$0xff]  ;;  %v1607_v44 = vld [vmem:[%s2307_s25 + $0x150] sm:$0xff] }
  0x1d   : > { %v193_v45 = vld [vmem:[%s2307_s25 + $0x90] sm:$0xff]  ;;  %v1608_v46 = vld [vmem:[%s2307_s25 + $0x158] sm:$0xff]  ;;  %v1609_v48 = vld [vmem:[%s2307_s25 + $0x160] sm:$0xff] }
  0x1e   : > { %1880 = vmatmul.mubr.msk.f32.gmra.mrb[6].mxu0 %vm200_vm4, %v178_v15  ;;  %1963 = vmatmul.mubr.msk.f32.gmra.mrb[6].mxu1 %vm200_vm4, %v1593_v16  ;;  %v194_v47 = vld [vmem:[%s2307_s25 + $0x98] sm:$0xff]  ;;  %v195_v49 = vld [vmem:[%s2307_s25 + $0xa0] sm:$0xff]  ;;  %v1610_v50 = vld [vmem:[%s2307_s25 + $0x168] sm:$0xff] }
  0x1f   : > { %1882 = vmatprep.mubr.msk.f32.mxu0 %vm2245_vm1, %v2246_v6  ;;  %1965 = vmatprep.mubr.msk.f32.mxu1 %vm2245_vm1, %v2246_v6  ;;  %v196_v51 = vld [vmem:[%s2307_s25 + $0xa8] sm:$0xff]  ;;  %v1611_v52 = vld [vmem:[%s2307_s25 + $0x170] sm:$0xff]  ;;  %v1612_v54 = vld [vmem:[%s2307_s25 + $0x178] sm:$0xff] }
  0x20   : > { %v197_v53 = vld [vmem:[%s2307_s25 + $0xb0] sm:$0xff]  ;;  %v198_v55 = vld [vmem:[%s2307_s25 + $0xb8] sm:$0xff]  ;;  %v1613_v56 = vld [vmem:[%s2307_s25 + $0x180] sm:$0xff] }
  0x21   : > { %v199_v57 = vld [vmem:[%s2307_s25 + $0xc0] sm:$0xf]  ;;  %v1614_v58 = vld [vmem:[%s2307_s25 + $0x188] sm:$0xf]  ;;  %v1641_v59 = vld [vmem:[%s2307_s25 + $0x190] sm:$0xff] }
  0x22   : > { %1883 = vmatmul.mubr.msk.f32.gmra.mrb[8].mxu0 %vm200_vm4, %v179_v17  ;;  %1966 = vmatmul.mubr.msk.f32.gmra.mrb[8].mxu1 %vm200_vm4, %v1594_v18  ;;  %v1692_v60 = vld [vmem:[%s2307_s25 + $0x258] sm:$0xff]  ;;  %v1693_v62 = vld [vmem:[%s2307_s25 + $0x260] sm:$0xff]  ;;  %v1694_v0 = vld [vmem:[%s2307_s25 + $0x268] sm:$0xff] }
  0x23   : > { %1885 = vmatprep.mubr.msk.f32.mxu0 %vm2245_vm1, %v2246_v6  ;;  %1968 = vmatprep.mubr.msk.f32.mxu1 %vm2245_vm1, %v2246_v6  ;;  %v1642_v61 = vld [vmem:[%s2307_s25 + $0x198] sm:$0xff]  ;;  %v1643_v63 = vld [vmem:[%s2307_s25 + $0x1a0] sm:$0xff]  ;;  %v1644_v1 = vld [vmem:[%s2307_s25 + $0x1a8] sm:$0xff] }
  0x24   : > { %v1695_v2 = vld [vmem:[%s2307_s25 + $0x270] sm:$0xff]  ;;  %v1696_v4 = vld [vmem:[%s2307_s25 + $0x278] sm:$0xff]  ;;  %v1697_v7 = vld [vmem:[%s2307_s25 + $0x280] sm:$0xff] }
  0x25   : > { %v1645_v3 = vld [vmem:[%s2307_s25 + $0x1b0] sm:$0xff]  ;;  %v1646_v5 = vld [vmem:[%s2307_s25 + $0x1b8] sm:$0xff]  ;;  %v1647_v8 = vld [vmem:[%s2307_s25 + $0x1c0] sm:$0xff] }
  0x26   : > { %1886 = vmatmul.mubr.msk.f32.gmra.mrb[10].mxu0 %vm200_vm4, %v180_v19  ;;  %1969 = vmatmul.mubr.msk.f32.gmra.mrb[10].mxu1 %vm200_vm4, %v1595_v20  ;;  %v1698_v9 = vld [vmem:[%s2307_s25 + $0x288] sm:$0xff]  ;;  %v1699_v11 = vld [vmem:[%s2307_s25 + $0x290] sm:$0xff]  ;;  %v1700_v13 = vld [vmem:[%s2307_s25 + $0x298] sm:$0xff] }
  0x27   : > { %1888 = vmatprep.mubr.msk.f32.mxu0 %vm2245_vm1, %v2246_v6  ;;  %1971 = vmatprep.mubr.msk.f32.mxu1 %vm2245_vm1, %v2246_v6  ;;  %v1648_v10 = vld [vmem:[%s2307_s25 + $0x1c8] sm:$0xff]  ;;  %v1649_v12 = vld [vmem:[%s2307_s25 + $0x1d0] sm:$0xff]  ;;  %v1650_v14 = vld [vmem:[%s2307_s25 + $0x1d8] sm:$0xff] }
  0x28   : > { %v1701_v15 = vld [vmem:[%s2307_s25 + $0x2a0] sm:$0xff]  ;;  %v1702_v17 = vld [vmem:[%s2307_s25 + $0x2a8] sm:$0xff]  ;;  %v1703_v19 = vld [vmem:[%s2307_s25 + $0x2b0] sm:$0xff] }
  0x29   : > { %v1651_v16 = vld [vmem:[%s2307_s25 + $0x1e0] sm:$0xff]  ;;  %v1652_v18 = vld [vmem:[%s2307_s25 + $0x1e8] sm:$0xff]  ;;  %v1653_v20 = vld [vmem:[%s2307_s25 + $0x1f0] sm:$0xff] }
  0x2a   : > { %1889 = vmatmul.mubr.msk.f32.gmra.mrb[12].mxu0 %vm200_vm4, %v181_v21  ;;  %1972 = vmatmul.mubr.msk.f32.gmra.mrb[12].mxu1 %vm200_vm4, %v1596_v22  ;;  %v1704_v21 = vld [vmem:[%s2307_s25 + $0x2b8] sm:$0xff] }
  0x2b   : > { %1891 = vmatprep.mubr.msk.f32.mxu0 %vm2245_vm1, %v2246_v6  ;;  %1974 = vmatprep.mubr.msk.f32.mxu1 %vm2245_vm1, %v2246_v6  ;;  %v1654_v22 = vld [vmem:[%s2307_s25 + $0x1f8] sm:$0xff] }
  0x2e   : > { %1892 = vmatmul.mubr.msk.f32.gmra.mrb[14].mxu0 %vm200_vm4, %v182_v23  ;;  %1975 = vmatmul.mubr.msk.f32.gmra.mrb[14].mxu1 %vm200_vm4, %v1597_v24  ;;  %v1705_v23 = vld [vmem:[%s2307_s25 + $0x2c0] sm:$0xff] }
  0x2f   : > { %1894 = vmatprep.mubr.msk.f32.mxu0 %vm2245_vm1, %v2246_v6  ;;  %1977 = vmatprep.mubr.msk.f32.mxu1 %vm2245_vm1, %v2246_v6  ;;  %v1655_v24 = vld [vmem:[%s2307_s25 + $0x200] sm:$0xff] }
  0x32   : > { %1895 = vmatmul.mubr.msk.f32.gmra.mrb[16].mxu0 %vm200_vm4, %v183_v25  ;;  %1978 = vmatmul.mubr.msk.f32.gmra.mrb[16].mxu1 %vm200_vm4, %v1598_v26  ;;  %v1706_v25 = vld [vmem:[%s2307_s25 + $0x2c8] sm:$0xff] }
  0x33   : > { %1897 = vmatprep.mubr.msk.f32.mxu0 %vm2245_vm1, %v2246_v6  ;;  %1980 = vmatprep.mubr.msk.f32.mxu1 %vm2245_vm1, %v2246_v6  ;;  %v1656_v26 = vld [vmem:[%s2307_s25 + $0x208] sm:$0xff] }
  0x36   : > { %1898 = vmatmul.mubr.msk.f32.gmra.mrb[18].mxu0 %vm200_vm4, %v184_v27  ;;  %1981 = vmatmul.mubr.msk.f32.gmra.mrb[18].mxu1 %vm200_vm4, %v1599_v28  ;;  %v1707_v27 = vld [vmem:[%s2307_s25 + $0x2d0] sm:$0xff] }
  0x37   : > { %1900 = vmatprep.mubr.msk.f32.mxu0 %vm2245_vm1, %v2246_v6  ;;  %1983 = vmatprep.mubr.msk.f32.mxu1 %vm2245_vm1, %v2246_v6  ;;  %v1657_v28 = vld [vmem:[%s2307_s25 + $0x210] sm:$0xff] }
  0x3a   : > { %1901 = vmatmul.mubr.msk.f32.gmra.mrb[20].mxu0 %vm200_vm4, %v185_v29  ;;  %1984 = vmatmul.mubr.msk.f32.gmra.mrb[20].mxu1 %vm200_vm4, %v1600_v30  ;;  %v1708_v29 = vld [vmem:[%s2307_s25 + $0x2d8] sm:$0xff] }
  0x3b   : > { %1903 = vmatprep.mubr.msk.f32.mxu0 %vm2245_vm1, %v2246_v6  ;;  %1986 = vmatprep.mubr.msk.f32.mxu1 %vm2245_vm1, %v2246_v6  ;;  %v1658_v30 = vld [vmem:[%s2307_s25 + $0x218] sm:$0xff] }
  0x3e   : > { %1904 = vmatmul.mubr.msk.f32.gmra.mrb[22].mxu0 %vm200_vm4, %v186_v31  ;;  %1987 = vmatmul.mubr.msk.f32.gmra.mrb[22].mxu1 %vm200_vm4, %v1601_v32  ;;  %v1709_v31 = vld [vmem:[%s2307_s25 + $0x2e0] sm:$0xff] }
  0x3f   : > { %1906 = vmatprep.mubr.msk.f32.mxu0 %vm2245_vm1, %v2246_v6  ;;  %1989 = vmatprep.mubr.msk.f32.mxu1 %vm2245_vm1, %v2246_v6  ;;  %v1659_v32 = vld [vmem:[%s2307_s25 + $0x220] sm:$0xff] }
  0x42   : > { %1907 = vmatmul.mubr.msk.f32.gmra.mrb[24].mxu0 %vm200_vm4, %v187_v33  ;;  %1990 = vmatmul.mubr.msk.f32.gmra.mrb[24].mxu1 %vm200_vm4, %v1602_v34  ;;  %v1710_v33 = vld [vmem:[%s2307_s25 + $0x2e8] sm:$0xff] }
  0x43   : > { %1909 = vmatprep.mubr.msk.f32.mxu0 %vm2245_vm1, %v2246_v6  ;;  %1992 = vmatprep.mubr.msk.f32.mxu1 %vm2245_vm1, %v2246_v6  ;;  %v1660_v34 = vld [vmem:[%s2307_s25 + $0x228] sm:$0xff] }
  0x46   : > { %1910 = vmatmul.mubr.msk.f32.gmra.mrb[26].mxu0 %vm200_vm4, %v188_v35  ;;  %1993 = vmatmul.mubr.msk.f32.gmra.mrb[26].mxu1 %vm200_vm4, %v1603_v36  ;;  %v1711_v35 = vld [vmem:[%s2307_s25 + $0x2f0] sm:$0xff] }
  0x47   : > { %1912 = vmatprep.mubr.msk.f32.mxu0 %vm2245_vm1, %v2246_v6  ;;  %1995 = vmatprep.mubr.msk.f32.mxu1 %vm2245_vm1, %v2246_v6  ;;  %v1661_v36 = vld [vmem:[%s2307_s25 + $0x230] sm:$0xff] }
  0x4a   : > { %1913 = vmatmul.mubr.msk.f32.gmra.mrb[28].mxu0 %vm200_vm4, %v189_v37  ;;  %1996 = vmatmul.mubr.msk.f32.gmra.mrb[28].mxu1 %vm200_vm4, %v1604_v38  ;;  %v1712_v37 = vld [vmem:[%s2307_s25 + $0x2f8] sm:$0xff] }
  0x4b   : > { %1915 = vmatprep.mubr.msk.f32.mxu0 %vm2245_vm1, %v2246_v6  ;;  %1998 = vmatprep.mubr.msk.f32.mxu1 %vm2245_vm1, %v2246_v6  ;;  %v1662_v38 = vld [vmem:[%s2307_s25 + $0x238] sm:$0xff] }
  0x4e   : > { %1916 = vmatmul.mubr.msk.f32.gmra.mrb[30].mxu0 %vm200_vm4, %v190_v39  ;;  %1999 = vmatmul.mubr.msk.f32.gmra.mrb[30].mxu1 %vm200_vm4, %v1605_v40  ;;  %v1713_v39 = vld [vmem:[%s2307_s25 + $0x300] sm:$0xff] }
  0x4f   : > { %1918 = vmatprep.mubr.msk.f32.mxu0 %vm2245_vm1, %v2246_v6  ;;  %2001 = vmatprep.mubr.msk.f32.mxu1 %vm2245_vm1, %v2246_v6  ;;  %v1663_v40 = vld [vmem:[%s2307_s25 + $0x240] sm:$0xff] }
  0x52   : > { %1919 = vmatmul.mubr.msk.f32.gmra.mrb[32].mxu0 %vm200_vm4, %v191_v41  ;;  %2002 = vmatmul.mubr.msk.f32.gmra.mrb[32].mxu1 %vm200_vm4, %v1606_v42  ;;  %v1714_v41 = vld [vmem:[%s2307_s25 + $0x308] sm:$0xff] }
  0x53   : > { %1921 = vmatprep.mubr.msk.f32.mxu0 %vm2245_vm1, %v2246_v6  ;;  %2004 = vmatprep.mubr.msk.f32.mxu1 %vm2245_vm1, %v2246_v6  ;;  %v1664_v42 = vld [vmem:[%s2307_s25 + $0x248] sm:$0xff] }
  0x56   : > { %1922 = vmatmul.mubr.msk.f32.gmra.mrb[34].mxu0 %vm200_vm4, %v192_v43  ;;  %2005 = vmatmul.mubr.msk.f32.gmra.mrb[34].mxu1 %vm200_vm4, %v1607_v44  ;;  %v1715_v43 = vld [vmem:[%s2307_s25 + $0x310] sm:$0xff] }
  0x57   : > { %1924 = vmatprep.mubr.msk.f32.mxu0 %vm2245_vm1, %v2246_v6  ;;  %2007 = vmatprep.mubr.msk.f32.mxu1 %vm2245_vm1, %v2246_v6  ;;  %v1665_v44 = vld [vmem:[%s2307_s25 + $0x250] sm:$0xf] }
  0x5a   : > { %1925 = vmatmul.mubr.msk.f32.gmra.mrb[36].mxu0 %vm200_vm4, %v193_v45  ;;  %2008 = vmatmul.mubr.msk.f32.gmra.mrb[36].mxu1 %vm200_vm4, %v1608_v46  ;;  %v1716_v45 = vld [vmem:[%s2307_s25 + $0x318] sm:$0xf] }
  0x5b   : > { %1927 = vmatprep.mubr.msk.f32.mxu0 %vm2245_vm1, %v2246_v6  ;;  %2010 = vmatprep.mubr.msk.f32.mxu1 %vm2245_vm1, %v2246_v6 }
  0x5e   : > { %1928 = vmatmul.mubr.msk.f32.gmra.mrb[38].mxu0 %vm200_vm4, %v194_v47  ;;  %2011 = vmatmul.mubr.msk.f32.gmra.mrb[38].mxu1 %vm200_vm4, %v1609_v48 }
  0x5f   : > { %1930 = vmatprep.mubr.msk.f32.mxu0 %vm2245_vm1, %v2246_v6  ;;  %2013 = vmatprep.mubr.msk.f32.mxu1 %vm2245_vm1, %v2246_v6 }
  0x62   : > { %1931 = vmatmul.mubr.msk.f32.gmra.mrb[40].mxu0 %vm200_vm4, %v195_v49  ;;  %2014 = vmatmul.mubr.msk.f32.gmra.mrb[40].mxu1 %vm200_vm4, %v1610_v50 }
  0x63   : > { %1933 = vmatprep.mubr.msk.f32.mxu0 %vm2245_vm1, %v2246_v6  ;;  %2016 = vmatprep.mubr.msk.f32.mxu1 %vm2245_vm1, %v2246_v6 }
  0x66   : > { %1934 = vmatmul.mubr.msk.f32.gmra.mrb[42].mxu0 %vm200_vm4, %v196_v51  ;;  %2017 = vmatmul.mubr.msk.f32.gmra.mrb[42].mxu1 %vm200_vm4, %v1611_v52 }
  0x67   : > { %1936 = vmatprep.mubr.msk.f32.mxu0 %vm2245_vm1, %v2246_v6  ;;  %2019 = vmatprep.mubr.msk.f32.mxu1 %vm2245_vm1, %v2246_v6 }
  0x6a   : > { %1937 = vmatmul.mubr.msk.f32.gmra.mrb[44].mxu0 %vm200_vm4, %v197_v53  ;;  %2020 = vmatmul.mubr.msk.f32.gmra.mrb[44].mxu1 %vm200_vm4, %v1612_v54 }
  0x6b   : > { %1939 = vmatprep.mubr.msk.f32.mxu0 %vm2245_vm1, %v2246_v6  ;;  %2022 = vmatprep.mubr.msk.f32.mxu1 %vm2245_vm1, %v2246_v6 }
  0x6e   : > { %1940 = vmatmul.mubr.msk.f32.gmra.mrb[46].mxu0 %vm200_vm4, %v198_v55  ;;  %2023 = vmatmul.mubr.msk.f32.gmra.mrb[46].mxu1 %vm200_vm4, %v1613_v56 }
  0x6f   : > { %1942 = vmatprep.mubr.msk.f32.mxu0 %vm2245_vm1, %v2246_v6  ;;  %2025 = vmatprep.mubr.msk.f32.mxu1 %vm2245_vm1, %v2246_v6 }
  0x72   : > { %1943 = vmatmul.mubr.msk.f32.gmra.mrb[48].mxu0 %vm200_vm4, %v199_v57  ;;  %2026 = vmatmul.mubr.msk.f32.gmra.mrb[48].mxu1 %vm200_vm4, %v1614_v58 }
  0x73   : > { %2036 = vmatprep.mubr.msk.f32.mxu0 %vm2245_vm1, %v2246_v6  ;;  %2119 = vmatprep.mubr.msk.f32.mxu1 %vm2245_vm1, %v2246_v6 }
  0x76   : > { %2037 = vmatmul.mubr.msk.f32.vlgmr.msra.gmra.mrb[50].mxu0 %vm200_vm4, %v1641_v59  ;;  %2120 = vmatmul.mubr.msk.f32.vlgmr.msra.gmra.mrb[50].mxu1 %vm200_vm4, %v1692_v60 }
  0x77   : > { %2039 = vmatprep.mubr.msk.f32.mxu0 %vm2245_vm1, %v2246_v6  ;;  %2122 = vmatprep.mubr.msk.f32.mxu1 %vm2245_vm1, %v2246_v6 }
  0x7a   : > { %2040 = vmatmul.mubr.msk.f32.gmra.mrb[52].mxu0 %vm200_vm4, %v1642_v61  ;;  %2123 = vmatmul.mubr.msk.f32.gmra.mrb[52].mxu1 %vm200_vm4, %v1693_v62 }
  0x7b   : > { %2042 = vmatprep.mubr.msk.f32.mxu0 %vm2245_vm1, %v2246_v6  ;;  %2125 = vmatprep.mubr.msk.f32.mxu1 %vm2245_vm1, %v2246_v6 }
  0x7e   : > { %2043 = vmatmul.mubr.msk.f32.gmra.mrb[54].mxu0 %vm200_vm4, %v1643_v63  ;;  %2126 = vmatmul.mubr.msk.f32.gmra.mrb[54].mxu1 %vm200_vm4, %v1694_v0 }
  0x7f   : > { %2045 = vmatprep.mubr.msk.f32.mxu0 %vm2245_vm1, %v2246_v6  ;;  %2128 = vmatprep.mubr.msk.f32.mxu1 %vm2245_vm1, %v2246_v6 }
  0x82   : > { %2046 = vmatmul.mubr.msk.f32.gmra.mrb[56].mxu0 %vm200_vm4, %v1644_v1  ;;  %2129 = vmatmul.mubr.msk.f32.gmra.mrb[56].mxu1 %vm200_vm4, %v1695_v2 }
  0x83   : > { %2048 = vmatprep.mubr.msk.f32.mxu0 %vm2245_vm1, %v2246_v6  ;;  %2131 = vmatprep.mubr.msk.f32.mxu1 %vm2245_vm1, %v2246_v6 }
  0x86   : > { %2049 = vmatmul.mubr.msk.f32.gmra.mrb[58].mxu0 %vm200_vm4, %v1645_v3  ;;  %2132 = vmatmul.mubr.msk.f32.gmra.mrb[58].mxu1 %vm200_vm4, %v1696_v4 }
  0x87   : > { %2051 = vmatprep.mubr.msk.f32.mxu0 %vm2245_vm1, %v2246_v6  ;;  %2134 = vmatprep.mubr.msk.f32.mxu1 %vm2245_vm1, %v2246_v6 }
  0x8a   : > { %2052 = vmatmul.mubr.msk.f32.gmra.mrb[60].mxu0 %vm200_vm4, %v1646_v5  ;;  %2135 = vmatmul.mubr.msk.f32.gmra.mrb[60].mxu1 %vm200_vm4, %v1697_v7 }
  0x8b   : > { %2054 = vmatprep.mubr.msk.f32.mxu0 %vm2245_vm1, %v2246_v6  ;;  %2137 = vmatprep.mubr.msk.f32.mxu1 %vm2245_vm1, %v2246_v6 }
  0x8e   : > { %2055 = vmatmul.mubr.msk.f32.gmra.mrb[62].mxu0 %vm200_vm4, %v1647_v8  ;;  %2138 = vmatmul.mubr.msk.f32.gmra.mrb[62].mxu1 %vm200_vm4, %v1698_v9 }
  0x8f   : > { %2057 = vmatprep.mubr.msk.f32.mxu0 %vm2245_vm1, %v2246_v6  ;;  %2140 = vmatprep.mubr.msk.f32.mxu1 %vm2245_vm1, %v2246_v6 }
  0x92   : > { %2058 = vmatmul.mubr.msk.f32.gmra.mrb[64].mxu0 %vm200_vm4, %v1648_v10  ;;  %2141 = vmatmul.mubr.msk.f32.gmra.mrb[64].mxu1 %vm200_vm4, %v1699_v11 }
  0x93   : > { %2060 = vmatprep.mubr.msk.f32.mxu0 %vm2245_vm1, %v2246_v6  ;;  %2143 = vmatprep.mubr.msk.f32.mxu1 %vm2245_vm1, %v2246_v6 }
  0x96   : > { %2061 = vmatmul.mubr.msk.f32.gmra.mrb[66].mxu0 %vm200_vm4, %v1649_v12  ;;  %2144 = vmatmul.mubr.msk.f32.gmra.mrb[66].mxu1 %vm200_vm4, %v1700_v13 }
  0x97   : > { %2063 = vmatprep.mubr.msk.f32.mxu0 %vm2245_vm1, %v2246_v6  ;;  %2146 = vmatprep.mubr.msk.f32.mxu1 %vm2245_vm1, %v2246_v6 }
  0x9a   : > { %2064 = vmatmul.mubr.msk.f32.gmra.mrb[68].mxu0 %vm200_vm4, %v1650_v14  ;;  %2147 = vmatmul.mubr.msk.f32.gmra.mrb[68].mxu1 %vm200_vm4, %v1701_v15 }
  0x9b   : > { %2066 = vmatprep.mubr.msk.f32.mxu0 %vm2245_vm1, %v2246_v6  ;;  %2149 = vmatprep.mubr.msk.f32.mxu1 %vm2245_vm1, %v2246_v6 }
  0x9e   : > { %2067 = vmatmul.mubr.msk.f32.gmra.mrb[70].mxu0 %vm200_vm4, %v1651_v16  ;;  %2150 = vmatmul.mubr.msk.f32.gmra.mrb[70].mxu1 %vm200_vm4, %v1702_v17 }
  0x9f   : > { %2069 = vmatprep.mubr.msk.f32.mxu0 %vm2245_vm1, %v2246_v6  ;;  %2152 = vmatprep.mubr.msk.f32.mxu1 %vm2245_vm1, %v2246_v6 }
  0xa2   : > { %2070 = vmatmul.mubr.msk.f32.gmra.mrb[72].mxu0 %vm200_vm4, %v1652_v18  ;;  %2153 = vmatmul.mubr.msk.f32.gmra.mrb[72].mxu1 %vm200_vm4, %v1703_v19 }
  0xa3   : > { %2072 = vmatprep.mubr.msk.f32.mxu0 %vm2245_vm1, %v2246_v6  ;;  %2155 = vmatprep.mubr.msk.f32.mxu1 %vm2245_vm1, %v2246_v6 }
  0xa6   : > { %2073 = vmatmul.mubr.msk.f32.gmra.mrb[74].mxu0 %vm200_vm4, %v1653_v20  ;;  %2156 = vmatmul.mubr.msk.f32.gmra.mrb[74].mxu1 %vm200_vm4, %v1704_v21 }
  0xa7   : > { %2075 = vmatprep.mubr.msk.f32.mxu0 %vm2245_vm1, %v2246_v6  ;;  %2158 = vmatprep.mubr.msk.f32.mxu1 %vm2245_vm1, %v2246_v6 }
  0xaa   : > { %2076 = vmatmul.mubr.msk.f32.gmra.mrb[76].mxu0 %vm200_vm4, %v1654_v22  ;;  %2159 = vmatmul.mubr.msk.f32.gmra.mrb[76].mxu1 %vm200_vm4, %v1705_v23 }
  0xab   : > { %2078 = vmatprep.mubr.msk.f32.mxu0 %vm2245_vm1, %v2246_v6  ;;  %2161 = vmatprep.mubr.msk.f32.mxu1 %vm2245_vm1, %v2246_v6 }
  0xae   : > { %2079 = vmatmul.mubr.msk.f32.gmra.mrb[78].mxu0 %vm200_vm4, %v1655_v24  ;;  %2162 = vmatmul.mubr.msk.f32.gmra.mrb[78].mxu1 %vm200_vm4, %v1706_v25 }
  0xaf   : > { %2081 = vmatprep.mubr.msk.f32.mxu0 %vm2245_vm1, %v2246_v6  ;;  %2164 = vmatprep.mubr.msk.f32.mxu1 %vm2245_vm1, %v2246_v6 }
  0xb2   : > { %2082 = vmatmul.mubr.msk.f32.gmra.mrb[80].mxu0 %vm200_vm4, %v1656_v26  ;;  %2165 = vmatmul.mubr.msk.f32.gmra.mrb[80].mxu1 %vm200_vm4, %v1707_v27 }
  0xb3   : > { %2084 = vmatprep.mubr.msk.f32.mxu0 %vm2245_vm1, %v2246_v6  ;;  %2167 = vmatprep.mubr.msk.f32.mxu1 %vm2245_vm1, %v2246_v6 }
  0xb6   : > { %2085 = vmatmul.mubr.msk.f32.gmra.mrb[82].mxu0 %vm200_vm4, %v1657_v28  ;;  %2168 = vmatmul.mubr.msk.f32.gmra.mrb[82].mxu1 %vm200_vm4, %v1708_v29 }
  0xb7   : > { %2087 = vmatprep.mubr.msk.f32.mxu0 %vm2245_vm1, %v2246_v6  ;;  %2170 = vmatprep.mubr.msk.f32.mxu1 %vm2245_vm1, %v2246_v6 }
  0xba   : > { %2088 = vmatmul.mubr.msk.f32.gmra.mrb[84].mxu0 %vm200_vm4, %v1658_v30  ;;  %2171 = vmatmul.mubr.msk.f32.gmra.mrb[84].mxu1 %vm200_vm4, %v1709_v31 }
  0xbb   : > { %2090 = vmatprep.mubr.msk.f32.mxu0 %vm2245_vm1, %v2246_v6  ;;  %2173 = vmatprep.mubr.msk.f32.mxu1 %vm2245_vm1, %v2246_v6 }
  0xbe   : > { %2091 = vmatmul.mubr.msk.f32.gmra.mrb[86].mxu0 %vm200_vm4, %v1659_v32  ;;  %2174 = vmatmul.mubr.msk.f32.gmra.mrb[86].mxu1 %vm200_vm4, %v1710_v33 }
  0xbf   : > { %2093 = vmatprep.mubr.msk.f32.mxu0 %vm2245_vm1, %v2246_v6  ;;  %2176 = vmatprep.mubr.msk.f32.mxu1 %vm2245_vm1, %v2246_v6 }
  0xc2   : > { %2094 = vmatmul.mubr.msk.f32.gmra.mrb[88].mxu0 %vm200_vm4, %v1660_v34  ;;  %2177 = vmatmul.mubr.msk.f32.gmra.mrb[88].mxu1 %vm200_vm4, %v1711_v35 }
  0xc3   : > { %2096 = vmatprep.mubr.msk.f32.mxu0 %vm2245_vm1, %v2246_v6  ;;  %2179 = vmatprep.mubr.msk.f32.mxu1 %vm2245_vm1, %v2246_v6 }
  0xc6   : > { %2097 = vmatmul.mubr.msk.f32.gmra.mrb[90].mxu0 %vm200_vm4, %v1661_v36  ;;  %2180 = vmatmul.mubr.msk.f32.gmra.mrb[90].mxu1 %vm200_vm4, %v1712_v37 }
  0xc7   : > { %2099 = vmatprep.mubr.msk.f32.mxu0 %vm2245_vm1, %v2246_v6  ;;  %2182 = vmatprep.mubr.msk.f32.mxu1 %vm2245_vm1, %v2246_v6 }
  0xca   : > { %2100 = vmatmul.mubr.msk.f32.gmra.mrb[92].mxu0 %vm200_vm4, %v1662_v38  ;;  %2183 = vmatmul.mubr.msk.f32.gmra.mrb[92].mxu1 %vm200_vm4, %v1713_v39 }
  0xcb   : > { %2102 = vmatprep.mubr.msk.f32.mxu0 %vm2245_vm1, %v2246_v6  ;;  %2185 = vmatprep.mubr.msk.f32.mxu1 %vm2245_vm1, %v2246_v6 }
  0xce   : > { %2103 = vmatmul.mubr.msk.f32.gmra.mrb[94].mxu0 %vm200_vm4, %v1663_v40  ;;  %2186 = vmatmul.mubr.msk.f32.gmra.mrb[94].mxu1 %vm200_vm4, %v1714_v41 }
  0xcf   : > { %2105 = vmatprep.mubr.msk.f32.mxu0 %vm2245_vm1, %v2246_v6  ;;  %2188 = vmatprep.mubr.msk.f32.mxu1 %vm2245_vm1, %v2246_v6 }
  0xd2   : > { %2106 = vmatmul.mubr.msk.f32.gmra.mrb[96].mxu0 %vm200_vm4, %v1664_v42  ;;  %2189 = vmatmul.mubr.msk.f32.gmra.mrb[96].mxu1 %vm200_vm4, %v1715_v43 }
  0xd3   : > { %2108 = vmatprep.mubr.msk.f32.mxu0 %vm2245_vm1, %v2246_v6  ;;  %2191 = vmatprep.mubr.msk.f32.mxu1 %vm2245_vm1, %v2246_v6 }
  0xd6   : > { %2109 = vmatmul.mubr.msk.f32.gmra.mrb[98].mxu0 %vm200_vm4, %v1665_v44  ;;  %2192 = vmatmul.mubr.msk.f32.gmra.mrb[98].mxu1 %vm200_vm4, %v1716_v45 }
  0xe5   : > { %v2709_v46 = vpop.f32.mrb[0].mxu0  ;;  %v2711_v47 = vpop.f32.mrb[0].mxu1 }
  0xe6   : > { %v1872_v48 = vpop.f32.mrb[1].mxu0  ;;  %v761_v49 = vmax.f32 %v2709_v46, %v2711_v47  ;;  %v1955_v50 = vpop.f32.mrb[1].mxu1 }
  0xe9   : > { %v2715_v51 = vpop.f32.mrb[2].mxu0  ;;  %v2717_v52 = vpop.f32.mrb[2].mxu1 }
  0xea   : > { %v1875_v53 = vpop.f32.mrb[3].mxu0  ;;  %v762_v6 = vmax.f32 %v2715_v51, %v2717_v52  ;;  %v1958_v54 = vpop.f32.mrb[3].mxu1 }
  0xed   : > { %v2721_v55 = vpop.f32.mrb[4].mxu0  ;;  %v2723_v56 = vpop.f32.mrb[4].mxu1 }
  0xee   : > { %v1878_v57 = vpop.f32.mrb[5].mxu0  ;;  %v1961_v59 = vpop.f32.mrb[5].mxu1  ;;  %v3028_v51 = vmax.f32 %v2721_v55, %v2723_v56 }
  0xf1   : > { %v2727_v60 = vpop.f32.mrb[6].mxu0  ;;  %v2729_v61 = vpop.f32.mrb[6].mxu1 }
  0xf2   : > { %v1881_v62 = vpop.f32.mrb[7].mxu0  ;;  %v1964_v0 = vpop.f32.mrb[7].mxu1 }
  0xf5   : > { %v2733_v1 = vpop.f32.mrb[8].mxu0  ;;  %v2735_v2 = vpop.f32.mrb[8].mxu1 }
  0xf6   : > { %v1884_v3 = vpop.f32.mrb[9].mxu0  ;;  %v1967_v5 = vpop.f32.mrb[9].mxu1 }
  0xf9   : > { %v2739_v7 = vpop.f32.mrb[10].mxu0  ;;  %v2741_v8 = vpop.f32.mrb[10].mxu1 }
  0xfa   : > { %v1887_v9 = vpop.f32.mrb[11].mxu0  ;;  %v1970_v11 = vpop.f32.mrb[11].mxu1 }
  0xfd   : > { %v2745_v12 = vpop.f32.mrb[12].mxu0  ;;  %v2747_v13 = vpop.f32.mrb[12].mxu1 }
  0xfe   : > { %v1890_v14 = vpop.f32.mrb[13].mxu0  ;;  %v1973_v16 = vpop.f32.mrb[13].mxu1 }
 0x101   : > { %v2751_v17 = vpop.f32.mrb[14].mxu0  ;;  %v2753_v18 = vpop.f32.mrb[14].mxu1 }
 0x102   : > { %v1893_v19 = vpop.f32.mrb[15].mxu0  ;;  %v1976_v21 = vpop.f32.mrb[15].mxu1 }
 0x105   : > { %v2757_v22 = vpop.f32.mrb[16].mxu0  ;;  %v2759_v23 = vpop.f32.mrb[16].mxu1 }
 0x106   : > { %v1896_v24 = vpop.f32.mrb[17].mxu0  ;;  %v1979_v26 = vpop.f32.mrb[17].mxu1 }
 0x109   : > { %v2763_v27 = vpop.f32.mrb[18].mxu0  ;;  %v2765_v28 = vpop.f32.mrb[18].mxu1 }
 0x10a   : > { %v1899_v29 = vpop.f32.mrb[19].mxu0  ;;  %v1982_v31 = vpop.f32.mrb[19].mxu1 }
 0x10d   : > { %v2769_v32 = vpop.f32.mrb[20].mxu0  ;;  %v2771_v33 = vpop.f32.mrb[20].mxu1 }
 0x10e   : > { %v1902_v34 = vpop.f32.mrb[21].mxu0  ;;  %v1985_v36 = vpop.f32.mrb[21].mxu1 }
 0x111   : > { %v2775_v37 = vpop.f32.mrb[22].mxu0  ;;  %v2777_v38 = vpop.f32.mrb[22].mxu1 }
 0x112   : > { %v1905_v39 = vpop.f32.mrb[23].mxu0  ;;  %v1988_v41 = vpop.f32.mrb[23].mxu1 }
 0x115   : > { %v2781_v42 = vpop.f32.mrb[24].mxu0  ;;  %v2783_v43 = vpop.f32.mrb[24].mxu1 }
 0x116   : > { %v1908_v44 = vpop.f32.mrb[25].mxu0  ;;  %v1991_v48 = vpop.f32.mrb[25].mxu1 }
 0x119   : > { %v2787_v50 = vpop.f32.mrb[26].mxu0  ;;  %v2789_v53 = vpop.f32.mrb[26].mxu1 }
 0x11a   : > { %v1911_v54 = vpop.f32.mrb[27].mxu0  ;;  %v1994_v59 = vpop.f32.mrb[27].mxu1 }
 0x11d   : > { %v2793_v62 = vpop.f32.mrb[28].mxu0  ;;  %v2795_v0 = vpop.f32.mrb[28].mxu1 }
 0x11e   : > { %v1914_v3 = vpop.f32.mrb[29].mxu0  ;;  %v1997_v9 = vpop.f32.mrb[29].mxu1 }
 0x121   : > { %v2799_v11 = vpop.f32.mrb[30].mxu0  ;;  %v2801_v14 = vpop.f32.mrb[30].mxu1 }
 0x122   : > { %v1917_v16 = vpop.f32.mrb[31].mxu0  ;;  %v2000_v21 = vpop.f32.mrb[31].mxu1 }
 0x125   : > { %v2805_v24 = vpop.f32.mrb[32].mxu0  ;;  %v2807_v26 = vpop.f32.mrb[32].mxu1 }
 0x126   : > { %v1920_v29 = vpop.f32.mrb[33].mxu0  ;;  %v2003_v34 = vpop.f32.mrb[33].mxu1 }
 0x129   : > { %v2811_v36 = vpop.f32.mrb[34].mxu0  ;;  %v2813_v39 = vpop.f32.mrb[34].mxu1 }
 0x12a   : > { %v1923_v41 = vpop.f32.mrb[35].mxu0  ;;  %v2006_v48 = vpop.f32.mrb[35].mxu1 }
 0x12d   : > { %v2817_v54 = vpop.f32.mrb[36].mxu0  ;;  %v2819_v59 = vpop.f32.mrb[36].mxu1 }
 0x12e   : > { %v1926_v3 = vpop.f32.mrb[37].mxu0  ;;  %v2009_v16 = vpop.f32.mrb[37].mxu1 }
 0x131   : > { %v2823_v21 = vpop.f32.mrb[38].mxu0  ;;  %v2825_v29 = vpop.f32.mrb[38].mxu1 }
 0x132   : > { %v1929_v34 = vpop.f32.mrb[39].mxu0  ;;  %v2012_v31 = vpop.f32.mrb[39].mxu1 }
 0x135   : > { %v2829_v44 = vpop.f32.mrb[40].mxu0  ;;  %v2831_v48 = vpop.f32.mrb[40].mxu1 }
 0x136   : > { %v1932_v19 = vpop.f32.mrb[41].mxu0  ;;  %v2015_v5 = vpop.f32.mrb[41].mxu1 }
 0x139   : > { %v2835_v9 = vpop.f32.mrb[42].mxu0  ;;  %v2837_v16 = vpop.f32.mrb[42].mxu1 }
 0x13a   : > { %v1935_v57 = vpop.f32.mrb[43].mxu0  ;;  %v2018_v45 = vpop.f32.mrb[43].mxu1 }
 0x13d   : > { %v2841_v41 = vpop.f32.mrb[44].mxu0  ;;  %v2843_v31 = vpop.f32.mrb[44].mxu1 }
 0x13e   : > { %v1938_v40 = vpop.f32.mrb[45].mxu0  ;;  %v2021_v35 = vpop.f32.mrb[45].mxu1 }
 0x141   : > { %v2847_v5 = vpop.f32.mrb[46].mxu0  ;;  %v2849_v3 = vpop.f32.mrb[46].mxu1 }
 0x142   : > { %v1941_v30 = vpop.f32.mrb[47].mxu0  ;;  %v2024_v34 = vpop.f32.mrb[47].mxu1 }
 0x143   : > { %v2866_v34 = vld [vmem:[%s3024_s2] ss:$0 sm:$0xff] }
 0x145   : > { %v2853_v45 = vpop.f32.mrb[48].mxu0  ;;  %v2855_v25 = vpop.f32.mrb[48].mxu1 }
 0x146   : > { %v1944_v20 = vpop.f32.mrb[49].mxu0  ;;  %v2027_v19 = vpop.f32.mrb[49].mxu1 }
 0x149   : > { %v953_v35 = vpop.f32.mrb[50].mxu0  ;;  %v1269_v15 = vpop.f32.mrb[50].mxu1 }
 0x14a   : > { %v1077_v10 = vmax.f32 %v761_v49, %v953_v35  ;;  %v2038_v30 = vpop.f32.mrb[51].mxu0  ;;  %v2121_v4 = vpop.f32.mrb[51].mxu1 }
 0x14c   : > { %v1393_v57 = vmax.f32 %v1077_v10, %v1269_v15 }
 0x14d   : > { %v958_v20 = vpop.f32.mrb[52].mxu0  ;;  %v1274_v63 = vpop.f32.mrb[52].mxu1 }
 0x14e   : > { %v1425_v40 = vadd.f32 %v2866_v34, %v1393_v57  ;;  %v1078_v19 = vmax.f32 %v762_v6, %v958_v20  ;;  %v2041_v58 = vpop.f32.mrb[53].mxu0  ;;  %v2124_v46 = vpop.f32.mrb[53].mxu1 }
 0x150   : > { %v1450_v47 = vmax.f32 %v1425_v40, 0.0  ;;  %v1394_v49 = vmax.f32 %v1078_v19, %v1274_v63  ;;  %v3029_v40 = vmax.f32 %v2727_v60, %v2729_v61 }
 0x151   : > { %v963_v4 = vpop.f32.mrb[54].mxu0  ;;  %v1279_v10 = vpop.f32.mrb[54].mxu1 }
 0x152   : > { %1476 = vst.msk [vmem:[%s2875_s4] sm:$0xff] %vm1475_vm5, %v1450_v47  ;;  %v1426_v15 = vadd.f32 %v2866_v34, %v1394_v49  ;;  %v1079_v52 = vmax.f32 %v3028_v51, %v963_v4  ;;  %v2044_v6 = vpop.f32.mrb[55].mxu0  ;;  %v2127_v58 = vpop.f32.mrb[55].mxu1 }
 0x154   : > { %v1451_v57 = vmax.f32 %v1426_v15, 0.0  ;;  %v1395_v35 = vmax.f32 %v1079_v52, %v1279_v10  ;;  %v3030_v15 = vmax.f32 %v2733_v1, %v2735_v2 }
 0x155   : > { %v968_v30 = vpop.f32.mrb[56].mxu0  ;;  %v1284_v20 = vpop.f32.mrb[56].mxu1 }
 0x156   : > { %1477 = vst.msk [vmem:[%s2875_s4 + $0x8] sm:$0xff] %vm1475_vm5, %v1451_v57  ;;  %v1427_v63 = vadd.f32 %v2866_v34, %v1395_v35  ;;  %v1080_v19 = vmax.f32 %v3029_v40, %v968_v30  ;;  %v2047_v46 = vpop.f32.mrb[57].mxu0  ;;  %v2130_v47 = vpop.f32.mrb[57].mxu1  ;;  %v3031_v30 = vmax.f32 %v2739_v7, %v2741_v8 }
 0x158   : > { %v1452_v55 = vmax.f32 %v1427_v63, 0.0  ;;  %v1396_v56 = vmax.f32 %v1080_v19, %v1284_v20 }
 0x159   : > { %v973_v49 = vpop.f32.mrb[58].mxu0  ;;  %v1289_v4 = vpop.f32.mrb[58].mxu1 }
 0x15a   : > { %1478 = vst.msk [vmem:[%s2875_s4 + $0x10] sm:$0xff] %vm1475_vm5, %v1452_v55  ;;  %v1428_v10 = vadd.f32 %v2866_v34, %v1396_v56  ;;  %v1081_v51 = vmax.f32 %v3030_v15, %v973_v49  ;;  %v2050_v52 = vpop.f32.mrb[59].mxu0  ;;  %v2133_v6 = vpop.f32.mrb[59].mxu1  ;;  %v3032_v55 = vmax.f32 %v2745_v12, %v2747_v13 }
 0x15b   : > { %v3033_v52 = vmax.f32 %v2751_v17, %v2753_v18 }
 0x15c   : > { %v1453_v60 = vmax.f32 %v1428_v10, 0.0  ;;  %v1397_v61 = vmax.f32 %v1081_v51, %v1289_v4 }
 0x15d   : > { %v978_v58 = vpop.f32.mrb[60].mxu0  ;;  %v1294_v57 = vpop.f32.mrb[60].mxu1 }
 0x15e   : > { %1479 = vst.msk [vmem:[%s2875_s4 + $0x18] sm:$0xff] %vm1475_vm5, %v1453_v60  ;;  %v1429_v35 = vadd.f32 %v2866_v34, %v1397_v61  ;;  %v1082_v20 = vmax.f32 %v3031_v30, %v978_v58  ;;  %v2053_v63 = vpop.f32.mrb[61].mxu0  ;;  %v2136_v40 = vpop.f32.mrb[61].mxu1  ;;  %v3034_v30 = vmax.f32 %v2757_v22, %v2759_v23 }
 0x160   : > { %v1454_v1 = vmax.f32 %v1429_v35, 0.0  ;;  %v1398_v2 = vmax.f32 %v1082_v20, %v1294_v57 }
 0x161   : > { %v983_v19 = vpop.f32.mrb[62].mxu0  ;;  %v1299_v46 = vpop.f32.mrb[62].mxu1 }
 0x162   : > { %1480 = vst.msk [vmem:[%s2875_s4 + $0x20] sm:$0xff] %vm1475_vm5, %v1454_v1  ;;  %v1430_v47 = vadd.f32 %v2866_v34, %v1398_v2  ;;  %v1083_v56 = vmax.f32 %v3032_v55, %v983_v19  ;;  %v2056_v49 = vpop.f32.mrb[63].mxu0  ;;  %v2139_v4 = vpop.f32.mrb[63].mxu1 }
 0x164   : > { %v1455_v7 = vmax.f32 %v1430_v47, 0.0  ;;  %v1399_v8 = vmax.f32 %v1083_v56, %v1299_v46  ;;  %v3035_v46 = vmax.f32 %v2763_v27, %v2765_v28 }
 0x165   : > { %v988_v10 = vpop.f32.mrb[64].mxu0  ;;  %v1304_v15 = vpop.f32.mrb[64].mxu1 }
 0x166   : > { %1481 = vst.msk [vmem:[%s2875_s4 + $0x28] sm:$0xff] %vm1475_vm5, %v1455_v7  ;;  %v1431_v51 = vadd.f32 %v2866_v34, %v1399_v8  ;;  %v1084_v6 = vmax.f32 %v3033_v52, %v988_v10  ;;  %v2059_v60 = vpop.f32.mrb[65].mxu0  ;;  %v2142_v61 = vpop.f32.mrb[65].mxu1  ;;  %v3036_v8 = vmax.f32 %v2769_v32, %v2771_v33 }
 0x167   : > { %v3037_v61 = vmax.f32 %v2775_v37, %v2777_v38 }
 0x168   : > { %v1456_v12 = vmax.f32 %v1431_v51, 0.0  ;;  %v1400_v13 = vmax.f32 %v1084_v6, %v1304_v15 }
 0x169   : > { %v993_v58 = vpop.f32.mrb[66].mxu0  ;;  %v1309_v57 = vpop.f32.mrb[66].mxu1 }
 0x16a   : > { %1482 = vst.msk [vmem:[%s2875_s4 + $0x30] sm:$0xff] %vm1475_vm5, %v1456_v12  ;;  %v1432_v35 = vadd.f32 %v2866_v34, %v1400_v13  ;;  %v1085_v20 = vmax.f32 %v3034_v30, %v993_v58  ;;  %v2062_v63 = vpop.f32.mrb[67].mxu0  ;;  %v2145_v40 = vpop.f32.mrb[67].mxu1 }
 0x16c   : > { %v1457_v17 = vmax.f32 %v1432_v35, 0.0  ;;  %v1401_v18 = vmax.f32 %v1085_v20, %v1309_v57  ;;  %v3038_v20 = vmax.f32 %v2781_v42, %v2783_v43 }
 0x16d   : > { %v998_v1 = vpop.f32.mrb[68].mxu0  ;;  %v1314_v2 = vpop.f32.mrb[68].mxu1 }
 0x16e   : > { %1483 = vst.msk [vmem:[%s2875_s4 + $0x38] sm:$0xff] %vm1475_vm5, %v1457_v17  ;;  %v1433_v19 = vadd.f32 %v2866_v34, %v1401_v18  ;;  %v1086_v47 = vmax.f32 %v3035_v46, %v998_v1  ;;  %v2065_v55 = vpop.f32.mrb[69].mxu0  ;;  %v2148_v56 = vpop.f32.mrb[69].mxu1 }
 0x170   : > { %v1458_v22 = vmax.f32 %v1433_v19, 0.0  ;;  %v1402_v23 = vmax.f32 %v1086_v47, %v1314_v2  ;;  %v3039_v19 = vmax.f32 %v2787_v50, %v2789_v53 }
 0x171   : > { %v1003_v49 = vpop.f32.mrb[70].mxu0  ;;  %v1319_v4 = vpop.f32.mrb[70].mxu1 }
 0x172   : > { %1484 = vst.msk [vmem:[%s2875_s4 + $0x40] sm:$0xff] %vm1475_vm5, %v1458_v22  ;;  %v1434_v7 = vadd.f32 %v2866_v34, %v1402_v23  ;;  %v1087_v10 = vmax.f32 %v3036_v8, %v1003_v49  ;;  %v2068_v15 = vpop.f32.mrb[71].mxu0  ;;  %v2151_v51 = vpop.f32.mrb[71].mxu1  ;;  %v3040_v49 = vmax.f32 %v2793_v62, %v2795_v0 }
 0x174   : > { %v1459_v27 = vmax.f32 %v1434_v7, 0.0  ;;  %v1403_v28 = vmax.f32 %v1087_v10, %v1319_v4 }
 0x175   : > { %v1008_v52 = vpop.f32.mrb[72].mxu0  ;;  %v1324_v6 = vpop.f32.mrb[72].mxu1 }
 0x176   : > { %1485 = vst.msk [vmem:[%s2875_s4 + $0x48] sm:$0xff] %vm1475_vm5, %v1459_v27  ;;  %v1435_v60 = vadd.f32 %v2866_v34, %v1403_v28  ;;  %v1088_v12 = vmax.f32 %v3037_v61, %v1008_v52  ;;  %v2071_v13 = vpop.f32.mrb[73].mxu0  ;;  %v2154_v58 = vpop.f32.mrb[73].mxu1  ;;  %v3041_v27 = vmax.f32 %v2799_v11, %v2801_v14 }
 0x177   : > { %v3042_v13 = vmax.f32 %v2805_v24, %v2807_v26 }
 0x178   : > { %v1460_v32 = vmax.f32 %v1435_v60, 0.0  ;;  %v1404_v33 = vmax.f32 %v1088_v12, %v1324_v6 }
 0x179   : > { %v1013_v57 = vpop.f32.mrb[74].mxu0  ;;  %v1329_v35 = vpop.f32.mrb[74].mxu1 }
 0x17a   : > { %1486 = vst.msk [vmem:[%s2875_s4 + $0x50] sm:$0xff] %vm1475_vm5, %v1460_v32  ;;  %v1436_v30 = vadd.f32 %v2866_v34, %v1404_v33  ;;  %v1089_v63 = vmax.f32 %v3038_v20, %v1013_v57  ;;  %v2074_v40 = vpop.f32.mrb[75].mxu0  ;;  %v2157_v17 = vpop.f32.mrb[75].mxu1  ;;  %v3043_v20 = vmax.f32 %v2811_v36, %v2813_v39 }
 0x17c   : > { %v1461_v37 = vmax.f32 %v1436_v30, 0.0  ;;  %v1405_v38 = vmax.f32 %v1089_v63, %v1329_v35 }
 0x17d   : > { %v1018_v18 = vpop.f32.mrb[76].mxu0  ;;  %v1334_v1 = vpop.f32.mrb[76].mxu1 }
 0x17e   : > { %1487 = vst.msk [vmem:[%s2875_s4 + $0x58] sm:$0xff] %vm1475_vm5, %v1461_v37  ;;  %v1437_v2 = vadd.f32 %v2866_v34, %v1405_v38  ;;  %v1090_v46 = vmax.f32 %v3039_v19, %v1018_v18  ;;  %v2077_v47 = vpop.f32.mrb[77].mxu0  ;;  %v2160_v55 = vpop.f32.mrb[77].mxu1 }
 0x180   : > { %v1462_v42 = vmax.f32 %v1437_v2, 0.0  ;;  %v1406_v43 = vmax.f32 %v1090_v46, %v1334_v1  ;;  %v3044_v1 = vmax.f32 %v2817_v54, %v2819_v59 }
 0x181   : > { %v1023_v56 = vpop.f32.mrb[78].mxu0  ;;  %v1339_v22 = vpop.f32.mrb[78].mxu1 }
 0x182   : > { %1488 = vst.msk [vmem:[%s2875_s4 + $0x60] sm:$0xff] %vm1475_vm5, %v1462_v42  ;;  %v1438_v23 = vadd.f32 %v2866_v34, %v1406_v43  ;;  %v1091_v4 = vmax.f32 %v3040_v49, %v1023_v56  ;;  %v2080_v7 = vpop.f32.mrb[79].mxu0  ;;  %v2163_v8 = vpop.f32.mrb[79].mxu1  ;;  %v3045_v43 = vmax.f32 %v2823_v21, %v2825_v29 }
 0x183   : > { %v3046_v8 = vmax.f32 %v2829_v44, %v2831_v48 }
 0x184   : > { %v1463_v50 = vmax.f32 %v1438_v23, 0.0  ;;  %v1407_v53 = vmax.f32 %v1091_v4, %v1339_v22 }
 0x185   : > { %v1028_v10 = vpop.f32.mrb[80].mxu0  ;;  %v1344_v15 = vpop.f32.mrb[80].mxu1 }
 0x186   : > { %1489 = vst.msk [vmem:[%s2875_s4 + $0x68] sm:$0xff] %vm1475_vm5, %v1463_v50  ;;  %v1439_v51 = vadd.f32 %v2866_v34, %v1407_v53  ;;  %v1092_v28 = vmax.f32 %v3041_v27, %v1028_v10  ;;  %v2083_v52 = vpop.f32.mrb[81].mxu0  ;;  %v2166_v6 = vpop.f32.mrb[81].mxu1 }
 0x188   : > { %v1464_v62 = vmax.f32 %v1439_v51, 0.0  ;;  %v1408_v0 = vmax.f32 %v1092_v28, %v1344_v15  ;;  %v3047_v28 = vmax.f32 %v2835_v9, %v2837_v16 }
 0x189   : > { %v1033_v60 = vpop.f32.mrb[82].mxu0  ;;  %v1349_v61 = vpop.f32.mrb[82].mxu1 }
 0x18a   : > { %1490 = vst.msk [vmem:[%s2875_s4 + $0x70] sm:$0xff] %vm1475_vm5, %v1464_v62  ;;  %v1440_v12 = vadd.f32 %v2866_v34, %v1408_v0  ;;  %v1093_v58 = vmax.f32 %v3042_v13, %v1033_v60  ;;  %v2086_v32 = vpop.f32.mrb[83].mxu0  ;;  %v2169_v33 = vpop.f32.mrb[83].mxu1 }
 0x18c   : > { %v1465_v11 = vmax.f32 %v1440_v12, 0.0  ;;  %v1409_v14 = vmax.f32 %v1093_v58, %v1349_v61  ;;  %v3048_v12 = vmax.f32 %v2841_v41, %v2843_v31 }
 0x18d   : > { %v1038_v57 = vpop.f32.mrb[84].mxu0  ;;  %v1354_v35 = vpop.f32.mrb[84].mxu1 }
 0x18e   : > { %1491 = vst.msk [vmem:[%s2875_s4 + $0x78] sm:$0xff] %vm1475_vm5, %v1465_v11  ;;  %v1441_v30 = vadd.f32 %v2866_v34, %v1409_v14  ;;  %v1094_v63 = vmax.f32 %v3043_v20, %v1038_v57  ;;  %v2089_v40 = vpop.f32.mrb[85].mxu0  ;;  %v2172_v17 = vpop.f32.mrb[85].mxu1  ;;  %v3049_v57 = vmax.f32 %v2847_v5, %v2849_v3 }
 0x190   : > { %v1466_v24 = vmax.f32 %v1441_v30, 0.0  ;;  %v1410_v26 = vmax.f32 %v1094_v63, %v1354_v35 }
 0x191   : > { %v1043_v37 = vpop.f32.mrb[86].mxu0  ;;  %v1359_v38 = vpop.f32.mrb[86].mxu1 }
 0x192   : > { %1492 = vst.msk [vmem:[%s2875_s4 + $0x80] sm:$0xff] %vm1475_vm5, %v1466_v24  ;;  %v1442_v18 = vadd.f32 %v2866_v34, %v1410_v26  ;;  %v1095_v2 = vmax.f32 %v3044_v1, %v1043_v37  ;;  %v2092_v19 = vpop.f32.mrb[87].mxu0  ;;  %v2175_v46 = vpop.f32.mrb[87].mxu1  ;;  %v3050_v24 = vmax.f32 %v2853_v45, %v2855_v25 }
 0x194   : > { %v1467_v36 = vmax.f32 %v1442_v18, 0.0  ;;  %v1411_v39 = vmax.f32 %v1095_v2, %v1359_v38 }
 0x195   : > { %v1048_v47 = vpop.f32.mrb[88].mxu0  ;;  %v1364_v55 = vpop.f32.mrb[88].mxu1 }
 0x196   : > { %1493 = vst.msk [vmem:[%s2875_s4 + $0x88] sm:$0xff] %vm1475_vm5, %v1467_v36  ;;  %v1443_v42 = vadd.f32 %v2866_v34, %v1411_v39  ;;  %v1096_v56 = vmax.f32 %v3045_v43, %v1048_v47  ;;  %v2095_v22 = vpop.f32.mrb[89].mxu0  ;;  %v2178_v23 = vpop.f32.mrb[89].mxu1 }
 0x198   : > { %v1468_v54 = vmax.f32 %v1443_v42, 0.0  ;;  %v1412_v59 = vmax.f32 %v1096_v56, %v1364_v55 }
 0x199   : > { %v1053_v49 = vpop.f32.mrb[90].mxu0  ;;  %v1369_v4 = vpop.f32.mrb[90].mxu1 }
 0x19a   : > { %1494 = vst.msk [vmem:[%s2875_s4 + $0x90] sm:$0xff] %vm1475_vm5, %v1468_v54  ;;  %v1444_v7 = vadd.f32 %v2866_v34, %v1412_v59  ;;  %v1097_v50 = vmax.f32 %v3046_v8, %v1053_v49  ;;  %v2098_v53 = vpop.f32.mrb[91].mxu0  ;;  %v2181_v10 = vpop.f32.mrb[91].mxu1 }
 0x19c   : > { %v1469_v21 = vmax.f32 %v1444_v7, 0.0  ;;  %v1413_v29 = vmax.f32 %v1097_v50, %v1369_v4 }
 0x19d   : > { %v1058_v15 = vpop.f32.mrb[92].mxu0  ;;  %v1374_v51 = vpop.f32.mrb[92].mxu1 }
 0x19e   : > { %1495 = vst.msk [vmem:[%s2875_s4 + $0x98] sm:$0xff] %vm1475_vm5, %v1469_v21  ;;  %v1445_v27 = vadd.f32 %v2866_v34, %v1413_v29  ;;  %v1098_v52 = vmax.f32 %v3047_v28, %v1058_v15  ;;  %v2101_v6 = vpop.f32.mrb[93].mxu0  ;;  %v2184_v62 = vpop.f32.mrb[93].mxu1 }
 0x1a0   : > { %v1470_v44 = vmax.f32 %v1445_v27, 0.0  ;;  %v1414_v48 = vmax.f32 %v1098_v52, %v1374_v51 }
 0x1a1   : > { %v1063_v0 = vpop.f32.mrb[94].mxu0  ;;  %v1379_v60 = vpop.f32.mrb[94].mxu1 }
 0x1a2   : > { %1496 = vst.msk [vmem:[%s2875_s4 + $0xa0] sm:$0xff] %vm1475_vm5, %v1470_v44  ;;  %v1446_v61 = vadd.f32 %v2866_v34, %v1414_v48  ;;  %v1099_v13 = vmax.f32 %v3048_v12, %v1063_v0  ;;  %v2104_v58 = vpop.f32.mrb[95].mxu0  ;;  %v2187_v32 = vpop.f32.mrb[95].mxu1 }
 0x1a4   : > { %v1471_v9 = vmax.f32 %v1446_v61, 0.0  ;;  %v1415_v16 = vmax.f32 %v1099_v13, %v1379_v60 }
 0x1a5   : > { %v1068_v33 = vpop.f32.mrb[96].mxu0  ;;  %v1384_v11 = vpop.f32.mrb[96].mxu1 }
 0x1a6   : > { %1497 = vst.msk [vmem:[%s2875_s4 + $0xa8] sm:$0xff] %vm1475_vm5, %v1471_v9  ;;  %v1447_v14 = vadd.f32 %v2866_v34, %v1415_v16  ;;  %v1100_v35 = vmax.f32 %v3049_v57, %v1068_v33  ;;  %v2107_v30 = vpop.f32.mrb[97].mxu0  ;;  %v2190_v20 = vpop.f32.mrb[97].mxu1 }
 0x1a8   : > { %v1472_v41 = vmax.f32 %v1447_v14, 0.0  ;;  %v1416_v31 = vmax.f32 %v1100_v35, %v1384_v11 }
 0x1a9   : > { %v1073_v63 = vpop.f32.mrb[98].mxu0  ;;  %v1389_v40 = vpop.f32.mrb[98].mxu1 }
 0x1aa   : > { %1498 = vst.msk [vmem:[%s2875_s4 + $0xb0] sm:$0xff] %vm1475_vm5, %v1472_v41  ;;  %v1448_v17 = vadd.f32 %v2866_v34, %v1416_v31  ;;  %v1101_v26 = vmax.f32 %v3050_v24, %v1073_v63  ;;  %v2110_v37 = vpop.f32.mrb[99].mxu0  ;;  %v2193_v38 = vpop.f32.mrb[99].mxu1 }
 0x1ac   : > { %v1473_v18 = vmax.f32 %v1448_v17, 0.0  ;;  %v1417_v3 = vmax.f32 %v1101_v26, %v1389_v40 }
 0x1ae   : > { %1499 = vst.msk [vmem:[%s2875_s4 + $0xb8] sm:$0xff] %vm1475_vm5, %v1473_v18  ;;  %v1449_v5 = vadd.f32 %v2866_v34, %v1417_v3 }
 0x1b0   : > { %v1474_v1 = vmax.f32 %v1449_v5, 0.0 }
 0x1b2   : > { %1501 = vst.msk [vmem:[%s2875_s4 + $0xc0] sm:$0xf] %vm1500_vm6, %v1474_v1 }
 0x1b3 PF: > { %s13_s12 = sadd.s32 1, %s2242_s12  }
 0x1b4   : > { %p10_p4 = scmp.ge.s32.totalorder %s13_s12, 4  }
 0x1b6   :  { %12 = sbr.rel (!%p10_p4) target bundleno = 1 (0x1), region = 65 }

// kernel: deepnet_forward.4
= control target key start
LH: loop header
LB: loop body
LE: loop exit
PB: predicated region body
PF: predicated region fallthrough
CT: control target
= control target key end

     0   :  { %s3694_s12 = smov 0   ;;  %s4750_s0 = inlined_call_operand.vmem [shape: f32[2,4,49,800], index: 0, kind: input, shape index: {}]   ;;  %s4751_s1 = inlined_call_operand.vmem [shape: f32[800,64], index: 1, kind: input, shape index: {}]   ;;  %s4752_s2 = inlined_call_operand.vmem [shape: f32[1,64], index: 2, kind: input, shape index: {}]   ;;  %s4753_s3 = inlined_call_operand.vmem [shape: f32[2,49,64], index: 3, kind: output, shape index: {}]  }
   0x1 LB: > { %s2261_s13 = sadd.s32 4294967295, %s3669_s12   ;;  %p2265_p0 = scmp.ge.s32.totalorder %s3669_s12, 1  ;;  %s3669_s12 = sphi %s3694_s12, %s13_s12  }
   0x2   : > { %p137_p1 = scmp.lt.s32.totalorder %s3669_s12, 3 }
   0x4   : > { %p138_p2 = pnand %p2265_p0, %p137_p1 }
   0x5   : > { %v187_v0 = vld [vmem:[%s4751_s1 + $0x80] sm:$0xff] (!%p138_p2)  ;;  %v188_v1 = vld [vmem:[%s4751_s1 + $0x88] sm:$0xff] (!%p138_p2)  ;;  %v189_v11 = vld [vmem:[%s4751_s1 + $0x90] sm:$0xff] (!%p138_p2)  ;;  %p3791_p3 = scmp.lt.s32.totalorder (!%p138_p2), %s2261_s13, 1  ;;  %vm3672_vm0 = vmmov (!%p138_p2), 0   ;;  %vm320_vm1 = vcmask (!%p138_p2), 261120  }
   0x6   : > { %141 = sbr.rel (%p138_p2) target bundleno = 508 (0x1fc), region = 32  ;;  %v219_v2 = vld [vmem:[%s4751_s1 + $0x180] sm:$0xff] (!%p138_p2)  ;;  %v3711_v3 = vpack.c.bf16 (!%p138_p2), %v188_v1, %v187_v0  ;;  %v220_v4 = vld [vmem:[%s4751_s1 + $0x188] sm:$0xff] (!%p138_p2)  ;;  %v190_v13 = vld [vmem:[%s4751_s1 + $0x98] sm:$0xff] (!%p138_p2)  ;;  %vm2197_vm2 = vcmask (!%p138_p2), 523264   ;;  %vm2204_vm3 = vcmask (!%p138_p2), 516096  }
   0x7   : > { %v171_v5 = vld [vmem:[%s4751_s1] sm:$0xff] (!%p138_p2)  ;;  %v172_v6 = vld [vmem:[%s4751_s1 + $0x8] sm:$0xff] (!%p138_p2)  ;;  %v3722_v7 = vpack.c.bf16 (!%p138_p2), %v220_v4, %v219_v2  ;;  %v221_v14 = vld [vmem:[%s4751_s1 + $0x190] sm:$0xff] (!%p138_p2)  ;;  %v3749_v16 = vpack.c.bf16 (!%p138_p2), %v190_v13, %v189_v11 }
   0x8   : > { %v3724_v8 = vpack.c.bf16 (!%p138_p2), %v172_v6, %v171_v5  ;;  %v203_v9 = vld [vmem:[%s4751_s1 + $0x100] sm:$0xff] (!%p138_p2)  ;;  %v204_v10 = vld [vmem:[%s4751_s1 + $0x108] sm:$0xff] (!%p138_p2)  ;;  %3243 = vmatprep.subr.bf16.mxu0 (!%p138_p2), %v3711_v3  ;;  %v222_v15 = vld [vmem:[%s4751_s1 + $0x198] sm:$0xff] (!%p138_p2) }
   0x9   : > { %v3736_v12 = vpack.c.bf16 (!%p138_p2), %v204_v10, %v203_v9  ;;  %3275 = vmatprep.subr.bf16.mxu1 (!%p138_p2), %v3722_v7  ;;  %v3751_v17 = vpack.c.bf16 (!%p138_p2), %v222_v15, %v221_v14  ;;  %v173_v18 = vld [vmem:[%s4751_s1 + $0x10] sm:$0xff] (!%p138_p2)  ;;  %v174_v19 = vld [vmem:[%s4751_s1 + $0x18] sm:$0xff] (!%p138_p2)  ;;  %v191_v23 = vld [vmem:[%s4751_s1 + $0xa0] sm:$0xff] (!%p138_p2) }
   0xa   : > { %3245 = vmatpush3.bf16.msra.mxu0 (!%p138_p2), %v3724_v8  ;;  %v205_v20 = vld [vmem:[%s4751_s1 + $0x110] sm:$0xff] (!%p138_p2)  ;;  %v3763_v21 = vpack.c.bf16 (!%p138_p2), %v174_v19, %v173_v18  ;;  %v206_v22 = vld [vmem:[%s4751_s1 + $0x118] sm:$0xff] (!%p138_p2)  ;;  %v192_v24 = vld [vmem:[%s4751_s1 + $0xa8] sm:$0xff] (!%p138_p2) }
   0xb   : > { %3277 = vmatpush3.bf16.msra.mxu1 (!%p138_p2), %v3736_v12  ;;  %3247 = vmatprep.subr.bf16.mxu0 (!%p138_p2), %v3749_v16  ;;  %v3776_v25 = vpack.c.bf16 (!%p138_p2), %v206_v22, %v205_v20  ;;  %v3778_v26 = vpack.c.bf16 (!%p138_p2), %v192_v24, %v191_v23  ;;  %v223_v27 = vld [vmem:[%s4751_s1 + $0x1a0] sm:$0xff] (!%p138_p2)  ;;  %v224_v28 = vld [vmem:[%s4751_s1 + $0x1a8] sm:$0xff] (!%p138_p2)  ;;  %v193_v35 = vld [vmem:[%s4751_s1 + $0xb0] sm:$0xff] (!%p138_p2) }
   0xc   : > { %3279 = vmatprep.subr.bf16.mxu1 (!%p138_p2), %v3751_v17  ;;  %v175_v29 = vld [vmem:[%s4751_s1 + $0x20] sm:$0xff] (!%p138_p2)  ;;  %v3795_v30 = vpack.c.bf16 (!%p138_p2), %v224_v28, %v223_v27  ;;  %v176_v31 = vld [vmem:[%s4751_s1 + $0x28] sm:$0xff] (!%p138_p2)  ;;  %v194_v36 = vld [vmem:[%s4751_s1 + $0xb8] sm:$0xff] (!%p138_p2) }
   0xd   : > { %v207_v32 = vld [vmem:[%s4751_s1 + $0x120] sm:$0xff]  ;;  %v208_v33 = vld [vmem:[%s4751_s1 + $0x128] sm:$0xff]  ;;  %v3807_v34 = vpack.c.bf16 %v176_v31, %v175_v29  ;;  %v225_v37 = vld [vmem:[%s4751_s1 + $0x1b0] sm:$0xff]  ;;  %v3822_v39 = vpack.c.bf16 %v194_v36, %v193_v35  ;;  %s4756_s13 = smov (!%p3791_p3, %s2261_s13), 1 }
   0xe   : > { %3249 = vmatpush3.bf16.msra.mxu0 %v3763_v21  ;;  %v3820_v38 = vpack.c.bf16 %v208_v33, %v207_v32  ;;  %v226_v40 = vld [vmem:[%s4751_s1 + $0x1b8] sm:$0xff]  ;;  %v177_v41 = vld [vmem:[%s4751_s1 + $0x30] sm:$0xff]  ;;  %v195_v46 = vld [vmem:[%s4751_s1 + $0xc0] sm:$0xff]  ;;  %s3650_s24 = smul.u32 1568, %s4756_s13 }
   0xf   : > { %3281 = vmatpush3.bf16.msra.mxu1 %v3776_v25  ;;  %3251 = vmatprep.subr.bf16.mxu0 %v3778_v26  ;;  %v178_v42 = vld [vmem:[%s4751_s1 + $0x38] sm:$0xff]  ;;  %v3834_v43 = vpack.c.bf16 %v226_v40, %v225_v37  ;;  %v209_v44 = vld [vmem:[%s4751_s1 + $0x130] sm:$0xff]  ;;  %v196_v47 = vld [vmem:[%s4751_s1 + $0xc8] sm:$0xff] }
  0x10   : > { %3283 = vmatprep.subr.bf16.mxu1 %v3795_v30  ;;  %v210_v45 = vld [vmem:[%s4751_s1 + $0x138] sm:$0xff]  ;;  %v227_v48 = vld [vmem:[%s4751_s1 + $0x1c0] sm:$0xff]  ;;  %v228_v49 = vld [vmem:[%s4751_s1 + $0x1c8] sm:$0xff]  ;;  %v3861_v50 = vpack.c.bf16 %v178_v42, %v177_v41  ;;  %v3867_v52 = vpack.c.bf16 %v196_v47, %v195_v46  ;;  %s3930_s18 = scalar_lea.vmem %s4750_s0, %s3650_s24 }
  0x11   : > { %v3865_v51 = vpack.c.bf16 %v210_v45, %v209_v44  ;;  %v179_v53 = vld [vmem:[%s4751_s1 + $0x40] sm:$0xff]  ;;  %v180_v54 = vld [vmem:[%s4751_s1 + $0x48] sm:$0xff]  ;;  %v3879_v56 = vpack.c.bf16 %v228_v49, %v227_v48  ;;  %v197_v58 = vld [vmem:[%s4751_s1 + $0xd0] sm:$0xff] }
  0x12   : > { %3253 = vmatpush3.bf16.msra.mxu0 %v3807_v34  ;;  %v211_v55 = vld [vmem:[%s4751_s1 + $0x140] sm:$0xff]  ;;  %v212_v57 = vld [vmem:[%s4751_s1 + $0x148] sm:$0xff]  ;;  %v198_v59 = vld [vmem:[%s4751_s1 + $0xd8] sm:$0xff]  ;;  %v3898_v62 = vpack.c.bf16 %v180_v54, %v179_v53 }
  0x13   : > { %3285 = vmatpush3.bf16.msra.mxu1 %v3820_v38  ;;  %3255 = vmatprep.subr.bf16.mxu0 %v3822_v39  ;;  %v229_v60 = vld [vmem:[%s4751_s1 + $0x1d0] sm:$0xff]  ;;  %v230_v61 = vld [vmem:[%s4751_s1 + $0x1d8] sm:$0xff]  ;;  %v3902_v63 = vpack.c.bf16 %v212_v57, %v211_v55  ;;  %v3904_v0 = vpack.c.bf16 %v198_v59, %v197_v58  ;;  %v199_v9 = vld [vmem:[%s4751_s1 + $0xe0] sm:$0xff] }
  0x14   : > { %3287 = vmatprep.subr.bf16.mxu1 %v3834_v43  ;;  %v181_v1 = vld [vmem:[%s4751_s1 + $0x50] sm:$0xff]  ;;  %v182_v2 = vld [vmem:[%s4751_s1 + $0x58] sm:$0xff]  ;;  %v3916_v5 = vpack.c.bf16 %v230_v61, %v229_v60  ;;  %v200_v10 = vld [vmem:[%s4751_s1 + $0xe8] sm:$0xff] }
  0x15   : > { %v213_v4 = vld [vmem:[%s4751_s1 + $0x150] sm:$0xff]  ;;  %v214_v6 = vld [vmem:[%s4751_s1 + $0x158] sm:$0xff]  ;;  %v231_v11 = vld [vmem:[%s4751_s1 + $0x1e0] sm:$0xff]  ;;  %v3939_v14 = vpack.c.bf16 %v182_v2, %v181_v1  ;;  %v3951_v20 = vpack.c.bf16 %v200_v10, %v199_v9  ;;  %v3671_v10 = vmov 0.0|0.0  }
  0x16   : > { %3257 = vmatpush3.bf16.msra.mxu0 %v3861_v50  ;;  %v232_v13 = vld [vmem:[%s4751_s1 + $0x1e8] sm:$0xff]  ;;  %v183_v15 = vld [vmem:[%s4751_s1 + $0x60] sm:$0xff]  ;;  %v3949_v19 = vpack.c.bf16 %v214_v6, %v213_v4  ;;  %v274_v24 = vld [vmem:[%s3930_s18 + $0x18] sm:$0xff] }
  0x17   : > { %3289 = vmatpush3.bf16.msra.mxu1 %v3865_v51  ;;  %3259 = vmatprep.subr.bf16.mxu0 %v3867_v52  ;;  %v184_v18 = vld [vmem:[%s4751_s1 + $0x68] sm:$0xff]  ;;  %v215_v22 = vld [vmem:[%s4751_s1 + $0x160] sm:$0xff]  ;;  %v3959_v27 = vpack.c.bf16 %v232_v13, %v231_v11  ;;  %v201_v29 = vld [vmem:[%s4751_s1 + $0xf0] sm:$0xff] }
  0x18   : > { %3291 = vmatprep.subr.bf16.mxu1 %v3879_v56  ;;  %v272_v23 = vld [vmem:[%s3930_s18 + $0x8] sm:$0xff]  ;;  %v202_v31 = vld [vmem:[%s4751_s1 + $0xf8] sm:$0xff]  ;;  %v233_v32 = vld [vmem:[%s4751_s1 + $0x1f0] sm:$0xff]  ;;  %506 = vmatprep.mubr.f32.mxu1 %v274_v24  ;;  %v3977_v35 = vpack.c.bf16 %v184_v18, %v183_v15 }
  0x19   : > { %v216_v28 = vld [vmem:[%s4751_s1 + $0x168] sm:$0xff]  ;;  %406 = vmatprep.mubr.f32.mxu0 %v272_v23  ;;  %v234_v33 = vld [vmem:[%s4751_s1 + $0x1f8] sm:$0xff]  ;;  %v3983_v37 = vpack.c.bf16 %v202_v31, %v201_v29  ;;  %v185_v40 = vld [vmem:[%s4751_s1 + $0x70] sm:$0xff] }
  0x1a   : > { %3261 = vmatpush3.bf16.msra.mxu0 %v3898_v62  ;;  %v3981_v36 = vpack.c.bf16 %v216_v28, %v215_v22  ;;  %v186_v41 = vld [vmem:[%s4751_s1 + $0x78] sm:$0xff]  ;;  %v217_v42 = vld [vmem:[%s4751_s1 + $0x170] sm:$0xff]  ;;  %v3995_v44 = vpack.c.bf16 %v234_v33, %v233_v32  ;;  %v251_v46 = vld [vmem:[%s4751_s1 + $0x280] sm:$0xff] }
  0x1b   : > { %3293 = vmatpush3.bf16.msra.mxu1 %v3902_v63  ;;  %3263 = vmatprep.subr.bf16.mxu0 %v3904_v0  ;;  %v218_v45 = vld [vmem:[%s4751_s1 + $0x178] sm:$0xff]  ;;  %v252_v47 = vld [vmem:[%s4751_s1 + $0x288] sm:$0xff]  ;;  %v4007_v48 = vpack.c.bf16 %v186_v41, %v185_v40  ;;  %v235_v54 = vld [vmem:[%s4751_s1 + $0x200] sm:$0xff] }
  0x1c   : > { %3295 = vmatprep.subr.bf16.mxu1 %v3916_v5  ;;  %v4011_v49 = vpack.c.bf16 %v218_v45, %v217_v42  ;;  %v4013_v53 = vpack.c.bf16 %v252_v47, %v251_v46  ;;  %v236_v55 = vld [vmem:[%s4751_s1 + $0x208] sm:$0xff]  ;;  %v267_v57 = vld [vmem:[%s4751_s1 + $0x300] sm:$0xff]  ;;  %v253_v59 = vld [vmem:[%s4751_s1 + $0x290] sm:$0xff] }
  0x1d   : > { %v268_v58 = vld [vmem:[%s4751_s1 + $0x308] sm:$0xff]  ;;  %v254_v60 = vld [vmem:[%s4751_s1 + $0x298] sm:$0xff]  ;;  %v271_v61 = vld [vmem:[%s3930_s18] sm:$0xff]  ;;  %v4036_v1 = vpack.c.bf16 %v236_v55, %v235_v54 }
  0x1e   : > { %3265 = vmatpush3.bf16.msra.mxu0 %v3939_v14  ;;  %v273_v2 = vld [vmem:[%s3930_s18 + $0x10] sm:$0xff]  ;;  %v4041_v4 = vpack.c.bf16 %v268_v58, %v267_v57  ;;  %v238_v9 = vld [vmem:[%s4751_s1 + $0x218] sm:$0xff]  ;;  %v279_v11 = vld [vmem:[%s3930_s18 + $0x40] sm:$0xff]  ;;  %v4052_v15 = vpack.c.bf16 %v254_v60, %v253_v59 }
  0x1f   : > { %3297 = vmatpush3.bf16.msra.mxu1 %v3949_v19  ;;  %3267 = vmatprep.subr.bf16.mxu0 %v3951_v20  ;;  %v237_v6 = vld [vmem:[%s4751_s1 + $0x210] sm:$0xff]  ;;  %v255_v18 = vld [vmem:[%s4751_s1 + $0x2a0] sm:$0xff]  ;;  %v256_v22 = vld [vmem:[%s4751_s1 + $0x2a8] sm:$0xff] }
  0x20   : > { %3299 = vmatprep.subr.bf16.mxu1 %v3959_v27  ;;  %v281_v13 = vld [vmem:[%s3930_s18 + $0x50] sm:$0xff]  ;;  %v270_v24 = vld [vmem:[%s4751_s1 + $0x318] sm:$0xff]  ;;  %v4068_v29 = vpack.c.bf16 %v238_v9, %v237_v6  ;;  %v280_v31 = vld [vmem:[%s3930_s18 + $0x48] sm:$0xff]  ;;  %v4081_v42 = vpack.c.bf16 %v256_v22, %v255_v18 }
  0x21   : > { %v269_v23 = vld [vmem:[%s4751_s1 + $0x310] sm:$0xff]  ;;  %v278_v28 = vld [vmem:[%s3930_s18 + $0x38] sm:$0xff]  ;;  %v239_v32 = vld [vmem:[%s4751_s1 + $0x220] sm:$0xff] }
  0x22   : > { %3269 = vmatpush3.bf16.msra.mxu0 %v3977_v35  ;;  %v240_v33 = vld [vmem:[%s4751_s1 + $0x228] sm:$0xff]  ;;  %v286_v40 = vld [vmem:[%s3930_s18 + $0x78] sm:$0xff]  ;;  %v4083_v45 = vpack.c.bf16 %v270_v24, %v269_v23  ;;  %v257_v46 = vld [vmem:[%s4751_s1 + $0x2b0] sm:$0xff] }
  0x23   : > { %3301 = vmatpush3.bf16.msra.mxu1 %v3981_v36  ;;  %3271 = vmatprep.subr.bf16.mxu0 %v3983_v37  ;;  %v288_v41 = vld [vmem:[%s3930_s18 + $0x88] sm:$0xff]  ;;  %v258_v47 = vld [vmem:[%s4751_s1 + $0x2b8] sm:$0xff]  ;;  %v285_v54 = vld [vmem:[%s3930_s18 + $0x70] sm:$0xff]  ;;  %v4094_v55 = vpack.c.bf16 %v240_v33, %v239_v32 }
  0x24   : > { %3303 = vmatprep.subr.bf16.mxu1 %v3995_v44  ;;  %v287_v57 = vld [vmem:[%s3930_s18 + $0x80] sm:$0xff]  ;;  %v241_v58 = vld [vmem:[%s4751_s1 + $0x230] sm:$0xff]  ;;  %v242_v59 = vld [vmem:[%s4751_s1 + $0x238] sm:$0xff] }
  0x25   : > { %v293_v60 = vld [vmem:[%s3930_s18 + $0xb0] sm:$0xff]  ;;  %v259_v6 = vld [vmem:[%s4751_s1 + $0x2c0] sm:$0xff]  ;;  %v260_v9 = vld [vmem:[%s4751_s1 + $0x2c8] sm:$0xff] }
  0x26   : > { %3273 = vmatpush3.bf16.msra.mxu0 %v4007_v48  ;;  %v294_v18 = vld [vmem:[%s3930_s18 + $0xb8] sm:$0xff]  ;;  %v243_v22 = vld [vmem:[%s4751_s1 + $0x240] sm:$0xff]  ;;  %v244_v23 = vld [vmem:[%s4751_s1 + $0x248] sm:$0xff] }
  0x27   : > { %3305 = vmatpush3.bf16.msra.mxu1 %v4011_v49  ;;  %3307 = vmatprep.subr.bf16.mxu0 %v4013_v53  ;;  %v300_v24 = vld [vmem:[%s3930_s18 + $0xe8] sm:$0xff]  ;;  %v261_v32 = vld [vmem:[%s4751_s1 + $0x2d0] sm:$0xff]  ;;  %v262_v33 = vld [vmem:[%s4751_s1 + $0x2d8] sm:$0xff] }
  0x28   : > { %3338 = vmatprep.subr.bf16.mxu1 %v3671_v10 }
  0x29   : > { %407 = vmatmul.mubr.f32.vlgmr.msra.gmra.mrb[0].mxu0 %v271_v61  ;;  %v295_v61 = vld [vmem:[%s3930_s18 + $0xc0] sm:$0xff] }
  0x2a   : > { %507 = vmatmul.mubr.f32.vlgmr.msra.gmra.mrb[0].mxu1 %v273_v2  ;;  %3309 = vmatpush3.bf16.msra.mxu0 %v4036_v1  ;;  %v4106_v2 = vpack.c.bf16 %v258_v47, %v257_v46  ;;  %v301_v46 = vld [vmem:[%s3930_s18 + $0xf0] sm:$0xff] }
  0x2b   : > { %3340 = vmatpush3.bf16.msra.mxu1 %v4041_v4  ;;  %411 = vmatprep.mubr.f32.mxu0 %v279_v11  ;;  %v292_v11 = vld [vmem:[%s3930_s18 + $0xa8] sm:$0xff]  ;;  %v245_v47 = vld [vmem:[%s4751_s1 + $0x250] sm:$0xff] }
  0x2c   : > { %511 = vmatprep.mubr.f32.mxu1 %v281_v13  ;;  %3311 = vmatprep.subr.bf16.mxu0 %v4052_v15  ;;  %v4118_v13 = vpack.c.bf16 %v242_v59, %v241_v58  ;;  %v309_v58 = vld [vmem:[%s3930_s18 + $0x130] sm:$0xff]  ;;  %v4152_v59 = vpack.c.bf16 %v262_v33, %v261_v32  ;;  %v266_v33 = vld [vmem:[%s4751_s1 + $0x2f8] sm:$0xff] }
  0x2d   : > { %412 = vmatmul.mubr.f32.gmra.mrb[2].mxu0 %v278_v28  ;;  %3341 = vmatprep.subr.bf16.mxu1 %v3671_v10  ;;  %v302_v28 = vld [vmem:[%s3930_s18 + $0xf8] sm:$0xff]  ;;  %v265_v32 = vld [vmem:[%s4751_s1 + $0x2f0] sm:$0xff] }
  0x2e   : > { %512 = vmatmul.mubr.f32.gmra.mrb[2].mxu1 %v280_v31  ;;  %3313 = vmatpush3.bf16.msra.mxu0 %v4068_v29  ;;  %v4130_v31 = vpack.c.bf16 %v260_v9, %v259_v6  ;;  %v306_v6 = vld [vmem:[%s3930_s18 + $0x118] sm:$0xff]  ;;  %v308_v9 = vld [vmem:[%s3930_s18 + $0x128] sm:$0xff] }
  0x2f   : > { %416 = vmatprep.mubr.f32.mxu0 %v286_v40  ;;  %516 = vmatprep.mubr.f32.mxu1 %v288_v41  ;;  %v299_v40 = vld [vmem:[%s3930_s18 + $0xe0] sm:$0xff]  ;;  %v4140_v41 = vpack.c.bf16 %v244_v23, %v243_v22  ;;  %v248_v23 = vld [vmem:[%s4751_s1 + $0x268] sm:$0xff] }
  0x30   : > { %3315 = vmatprep.subr.bf16.mxu0 %v4081_v42  ;;  %3343 = vmatpush3.bf16.msra.mxu1 %v4083_v45  ;;  %v247_v22 = vld [vmem:[%s4751_s1 + $0x260] sm:$0xff] }
  0x31   : > { %417 = vmatmul.mubr.f32.gmra.mrb[4].mxu0 %v285_v54  ;;  %3345 = vmatprep.subr.bf16.mxu1 %v3711_v3  ;;  %v246_v54 = vld [vmem:[%s4751_s1 + $0x258] sm:$0xff] }
  0x32   : > { %517 = vmatmul.mubr.f32.gmra.mrb[4].mxu1 %v287_v57  ;;  %3317 = vmatpush3.bf16.msra.mxu0 %v4094_v55  ;;  %v307_v57 = vld [vmem:[%s3930_s18 + $0x120] sm:$0xff] }
  0x33   : > { %421 = vmatprep.mubr.f32.mxu0 %v293_v60  ;;  %521 = vmatprep.mubr.f32.mxu1 %v295_v61  ;;  %v263_v60 = vld [vmem:[%s4751_s1 + $0x2e0] sm:$0xff]  ;;  %v264_v61 = vld [vmem:[%s4751_s1 + $0x2e8] sm:$0xff] }
  0x34   : > { %3319 = vmatprep.subr.bf16.mxu0 %v4106_v2 }
  0x35   : > { %422 = vmatmul.mubr.f32.gmra.mrb[6].mxu0 %v292_v11  ;;  %v4163_v11 = vpack.c.bf16 %v246_v54, %v245_v47  ;;  %v315_v47 = vld [vmem:[%s3930_s18 + $0x160] sm:$0x1]  ;;  %v4187_v54 = vpack.c.bf16 %v266_v33, %v265_v32  ;;  %v290_v32 = vld [vmem:[%s3930_s18 + $0x98] sm:$0xff] }
  0x36   : > { %522 = vmatmul.mubr.f32.gmra.mrb[6].mxu1 %v294_v18  ;;  %3321 = vmatpush3.bf16.msra.mxu0 %v4118_v13  ;;  %v314_v18 = vld [vmem:[%s3930_s18 + $0x158] sm:$0x1]  ;;  %v291_v33 = vld [vmem:[%s3930_s18 + $0xa0] sm:$0xff] }
  0x37   : > { %426 = vmatprep.mubr.f32.mxu0 %v300_v24  ;;  %526 = vmatprep.mubr.f32.mxu1 %v302_v28  ;;  %v316_v24 = vld [vmem:[%s3930_s18 + $0x168] sm:$0x1]  ;;  %v4174_v28 = vpack.c.bf16 %v264_v61, %v263_v60 }
  0x38   : > { %3323 = vmatprep.subr.bf16.mxu0 %v4130_v31  ;;  %v276_v60 = vld [vmem:[%s3930_s18 + $0x28] sm:$0xff] }
  0x39   : > { %427 = vmatmul.mubr.f32.gmra.mrb[8].mxu0 %v299_v40  ;;  %v313_v40 = vld [vmem:[%s3930_s18 + $0x150] sm:$0x1] }
  0x3a   : > { %527 = vmatmul.mubr.f32.gmra.mrb[8].mxu1 %v301_v46  ;;  %3325 = vmatpush3.bf16.msra.mxu0 %v4140_v41  ;;  %v4184_v46 = vpack.c.bf16 %v248_v23, %v247_v22  ;;  %v283_v22 = vld [vmem:[%s3930_s18 + $0x60] sm:$0xff]  ;;  %v284_v23 = vld [vmem:[%s3930_s18 + $0x68] sm:$0xff] }
  0x3b   : > { %431 = vmatprep.mubr.f32.mxu0 %v307_v57  ;;  %531 = vmatprep.mubr.f32.mxu1 %v309_v58  ;;  %v249_v57 = vld [vmem:[%s4751_s1 + $0x270] sm:$0xff]  ;;  %v250_v58 = vld [vmem:[%s4751_s1 + $0x278] sm:$0xff] }
  0x3c   : > { %3327 = vmatprep.subr.bf16.mxu0 %v4152_v59  ;;  %v4198_v61 = vpack.c.bf16 %v250_v58, %v249_v57  ;;  %v298_v57 = vld [vmem:[%s3930_s18 + $0xd8] sm:$0xff]  ;;  %v296_v58 = vld [vmem:[%s3930_s18 + $0xc8] sm:$0xff] }
  0x3d   : > { %432 = vmatmul.mubr.f32.gmra.mrb[10].mxu0 %v306_v6  ;;  %v3673_v6 = vmov 0.0  }
  0x3e   : > { %532 = vmatmul.mubr.f32.gmra.mrb[10].mxu1 %v308_v9  ;;  %3329 = vmatpush3.bf16.msra.mxu0 %v4163_v11  ;;  %v277_v9 = vld [vmem:[%s3930_s18 + $0x30] sm:$0xff] }
  0x3f   : > { %436 = vmatprep.mubr.f32.mxu0 %v314_v18  ;;  %536 = vmatprep.mubr.f32.mxu1 %v316_v24  ;;  %v275_v18 = vld [vmem:[%s3930_s18 + $0x20] sm:$0xff]  ;;  %v282_v24 = vld [vmem:[%s3930_s18 + $0x58] sm:$0xff] }
  0x40   : > { %3331 = vmatprep.subr.bf16.mxu0 %v4174_v28 }
  0x41   : > { %437 = vmatmul.mubr.f32.gmra.mrb[12].mxu0 %v313_v40  ;;  %v289_v40 = vld [vmem:[%s3930_s18 + $0x90] sm:$0xff] }
  0x42   : > { %537 = vmatmul.mubr.f32.gmra.mrb[12].mxu1 %v315_v47  ;;  %3333 = vmatpush3.bf16.msra.mxu0 %v4184_v46  ;;  %v297_v47 = vld [vmem:[%s3930_s18 + $0xd0] sm:$0xff] }
  0x43   : > { %3134 = vmatprep.mubr.msk.f32.mxu1 %vm3672_vm0, %v3673_v6  ;;  %3335 = vmatprep.subr.bf16.mxu0 %v4187_v54 }
  0x44   : > { %606 = vmatprep.mubr.f32.mxu0 %v276_v60  ;;  %v304_v60 = vld [vmem:[%s3930_s18 + $0x108] sm:$0xff] }
  0x46   : > { %3135 = vmatmul.mubr.msk.f32.vlgmr.msra.gmra.mrb[14].mxu1 %vm320_vm1, %v277_v9  ;;  %3337 = vmatpush3.bf16.msra.mxu0 %v4198_v61  ;;  %v305_v9 = vld [vmem:[%s3930_s18 + $0x110] sm:$0xff] }
  0x47   : > { %3347 = vmatpush3.bf16.msra.mxu1 %v3724_v8  ;;  %3377 = vmatprep.subr.bf16.mxu0 %v3722_v7 }
  0x48   : > { %3349 = vmatprep.subr.bf16.mxu1 %v3749_v16  ;;  %3137 = vmatprep.mubr.msk.f32.mxu1 %vm3672_vm0, %v3673_v6 }
  0x49   : > { %607 = vmatmul.mubr.f32.vlgmr.msra.gmra.mrb[14].mxu0 %v275_v18  ;;  %v303_v18 = vld [vmem:[%s3930_s18 + $0x100] sm:$0xff] }
  0x4a   : > { %3379 = vmatpush3.bf16.msra.mxu0 %v3736_v12  ;;  %611 = vmatprep.mubr.f32.mxu0 %v283_v22  ;;  %v311_v22 = vld [vmem:[%s3930_s18 + $0x140] sm:$0xff] }
  0x4b   : > { %3351 = vmatpush3.bf16.msra.mxu1 %v3763_v21  ;;  %3381 = vmatprep.subr.bf16.mxu0 %v3751_v17 }
  0x4c   : > { %3138 = vmatmul.mubr.msk.f32.gmra.mrb[16].mxu1 %vm320_vm1, %v284_v23  ;;  %3353 = vmatprep.subr.bf16.mxu1 %v3778_v26  ;;  %v312_v23 = vld [vmem:[%s3930_s18 + $0x148] sm:$0xff] }
  0x4d   : > { %612 = vmatmul.mubr.f32.gmra.mrb[16].mxu0 %v282_v24  ;;  %3140 = vmatprep.mubr.msk.f32.mxu1 %vm3672_vm0, %v3673_v6  ;;  %v310_v24 = vld [vmem:[%s3930_s18 + $0x138] sm:$0xff] }
  0x4e   : > { %3383 = vmatpush3.bf16.msra.mxu0 %v3776_v25  ;;  %616 = vmatprep.mubr.f32.mxu0 %v290_v32  ;;  %v318_v32 = vld [vmem:[%s3930_s18 + $0x178] sm:$0x1] }
  0x4f   : > { %3355 = vmatpush3.bf16.msra.mxu1 %v3807_v34  ;;  %3385 = vmatprep.subr.bf16.mxu0 %v3795_v30 }
  0x50   : > { %3141 = vmatmul.mubr.msk.f32.gmra.mrb[18].mxu1 %vm320_vm1, %v291_v33  ;;  %3357 = vmatprep.subr.bf16.mxu1 %v3822_v39  ;;  %v319_v33 = vld [vmem:[%s3930_s18 + $0x180] sm:$0x1] }
  0x51   : > { %617 = vmatmul.mubr.f32.gmra.mrb[18].mxu0 %v289_v40  ;;  %3143 = vmatprep.mubr.msk.f32.mxu1 %vm3672_vm0, %v3673_v6  ;;  %v317_v40 = vld [vmem:[%s3930_s18 + $0x170] sm:$0x1] }
  0x52   : > { %3387 = vmatpush3.bf16.msra.mxu0 %v3820_v38  ;;  %621 = vmatprep.mubr.f32.mxu0 %v297_v47  ;;  %v2276_v47 = vld [vmem:[%s3930_s18 + $0x190] sm:$0xff] }
  0x53   : > { %3359 = vmatpush3.bf16.msra.mxu1 %v3861_v50  ;;  %3389 = vmatprep.subr.bf16.mxu0 %v3834_v43 }
  0x54   : > { %3144 = vmatmul.mubr.msk.f32.gmra.mrb[20].mxu1 %vm320_vm1, %v298_v57  ;;  %3361 = vmatprep.subr.bf16.mxu1 %v3867_v52  ;;  %v2278_v57 = vld [vmem:[%s3930_s18 + $0x1a0] sm:$0xff] }
  0x55   : > { %622 = vmatmul.mubr.f32.gmra.mrb[20].mxu0 %v296_v58  ;;  %3146 = vmatprep.mubr.msk.f32.mxu1 %vm3672_vm0, %v3673_v6  ;;  %v2275_v58 = vld [vmem:[%s3930_s18 + $0x188] sm:$0xff] }
  0x56   : > { %3391 = vmatpush3.bf16.msra.mxu0 %v3865_v51  ;;  %626 = vmatprep.mubr.f32.mxu0 %v304_v60  ;;  %v2283_v60 = vld [vmem:[%s3930_s18 + $0x1c8] sm:$0xff] }
  0x57   : > { %3363 = vmatpush3.bf16.msra.mxu1 %v3898_v62  ;;  %3393 = vmatprep.subr.bf16.mxu0 %v3879_v56 }
  0x58   : > { %3147 = vmatmul.mubr.msk.f32.gmra.mrb[22].mxu1 %vm320_vm1, %v305_v9  ;;  %3365 = vmatprep.subr.bf16.mxu1 %v3904_v0  ;;  %v2277_v9 = vld [vmem:[%s3930_s18 + $0x198] sm:$0xff] }
  0x59   : > { %627 = vmatmul.mubr.f32.gmra.mrb[22].mxu0 %v303_v18  ;;  %3149 = vmatprep.mubr.msk.f32.mxu1 %vm3672_vm0, %v3673_v6  ;;  %v2282_v18 = vld [vmem:[%s3930_s18 + $0x1c0] sm:$0xff] }
  0x5a   : > { %3395 = vmatpush3.bf16.msra.mxu0 %v3902_v63  ;;  %631 = vmatprep.mubr.f32.mxu0 %v311_v22  ;;  %v2285_v22 = vld [vmem:[%s3930_s18 + $0x1d8] sm:$0xff] }
  0x5b   : > { %3367 = vmatpush3.bf16.msra.mxu1 %v3939_v14  ;;  %3397 = vmatprep.subr.bf16.mxu0 %v3916_v5 }
  0x5c   : > { %3150 = vmatmul.mubr.msk.f32.gmra.mrb[24].mxu1 %vm320_vm1, %v312_v23  ;;  %3369 = vmatprep.subr.bf16.mxu1 %v3951_v20  ;;  %v2290_v23 = vld [vmem:[%s3930_s18 + $0x200] sm:$0xff] }
  0x5d   : > { %632 = vmatmul.mubr.f32.gmra.mrb[24].mxu0 %v310_v24  ;;  %3152 = vmatprep.mubr.msk.f32.mxu1 %vm3672_vm0, %v3673_v6  ;;  %v2284_v24 = vld [vmem:[%s3930_s18 + $0x1d0] sm:$0xff] }
  0x5e   : > { %3399 = vmatpush3.bf16.msra.mxu0 %v3949_v19  ;;  %636 = vmatprep.mubr.f32.mxu0 %v318_v32  ;;  %v2289_v32 = vld [vmem:[%s3930_s18 + $0x1f8] sm:$0xff] }
  0x5f   : > { %3371 = vmatpush3.bf16.msra.mxu1 %v3977_v35  ;;  %3401 = vmatprep.subr.bf16.mxu0 %v3959_v27 }
  0x60   : > { %3153 = vmatmul.mubr.msk.f32.gmra.mrb[26].mxu1 %vm320_vm1, %v319_v33  ;;  %3373 = vmatprep.subr.bf16.mxu1 %v3983_v37  ;;  %v2292_v33 = vld [vmem:[%s3930_s18 + $0x210] sm:$0xff] }
  0x61   : > { %637 = vmatmul.mubr.f32.gmra.mrb[26].mxu0 %v317_v40  ;;  %877 = vmatprep.mubr.f32.mxu1 %v2276_v47  ;;  %v2297_v40 = vld [vmem:[%s3930_s18 + $0x238] sm:$0xff]  ;;  %v2291_v47 = vld [vmem:[%s3930_s18 + $0x208] sm:$0xff] }
  0x62   : > { %3403 = vmatpush3.bf16.msra.mxu0 %v3981_v36  ;;  %977 = vmatprep.mubr.f32.mxu0 %v2278_v57  ;;  %v2296_v57 = vld [vmem:[%s3930_s18 + $0x230] sm:$0xff] }
  0x63   : > { %3375 = vmatpush3.bf16.msra.mxu1 %v4007_v48  ;;  %3405 = vmatprep.subr.bf16.mxu0 %v3995_v44 }
  0x64   : > { %3409 = vmatprep.subr.bf16.mxu1 %v4013_v53 }
  0x66   : > { %878 = vmatmul.mubr.f32.vlgmr.msra.gmra.mrb[28].mxu1 %v2275_v58  ;;  %3407 = vmatpush3.bf16.msra.mxu0 %v4011_v49  ;;  %v2299_v58 = vld [vmem:[%s3930_s18 + $0x248] sm:$0xff] }
  0x67   : > { %3411 = vmatpush3.bf16.msra.mxu1 %v4036_v1  ;;  %882 = vmatprep.mubr.f32.mxu1 %v2283_v60  ;;  %v2304_v60 = vld [vmem:[%s3930_s18 + $0x270] sm:$0xff] }
  0x68   : > { %3413 = vmatprep.subr.bf16.mxu1 %v4052_v15  ;;  %3440 = vmatprep.subr.bf16.mxu0 %v3671_v10 }
  0x69   : > { %978 = vmatmul.mubr.f32.vlgmr.msra.gmra.mrb[28].mxu0 %v2277_v9  ;;  %v2298_v9 = vld [vmem:[%s3930_s18 + $0x240] sm:$0xff] }
  0x6a   : > { %883 = vmatmul.mubr.f32.gmra.mrb[30].mxu1 %v2282_v18  ;;  %982 = vmatprep.mubr.f32.mxu0 %v2285_v22  ;;  %v2303_v18 = vld [vmem:[%s3930_s18 + $0x268] sm:$0xff]  ;;  %v2306_v22 = vld [vmem:[%s3930_s18 + $0x280] sm:$0xff] }
  0x6b   : > { %3415 = vmatpush3.bf16.msra.mxu1 %v4068_v29  ;;  %3442 = vmatpush3.bf16.msra.mxu0 %v4041_v4 }
  0x6c   : > { %3417 = vmatprep.subr.bf16.mxu1 %v4081_v42  ;;  %887 = vmatprep.mubr.f32.mxu1 %v2290_v23  ;;  %v2311_v23 = vld [vmem:[%s3930_s18 + $0x2a8] sm:$0xff] }
  0x6d   : > { %983 = vmatmul.mubr.f32.gmra.mrb[30].mxu0 %v2284_v24  ;;  %3443 = vmatprep.subr.bf16.mxu0 %v3671_v10  ;;  %v2305_v24 = vld [vmem:[%s3930_s18 + $0x278] sm:$0xff] }
  0x6e   : > { %888 = vmatmul.mubr.f32.gmra.mrb[32].mxu1 %v2289_v32  ;;  %987 = vmatprep.mubr.f32.mxu0 %v2292_v33  ;;  %v2310_v32 = vld [vmem:[%s3930_s18 + $0x2a0] sm:$0xff]  ;;  %v2313_v33 = vld [vmem:[%s3930_s18 + $0x2b8] sm:$0xff] }
  0x6f   : > { %3419 = vmatpush3.bf16.msra.mxu1 %v4094_v55  ;;  %892 = vmatprep.mubr.f32.mxu1 %v2297_v40  ;;  %v2318_v40 = vld [vmem:[%s3930_s18 + $0x2e0] sm:$0x1] }
  0x70   : > { %3421 = vmatprep.subr.bf16.mxu1 %v4106_v2  ;;  %3445 = vmatpush3.bf16.msra.mxu0 %v4083_v45 }
  0x71   : > { %988 = vmatmul.mubr.f32.gmra.mrb[32].mxu0 %v2291_v47  ;;  %3447 = vmatprep.subr.bf16.mxu0 %v3711_v3  ;;  %v2312_v47 = vld [vmem:[%s3930_s18 + $0x2b0] sm:$0xff] }
  0x72   : > { %893 = vmatmul.mubr.f32.gmra.mrb[34].mxu1 %v2296_v57  ;;  %992 = vmatprep.mubr.f32.mxu0 %v2299_v58  ;;  %v2317_v57 = vld [vmem:[%s3930_s18 + $0x2d8] sm:$0x1]  ;;  %v2320_v58 = vld [vmem:[%s3930_s18 + $0x2f0] sm:$0x1] }
  0x73   : > { %3423 = vmatpush3.bf16.msra.mxu1 %v4118_v13  ;;  %897 = vmatprep.mubr.f32.mxu1 %v2304_v60  ;;  %v2280_v60 = vld [vmem:[%s3930_s18 + $0x1b0] sm:$0xff] }
  0x74   : > { %3425 = vmatprep.subr.bf16.mxu1 %v4130_v31 }
  0x75   : > { %993 = vmatmul.mubr.f32.gmra.mrb[34].mxu0 %v2298_v9  ;;  %v2319_v9 = vld [vmem:[%s3930_s18 + $0x2e8] sm:$0x1] }
  0x76   : > { %898 = vmatmul.mubr.f32.gmra.mrb[36].mxu1 %v2303_v18  ;;  %997 = vmatprep.mubr.f32.mxu0 %v2306_v22  ;;  %v2281_v18 = vld [vmem:[%s3930_s18 + $0x1b8] sm:$0xff]  ;;  %v2279_v22 = vld [vmem:[%s3930_s18 + $0x1a8] sm:$0xff] }
  0x77   : > { %3427 = vmatpush3.bf16.msra.mxu1 %v4140_v41  ;;  %902 = vmatprep.mubr.f32.mxu1 %v2311_v23  ;;  %v2287_v23 = vld [vmem:[%s3930_s18 + $0x1e8] sm:$0xff] }
  0x78   : > { %3429 = vmatprep.subr.bf16.mxu1 %v4152_v59 }
  0x79   : > { %998 = vmatmul.mubr.f32.gmra.mrb[36].mxu0 %v2305_v24  ;;  %v2286_v24 = vld [vmem:[%s3930_s18 + $0x1e0] sm:$0xff] }
  0x7a   : > { %903 = vmatmul.mubr.f32.gmra.mrb[38].mxu1 %v2310_v32  ;;  %1002 = vmatprep.mubr.f32.mxu0 %v2313_v33  ;;  %v2294_v32 = vld [vmem:[%s3930_s18 + $0x220] sm:$0xff]  ;;  %v2288_v33 = vld [vmem:[%s3930_s18 + $0x1f0] sm:$0xff] }
  0x7b   : > { %3431 = vmatpush3.bf16.msra.mxu1 %v4163_v11  ;;  %907 = vmatprep.mubr.f32.mxu1 %v2318_v40  ;;  %v2293_v40 = vld [vmem:[%s3930_s18 + $0x218] sm:$0xff] }
  0x7c   : > { %3433 = vmatprep.subr.bf16.mxu1 %v4174_v28 }
  0x7d   : > { %1003 = vmatmul.mubr.f32.gmra.mrb[38].mxu0 %v2312_v47  ;;  %v2301_v47 = vld [vmem:[%s3930_s18 + $0x258] sm:$0xff] }
  0x7e   : > { %908 = vmatmul.mubr.f32.gmra.mrb[40].mxu1 %v2317_v57  ;;  %1007 = vmatprep.mubr.f32.mxu0 %v2320_v58  ;;  %v2295_v57 = vld [vmem:[%s3930_s18 + $0x228] sm:$0xff]  ;;  %v2300_v58 = vld [vmem:[%s3930_s18 + $0x250] sm:$0xff] }
  0x7f   : > { %3435 = vmatpush3.bf16.msra.mxu1 %v4184_v46  ;;  %1077 = vmatprep.mubr.f32.mxu1 %v2280_v60  ;;  %v2308_v60 = vld [vmem:[%s3930_s18 + $0x290] sm:$0xff] }
  0x80   : > { %3437 = vmatprep.subr.bf16.mxu1 %v4187_v54 }
  0x81   : > { %1008 = vmatmul.mubr.f32.gmra.mrb[40].mxu0 %v2319_v9  ;;  %v2302_v9 = vld [vmem:[%s3930_s18 + $0x260] sm:$0xff] }
  0x82   : > { %3163 = vmatprep.mubr.msk.f32.mxu0 %vm3672_vm0, %v3673_v6 }
  0x83   : > { %3439 = vmatpush3.bf16.msra.mxu1 %v4198_v61 }
  0x84   : > { %3479 = vmatprep.subr.bf16.mxu1 %v3722_v7 }
  0x85   : > { %3164 = vmatmul.mubr.msk.f32.vlgmr.msra.gmra.mrb[42].mxu0 %vm320_vm1, %v2281_v18  ;;  %v2307_v18 = vld [vmem:[%s3930_s18 + $0x288] sm:$0xff] }
  0x86   : > { %1078 = vmatmul.mubr.f32.vlgmr.msra.gmra.mrb[42].mxu1 %v2279_v22  ;;  %3449 = vmatpush3.bf16.msra.mxu0 %v3724_v8  ;;  %v2315_v22 = vld [vmem:[%s3930_s18 + $0x2c8] sm:$0xff] }
  0x87   : > { %3481 = vmatpush3.bf16.msra.mxu1 %v3736_v12  ;;  %1082 = vmatprep.mubr.f32.mxu1 %v2287_v23  ;;  %v2309_v23 = vld [vmem:[%s3930_s18 + $0x298] sm:$0xff] }
  0x88   : > { %3451 = vmatprep.subr.bf16.mxu0 %v3749_v16  ;;  %3483 = vmatprep.subr.bf16.mxu1 %v3751_v17 }
  0x89   : > { %3166 = vmatprep.mubr.msk.f32.mxu0 %vm3672_vm0, %v3673_v6 }
  0x8a   : > { %1083 = vmatmul.mubr.f32.gmra.mrb[44].mxu1 %v2286_v24  ;;  %3453 = vmatpush3.bf16.msra.mxu0 %v3763_v21  ;;  %v2314_v24 = vld [vmem:[%s3930_s18 + $0x2c0] sm:$0xff] }
  0x8b   : > { %3485 = vmatpush3.bf16.msra.mxu1 %v3776_v25  ;;  %1087 = vmatprep.mubr.f32.mxu1 %v2294_v32  ;;  %v2322_v32 = vld [vmem:[%s3930_s18 + $0x300] sm:$0x1] }
  0x8c   : > { %3167 = vmatmul.mubr.msk.f32.gmra.mrb[44].mxu0 %vm320_vm1, %v2288_v33  ;;  %3455 = vmatprep.subr.bf16.mxu0 %v3778_v26  ;;  %v2316_v33 = vld [vmem:[%s3930_s18 + $0x2d0] sm:$0xff] }
  0x8d   : > { %3487 = vmatprep.subr.bf16.mxu1 %v3795_v30  ;;  %3169 = vmatprep.mubr.msk.f32.mxu0 %vm3672_vm0, %v3673_v6 }
  0x8e   : > { %1088 = vmatmul.mubr.f32.gmra.mrb[46].mxu1 %v2293_v40  ;;  %3457 = vmatpush3.bf16.msra.mxu0 %v3807_v34  ;;  %v2321_v40 = vld [vmem:[%s3930_s18 + $0x2f8] sm:$0x1] }
  0x8f   : > { %3489 = vmatpush3.bf16.msra.mxu1 %v3820_v38  ;;  %1092 = vmatprep.mubr.f32.mxu1 %v2301_v47  ;;  %v2323_v47 = vld [vmem:[%s3930_s18 + $0x308] sm:$0x1] }
  0x90   : > { %3170 = vmatmul.mubr.msk.f32.gmra.mrb[46].mxu0 %vm320_vm1, %v2295_v57  ;;  %3459 = vmatprep.subr.bf16.mxu0 %v3822_v39  ;;  %v2332_v57 = vld [vmem:[%s3930_s18 + $0x318] sm:$0xff] }
  0x91   : > { %3491 = vmatprep.subr.bf16.mxu1 %v3834_v43  ;;  %3172 = vmatprep.mubr.msk.f32.mxu0 %vm3672_vm0, %v3673_v6 }
  0x92   : > { %1093 = vmatmul.mubr.f32.gmra.mrb[48].mxu1 %v2300_v58  ;;  %3461 = vmatpush3.bf16.msra.mxu0 %v3861_v50  ;;  %v2334_v58 = vld [vmem:[%s3930_s18 + $0x328] sm:$0xff] }
  0x93   : > { %3493 = vmatpush3.bf16.msra.mxu1 %v3865_v51  ;;  %1097 = vmatprep.mubr.f32.mxu1 %v2308_v60  ;;  %v2331_v60 = vld [vmem:[%s3930_s18 + $0x310] sm:$0xff] }
  0x94   : > { %3173 = vmatmul.mubr.msk.f32.gmra.mrb[48].mxu0 %vm320_vm1, %v2302_v9  ;;  %3463 = vmatprep.subr.bf16.mxu0 %v3867_v52  ;;  %v2333_v9 = vld [vmem:[%s3930_s18 + $0x320] sm:$0xff] }
  0x95   : > { %3495 = vmatprep.subr.bf16.mxu1 %v3879_v56  ;;  %3175 = vmatprep.mubr.msk.f32.mxu0 %vm3672_vm0, %v3673_v6 }
  0x96   : > { %1098 = vmatmul.mubr.f32.gmra.mrb[50].mxu1 %v2307_v18  ;;  %3465 = vmatpush3.bf16.msra.mxu0 %v3898_v62  ;;  %v2339_v18 = vld [vmem:[%s3930_s18 + $0x350] sm:$0xff] }
  0x97   : > { %3497 = vmatpush3.bf16.msra.mxu1 %v3902_v63  ;;  %1102 = vmatprep.mubr.f32.mxu1 %v2315_v22  ;;  %v2341_v22 = vld [vmem:[%s3930_s18 + $0x360] sm:$0xff] }
  0x98   : > { %3176 = vmatmul.mubr.msk.f32.gmra.mrb[50].mxu0 %vm320_vm1, %v2309_v23  ;;  %3467 = vmatprep.subr.bf16.mxu0 %v3904_v0  ;;  %v2338_v23 = vld [vmem:[%s3930_s18 + $0x348] sm:$0xff] }
  0x99   : > { %3499 = vmatprep.subr.bf16.mxu1 %v3916_v5  ;;  %3178 = vmatprep.mubr.msk.f32.mxu0 %vm3672_vm0, %v3673_v6 }
  0x9a   : > { %1103 = vmatmul.mubr.f32.gmra.mrb[52].mxu1 %v2314_v24  ;;  %3469 = vmatpush3.bf16.msra.mxu0 %v3939_v14  ;;  %v2340_v24 = vld [vmem:[%s3930_s18 + $0x358] sm:$0xff] }
  0x9b   : > { %3501 = vmatpush3.bf16.msra.mxu1 %v3949_v19  ;;  %1107 = vmatprep.mubr.f32.mxu1 %v2322_v32  ;;  %v2346_v32 = vld [vmem:[%s3930_s18 + $0x388] sm:$0xff] }
  0x9c   : > { %3179 = vmatmul.mubr.msk.f32.gmra.mrb[52].mxu0 %vm320_vm1, %v2316_v33  ;;  %3471 = vmatprep.subr.bf16.mxu0 %v3951_v20  ;;  %v2348_v33 = vld [vmem:[%s3930_s18 + $0x398] sm:$0xff] }
  0x9d   : > { %3503 = vmatprep.subr.bf16.mxu1 %v3959_v27  ;;  %3181 = vmatprep.mubr.msk.f32.mxu0 %vm3672_vm0, %v3673_v6 }
  0x9e   : > { %1108 = vmatmul.mubr.f32.gmra.mrb[54].mxu1 %v2321_v40  ;;  %3473 = vmatpush3.bf16.msra.mxu0 %v3977_v35  ;;  %v2345_v40 = vld [vmem:[%s3930_s18 + $0x380] sm:$0xff] }
  0x9f   : > { %3505 = vmatpush3.bf16.msra.mxu1 %v3981_v36  ;;  %3475 = vmatprep.subr.bf16.mxu0 %v3983_v37 }
  0xa0   : > { %3182 = vmatmul.mubr.msk.f32.gmra.mrb[54].mxu0 %vm320_vm1, %v2323_v47  ;;  %3507 = vmatprep.subr.bf16.mxu1 %v3995_v44  ;;  %v2347_v47 = vld [vmem:[%s3930_s18 + $0x390] sm:$0xff] }
  0xa1   : > { %1355 = vmatprep.mubr.f32.mxu0 %v2332_v57  ;;  %1455 = vmatprep.mubr.f32.mxu1 %v2334_v58  ;;  %v2353_v57 = vld [vmem:[%s3930_s18 + $0x3c0] sm:$0xff]  ;;  %v2355_v58 = vld [vmem:[%s3930_s18 + $0x3d0] sm:$0xff] }
  0xa2   : > { %3477 = vmatpush3.bf16.msra.mxu0 %v4007_v48 }
  0xa3   : > { %3509 = vmatpush3.bf16.msra.mxu1 %v4011_v49  ;;  %3511 = vmatprep.subr.bf16.mxu0 %v4013_v53 }
  0xa4   : > { %3542 = vmatprep.subr.bf16.mxu1 %v3671_v10 }
  0xa5   : > { %1356 = vmatmul.mubr.f32.vlgmr.msra.gmra.mrb[56].mxu0 %v2331_v60  ;;  %v2352_v60 = vld [vmem:[%s3930_s18 + $0x3b8] sm:$0xff] }
  0xa6   : > { %1456 = vmatmul.mubr.f32.vlgmr.msra.gmra.mrb[56].mxu1 %v2333_v9  ;;  %3513 = vmatpush3.bf16.msra.mxu0 %v4036_v1  ;;  %v2354_v9 = vld [vmem:[%s3930_s18 + $0x3c8] sm:$0xff] }
  0xa7   : > { %3544 = vmatpush3.bf16.msra.mxu1 %v4041_v4  ;;  %1360 = vmatprep.mubr.f32.mxu0 %v2339_v18  ;;  %v2360_v18 = vld [vmem:[%s3930_s18 + $0x3f8] sm:$0xff] }
  0xa8   : > { %1460 = vmatprep.mubr.f32.mxu1 %v2341_v22  ;;  %3515 = vmatprep.subr.bf16.mxu0 %v4052_v15  ;;  %v2362_v22 = vld [vmem:[%s3930_s18 + $0x408] sm:$0xff] }
  0xa9   : > { %1361 = vmatmul.mubr.f32.gmra.mrb[58].mxu0 %v2338_v23  ;;  %3545 = vmatprep.subr.bf16.mxu1 %v3671_v10  ;;  %v2361_v23 = vld [vmem:[%s3930_s18 + $0x400] sm:$0xff] }
  0xaa   : > { %1461 = vmatmul.mubr.f32.gmra.mrb[58].mxu1 %v2340_v24  ;;  %3517 = vmatpush3.bf16.msra.mxu0 %v4068_v29  ;;  %v2367_v24 = vld [vmem:[%s3930_s18 + $0x430] sm:$0xff] }
  0xab   : > { %1365 = vmatprep.mubr.f32.mxu0 %v2346_v32  ;;  %1465 = vmatprep.mubr.f32.mxu1 %v2348_v33  ;;  %v2369_v32 = vld [vmem:[%s3930_s18 + $0x440] sm:$0xff]  ;;  %v2366_v33 = vld [vmem:[%s3930_s18 + $0x428] sm:$0xff] }
  0xac   : > { %3519 = vmatprep.subr.bf16.mxu0 %v4081_v42  ;;  %3547 = vmatpush3.bf16.msra.mxu1 %v4083_v45 }
  0xad   : > { %1366 = vmatmul.mubr.f32.gmra.mrb[60].mxu0 %v2345_v40  ;;  %3549 = vmatprep.subr.bf16.mxu1 %v3711_v3  ;;  %v2359_v3 = vld [vmem:[%s3930_s18 + $0x3f0] sm:$0xff]  ;;  %v2368_v40 = vld [vmem:[%s3930_s18 + $0x438] sm:$0xff] }
  0xae   : > { %1466 = vmatmul.mubr.f32.gmra.mrb[60].mxu1 %v2347_v47  ;;  %3521 = vmatpush3.bf16.msra.mxu0 %v4094_v55  ;;  %v2374_v47 = vld [vmem:[%s3930_s18 + $0x468] sm:$0x1] }
  0xaf   : > { %1370 = vmatprep.mubr.f32.mxu0 %v2353_v57  ;;  %1470 = vmatprep.mubr.f32.mxu1 %v2355_v58  ;;  %v2376_v57 = vld [vmem:[%s3930_s18 + $0x478] sm:$0x1]  ;;  %v2373_v58 = vld [vmem:[%s3930_s18 + $0x460] sm:$0x1] }
  0xb0   : > { %3523 = vmatprep.subr.bf16.mxu0 %v4106_v2 }
  0xb1   : > { %1371 = vmatmul.mubr.f32.gmra.mrb[62].mxu0 %v2352_v60  ;;  %v2375_v60 = vld [vmem:[%s3930_s18 + $0x470] sm:$0x1] }
  0xb2   : > { %1471 = vmatmul.mubr.f32.gmra.mrb[62].mxu1 %v2354_v9  ;;  %3525 = vmatpush3.bf16.msra.mxu0 %v4118_v13  ;;  %v2336_v9 = vld [vmem:[%s3930_s18 + $0x338] sm:$0xff] }
  0xb3   : > { %1375 = vmatprep.mubr.f32.mxu0 %v2360_v18  ;;  %1475 = vmatprep.mubr.f32.mxu1 %v2362_v22  ;;  %v2337_v18 = vld [vmem:[%s3930_s18 + $0x340] sm:$0xff]  ;;  %v2335_v22 = vld [vmem:[%s3930_s18 + $0x330] sm:$0xff] }
  0xb4   : > { %3527 = vmatprep.subr.bf16.mxu0 %v4130_v31 }
  0xb5   : > { %1376 = vmatmul.mubr.f32.gmra.mrb[64].mxu0 %v2359_v3  ;;  %v2343_v3 = vld [vmem:[%s3930_s18 + $0x370] sm:$0xff] }
  0xb6   : > { %1476 = vmatmul.mubr.f32.gmra.mrb[64].mxu1 %v2361_v23  ;;  %3529 = vmatpush3.bf16.msra.mxu0 %v4140_v41  ;;  %v2344_v23 = vld [vmem:[%s3930_s18 + $0x378] sm:$0xff] }
  0xb7   : > { %1380 = vmatprep.mubr.f32.mxu0 %v2367_v24  ;;  %1480 = vmatprep.mubr.f32.mxu1 %v2369_v32  ;;  %v2342_v24 = vld [vmem:[%s3930_s18 + $0x368] sm:$0xff] }
  0xb8   : > { %3531 = vmatprep.subr.bf16.mxu0 %v4152_v59 }
  0xb9   : > { %1381 = vmatmul.mubr.f32.gmra.mrb[66].mxu0 %v2366_v33 }
  0xba   : > { %1481 = vmatmul.mubr.f32.gmra.mrb[66].mxu1 %v2368_v40  ;;  %3533 = vmatpush3.bf16.msra.mxu0 %v4163_v11 }
  0xbb   : > { %1385 = vmatprep.mubr.f32.mxu0 %v2374_v47  ;;  %1485 = vmatprep.mubr.f32.mxu1 %v2376_v57  ;;  %v2391_v57 = vld [vmem:[%s3930_s18 + $0x4b8] sm:$0xff] }
  0xbc   : > { %3535 = vmatprep.subr.bf16.mxu0 %v4174_v28 }
  0xbd   : > { %1386 = vmatmul.mubr.f32.gmra.mrb[68].mxu0 %v2373_v58  ;;  %v2399_v58 = vld [vmem:[%s3930_s18 + $0x4f8] sm:$0xff] }
  0xbe   : > { %1486 = vmatmul.mubr.f32.gmra.mrb[68].mxu1 %v2375_v60  ;;  %3537 = vmatpush3.bf16.msra.mxu0 %v4184_v46 }
  0xbf   : > { %3192 = vmatprep.mubr.msk.f32.mxu1 %vm3672_vm0, %v3673_v6  ;;  %3539 = vmatprep.subr.bf16.mxu0 %v4187_v54 }
  0xc0   : > { %1555 = vmatprep.mubr.f32.mxu0 %v2336_v9 }
  0xc2   : > { %3193 = vmatmul.mubr.msk.f32.vlgmr.msra.gmra.mrb[70].mxu1 %vm320_vm1, %v2337_v18  ;;  %3541 = vmatpush3.bf16.msra.mxu0 %v4198_v61 }
  0xc3   : > { %3551 = vmatpush3.bf16.msra.mxu1 %v3724_v8  ;;  %3581 = vmatprep.subr.bf16.mxu0 %v3722_v7  ;;  %v2350_v7 = vld [vmem:[%s3930_s18 + $0x3a8] sm:$0xff]  ;;  %v2351_v8 = vld [vmem:[%s3930_s18 + $0x3b0] sm:$0xff] }
  0xc4   : > { %3553 = vmatprep.subr.bf16.mxu1 %v3749_v16  ;;  %3195 = vmatprep.mubr.msk.f32.mxu1 %vm3672_vm0, %v3673_v6  ;;  %v2357_v16 = vld [vmem:[%s3930_s18 + $0x3e0] sm:$0xff] }
  0xc5   : > { %1556 = vmatmul.mubr.f32.vlgmr.msra.gmra.mrb[70].mxu0 %v2335_v22 }
  0xc6   : > { %3583 = vmatpush3.bf16.msra.mxu0 %v3736_v12  ;;  %1560 = vmatprep.mubr.f32.mxu0 %v2343_v3  ;;  %v2349_v12 = vld [vmem:[%s3930_s18 + $0x3a0] sm:$0xff] }
  0xc7   : > { %3555 = vmatpush3.bf16.msra.mxu1 %v3763_v21  ;;  %3585 = vmatprep.subr.bf16.mxu0 %v3751_v17  ;;  %v2358_v17 = vld [vmem:[%s3930_s18 + $0x3e8] sm:$0xff]  ;;  %v2356_v21 = vld [vmem:[%s3930_s18 + $0x3d8] sm:$0xff] }
  0xc8   : > { %3557 = vmatprep.subr.bf16.mxu1 %v3778_v26  ;;  %3196 = vmatmul.mubr.msk.f32.gmra.mrb[72].mxu1 %vm320_vm1, %v2344_v23  ;;  %v2365_v26 = vld [vmem:[%s3930_s18 + $0x420] sm:$0xff]  ;;  %v2398_v23 = vld [vmem:[%s3930_s18 + $0x4f0] sm:$0xff] }
  0xc9   : > { %1561 = vmatmul.mubr.f32.gmra.mrb[72].mxu0 %v2342_v24  ;;  %3198 = vmatprep.mubr.msk.f32.mxu1 %vm3672_vm0, %v3673_v6 }
  0xca   : > { %3587 = vmatpush3.bf16.msra.mxu0 %v3776_v25  ;;  %1565 = vmatprep.mubr.f32.mxu0 %v2350_v7  ;;  %v2364_v25 = vld [vmem:[%s3930_s18 + $0x418] sm:$0xff]  ;;  %v2406_v7 = vld [vmem:[%s3930_s18 + $0x530] sm:$0xff] }
  0xcb   : > { %3559 = vmatpush3.bf16.msra.mxu1 %v3807_v34  ;;  %3589 = vmatprep.subr.bf16.mxu0 %v3795_v30  ;;  %v2363_v30 = vld [vmem:[%s3930_s18 + $0x410] sm:$0xff] }
  0xcc   : > { %3561 = vmatprep.subr.bf16.mxu1 %v3822_v39  ;;  %3199 = vmatmul.mubr.msk.f32.gmra.mrb[74].mxu1 %vm320_vm1, %v2351_v8  ;;  %v2371_v34 = vld [vmem:[%s3930_s18 + $0x450] sm:$0xff]  ;;  %v2370_v39 = vld [vmem:[%s3930_s18 + $0x448] sm:$0xff] }
  0xcd   : > { %1566 = vmatmul.mubr.f32.gmra.mrb[74].mxu0 %v2349_v12  ;;  %3201 = vmatprep.mubr.msk.f32.mxu1 %vm3672_vm0, %v3673_v6 }
  0xce   : > { %3591 = vmatpush3.bf16.msra.mxu0 %v3820_v38  ;;  %1570 = vmatprep.mubr.f32.mxu0 %v2357_v16  ;;  %v2372_v38 = vld [vmem:[%s3930_s18 + $0x458] sm:$0xff] }
  0xcf   : > { %3563 = vmatpush3.bf16.msra.mxu1 %v3861_v50  ;;  %3593 = vmatprep.subr.bf16.mxu0 %v3834_v43  ;;  %v2378_v43 = vld [vmem:[%s3930_s18 + $0x488] sm:$0x1]  ;;  %v2379_v50 = vld [vmem:[%s3930_s18 + $0x490] sm:$0x1] }
  0xd0   : > { %3565 = vmatprep.subr.bf16.mxu1 %v3867_v52  ;;  %3202 = vmatmul.mubr.msk.f32.gmra.mrb[76].mxu1 %vm320_vm1, %v2358_v17  ;;  %v2388_v52 = vld [vmem:[%s3930_s18 + $0x4a0] sm:$0xff] }
  0xd1   : > { %1571 = vmatmul.mubr.f32.gmra.mrb[76].mxu0 %v2356_v21  ;;  %3204 = vmatprep.mubr.msk.f32.mxu1 %vm3672_vm0, %v3673_v6 }
  0xd2   : > { %3595 = vmatpush3.bf16.msra.mxu0 %v3865_v51  ;;  %1575 = vmatprep.mubr.f32.mxu0 %v2364_v25  ;;  %v2377_v51 = vld [vmem:[%s3930_s18 + $0x480] sm:$0x1]  ;;  %v2407_v25 = vld [vmem:[%s3930_s18 + $0x538] sm:$0xff] }
  0xd3   : > { %3567 = vmatpush3.bf16.msra.mxu1 %v3898_v62  ;;  %3597 = vmatprep.subr.bf16.mxu0 %v3879_v56  ;;  %v2390_v56 = vld [vmem:[%s3930_s18 + $0x4b0] sm:$0xff]  ;;  %v2387_v62 = vld [vmem:[%s3930_s18 + $0x498] sm:$0xff] }
  0xd4   : > { %3569 = vmatprep.subr.bf16.mxu1 %v3904_v0  ;;  %3205 = vmatmul.mubr.msk.f32.gmra.mrb[78].mxu1 %vm320_vm1, %v2365_v26  ;;  %v2389_v0 = vld [vmem:[%s3930_s18 + $0x4a8] sm:$0xff] }
  0xd5   : > { %1576 = vmatmul.mubr.f32.gmra.mrb[78].mxu0 %v2363_v30  ;;  %3207 = vmatprep.mubr.msk.f32.mxu1 %vm3672_vm0, %v3673_v6  ;;  %v2405_v30 = vld [vmem:[%s3930_s18 + $0x528] sm:$0xff] }
  0xd6   : > { %3599 = vmatpush3.bf16.msra.mxu0 %v3902_v63  ;;  %1580 = vmatprep.mubr.f32.mxu0 %v2371_v34  ;;  %v2395_v63 = vld [vmem:[%s3930_s18 + $0x4d8] sm:$0xff] }
  0xd7   : > { %3571 = vmatpush3.bf16.msra.mxu1 %v3939_v14  ;;  %3601 = vmatprep.subr.bf16.mxu0 %v3916_v5  ;;  %v2394_v5 = vld [vmem:[%s3930_s18 + $0x4d0] sm:$0xff]  ;;  %v2397_v14 = vld [vmem:[%s3930_s18 + $0x4e8] sm:$0xff] }
  0xd8   : > { %3573 = vmatprep.subr.bf16.mxu1 %v3951_v20  ;;  %3208 = vmatmul.mubr.msk.f32.gmra.mrb[80].mxu1 %vm320_vm1, %v2372_v38  ;;  %v2396_v20 = vld [vmem:[%s3930_s18 + $0x4e0] sm:$0xff]  ;;  %v2413_v38 = vld [vmem:[%s3930_s18 + $0x568] sm:$0xff] }
  0xd9   : > { %1581 = vmatmul.mubr.f32.gmra.mrb[80].mxu0 %v2370_v39  ;;  %3210 = vmatprep.mubr.msk.f32.mxu1 %vm3672_vm0, %v3673_v6 }
  0xda   : > { %3603 = vmatpush3.bf16.msra.mxu0 %v3949_v19  ;;  %1585 = vmatprep.mubr.f32.mxu0 %v2378_v43  ;;  %v2402_v19 = vld [vmem:[%s3930_s18 + $0x510] sm:$0xff] }
  0xdb   : > { %3575 = vmatpush3.bf16.msra.mxu1 %v3977_v35  ;;  %3605 = vmatprep.subr.bf16.mxu0 %v3959_v27  ;;  %v2401_v27 = vld [vmem:[%s3930_s18 + $0x508] sm:$0xff]  ;;  %v2404_v35 = vld [vmem:[%s3930_s18 + $0x520] sm:$0xff] }
  0xdc   : > { %3577 = vmatprep.subr.bf16.mxu1 %v3983_v37  ;;  %3211 = vmatmul.mubr.msk.f32.gmra.mrb[82].mxu1 %vm320_vm1, %v2379_v50  ;;  %v2403_v37 = vld [vmem:[%s3930_s18 + $0x518] sm:$0xff] }
  0xdd   : > { %1586 = vmatmul.mubr.f32.gmra.mrb[82].mxu0 %v2377_v51  ;;  %1833 = vmatprep.mubr.f32.mxu1 %v2388_v52 }
  0xde   : > { %3607 = vmatpush3.bf16.msra.mxu0 %v3981_v36  ;;  %1933 = vmatprep.mubr.f32.mxu0 %v2390_v56  ;;  %v2409_v36 = vld [vmem:[%s3930_s18 + $0x548] sm:$0xff]  ;;  %v2414_v56 = vld [vmem:[%s3930_s18 + $0x570] sm:$0xff] }
  0xdf   : > { %3579 = vmatpush3.bf16.msra.mxu1 %v4007_v48  ;;  %3609 = vmatprep.subr.bf16.mxu0 %v3995_v44  ;;  %v2408_v44 = vld [vmem:[%s3930_s18 + $0x540] sm:$0xff]  ;;  %v2411_v48 = vld [vmem:[%s3930_s18 + $0x558] sm:$0xff] }
  0xe0   : > { %3613 = vmatprep.subr.bf16.mxu1 %v4013_v53  ;;  %v2410_v53 = vld [vmem:[%s3930_s18 + $0x550] sm:$0xff] }
  0xe2   : > { %1834 = vmatmul.mubr.f32.vlgmr.msra.gmra.mrb[84].mxu1 %v2387_v62  ;;  %3611 = vmatpush3.bf16.msra.mxu0 %v4011_v49  ;;  %v2416_v49 = vld [vmem:[%s3930_s18 + $0x580] sm:$0xff] }
  0xe3   : > { %3615 = vmatpush3.bf16.msra.mxu1 %v4036_v1  ;;  %1838 = vmatprep.mubr.f32.mxu1 %v2395_v63  ;;  %v2415_v1 = vld [vmem:[%s3930_s18 + $0x578] sm:$0xff]  ;;  %v2412_v63 = vld [vmem:[%s3930_s18 + $0x560] sm:$0xff] }
  0xe4   : > { %3617 = vmatprep.subr.bf16.mxu1 %v4052_v15  ;;  %3644 = vmatprep.subr.bf16.mxu0 %v3671_v10  ;;  %v2417_v15 = vld [vmem:[%s3930_s18 + $0x588] sm:$0xff] }
  0xe5   : > { %1934 = vmatmul.mubr.f32.vlgmr.msra.gmra.mrb[84].mxu0 %v2389_v0 }
  0xe6   : > { %1839 = vmatmul.mubr.f32.gmra.mrb[86].mxu1 %v2394_v5  ;;  %1938 = vmatprep.mubr.f32.mxu0 %v2397_v14  ;;  %v2420_v5 = vld [vmem:[%s3930_s18 + $0x5a0] sm:$0xff] }
  0xe7   : > { %3619 = vmatpush3.bf16.msra.mxu1 %v4068_v29  ;;  %3646 = vmatpush3.bf16.msra.mxu0 %v4041_v4  ;;  %v2418_v4 = vld [vmem:[%s3930_s18 + $0x590] sm:$0xff] }
  0xe8   : > { %3621 = vmatprep.subr.bf16.mxu1 %v4081_v42  ;;  %1843 = vmatprep.mubr.f32.mxu1 %v2402_v19  ;;  %v2422_v29 = vld [vmem:[%s3930_s18 + $0x5b0] sm:$0xff]  ;;  %v2425_v42 = vld [vmem:[%s3930_s18 + $0x5c8] sm:$0xff] }
  0xe9   : > { %1939 = vmatmul.mubr.f32.gmra.mrb[86].mxu0 %v2396_v20  ;;  %3647 = vmatprep.subr.bf16.mxu0 %v3671_v10  ;;  %v2423_v10 = vld [vmem:[%s3930_s18 + $0x5b8] sm:$0xff] }
  0xea   : > { %1844 = vmatmul.mubr.f32.gmra.mrb[88].mxu1 %v2401_v27  ;;  %1943 = vmatprep.mubr.f32.mxu0 %v2404_v35 }
  0xeb   : > { %3623 = vmatpush3.bf16.msra.mxu1 %v4094_v55  ;;  %1848 = vmatprep.mubr.f32.mxu1 %v2409_v36  ;;  %v2424_v55 = vld [vmem:[%s3930_s18 + $0x5c0] sm:$0xff]  ;;  %v2421_v36 = vld [vmem:[%s3930_s18 + $0x5a8] sm:$0xff] }
  0xec   : > { %3625 = vmatprep.subr.bf16.mxu1 %v4106_v2  ;;  %3649 = vmatpush3.bf16.msra.mxu0 %v4083_v45  ;;  %v2430_v45 = vld [vmem:[%s3930_s18 + $0x5f0] sm:$0x1]  ;;  %v2429_v2 = vld [vmem:[%s3930_s18 + $0x5e8] sm:$0x1] }
  0xed   : > { %1944 = vmatmul.mubr.f32.gmra.mrb[88].mxu0 %v2403_v37 }
  0xee   : > { %1849 = vmatmul.mubr.f32.gmra.mrb[90].mxu1 %v2408_v44  ;;  %1948 = vmatprep.mubr.f32.mxu0 %v2411_v48  ;;  %v2419_v44 = vld [vmem:[%s3930_s18 + $0x598] sm:$0xff] }
  0xef   : > { %3627 = vmatpush3.bf16.msra.mxu1 %v4118_v13  ;;  %1853 = vmatprep.mubr.f32.mxu1 %v2416_v49  ;;  %v2432_v13 = vld [vmem:[%s3930_s18 + $0x600] sm:$0x1]  ;;  %v2427_v49 = vld [vmem:[%s3930_s18 + $0x5d8] sm:$0xff] }
  0xf0   : > { %3629 = vmatprep.subr.bf16.mxu1 %v4130_v31  ;;  %v2392_v31 = vld [vmem:[%s3930_s18 + $0x4c0] sm:$0xff] }
  0xf1   : > { %1949 = vmatmul.mubr.f32.gmra.mrb[90].mxu0 %v2410_v53 }
  0xf2   : > { %1854 = vmatmul.mubr.f32.gmra.mrb[92].mxu1 %v2415_v1  ;;  %1953 = vmatprep.mubr.f32.mxu0 %v2418_v4 }
  0xf3   : > { %3631 = vmatpush3.bf16.msra.mxu1 %v4140_v41  ;;  %1858 = vmatprep.mubr.f32.mxu1 %v2423_v10  ;;  %v2431_v41 = vld [vmem:[%s3930_s18 + $0x5f8] sm:$0x1] }
  0xf4   : > { %3633 = vmatprep.subr.bf16.mxu1 %v4152_v59 }
  0xf5   : > { %1954 = vmatmul.mubr.f32.gmra.mrb[92].mxu0 %v2417_v15 }
  0xf6   : > { %1859 = vmatmul.mubr.f32.gmra.mrb[94].mxu1 %v2422_v29  ;;  %1958 = vmatprep.mubr.f32.mxu0 %v2425_v42  ;;  %v2428_v29 = vld [vmem:[%s3930_s18 + $0x5e0] sm:$0xff] }
  0xf7   : > { %3635 = vmatpush3.bf16.msra.mxu1 %v4163_v11  ;;  %1863 = vmatprep.mubr.f32.mxu1 %v2430_v45  ;;  %v2426_v45 = vld [vmem:[%s3930_s18 + $0x5d0] sm:$0xff] }
  0xf8   : > { %3637 = vmatprep.subr.bf16.mxu1 %v4174_v28  ;;  %v2393_v28 = vld [vmem:[%s3930_s18 + $0x4c8] sm:$0xff] }
  0xf9   : > { %1959 = vmatmul.mubr.f32.gmra.mrb[94].mxu0 %v2424_v55 }
  0xfa   : > { %1864 = vmatmul.mubr.f32.gmra.mrb[96].mxu1 %v2429_v2  ;;  %1963 = vmatprep.mubr.f32.mxu0 %v2432_v13  ;;  %v2434_v2 = vld [vmem:[%s3930_s18 + $0x610] sm:$0x1] }
  0xfb   : > { %3639 = vmatpush3.bf16.msra.mxu1 %v4184_v46  ;;  %2033 = vmatprep.mubr.f32.mxu1 %v2392_v31 }
  0xfc   : > { %3641 = vmatprep.subr.bf16.mxu1 %v4187_v54  ;;  %v2478_v59 = vpop.f32.mrb[0].mxu0 }
  0xfd   : > { %v2531_v11 = vpop.f32.mrb[0].mxu1  ;;  %1964 = vmatmul.mubr.f32.gmra.mrb[96].mxu0 %v2431_v41  ;;  %v2479_v32 = vpop.f32.mrb[1].mxu0 }
  0xfe   : > { %v2480_v33 = vadd.f32 %v2479_v32, %v2478_v59  ;;  %v2532_v40 = vpop.f32.mrb[1].mxu1  ;;  %3221 = vmatprep.mubr.msk.f32.mxu0 %vm3672_vm0, %v3673_v6  ;;  %v2435_v32 = vld [vmem:[%s3930_s18 + $0x618] sm:$0x1] }
  0xff   : > { %3643 = vmatpush3.bf16.msra.mxu1 %v4198_v61  ;;  %v2533_v47 = vadd.f32 %v2532_v40, %v2531_v11  ;;  %v2400_v61 = vld [vmem:[%s3930_s18 + $0x500] sm:$0xff]  ;;  %v2433_v40 = vld [vmem:[%s3930_s18 + $0x608] sm:$0x1]  ;;  %s3651_s18 = smul.u32 56, %s4756_s13 }
 0x100   : > { %v2481_v46 = vpop.f32.mrb[2].mxu0 }
 0x101   : > { %v4572_v54 = vadd.f32 %v2533_v47, %v2480_v33  ;;  %v2534_v60 = vpop.f32.mrb[2].mxu1  ;;  %v2482_v9 = vpop.f32.mrb[3].mxu0  ;;  %3222 = vmatmul.mubr.msk.f32.vlgmr.msra.gmra.mrb[98].mxu0 %vm320_vm1, %v2393_v28  ;;  %s4717_s13 = scalar_lea.vmem %s4753_s3, %s3651_s18 }
 0x102   : > { %2034 = vmatmul.mubr.f32.vlgmr.msra.gmra.mrb[98].mxu1 %v2391_v57  ;;  %v2483_v18 = vadd.f32 %v2482_v9, %v2481_v46  ;;  %v2535_v22 = vpop.f32.mrb[3].mxu1  ;;  %3224 = vmatprep.mubr.msk.f32.mxu0 %vm3672_vm0, %v3673_v6 }
 0x103   : > { %v2536_v3 = vadd.f32 %v2535_v22, %v2534_v60  ;;  %2038 = vmatprep.mubr.f32.mxu1 %v2399_v58 }
 0x104   : > { %v2484_v24 = vpop.f32.mrb[4].mxu0 }
 0x105   : > { %v4580_v8 = vadd.f32 %v2536_v3, %v2483_v18  ;;  %v2537_v12 = vpop.f32.mrb[4].mxu1  ;;  %v2485_v16 = vpop.f32.mrb[5].mxu0  ;;  %3225 = vmatmul.mubr.msk.f32.gmra.mrb[100].mxu0 %vm320_vm1, %v2400_v61 }
 0x106   : > { %2039 = vmatmul.mubr.f32.gmra.mrb[100].mxu1 %v2398_v23  ;;  %v2486_v17 = vadd.f32 %v2485_v16, %v2484_v24  ;;  %v2538_v21 = vpop.f32.mrb[5].mxu1  ;;  %3227 = vmatprep.mubr.msk.f32.mxu0 %vm3672_vm0, %v3673_v6 }
 0x107   : > { %v2539_v26 = vadd.f32 %v2538_v21, %v2537_v12  ;;  %2043 = vmatprep.mubr.f32.mxu1 %v2406_v7 }
 0x108   : > { %v2487_v34 = vpop.f32.mrb[6].mxu0 }
 0x109   : > { %v4588_v39 = vadd.f32 %v2539_v26, %v2486_v17  ;;  %v2540_v43 = vpop.f32.mrb[6].mxu1  ;;  %v2488_v50 = vpop.f32.mrb[7].mxu0  ;;  %3228 = vmatmul.mubr.msk.f32.gmra.mrb[102].mxu0 %vm320_vm1, %v2407_v25 }
 0x10a   : > { %2044 = vmatmul.mubr.f32.gmra.mrb[102].mxu1 %v2405_v30  ;;  %v2489_v51 = vadd.f32 %v2488_v50, %v2487_v34  ;;  %v2541_v52 = vpop.f32.mrb[7].mxu1  ;;  %3230 = vmatprep.mubr.msk.f32.mxu0 %vm3672_vm0, %v3673_v6 }
 0x10b   : > { %v2542_v62 = vadd.f32 %v2541_v52, %v2540_v43  ;;  %2048 = vmatprep.mubr.f32.mxu1 %v2413_v38 }
 0x10c   : > { %v2490_v0 = vpop.f32.mrb[8].mxu0 }
 0x10d   : > { %v4596_v14 = vadd.f32 %v2542_v62, %v2489_v51  ;;  %v2543_v19 = vpop.f32.mrb[8].mxu1  ;;  %v2491_v20 = vpop.f32.mrb[9].mxu0  ;;  %3231 = vmatmul.mubr.msk.f32.gmra.mrb[104].mxu0 %vm320_vm1, %v2414_v56 }
 0x10e   : > { %2049 = vmatmul.mubr.f32.gmra.mrb[104].mxu1 %v2412_v63  ;;  %v2492_v27 = vadd.f32 %v2491_v20, %v2490_v0  ;;  %v2544_v35 = vpop.f32.mrb[9].mxu1  ;;  %3233 = vmatprep.mubr.msk.f32.mxu0 %vm3672_vm0, %v3673_v6 }
 0x10f   : > { %v2545_v37 = vadd.f32 %v2544_v35, %v2543_v19  ;;  %2053 = vmatprep.mubr.f32.mxu1 %v2420_v5 }
 0x110   : > { %v2493_v48 = vpop.f32.mrb[10].mxu0 }
 0x111   : > { %v4604_v53 = vadd.f32 %v2545_v37, %v2492_v27  ;;  %v2546_v1 = vpop.f32.mrb[10].mxu1  ;;  %v2494_v4 = vpop.f32.mrb[11].mxu0  ;;  %3234 = vmatmul.mubr.msk.f32.gmra.mrb[106].mxu0 %vm320_vm1, %v2421_v36 }
 0x112   : > { %2054 = vmatmul.mubr.f32.gmra.mrb[106].mxu1 %v2419_v44  ;;  %v2495_v10 = vadd.f32 %v2494_v4, %v2493_v48  ;;  %v2547_v15 = vpop.f32.mrb[11].mxu1  ;;  %3236 = vmatprep.mubr.msk.f32.mxu0 %vm3672_vm0, %v3673_v6 }
 0x113   : > { %v2548_v42 = vadd.f32 %v2547_v15, %v2546_v1  ;;  %2058 = vmatprep.mubr.f32.mxu1 %v2427_v49 }
 0x114   : > { %v2496_v55 = vpop.f32.mrb[12].mxu0 }
 0x115   : > { %v534_v13 = vadd.f32 %v2548_v42, %v2495_v10  ;;  %v2549_v31 = vpop.f32.mrb[12].mxu1  ;;  %v2497_v41 = vpop.f32.mrb[13].mxu0  ;;  %3237 = vmatmul.mubr.msk.f32.gmra.mrb[108].mxu0 %vm320_vm1, %v2428_v29 }
 0x116   : > { %2059 = vmatmul.mubr.f32.gmra.mrb[108].mxu1 %v2426_v45  ;;  %v2498_v59 = vadd.f32 %v2497_v41, %v2496_v55  ;;  %v2550_v11 = vpop.f32.mrb[13].mxu1  ;;  %3239 = vmatprep.mubr.msk.f32.mxu0 %vm3672_vm0, %v3673_v6 }
 0x117   : > { %v2551_v33 = vadd.f32 %v2550_v11, %v2549_v31  ;;  %2063 = vmatprep.mubr.f32.mxu1 %v2434_v2 }
 0x119   : > { %v539_v28 = vadd.f32 %v2551_v33, %v2498_v59  ;;  %v708_v47 = vpop.f32.mrb[14].mxu1  ;;  %3240 = vmatmul.mubr.msk.f32.gmra.mrb[110].mxu0 %vm320_vm1, %v2435_v32 }
 0x11a   : > { %2064 = vmatmul.mubr.f32.gmra.mrb[110].mxu1 %v2433_v40  ;;  %v3136_v57 = vpop.f32.mrb[15].mxu1 }
 0x11c   : > { %v2584_v46 = vpop.f32.mrb[14].mxu0 }
 0x11d   : > { %v2585_v58 = vpop.f32.mrb[15].mxu0 }
 0x11e   : > { %v2586_v60 = vadd.f32 %v2585_v58, %v2584_v46 }
 0x11f   : > { %v713_v9 = vpop.f32.mrb[16].mxu1 }
 0x120   : > { %v609_v18 = vadd.f32 %v2586_v60, %v4572_v54  ;;  %v2587_v22 = vpop.f32.mrb[16].mxu0  ;;  %v3139_v61 = vpop.f32.mrb[17].mxu1 }
 0x121   : > { %v2588_v3 = vpop.f32.mrb[17].mxu0 }
 0x122   : > { %v2589_v6 = vadd.f32 %v2588_v3, %v2587_v22  ;;  %v4619_v23 = vadd.f32 %v708_v47, %v609_v18 }
 0x123   : > { %v718_v24 = vpop.f32.mrb[18].mxu1 }
 0x124   : > { %v614_v7 = vadd.f32 %v2589_v6, %v4580_v8  ;;  %v2590_v12 = vpop.f32.mrb[18].mxu0  ;;  %v3142_v16 = vpop.f32.mrb[19].mxu1 }
 0x125   : > { %v2591_v17 = vpop.f32.mrb[19].mxu0 }
 0x126   : > { %v2592_v21 = vadd.f32 %v2591_v17, %v2590_v12  ;;  %v4622_v25 = vadd.f32 %v713_v9, %v614_v7 }
 0x127   : > { %v723_v26 = vpop.f32.mrb[20].mxu1 }
 0x128   : > { %v619_v30 = vadd.f32 %v2592_v21, %v4588_v39  ;;  %v2593_v34 = vpop.f32.mrb[20].mxu0  ;;  %v3145_v54 = vpop.f32.mrb[21].mxu1 }
 0x129   : > { %v2594_v38 = vpop.f32.mrb[21].mxu0 }
 0x12a   : > { %v2595_v43 = vadd.f32 %v2594_v38, %v2593_v34  ;;  %v4625_v50 = vadd.f32 %v718_v24, %v619_v30 }
 0x12b   : > { %v728_v51 = vpop.f32.mrb[22].mxu1 }
 0x12c   : > { %v624_v52 = vadd.f32 %v2595_v43, %v4596_v14  ;;  %v2596_v56 = vpop.f32.mrb[22].mxu0  ;;  %v3148_v8 = vpop.f32.mrb[23].mxu1 }
 0x12d   : > { %v2597_v62 = vpop.f32.mrb[23].mxu0 }
 0x12e   : > { %v2598_v63 = vadd.f32 %v2597_v62, %v2596_v56  ;;  %v4628_v0 = vadd.f32 %v723_v26, %v624_v52 }
 0x12f   : > { %v733_v5 = vpop.f32.mrb[24].mxu1 }
 0x130   : > { %v629_v19 = vadd.f32 %v2598_v63, %v4604_v53  ;;  %v2599_v20 = vpop.f32.mrb[24].mxu0  ;;  %v3151_v39 = vpop.f32.mrb[25].mxu1 }
 0x131   : > { %v2600_v27 = vpop.f32.mrb[25].mxu0 }
 0x132   : > { %v2601_v35 = vadd.f32 %v2600_v27, %v2599_v20  ;;  %v4631_v36 = vadd.f32 %v728_v51, %v629_v19 }
 0x133   : > { %v738_v37 = vpop.f32.mrb[26].mxu1 }
 0x134   : > { %v634_v44 = vadd.f32 %v2601_v35, %v534_v13  ;;  %v2602_v48 = vpop.f32.mrb[26].mxu0  ;;  %v3154_v49 = vpop.f32.mrb[27].mxu1 }
 0x135   : > { %v2603_v14 = vpop.f32.mrb[27].mxu0 }
 0x136   : > { %v2604_v1 = vadd.f32 %v2603_v14, %v2602_v48  ;;  %v4633_v4 = vadd.f32 %v733_v5, %v634_v44 }
 0x138   : > { %v639_v10 = vadd.f32 %v2604_v1, %v539_v28 }
 0x139   : > { %v2648_v15 = vpop.f32.mrb[28].mxu1 }
 0x13a   : > { %v2649_v29 = vpop.f32.mrb[29].mxu1  ;;  %v4635_v42 = vadd.f32 %v738_v37, %v639_v10 }
 0x13b   : > { %v2650_v53 = vadd.f32 %v2649_v29, %v2648_v15 }
 0x13c   : > { %v2701_v45 = vpop.f32.mrb[28].mxu0 }
 0x13d   : > { %v2702_v55 = vpop.f32.mrb[29].mxu0  ;;  %v2651_v2 = vpop.f32.mrb[30].mxu1 }
 0x13e   : > { %v2703_v31 = vadd.f32 %v2702_v55, %v2701_v45  ;;  %v2652_v41 = vpop.f32.mrb[31].mxu1 }
 0x13f   : > { %v2653_v59 = vadd.f32 %v2652_v41, %v2651_v2 }
 0x140   : > { %v980_v11 = vadd.f32 %v2703_v31, %v2650_v53  ;;  %v2704_v13 = vpop.f32.mrb[30].mxu0 }
 0x141   : > { %v2705_v32 = vpop.f32.mrb[31].mxu0  ;;  %v2654_v33 = vpop.f32.mrb[32].mxu1 }
 0x142   : > { %v2706_v40 = vadd.f32 %v2705_v32, %v2704_v13  ;;  %v2655_v47 = vpop.f32.mrb[33].mxu1 }
 0x143   : > { %v2656_v57 = vadd.f32 %v2655_v47, %v2654_v33 }
 0x144   : > { %v985_v46 = vadd.f32 %v2706_v40, %v2653_v59  ;;  %v2707_v28 = vpop.f32.mrb[32].mxu0 }
 0x145   : > { %v2708_v58 = vpop.f32.mrb[33].mxu0  ;;  %v2657_v60 = vpop.f32.mrb[34].mxu1 }
 0x146   : > { %v2709_v9 = vadd.f32 %v2708_v58, %v2707_v28  ;;  %v2658_v18 = vpop.f32.mrb[35].mxu1 }
 0x147   : > { %v2659_v22 = vadd.f32 %v2658_v18, %v2657_v60 }
 0x148   : > { %v990_v61 = vadd.f32 %v2709_v9, %v2656_v57  ;;  %v2710_v3 = vpop.f32.mrb[34].mxu0 }
 0x149   : > { %v2711_v6 = vpop.f32.mrb[35].mxu0  ;;  %v2660_v24 = vpop.f32.mrb[36].mxu1 }
 0x14a   : > { %v2712_v7 = vadd.f32 %v2711_v6, %v2710_v3  ;;  %v2661_v12 = vpop.f32.mrb[37].mxu1 }
 0x14b   : > { %v2662_v16 = vadd.f32 %v2661_v12, %v2660_v24 }
 0x14c   : > { %v995_v17 = vadd.f32 %v2712_v7, %v2659_v22  ;;  %v2713_v21 = vpop.f32.mrb[36].mxu0 }
 0x14d   : > { %v2714_v26 = vpop.f32.mrb[37].mxu0  ;;  %v2663_v30 = vpop.f32.mrb[38].mxu1 }
 0x14e   : > { %v2715_v34 = vadd.f32 %v2714_v26, %v2713_v21  ;;  %v2664_v54 = vpop.f32.mrb[39].mxu1 }
 0x14f   : > { %v2665_v38 = vadd.f32 %v2664_v54, %v2663_v30 }
 0x150   : > { %v1000_v43 = vadd.f32 %v2715_v34, %v2662_v16  ;;  %v2716_v51 = vpop.f32.mrb[38].mxu0 }
 0x151   : > { %v2717_v52 = vpop.f32.mrb[39].mxu0  ;;  %v2666_v56 = vpop.f32.mrb[40].mxu1 }
 0x152   : > { %v2718_v8 = vadd.f32 %v2717_v52, %v2716_v51  ;;  %v2667_v62 = vpop.f32.mrb[41].mxu1 }
 0x153   : > { %v2668_v63 = vadd.f32 %v2667_v62, %v2666_v56 }
 0x154   : > { %v1005_v5 = vadd.f32 %v2718_v8, %v2665_v38  ;;  %v2719_v19 = vpop.f32.mrb[40].mxu0 }
 0x155   : > { %v2720_v20 = vpop.f32.mrb[41].mxu0 }
 0x156   : > { %v2721_v39 = vadd.f32 %v2720_v20, %v2719_v19 }
 0x158   : > { %v1010_v27 = vadd.f32 %v2721_v39, %v2668_v63  ;;  %v1179_v35 = vpop.f32.mrb[42].mxu0 }
 0x159   : > { %v2754_v37 = vpop.f32.mrb[42].mxu1  ;;  %v3165_v44 = vpop.f32.mrb[43].mxu0 }
 0x15a   : > { %v2755_v48 = vpop.f32.mrb[43].mxu1 }
 0x15b   : > { %v2756_v49 = vadd.f32 %v2755_v48, %v2754_v37 }
 0x15d   : > { %v2757_v14 = vpop.f32.mrb[44].mxu1  ;;  %v1080_v1 = vadd.f32 %v2756_v49, %v980_v11 }
 0x15e   : > { %v2758_v10 = vpop.f32.mrb[45].mxu1 }
 0x15f   : > { %v4637_v15 = vadd.f32 %v1179_v35, %v1080_v1  ;;  %v2759_v29 = vadd.f32 %v2758_v10, %v2757_v14  ;;  %v1184_v53 = vpop.f32.mrb[44].mxu0 }
 0x160   : > { %v3168_v45 = vpop.f32.mrb[45].mxu0 }
 0x161   : > { %v1213_v55 = vmax.f32 %v4619_v23, %v4637_v15  ;;  %v2760_v2 = vpop.f32.mrb[46].mxu1  ;;  %v1085_v31 = vadd.f32 %v2759_v29, %v985_v46 }
 0x162   : > { %v2761_v41 = vpop.f32.mrb[47].mxu1 }
 0x163   : > { %v2762_v59 = vadd.f32 %v2761_v41, %v2760_v2  ;;  %v4641_v13 = vadd.f32 %v1184_v53, %v1085_v31  ;;  %v1189_v32 = vpop.f32.mrb[46].mxu0 }
 0x164   : > { %v3171_v33 = vpop.f32.mrb[47].mxu0 }
 0x165   : > { %v1214_v11 = vmax.f32 %v4622_v25, %v4641_v13  ;;  %v2763_v40 = vpop.f32.mrb[48].mxu1  ;;  %v1090_v47 = vadd.f32 %v2762_v59, %v990_v61 }
 0x166   : > { %v2764_v57 = vpop.f32.mrb[49].mxu1 }
 0x167   : > { %v2765_v28 = vadd.f32 %v2764_v57, %v2763_v40  ;;  %v4645_v58 = vadd.f32 %v1189_v32, %v1090_v47  ;;  %v1194_v60 = vpop.f32.mrb[48].mxu0 }
 0x168   : > { %v3174_v9 = vpop.f32.mrb[49].mxu0 }
 0x169   : > { %v1215_v46 = vmax.f32 %v4625_v50, %v4645_v58  ;;  %v2766_v18 = vpop.f32.mrb[50].mxu1  ;;  %v1095_v22 = vadd.f32 %v2765_v28, %v995_v17 }
 0x16a   : > { %v2767_v3 = vpop.f32.mrb[51].mxu1 }
 0x16b   : > { %v2768_v6 = vadd.f32 %v2767_v3, %v2766_v18  ;;  %v4649_v24 = vadd.f32 %v1194_v60, %v1095_v22  ;;  %v1199_v7 = vpop.f32.mrb[50].mxu0 }
 0x16c   : > { %v3177_v12 = vpop.f32.mrb[51].mxu0 }
 0x16d   : > { %v1216_v61 = vmax.f32 %v4628_v0, %v4649_v24  ;;  %v2769_v16 = vpop.f32.mrb[52].mxu1  ;;  %v1100_v21 = vadd.f32 %v2768_v6, %v1000_v43 }
 0x16e   : > { %v2770_v26 = vpop.f32.mrb[53].mxu1 }
 0x16f   : > { %v2771_v30 = vadd.f32 %v2770_v26, %v2769_v16  ;;  %v4653_v34 = vadd.f32 %v1199_v7, %v1100_v21  ;;  %v1204_v54 = vpop.f32.mrb[52].mxu0 }
 0x170   : > { %v3180_v38 = vpop.f32.mrb[53].mxu0 }
 0x171   : > { %v1217_v17 = vmax.f32 %v4631_v36, %v4653_v34  ;;  %v2772_v51 = vpop.f32.mrb[54].mxu1  ;;  %v1105_v52 = vadd.f32 %v2771_v30, %v1005_v5 }
 0x172   : > { %v2773_v56 = vpop.f32.mrb[55].mxu1 }
 0x173   : > { %v2774_v8 = vadd.f32 %v2773_v56, %v2772_v51  ;;  %v4657_v62 = vadd.f32 %v1204_v54, %v1105_v52  ;;  %v1209_v63 = vpop.f32.mrb[54].mxu0 }
 0x174   : > { %v3183_v19 = vpop.f32.mrb[55].mxu0 }
 0x175   : > { %v1218_v43 = vmax.f32 %v4633_v4, %v4657_v62  ;;  %v1110_v20 = vadd.f32 %v2774_v8, %v1010_v27 }
 0x177   : > { %v4661_v39 = vadd.f32 %v1209_v63, %v1110_v20 }
 0x178   : > { %v2818_v35 = vpop.f32.mrb[56].mxu0 }
 0x179   : > { %v1219_v37 = vmax.f32 %v4635_v42, %v4661_v39  ;;  %v2871_v44 = vpop.f32.mrb[56].mxu1  ;;  %v2819_v48 = vpop.f32.mrb[57].mxu0 }
 0x17a   : > { %v2820_v49 = vadd.f32 %v2819_v48, %v2818_v35  ;;  %v2872_v5 = vpop.f32.mrb[57].mxu1 }
 0x17b   : > { %v2873_v14 = vadd.f32 %v2872_v5, %v2871_v44 }
 0x17c   : > { %v2821_v1 = vpop.f32.mrb[58].mxu0 }
 0x17d   : > { %v1458_v10 = vadd.f32 %v2873_v14, %v2820_v49  ;;  %v2874_v29 = vpop.f32.mrb[58].mxu1  ;;  %v2822_v53 = vpop.f32.mrb[59].mxu0 }
 0x17e   : > { %v2823_v45 = vadd.f32 %v2822_v53, %v2821_v1  ;;  %v2875_v2 = vpop.f32.mrb[59].mxu1 }
 0x17f   : > { %v2876_v31 = vadd.f32 %v2875_v2, %v2874_v29 }
 0x180   : > { %v2824_v41 = vpop.f32.mrb[60].mxu0 }
 0x181   : > { %v1463_v27 = vadd.f32 %v2876_v31, %v2823_v45  ;;  %v2877_v59 = vpop.f32.mrb[60].mxu1  ;;  %v2825_v32 = vpop.f32.mrb[61].mxu0 }
 0x182   : > { %v2826_v33 = vadd.f32 %v2825_v32, %v2824_v41  ;;  %v2878_v40 = vpop.f32.mrb[61].mxu1 }
 0x183   : > { %v2879_v47 = vadd.f32 %v2878_v40, %v2877_v59 }
 0x184   : > { %v2827_v57 = vpop.f32.mrb[62].mxu0 }
 0x185   : > { %v1468_v28 = vadd.f32 %v2879_v47, %v2826_v33  ;;  %v2880_v60 = vpop.f32.mrb[62].mxu1  ;;  %v2828_v9 = vpop.f32.mrb[63].mxu0 }
 0x186   : > { %v2829_v18 = vadd.f32 %v2828_v9, %v2827_v57  ;;  %v2881_v22 = vpop.f32.mrb[63].mxu1 }
 0x187   : > { %v2882_v3 = vadd.f32 %v2881_v22, %v2880_v60 }
 0x188   : > { %v2830_v6 = vpop.f32.mrb[64].mxu0 }
 0x189   : > { %v1473_v7 = vadd.f32 %v2882_v3, %v2829_v18  ;;  %v2883_v12 = vpop.f32.mrb[64].mxu1  ;;  %v2831_v16 = vpop.f32.mrb[65].mxu0 }
 0x18a   : > { %v2832_v21 = vadd.f32 %v2831_v16, %v2830_v6  ;;  %v2884_v26 = vpop.f32.mrb[65].mxu1 }
 0x18b   : > { %v2885_v30 = vadd.f32 %v2884_v26, %v2883_v12 }
 0x18c   : > { %v2833_v54 = vpop.f32.mrb[66].mxu0 }
 0x18d   : > { %v1478_v38 = vadd.f32 %v2885_v30, %v2832_v21  ;;  %v2886_v51 = vpop.f32.mrb[66].mxu1  ;;  %v2834_v52 = vpop.f32.mrb[67].mxu0 }
 0x18e   : > { %v2835_v56 = vadd.f32 %v2834_v52, %v2833_v54  ;;  %v2887_v8 = vpop.f32.mrb[67].mxu1 }
 0x18f   : > { %v2888_v63 = vadd.f32 %v2887_v8, %v2886_v51 }
 0x190   : > { %v2836_v19 = vpop.f32.mrb[68].mxu0 }
 0x191   : > { %v1483_v20 = vadd.f32 %v2888_v63, %v2835_v56  ;;  %v2889_v35 = vpop.f32.mrb[68].mxu1  ;;  %v2837_v44 = vpop.f32.mrb[69].mxu0 }
 0x192   : > { %v2838_v48 = vadd.f32 %v2837_v44, %v2836_v19  ;;  %v2890_v49 = vpop.f32.mrb[69].mxu1 }
 0x193   : > { %v2891_v5 = vadd.f32 %v2890_v49, %v2889_v35 }
 0x195   : > { %v1488_v14 = vadd.f32 %v2891_v5, %v2838_v48  ;;  %v1657_v1 = vpop.f32.mrb[70].mxu1 }
 0x196   : > { %v3194_v29 = vpop.f32.mrb[71].mxu1 }
 0x198   : > { %v2924_v53 = vpop.f32.mrb[70].mxu0 }
 0x199   : > { %v2925_v45 = vpop.f32.mrb[71].mxu0 }
 0x19a   : > { %v2926_v2 = vadd.f32 %v2925_v45, %v2924_v53 }
 0x19b   : > { %v1662_v31 = vpop.f32.mrb[72].mxu1 }
 0x19c   : > { %v1558_v41 = vadd.f32 %v2926_v2, %v1458_v10  ;;  %v2927_v59 = vpop.f32.mrb[72].mxu0  ;;  %v3197_v32 = vpop.f32.mrb[73].mxu1 }
 0x19d   : > { %v2928_v33 = vpop.f32.mrb[73].mxu0 }
 0x19e   : > { %v1658_v40 = vadd.f32 %v1657_v1, %v1558_v41  ;;  %v2929_v47 = vadd.f32 %v2928_v33, %v2927_v59 }
 0x19f   : > { %v1667_v57 = vpop.f32.mrb[74].mxu1 }
 0x1a0   : > { %v1563_v60 = vadd.f32 %v2929_v47, %v1463_v27  ;;  %v2930_v9 = vpop.f32.mrb[74].mxu0  ;;  %v3200_v18 = vpop.f32.mrb[75].mxu1  ;;  %v4668_v22 = vmax.f32 %v1213_v55, %v1658_v40 }
 0x1a1   : > { %v2931_v3 = vpop.f32.mrb[75].mxu0 }
 0x1a2   : > { %v1663_v6 = vadd.f32 %v1662_v31, %v1563_v60  ;;  %v2932_v12 = vadd.f32 %v2931_v3, %v2930_v9 }
 0x1a3   : > { %v1672_v16 = vpop.f32.mrb[76].mxu1 }
 0x1a4   : > { %v1568_v21 = vadd.f32 %v2932_v12, %v1468_v28  ;;  %v2933_v10 = vpop.f32.mrb[76].mxu0  ;;  %v3203_v26 = vpop.f32.mrb[77].mxu1  ;;  %v4673_v30 = vmax.f32 %v1214_v11, %v1663_v6 }
 0x1a5   : > { %v2934_v27 = vpop.f32.mrb[77].mxu0 }
 0x1a6   : > { %v1668_v54 = vadd.f32 %v1667_v57, %v1568_v21  ;;  %v2935_v51 = vadd.f32 %v2934_v27, %v2933_v10 }
 0x1a7   : > { %v1677_v52 = vpop.f32.mrb[78].mxu1 }
 0x1a8   : > { %v1573_v56 = vadd.f32 %v2935_v51, %v1473_v7  ;;  %v2936_v23 = vpop.f32.mrb[78].mxu0  ;;  %v3206_v15 = vpop.f32.mrb[79].mxu1  ;;  %v4678_v55 = vmax.f32 %v1215_v46, %v1668_v54 }
 0x1a9   : > { %v2937_v28 = vpop.f32.mrb[79].mxu0 }
 0x1aa   : > { %v1673_v8 = vadd.f32 %v1672_v16, %v1573_v56  ;;  %v2938_v63 = vadd.f32 %v2937_v28, %v2936_v23 }
 0x1ab   : > { %v1682_v19 = vpop.f32.mrb[80].mxu1 }
 0x1ac   : > { %v1578_v35 = vadd.f32 %v2938_v63, %v1478_v38  ;;  %v2939_v25 = vpop.f32.mrb[80].mxu0  ;;  %v3209_v13 = vpop.f32.mrb[81].mxu1  ;;  %v4683_v11 = vmax.f32 %v1216_v61, %v1673_v8 }
 0x1ad   : > { %v2940_v7 = vpop.f32.mrb[81].mxu0 }
 0x1ae   : > { %v1678_v44 = vadd.f32 %v1677_v52, %v1578_v35  ;;  %v2941_v48 = vadd.f32 %v2940_v7, %v2939_v25 }
 0x1af   : > { %v1687_v49 = vpop.f32.mrb[82].mxu1 }
 0x1b0   : > { %v1583_v5 = vadd.f32 %v2941_v48, %v1483_v20  ;;  %v2942_v50 = vpop.f32.mrb[82].mxu0  ;;  %v3212_v58 = vpop.f32.mrb[83].mxu1  ;;  %v4688_v46 = vmax.f32 %v1217_v17, %v1678_v44 }
 0x1b1   : > { %v2943_v38 = vpop.f32.mrb[83].mxu0 }
 0x1b2   : > { %v1683_v1 = vadd.f32 %v1682_v19, %v1583_v5  ;;  %v2944_v29 = vadd.f32 %v2943_v38, %v2942_v50 }
 0x1b4   : > { %v1588_v53 = vadd.f32 %v2944_v29, %v1488_v14  ;;  %v4693_v0 = vmax.f32 %v1218_v43, %v1683_v1 }
 0x1b5   : > { %v2988_v24 = vpop.f32.mrb[84].mxu1 }
 0x1b6   : > { %v1688_v61 = vadd.f32 %v1687_v49, %v1588_v53  ;;  %v2989_v45 = vpop.f32.mrb[85].mxu1 }
 0x1b7   : > { %v2990_v20 = vadd.f32 %v2989_v45, %v2988_v24 }
 0x1b8   : > { %v3041_v2 = vpop.f32.mrb[84].mxu0  ;;  %v4698_v36 = vmax.f32 %v1219_v37, %v1688_v61 }
 0x1b9   : > { %v3042_v34 = vpop.f32.mrb[85].mxu0  ;;  %v2991_v17 = vpop.f32.mrb[86].mxu1 }
 0x1ba   : > { %v3043_v31 = vadd.f32 %v3042_v34, %v3041_v2  ;;  %v2992_v41 = vpop.f32.mrb[87].mxu1  ;;  %v4710_v34 = vld [vmem:[%s4752_s2] ss:$0 sm:$0xff] }
 0x1bb   : > { %v2993_v14 = vadd.f32 %v2992_v41, %v2991_v17 }
 0x1bc   : > { %v1936_v59 = vadd.f32 %v3043_v31, %v2990_v20  ;;  %v3044_v32 = vpop.f32.mrb[86].mxu0 }
 0x1bd   : > { %v3045_v4 = vpop.f32.mrb[87].mxu0  ;;  %v2994_v62 = vpop.f32.mrb[88].mxu1 }
 0x1be   : > { %v3046_v43 = vadd.f32 %v3045_v4, %v3044_v32  ;;  %v2995_v33 = vpop.f32.mrb[89].mxu1 }
 0x1bf   : > { %v2996_v40 = vadd.f32 %v2995_v33, %v2994_v62 }
 0x1c0   : > { %v1941_v47 = vadd.f32 %v3046_v43, %v2993_v14  ;;  %v3047_v57 = vpop.f32.mrb[88].mxu0 }
 0x1c1   : > { %v3048_v60 = vpop.f32.mrb[89].mxu0  ;;  %v2997_v9 = vpop.f32.mrb[90].mxu1 }
 0x1c2   : > { %v3049_v18 = vadd.f32 %v3048_v60, %v3047_v57  ;;  %v2998_v42 = vpop.f32.mrb[91].mxu1 }
 0x1c3   : > { %v2999_v39 = vadd.f32 %v2998_v42, %v2997_v9 }
 0x1c4   : > { %v1946_v37 = vadd.f32 %v3049_v18, %v2996_v40  ;;  %v3050_v3 = vpop.f32.mrb[90].mxu0 }
 0x1c5   : > { %v3051_v6 = vpop.f32.mrb[91].mxu0  ;;  %v3000_v12 = vpop.f32.mrb[92].mxu1 }
 0x1c6   : > { %v3052_v16 = vadd.f32 %v3051_v6, %v3050_v3  ;;  %v3001_v21 = vpop.f32.mrb[93].mxu1 }
 0x1c7   : > { %v3002_v10 = vadd.f32 %v3001_v21, %v3000_v12 }
 0x1c8   : > { %v1951_v26 = vadd.f32 %v3052_v16, %v2999_v39  ;;  %v3053_v27 = vpop.f32.mrb[92].mxu0 }
 0x1c9   : > { %v3054_v54 = vpop.f32.mrb[93].mxu0  ;;  %v3003_v51 = vpop.f32.mrb[94].mxu1 }
 0x1ca   : > { %v3055_v52 = vadd.f32 %v3054_v54, %v3053_v27  ;;  %v3004_v56 = vpop.f32.mrb[95].mxu1 }
 0x1cb   : > { %v3005_v23 = vadd.f32 %v3004_v56, %v3003_v51 }
 0x1cc   : > { %v4700_v15 = vadd.f32 %v3055_v52, %v3002_v10  ;;  %v3056_v28 = vpop.f32.mrb[94].mxu0 }
 0x1cd   : > { %v3057_v8 = vpop.f32.mrb[95].mxu0  ;;  %v3006_v63 = vpop.f32.mrb[96].mxu1 }
 0x1ce   : > { %v3058_v19 = vadd.f32 %v3057_v8, %v3056_v28  ;;  %v3007_v35 = vpop.f32.mrb[97].mxu1 }
 0x1cf   : > { %v3008_v25 = vadd.f32 %v3007_v35, %v3006_v63 }
 0x1d0   : > { %v4702_v13 = vadd.f32 %v3058_v19, %v3005_v23  ;;  %v3059_v7 = vpop.f32.mrb[96].mxu0 }
 0x1d1   : > { %v3060_v44 = vpop.f32.mrb[97].mxu0 }
 0x1d2   : > { %v3061_v48 = vadd.f32 %v3060_v44, %v3059_v7 }
 0x1d4   : > { %v4704_v49 = vadd.f32 %v3061_v48, %v3008_v25  ;;  %v2135_v5 = vpop.f32.mrb[98].mxu0 }
 0x1d5   : > { %v3094_v50 = vpop.f32.mrb[98].mxu1  ;;  %v3223_v58 = vpop.f32.mrb[99].mxu0 }
 0x1d6   : > { %v3095_v38 = vpop.f32.mrb[99].mxu1 }
 0x1d7   : > { %v3096_v1 = vadd.f32 %v3095_v38, %v3094_v50 }
 0x1d8   : > { %v2140_v29 = vpop.f32.mrb[100].mxu0 }
 0x1d9   : > { %v3097_v53 = vpop.f32.mrb[100].mxu1  ;;  %v2036_v24 = vadd.f32 %v3096_v1, %v1936_v59  ;;  %v3226_v61 = vpop.f32.mrb[101].mxu0 }
 0x1da   : > { %v3098_v45 = vpop.f32.mrb[101].mxu1 }
 0x1db   : > { %v3099_v20 = vadd.f32 %v3098_v45, %v3097_v53  ;;  %v2136_v2 = vadd.f32 %v2135_v5, %v2036_v24 }
 0x1dc   : > { %v2145_v17 = vpop.f32.mrb[102].mxu0 }
 0x1dd   : > { %v2169_v31 = vmax.f32 %v4668_v22, %v2136_v2  ;;  %v3100_v41 = vpop.f32.mrb[102].mxu1  ;;  %v2041_v14 = vadd.f32 %v3099_v20, %v1941_v47  ;;  %v3229_v32 = vpop.f32.mrb[103].mxu0 }
 0x1de   : > { %v3101_v4 = vpop.f32.mrb[103].mxu1 }
 0x1df   : > { %v2183_v62 = vadd.f32 %v4710_v34, %v2169_v31  ;;  %v3102_v59 = vadd.f32 %v3101_v4, %v3100_v41  ;;  %v2141_v43 = vadd.f32 %v2140_v29, %v2041_v14 }
 0x1e0   : > { %v2150_v33 = vpop.f32.mrb[104].mxu0 }
 0x1e1   : > { %v2190_v40 = vmax.f32 %v2183_v62, 0.0  ;;  %v2170_v57 = vmax.f32 %v4673_v30, %v2141_v43  ;;  %v3103_v22 = vpop.f32.mrb[104].mxu1  ;;  %v2046_v47 = vadd.f32 %v3102_v59, %v1946_v37  ;;  %v3232_v60 = vpop.f32.mrb[105].mxu0 }
 0x1e2   : > { %v3104_v9 = vpop.f32.mrb[105].mxu1 }
 0x1e3   : > { %2198 = vst.msk [vmem:[%s4717_s13] sm:$0xff] %vm2197_vm2, %v2190_v40  ;;  %v2184_v18 = vadd.f32 %v4710_v34, %v2170_v57  ;;  %v3105_v42 = vadd.f32 %v3104_v9, %v3103_v22  ;;  %v2146_v39 = vadd.f32 %v2145_v17, %v2046_v47 }
 0x1e4   : > { %v2155_v3 = vpop.f32.mrb[106].mxu0 }
 0x1e5   : > { %v2191_v6 = vmax.f32 %v2184_v18, 0.0  ;;  %v2171_v12 = vmax.f32 %v4678_v55, %v2146_v39  ;;  %v3106_v16 = vpop.f32.mrb[106].mxu1  ;;  %v2051_v21 = vadd.f32 %v3105_v42, %v1951_v26  ;;  %v3235_v10 = vpop.f32.mrb[107].mxu0 }
 0x1e6   : > { %v3107_v30 = vpop.f32.mrb[107].mxu1 }
 0x1e7   : > { %2199 = vst.msk [vmem:[%s4717_s13 + $0x8] sm:$0xff] %vm2197_vm2, %v2191_v6  ;;  %v2185_v37 = vadd.f32 %v4710_v34, %v2171_v12  ;;  %v3108_v27 = vadd.f32 %v3107_v30, %v3106_v16  ;;  %v2151_v54 = vadd.f32 %v2150_v33, %v2051_v21 }
 0x1e8   : > { %v2160_v51 = vpop.f32.mrb[108].mxu0 }
 0x1e9   : > { %v2192_v52 = vmax.f32 %v2185_v37, 0.0  ;;  %v2172_v56 = vmax.f32 %v4683_v11, %v2151_v54  ;;  %v3109_v23 = vpop.f32.mrb[108].mxu1  ;;  %v2056_v28 = vadd.f32 %v3108_v27, %v4700_v15  ;;  %v3238_v55 = vpop.f32.mrb[109].mxu0 }
 0x1ea   : > { %v3110_v8 = vpop.f32.mrb[109].mxu1 }
 0x1eb   : > { %2200 = vst.msk [vmem:[%s4717_s13 + $0x10] sm:$0xff] %vm2197_vm2, %v2192_v52  ;;  %v2186_v26 = vadd.f32 %v4710_v34, %v2172_v56  ;;  %v3111_v63 = vadd.f32 %v3110_v8, %v3109_v23  ;;  %v2156_v19 = vadd.f32 %v2155_v3, %v2056_v28 }
 0x1ec   : > { %v2165_v35 = vpop.f32.mrb[110].mxu0 }
 0x1ed   : > { %v2193_v25 = vmax.f32 %v2186_v26, 0.0  ;;  %v2173_v7 = vmax.f32 %v4688_v46, %v2156_v19  ;;  %v3112_v44 = vpop.f32.mrb[110].mxu1  ;;  %v2061_v11 = vadd.f32 %v3111_v63, %v4702_v13  ;;  %v3241_v48 = vpop.f32.mrb[111].mxu0 }
 0x1ee   : > { %v3113_v5 = vpop.f32.mrb[111].mxu1 }
 0x1ef   : > { %2201 = vst.msk [vmem:[%s4717_s13 + $0x18] sm:$0xff] %vm2197_vm2, %v2193_v25  ;;  %v2187_v15 = vadd.f32 %v4710_v34, %v2173_v7  ;;  %v3114_v50 = vadd.f32 %v3113_v5, %v3112_v44  ;;  %v2161_v58 = vadd.f32 %v2160_v51, %v2061_v11 }
 0x1f1   : > { %v2194_v38 = vmax.f32 %v2187_v15, 0.0  ;;  %v2174_v1 = vmax.f32 %v4693_v0, %v2161_v58  ;;  %v2066_v29 = vadd.f32 %v3114_v50, %v4704_v49 }
 0x1f3   : > { %2202 = vst.msk [vmem:[%s4717_s13 + $0x20] sm:$0xff] %vm2197_vm2, %v2194_v38  ;;  %v2188_v46 = vadd.f32 %v4710_v34, %v2174_v1  ;;  %v2166_v53 = vadd.f32 %v2165_v35, %v2066_v29 }
 0x1f5   : > { %v2195_v13 = vmax.f32 %v2188_v46, 0.0  ;;  %v2175_v24 = vmax.f32 %v4698_v36, %v2166_v53 }
 0x1f7   : > { %2203 = vst.msk [vmem:[%s4717_s13 + $0x28] sm:$0xff] %vm2197_vm2, %v2195_v13  ;;  %v2189_v61 = vadd.f32 %v4710_v34, %v2175_v24 }
 0x1f9   : > { %v2196_v45 = vmax.f32 %v2189_v61, 0.0 }
 0x1fb   : > { %2205 = vst.msk [vmem:[%s4717_s13 + $0x30] sm:$0x1] %vm2204_vm3, %v2196_v45 }
 0x1fc PF: > { %s13_s12 = sadd.s32 1, %s3669_s12  }
 0x1fd   : > { %p10_p4 = scmp.ge.s32.totalorder %s13_s12, 4  }
 0x1ff   :  { %12 = sbr.rel (!%p10_p4) target bundleno = 1 (0x1), region = 65 }

// kernel: deepnet_forward.5
= control target key start
LH: loop header
LB: loop body
LE: loop exit
PB: predicated region body
PF: predicated region fallthrough
CT: control target
= control target key end

     0   :  { %8 = vsyncpa [#allocation3], 0  ;;  %s16026_s0 = inlined_call_operand.vmem [shape: f32[2,3136], index: 0, kind: input, shape index: {}]   ;;  %s16027_s1 = inlined_call_operand.hbm [shape: bf16[3136,10240], index: 1, kind: input, shape index: {}]   ;;  %s16028_s2 = inlined_call_operand.vmem [shape: f32[1,10240], index: 2, kind: input, shape index: {}]   ;;  %s16029_s3 = inlined_call_operand.vmem [shape: f32[2,10240], index: 3, kind: output, shape index: {}]  }
   0x1   :  { %10 = vsyncpa [#allocation3 + $0x1], 0  ;;  %s14025_s12 = smov 0   ;;  %s14027_s13 = smov 0  }
   0x2   :  { %s14029_s14 = smov 0   ;;  %s14031_s15 = smov 0  }
   0x3 LB: > { %s12094_s16 = sadd.s32 4294967295, %s13997_s15   ;;  %s14045_s17 = sadd.s32 1, %s13997_s15   ;;  %s13997_s15 = sphi %s14031_s15, %s16035_s15   ;;  %s13993_s14 = sphi %s14029_s14, %s16034_s14   ;;  %s13989_s13 = sphi %s14027_s13, %s16033_s13   ;;  %s13985_s12 = sphi %s14025_s12, %s16032_s12  }
   0x4   : > { %s41_s18 = ssub.s32 %s13997_s15, %s14045_s17  ;;  %s44_s19 = sadd.s32 1, %s13993_s14 }
   0x5   : > { %p42_p0 = scmp.eq.s32.totalorder %s41_s18, 0  ;;  %p51_p1 = scmp.ne.s32.totalorder %s13993_s14, %s13989_s13 }
   0x6   : > { %p52_p2 = scmp.eq.s32.totalorder %s13997_s15, 0  ;;  %p57_p3 = scmp.ne.s32.totalorder %s13989_s13, %s13985_s12 }
   0x7   : > { %s14055_s20 = scalar_select %p42_p0, %s13993_s14, %s44_s19  }
   0x8   : > { %p53_p4 = por %p52_p2, %p51_p1  ;;  %p58_p5 = scmp.eq.s32.totalorder %s12094_s16, 0 }
   0x9   : > { %p13888_p6 = scmp.lt.s32.totalorder %s13997_s15, 10  ;;  %s136_s22 = sand.u32 1, %s13993_s14  }
   0xa   : > { %p14060_p7 = por %p58_p5, %p57_p3  ;;  %s13880_s23 = smul.u32 12544, %s136_s22 }
   0xb   : > { %s13679_s24 = sshll.u32 %s13997_s15, 9  ;;  %p14066_p8 = pnand %p13888_p6, %p53_p4 }
   0xc   : > { %s14073_s28 = scalar_lea.hbm %s16027_s1, %s13679_s24  ;;  %s140_s29 = scalar_lea.vmem [#allocation2], %s13880_s23 }
   0xd   : > { %s147_s30 = sshll.u32 %s140_s29, 4  ;;  %s14077_s4 = scalar_lea.sflag [#allocation3], %s136_s22  ;;  %s14075_s30 = int_to_ptr.vmem [resolvable:$true] %s147_s30 }
   0xe   : > { %s13933_s5 = scalar_lea.hbm %s14073_s28, 200704  ;;  %p13935_p10 = pneg %p14066_p8 }
   0xf   : > { %p13934_p9 = scmp.ne.s32.totalorder %s14073_s28, %s13933_s5  ;;  %s13938_s8 = scalar_lea.hbm %s16027_s1, 2007040 }
  0x10   : > { %p13939_p13 = scmp.lt.u32.totalorder %s14073_s28, %s16027_s1  ;;  %p13940_p0 = scmp.lt.u32.totalorder %s13938_s8, %s13933_s5 }
  0x11   : > { %p13936_p11 = pnand %p13935_p10, %p13934_p9  ;;  %p13942_p2 = scmp.lt.u32.totalorder %s13933_s5, %s14073_s28 }
  0x12   : > { %p13941_p1 = por %p13940_p0, %p13939_p13 }
  0x13   : > { %p13937_p12 = pneg %p13936_p11 }
  0x14   : > { %p13943_p3 = por %p13942_p2, %p13941_p1 }
  0x16   : > { %p13944_p4 = pnand %p13943_p3, %p13937_p12 }
  0x18   : > { %13947 = shalt.err (!%p13944_p4)
}
  0x19   : > { %s13948_s11 = scalar_lea.vmem %s14075_s30, 200704  ;;  %s13999_s12 = smov [#allocation2]  }
  0x1a   : > { %p13949_p5 = scmp.ne.s32.totalorder %s14075_s30, %s13948_s11  ;;  %s13953_s18 = sshll.u32 %s13999_s12, 4  ;;  %s13954_s18 = int_to_ptr.vmem [resolvable:$false] %s13953_s18 }
  0x1b   : > { %s13955_s19 = scalar_lea.vmem %s13954_s18, 401408  ;;  %p13956_p11 = scmp.lt.s32.totalorder %s14075_s30, %s13954_s18 }
  0x1c   : > { %p13951_p6 = pnand %p13949_p5, %p13935_p10  ;;  %p13957_p13 = scmp.lt.s32.totalorder %s13955_s19, %s13948_s11 }
  0x1e   : > { %p13952_p9 = pneg %p13951_p6  ;;  %p13958_p0 = por %p13957_p13, %p13956_p11 }
  0x20   : > { %p13959_p1 = pnand %p13958_p0, %p13952_p9 }
  0x22   : > { %13962 = shalt.err (!%p13959_p1)
}
  0x23   : > { %s14000_s22 = smov 5120   ;;  %s14001_s23 = smov 512  }
  0x24   : > { %s14002_s24 = smov 32   ;;  %p12100_p10 = scmp.ge.s32.totalorder %s13997_s15, 1 }
  0x25   : > { %13887 = dma.hbm_to_vmem [thread:$0]  (!%p14066_p8), %s14073_s28, 200704, %s14075_s30, %s14077_s4, %s14000_s22, %s14001_s23, %s14002_s24  }
  0x26   : > { %p163_p12 = scmp.lt.s32.totalorder %s13997_s15, 11 }
  0x28   : > { %p164_p2 = pnand %p12100_p10, %p163_p12 }
  0x29   : > { %s169_s26 = sand.u32 (!%p164_p2), 1, %s13989_s13  }
  0x2a   : > { %167 = sbr.rel (%p164_p2) target bundleno = 1844 (0x734), region = 32  ;;  %s170_s29 = scalar_lea.sflag (!%p164_p2), [#allocation3], %s169_s26 }
  0x2b   : > { %s13881_s27 = smul.u32 (!%p164_p2), 12544, %s169_s26 }
  0x2d   : > { %s14108_s5 = scalar_lea.vmem (!%p164_p2), [#allocation2], %s13881_s27 }
  0x31   : > { %13980 = dma.done.wait (%p14060_p7), %s170_s29, 200704  }
  0x32   : > { %13982 = vsyncadd (%p14060_p7), %s170_s29, 4294766592  ;;  %v386_v0 = vld [vmem:[%s14108_s5] sm:$0xff]  ;;  %v387_v2 = vld [vmem:[%s14108_s5 + $0x8] sm:$0xff]  ;;  %v14003_v32 = vmov 1983009808   ;;  %v231_v34 = vlaneseq  ;;  %vm9836_vm0 = vcmask 523264  }
  0x33   : > { %v390_v1 = vld [vmem:[%s14108_s5 + $0x20] sm:$0xff]  ;;  %v391_v4 = vld [vmem:[%s14108_s5 + $0x28] sm:$0xff]  ;;  %v229_v33 = vunpack.c.l.s4 %v14003_v32  ;;  %v14150_v59 = vld [vmem:[%s16026_s0] sm:$0xff]  ;;  %s12101_s22 = sshll.u32 %s12094_s16, 3 }
  0x34   : > { %v12106_v3 = vcombine.high %v386_v0, %v390_v1  ;;  %v12105_v5 = vcombine.low %v386_v0, %v390_v1  ;;  %v394_v6 = vld [vmem:[%s14108_s5 + $0x40] sm:$0xff]  ;;  %v12108_v8 = vcombine.high %v387_v2, %v391_v4  ;;  %v12107_v9 = vcombine.low %v387_v2, %v391_v4  ;;  %v395_v11 = vld [vmem:[%s14108_s5 + $0x48] sm:$0xff]  ;;  %p202_p7 = scmp.lt.s32.totalorder %s12101_s22, 79 }
  0x35   : > { %v398_v7 = vld [vmem:[%s14108_s5 + $0x60] sm:$0xff]  ;;  %v399_v12 = vld [vmem:[%s14108_s5 + $0x68] sm:$0xff]  ;;  %v230_v43 = vunpack.c.0.s8 %v229_v33  ;;  %v14136_v44 = vshrl.u32 %v231_v34, 7 }
  0x36   : > { %v12114_v10 = vcombine.high %v394_v6, %v398_v7  ;;  %v402_v13 = vld [vmem:[%s14108_s5 + $0x80] sm:$0xff]  ;;  %9840 = vmatprep.subr.bf16.mxu0 %v12106_v3  ;;  %v12116_v14 = vcombine.high %v395_v11, %v399_v12  ;;  %v403_v16 = vld [vmem:[%s14108_s5 + $0x88] sm:$0xff]  ;;  %10373 = vmatprep.subr.bf16.mxu1 %v12108_v8  ;;  %v12113_v18 = vcombine.low %v394_v6, %v398_v7  ;;  %s16037_s22 = smov (!%p202_p7, %s12101_s22), 79 }
  0x37   : > { %v406_v15 = vld [vmem:[%s14108_s5 + $0xa0] sm:$0xff]  ;;  %v407_v17 = vld [vmem:[%s14108_s5 + $0xa8] sm:$0xff]  ;;  %9841 = vmatpush1.bf16.msra.mxu0 %v12105_v5  ;;  %10374 = vmatpush1.bf16.msra.mxu1 %v12107_v9  ;;  %v12115_v19 = vcombine.low %v395_v11, %v399_v12  ;;  %v14143_v53 = vsub.s32 %v230_v43, %v14136_v44  ;;  %s15377_s23 = scalar_lea.vmem %s16028_s2, %s16037_s22  ;;  %s12103_s24 = sshll.u32 %s16037_s22, 1 }
  0x38   : > { %9842 = vmatprep.subr.bf16.mxu0 %v12114_v10  ;;  %v12122_v20 = vcombine.high %v402_v13, %v406_v15  ;;  %10375 = vmatprep.subr.bf16.mxu1 %v12116_v14  ;;  %v12124_v21 = vcombine.high %v403_v16, %v407_v17  ;;  %v410_v22 = vld [vmem:[%s14108_s5 + $0xc0] sm:$0xff]  ;;  %v411_v24 = vld [vmem:[%s14108_s5 + $0xc8] sm:$0xff]  ;;  %v12121_v26 = vcombine.low %v402_v13, %v406_v15  ;;  %s15406_s29 = scalar_lea.vmem %s16029_s3, %s12103_s24 }
  0x39   : > { %v414_v23 = vld [vmem:[%s14108_s5 + $0xe0] sm:$0xff]  ;;  %v415_v25 = vld [vmem:[%s14108_s5 + $0xe8] sm:$0xff]  ;;  %v12123_v27 = vcombine.low %v403_v16, %v407_v17  ;;  %v14156_v63 = vrot.slane %v14150_v59, %v14143_v53 }
  0x3a   : > { %v12130_v28 = vcombine.high %v410_v22, %v414_v23  ;;  %v12132_v29 = vcombine.high %v411_v24, %v415_v25  ;;  %v418_v30 = vld [vmem:[%s14108_s5 + $0x100] sm:$0xff]  ;;  %v419_v35 = vld [vmem:[%s14108_s5 + $0x108] sm:$0xff]  ;;  %v12129_v37 = vcombine.low %v410_v22, %v414_v23  ;;  %v12131_v38 = vcombine.low %v411_v24, %v415_v25 }
  0x3b   : > { %9843 = vmatpush1.bf16.msra.mxu0 %v12113_v18  ;;  %10376 = vmatpush1.bf16.msra.mxu1 %v12115_v19  ;;  %v422_v31 = vld [vmem:[%s14108_s5 + $0x120] sm:$0xff]  ;;  %v423_v36 = vld [vmem:[%s14108_s5 + $0x128] sm:$0xff]  ;;  %v242_v3 = vcombine.high %v14156_v63, %v14156_v63 }
  0x3c   : > { %9844 = vmatprep.subr.bf16.mxu0 %v12122_v20  ;;  %10377 = vmatprep.subr.bf16.mxu1 %v12124_v21  ;;  %v12138_v39 = vcombine.high %v418_v30, %v422_v31  ;;  %v12140_v40 = vcombine.high %v419_v35, %v423_v36  ;;  %v426_v41 = vld [vmem:[%s14108_s5 + $0x140] sm:$0xff]  ;;  %v427_v45 = vld [vmem:[%s14108_s5 + $0x148] sm:$0xff]  ;;  %v12137_v47 = vcombine.low %v418_v30, %v422_v31 }
  0x3d   : > { %v430_v42 = vld [vmem:[%s14108_s5 + $0x160] sm:$0xff]  ;;  %v431_v46 = vld [vmem:[%s14108_s5 + $0x168] sm:$0xff]  ;;  %v12139_v48 = vcombine.low %v419_v35, %v423_v36  ;;  %v14164_v9 = vpack.c.bf16 %v242_v3, %v242_v3 }
  0x3e   : > { %v12146_v49 = vcombine.high %v426_v41, %v430_v42  ;;  %v12148_v50 = vcombine.high %v427_v45, %v431_v46  ;;  %v434_v51 = vld [vmem:[%s14108_s5 + $0x180] sm:$0xff]  ;;  %v435_v54 = vld [vmem:[%s14108_s5 + $0x188] sm:$0xff]  ;;  %v12145_v56 = vcombine.low %v426_v41, %v430_v42  ;;  %v12147_v57 = vcombine.low %v427_v45, %v431_v46 }
  0x3f   : > { %9845 = vmatpush1.bf16.msra.mxu0 %v12121_v26  ;;  %10378 = vmatpush1.bf16.msra.mxu1 %v12123_v27  ;;  %v438_v52 = vld [vmem:[%s14108_s5 + $0x1a0] sm:$0xff]  ;;  %v439_v55 = vld [vmem:[%s14108_s5 + $0x1a8] sm:$0xff] }
  0x40   : > { %9846 = vmatprep.subr.bf16.mxu0 %v12130_v28  ;;  %10379 = vmatprep.subr.bf16.mxu1 %v12132_v29  ;;  %v12154_v58 = vcombine.high %v434_v51, %v438_v52  ;;  %v12156_v60 = vcombine.high %v435_v54, %v439_v55  ;;  %v442_v61 = vld [vmem:[%s14108_s5 + $0x1c0] sm:$0xff]  ;;  %v443_v0 = vld [vmem:[%s14108_s5 + $0x1c8] sm:$0xff]  ;;  %v12153_v2 = vcombine.low %v434_v51, %v438_v52 }
  0x41   : > { %v446_v62 = vld [vmem:[%s14108_s5 + $0x1e0] sm:$0xff]  ;;  %v447_v1 = vld [vmem:[%s14108_s5 + $0x1e8] sm:$0xff]  ;;  %v12155_v4 = vcombine.low %v435_v54, %v439_v55  ;;  %9872 = vmatprep.mubr.bf16.mxu0 %v14164_v9  ;;  %10405 = vmatprep.mubr.bf16.mxu1 %v14164_v9 }
  0x42   : > { %v12162_v5 = vcombine.high %v442_v61, %v446_v62  ;;  %v12164_v6 = vcombine.high %v443_v0, %v447_v1  ;;  %v450_v7 = vld [vmem:[%s14108_s5 + $0x200] sm:$0xff]  ;;  %v451_v10 = vld [vmem:[%s14108_s5 + $0x208] sm:$0xff]  ;;  %v12161_v12 = vcombine.low %v442_v61, %v446_v62  ;;  %v12163_v13 = vcombine.low %v443_v0, %v447_v1 }
  0x43   : > { %9847 = vmatpush1.bf16.msra.mxu0 %v12129_v37  ;;  %10380 = vmatpush1.bf16.msra.mxu1 %v12131_v38  ;;  %v454_v8 = vld [vmem:[%s14108_s5 + $0x220] sm:$0xff]  ;;  %v455_v11 = vld [vmem:[%s14108_s5 + $0x228] sm:$0xff] }
  0x44   : > { %9848 = vmatprep.subr.bf16.mxu0 %v12138_v39  ;;  %10381 = vmatprep.subr.bf16.mxu1 %v12140_v40  ;;  %v12170_v14 = vcombine.high %v450_v7, %v454_v8  ;;  %v12172_v15 = vcombine.high %v451_v10, %v455_v11  ;;  %v458_v16 = vld [vmem:[%s14108_s5 + $0x240] sm:$0xff]  ;;  %v459_v18 = vld [vmem:[%s14108_s5 + $0x248] sm:$0xff]  ;;  %v12169_v20 = vcombine.low %v450_v7, %v454_v8 }
  0x45   : > { %v462_v17 = vld [vmem:[%s14108_s5 + $0x260] sm:$0xff]  ;;  %v463_v19 = vld [vmem:[%s14108_s5 + $0x268] sm:$0xff]  ;;  %v12171_v21 = vcombine.low %v451_v10, %v455_v11 }
  0x46   : > { %v12178_v22 = vcombine.high %v458_v16, %v462_v17  ;;  %v12180_v23 = vcombine.high %v459_v18, %v463_v19  ;;  %v466_v24 = vld [vmem:[%s14108_s5 + $0x280] sm:$0xff]  ;;  %v467_v26 = vld [vmem:[%s14108_s5 + $0x288] sm:$0xff]  ;;  %v12177_v28 = vcombine.low %v458_v16, %v462_v17  ;;  %v12179_v29 = vcombine.low %v459_v18, %v463_v19 }
  0x47   : > { %9849 = vmatpush1.bf16.msra.mxu0 %v12137_v47  ;;  %10382 = vmatpush1.bf16.msra.mxu1 %v12139_v48  ;;  %v470_v25 = vld [vmem:[%s14108_s5 + $0x2a0] sm:$0xff]  ;;  %v471_v27 = vld [vmem:[%s14108_s5 + $0x2a8] sm:$0xff] }
  0x48   : > { %9850 = vmatprep.subr.bf16.mxu0 %v12146_v49  ;;  %10383 = vmatprep.subr.bf16.mxu1 %v12148_v50  ;;  %v12186_v30 = vcombine.high %v466_v24, %v470_v25  ;;  %v12188_v31 = vcombine.high %v467_v26, %v471_v27  ;;  %v474_v32 = vld [vmem:[%s14108_s5 + $0x2c0] sm:$0xff]  ;;  %v475_v34 = vld [vmem:[%s14108_s5 + $0x2c8] sm:$0xff]  ;;  %v12185_v36 = vcombine.low %v466_v24, %v470_v25 }
  0x49   : > { %v478_v33 = vld [vmem:[%s14108_s5 + $0x2e0] sm:$0xff]  ;;  %v479_v35 = vld [vmem:[%s14108_s5 + $0x2e8] sm:$0xff]  ;;  %v12187_v37 = vcombine.low %v467_v26, %v471_v27  ;;  %v14213_v25 = vpack.c.bf16 %v14156_v63, %v14156_v63 }
  0x4a   : > { %v12194_v38 = vcombine.high %v474_v32, %v478_v33  ;;  %v12196_v39 = vcombine.high %v475_v34, %v479_v35  ;;  %v482_v40 = vld [vmem:[%s14108_s5 + $0x300] sm:$0xff]  ;;  %v483_v42 = vld [vmem:[%s14108_s5 + $0x308] sm:$0xff]  ;;  %v12193_v45 = vcombine.low %v474_v32, %v478_v33  ;;  %v12195_v46 = vcombine.low %v475_v34, %v479_v35 }
  0x4b   : > { %9851 = vmatpush1.bf16.msra.mxu0 %v12145_v56  ;;  %10384 = vmatpush1.bf16.msra.mxu1 %v12147_v57  ;;  %v486_v41 = vld [vmem:[%s14108_s5 + $0x320] sm:$0xff]  ;;  %v487_v43 = vld [vmem:[%s14108_s5 + $0x328] sm:$0xff] }
  0x4c   : > { %9852 = vmatprep.subr.bf16.mxu0 %v12154_v58  ;;  %10385 = vmatprep.subr.bf16.mxu1 %v12156_v60  ;;  %v12202_v47 = vcombine.high %v482_v40, %v486_v41  ;;  %v12204_v48 = vcombine.high %v483_v42, %v487_v43  ;;  %v490_v49 = vld [vmem:[%s14108_s5 + $0x340] sm:$0xff]  ;;  %v491_v51 = vld [vmem:[%s14108_s5 + $0x348] sm:$0xff]  ;;  %v12201_v54 = vcombine.low %v482_v40, %v486_v41 }
  0x4d   : > { %v494_v50 = vld [vmem:[%s14108_s5 + $0x360] sm:$0xff]  ;;  %v495_v52 = vld [vmem:[%s14108_s5 + $0x368] sm:$0xff]  ;;  %v12203_v55 = vcombine.low %v483_v42, %v487_v43 }
  0x4e   : > { %v12210_v56 = vcombine.high %v490_v49, %v494_v50  ;;  %v12212_v57 = vcombine.high %v491_v51, %v495_v52  ;;  %v498_v58 = vld [vmem:[%s14108_s5 + $0x380] sm:$0xff]  ;;  %v499_v61 = vld [vmem:[%s14108_s5 + $0x388] sm:$0xff]  ;;  %v12209_v0 = vcombine.low %v490_v49, %v494_v50  ;;  %v12211_v1 = vcombine.low %v491_v51, %v495_v52 }
  0x4f   : > { %9853 = vmatpush1.bf16.msra.mxu0 %v12153_v2  ;;  %10386 = vmatpush1.bf16.msra.mxu1 %v12155_v4  ;;  %v502_v60 = vld [vmem:[%s14108_s5 + $0x3a0] sm:$0xff]  ;;  %v503_v62 = vld [vmem:[%s14108_s5 + $0x3a8] sm:$0xff] }
  0x50   : > { %9854 = vmatprep.subr.bf16.mxu0 %v12162_v5  ;;  %10387 = vmatprep.subr.bf16.mxu1 %v12164_v6  ;;  %v12218_v2 = vcombine.high %v498_v58, %v502_v60  ;;  %v12220_v3 = vcombine.high %v499_v61, %v503_v62  ;;  %v506_v4 = vld [vmem:[%s14108_s5 + $0x3c0] sm:$0xff]  ;;  %v227_v6 = vcombine.high %v14150_v59, %v14150_v59  ;;  %v507_v7 = vld [vmem:[%s14108_s5 + $0x3c8] sm:$0xff] }
  0x51   : > { %v510_v5 = vld [vmem:[%s14108_s5 + $0x3e0] sm:$0xff]  ;;  %v511_v8 = vld [vmem:[%s14108_s5 + $0x3e8] sm:$0xff]  ;;  %v12217_v10 = vcombine.low %v498_v58, %v502_v60  ;;  %v12219_v11 = vcombine.low %v499_v61, %v503_v62 }
  0x52   : > { %v14203_v16 = vrot.slane %v227_v6, %v14143_v53  ;;  %v515_v59 = vld [vmem:[%s14108_s5 + $0x408] sm:$0xff]  ;;  %v12225_v18 = vcombine.low %v506_v4, %v510_v5  ;;  %v12227_v19 = vcombine.low %v507_v7, %v511_v8  ;;  %v530_v32 = vld [vmem:[%s14108_s5 + $0x480] sm:$0xff] }
  0x53   : > { %9855 = vmatpush1.bf16.msra.mxu0 %v12161_v12  ;;  %10388 = vmatpush1.bf16.msra.mxu1 %v12163_v13  ;;  %v12226_v12 = vcombine.high %v506_v4, %v510_v5  ;;  %v12228_v13 = vcombine.high %v507_v7, %v511_v8  ;;  %v519_v17 = vld [vmem:[%s14108_s5 + $0x428] sm:$0xff]  ;;  %v534_v33 = vld [vmem:[%s14108_s5 + $0x4a0] sm:$0xff] }
  0x54   : > { %9856 = vmatprep.subr.bf16.mxu0 %v12170_v14  ;;  %10389 = vmatprep.subr.bf16.mxu1 %v12172_v15  ;;  %v514_v14 = vld [vmem:[%s14108_s5 + $0x400] sm:$0xff]  ;;  %v243_v24 = vcombine.high %v14203_v16, %v14203_v16  ;;  %v523_v26 = vld [vmem:[%s14108_s5 + $0x448] sm:$0xff] }
  0x55   : > { %v518_v15 = vld [vmem:[%s14108_s5 + $0x420] sm:$0xff]  ;;  %v527_v27 = vld [vmem:[%s14108_s5 + $0x468] sm:$0xff] }
  0x56   : > { %v14219_v34 = vpack.c.bf16 %v243_v24, %v243_v24  ;;  %v531_v63 = vld [vmem:[%s14108_s5 + $0x488] sm:$0xff]  ;;  %v538_v40 = vld [vmem:[%s14108_s5 + $0x4c0] sm:$0xff] }
  0x57   : > { %9857 = vmatpush1.bf16.msra.mxu0 %v12169_v20  ;;  %10390 = vmatpush1.bf16.msra.mxu1 %v12171_v21  ;;  %v12234_v20 = vcombine.high %v514_v14, %v518_v15  ;;  %v12236_v21 = vcombine.high %v515_v59, %v519_v17  ;;  %v535_v35 = vld [vmem:[%s14108_s5 + $0x4a8] sm:$0xff]  ;;  %v542_v41 = vld [vmem:[%s14108_s5 + $0x4e0] sm:$0xff] }
  0x58   : > { %9858 = vmatprep.subr.bf16.mxu0 %v12178_v22  ;;  %10391 = vmatprep.subr.bf16.mxu1 %v12180_v23  ;;  %v522_v22 = vld [vmem:[%s14108_s5 + $0x440] sm:$0xff]  ;;  %v539_v42 = vld [vmem:[%s14108_s5 + $0x4c8] sm:$0xff] }
  0x59   : > { %v526_v23 = vld [vmem:[%s14108_s5 + $0x460] sm:$0xff]  ;;  %v543_v43 = vld [vmem:[%s14108_s5 + $0x4e8] sm:$0xff] }
  0x5a   : > { %v546_v49 = vld [vmem:[%s14108_s5 + $0x500] sm:$0xff]  ;;  %v547_v51 = vld [vmem:[%s14108_s5 + $0x508] sm:$0xff] }
  0x5b   : > { %9859 = vmatpush1.bf16.msra.mxu0 %v12177_v28  ;;  %10392 = vmatpush1.bf16.msra.mxu1 %v12179_v29  ;;  %v12233_v28 = vcombine.low %v514_v14, %v518_v15  ;;  %v12235_v29 = vcombine.low %v515_v59, %v519_v17  ;;  %v550_v50 = vld [vmem:[%s14108_s5 + $0x520] sm:$0xff]  ;;  %v551_v52 = vld [vmem:[%s14108_s5 + $0x528] sm:$0xff] }
  0x5c   : > { %9860 = vmatprep.subr.bf16.mxu0 %v12186_v30  ;;  %10393 = vmatprep.subr.bf16.mxu1 %v12188_v31  ;;  %v12242_v30 = vcombine.high %v522_v22, %v526_v23  ;;  %v12244_v31 = vcombine.high %v523_v26, %v527_v27  ;;  %v554_v58 = vld [vmem:[%s14108_s5 + $0x540] sm:$0xff]  ;;  %v555_v61 = vld [vmem:[%s14108_s5 + $0x548] sm:$0xff] }
  0x5d   : > { %v558_v60 = vld [vmem:[%s14108_s5 + $0x560] sm:$0xff]  ;;  %v559_v62 = vld [vmem:[%s14108_s5 + $0x568] sm:$0xff] }
  0x5e   : > { %v562_v4 = vld [vmem:[%s14108_s5 + $0x580] sm:$0xff]  ;;  %v563_v6 = vld [vmem:[%s14108_s5 + $0x588] sm:$0xff]  ;;  %v12273_v8 = vcombine.low %v554_v58, %v558_v60 }
  0x5f   : > { %9861 = vmatpush1.bf16.msra.mxu0 %v12185_v36  ;;  %10394 = vmatpush1.bf16.msra.mxu1 %v12187_v37  ;;  %v12241_v36 = vcombine.low %v522_v22, %v526_v23  ;;  %v12243_v37 = vcombine.low %v523_v26, %v527_v27  ;;  %v566_v5 = vld [vmem:[%s14108_s5 + $0x5a0] sm:$0xff]  ;;  %v567_v7 = vld [vmem:[%s14108_s5 + $0x5a8] sm:$0xff] }
  0x60   : > { %9862 = vmatprep.subr.bf16.mxu0 %v12194_v38  ;;  %10395 = vmatprep.subr.bf16.mxu1 %v12196_v39  ;;  %v12250_v38 = vcombine.high %v530_v32, %v534_v33  ;;  %v12252_v39 = vcombine.high %v531_v63, %v535_v35  ;;  %v574_v14 = vld [vmem:[%s14108_s5 + $0x5e0] sm:$0xff]  ;;  %v571_v15 = vld [vmem:[%s14108_s5 + $0x5c8] sm:$0xff]  ;;  %v12281_v17 = vcombine.low %v562_v4, %v566_v5 }
  0x61   : > { %v575_v59 = vld [vmem:[%s14108_s5 + $0x5e8] sm:$0xff]  ;;  %v582_v22 = vld [vmem:[%s14108_s5 + $0x620] sm:$0xff] }
  0x62   : > { %v579_v23 = vld [vmem:[%s14108_s5 + $0x608] sm:$0xff]  ;;  %v12291_v27 = vcombine.low %v571_v15, %v575_v59 }
  0x63   : > { %9863 = vmatpush1.bf16.msra.mxu0 %v12193_v45  ;;  %10396 = vmatpush1.bf16.msra.mxu1 %v12195_v46  ;;  %v12249_v45 = vcombine.low %v530_v32, %v534_v33  ;;  %v12251_v46 = vcombine.low %v531_v63, %v535_v35  ;;  %v583_v24 = vld [vmem:[%s14108_s5 + $0x628] sm:$0xff] }
  0x64   : > { %9864 = vmatprep.subr.bf16.mxu0 %v12202_v47  ;;  %10397 = vmatprep.subr.bf16.mxu1 %v12204_v48  ;;  %v12258_v47 = vcombine.high %v538_v40, %v542_v41  ;;  %v12260_v48 = vcombine.high %v539_v42, %v543_v43  ;;  %v587_v32 = vld [vmem:[%s14108_s5 + $0x648] sm:$0xff]  ;;  %v12299_v35 = vcombine.low %v579_v23, %v583_v24 }
  0x65   : > { %v591_v33 = vld [vmem:[%s14108_s5 + $0x668] sm:$0xff] }
  0x67   : > { %9865 = vmatpush1.bf16.msra.mxu0 %v12201_v54  ;;  %10398 = vmatpush1.bf16.msra.mxu1 %v12203_v55  ;;  %v12257_v54 = vcombine.low %v538_v40, %v542_v41  ;;  %v12259_v55 = vcombine.low %v539_v42, %v543_v43  ;;  %v595_v40 = vld [vmem:[%s14108_s5 + $0x688] sm:$0xff]  ;;  %v12307_v43 = vcombine.low %v587_v32, %v591_v33 }
  0x68   : > { %9866 = vmatprep.subr.bf16.mxu0 %v12210_v56  ;;  %10399 = vmatprep.subr.bf16.mxu1 %v12212_v57  ;;  %v12266_v56 = vcombine.high %v546_v49, %v550_v50  ;;  %v12268_v57 = vcombine.high %v547_v51, %v551_v52  ;;  %v599_v41 = vld [vmem:[%s14108_s5 + $0x6a8] sm:$0xff] }
  0x6b   : > { %9867 = vmatpush1.bf16.msra.mxu0 %v12209_v0  ;;  %10400 = vmatpush1.bf16.msra.mxu1 %v12211_v1  ;;  %v12265_v0 = vcombine.low %v546_v49, %v550_v50  ;;  %v12267_v1 = vcombine.low %v547_v51, %v551_v52  ;;  %v603_v49 = vld [vmem:[%s14108_s5 + $0x6c8] sm:$0xff]  ;;  %v12315_v52 = vcombine.low %v595_v40, %v599_v41 }
  0x6c   : > { %9868 = vmatprep.subr.bf16.mxu0 %v12218_v2  ;;  %10401 = vmatprep.subr.bf16.mxu1 %v12220_v3  ;;  %v12274_v2 = vcombine.high %v554_v58, %v558_v60  ;;  %v12276_v3 = vcombine.high %v555_v61, %v559_v62  ;;  %v607_v50 = vld [vmem:[%s14108_s5 + $0x6e8] sm:$0xff] }
  0x6d   : > { %v611_v58 = vld [vmem:[%s14108_s5 + $0x708] sm:$0xff] }
  0x6e   : > { %v615_v60 = vld [vmem:[%s14108_s5 + $0x728] sm:$0xff] }
  0x6f   : > { %9869 = vmatpush1.bf16.msra.mxu0 %v12217_v10  ;;  %10402 = vmatpush1.bf16.msra.mxu1 %v12219_v11  ;;  %v12275_v10 = vcombine.low %v555_v61, %v559_v62  ;;  %v12282_v11 = vcombine.high %v562_v4, %v566_v5  ;;  %v12323_v62 = vcombine.low %v603_v49, %v607_v50  ;;  %v619_v4 = vld [vmem:[%s14108_s5 + $0x748] sm:$0xff] }
  0x70   : > { %9870 = vmatprep.subr.bf16.mxu0 %v12226_v12  ;;  %10403 = vmatprep.subr.bf16.mxu1 %v12228_v13  ;;  %v12284_v12 = vcombine.high %v563_v6, %v567_v7  ;;  %v570_v13 = vld [vmem:[%s14108_s5 + $0x5c0] sm:$0xff]  ;;  %v623_v5 = vld [vmem:[%s14108_s5 + $0x768] sm:$0xff] }
  0x71   : > { %v12289_v26 = vcombine.low %v570_v13, %v574_v14 }
  0x73   : > { %9871 = vmatpush1.bf16.msra.mxu0 %v12225_v18  ;;  %10404 = vmatpush1.bf16.msra.mxu1 %v12227_v19  ;;  %v12283_v18 = vcombine.low %v563_v6, %v567_v7  ;;  %v12290_v19 = vcombine.high %v570_v13, %v574_v14  ;;  %v12331_v7 = vcombine.low %v611_v58, %v615_v60  ;;  %v627_v13 = vld [vmem:[%s14108_s5 + $0x788] sm:$0xff] }
  0x74   : > { %9881 = vmatprep.subr.bf16.mxu0 %v12234_v20  ;;  %10414 = vmatprep.subr.bf16.mxu1 %v12236_v21  ;;  %v12292_v20 = vcombine.high %v571_v15, %v575_v59  ;;  %v578_v21 = vld [vmem:[%s14108_s5 + $0x600] sm:$0xff]  ;;  %v631_v14 = vld [vmem:[%s14108_s5 + $0x7a8] sm:$0xff]  ;;  %v12339_v59 = vcombine.low %v619_v4, %v623_v5 }
  0x75   : > { %v12297_v63 = vcombine.low %v578_v21, %v582_v22 }
  0x76   : > { %9873 = vmatmul.mubr.bf16.vlgmr.msra.gmra.mrb[0].mxu0 %v14213_v25  ;;  %10406 = vmatmul.mubr.bf16.vlgmr.msra.gmra.mrb[0].mxu1 %v14213_v25 }
  0x77   : > { %9882 = vmatpush1.bf16.msra.mxu0 %v12233_v28  ;;  %10415 = vmatpush1.bf16.msra.mxu1 %v12235_v29  ;;  %v12298_v28 = vcombine.high %v578_v21, %v582_v22  ;;  %v12300_v29 = vcombine.high %v579_v23, %v583_v24  ;;  %v635_v21 = vld [vmem:[%s14108_s5 + $0x7c8] sm:$0xff]  ;;  %v14282_v23 = vld [vmem:[%s16026_s0 + $0x8] sm:$0xff] }
  0x78   : > { %9883 = vmatprep.subr.bf16.mxu0 %v12242_v30  ;;  %10416 = vmatprep.subr.bf16.mxu1 %v12244_v31  ;;  %v586_v30 = vld [vmem:[%s14108_s5 + $0x640] sm:$0xff]  ;;  %v639_v22 = vld [vmem:[%s14108_s5 + $0x7e8] sm:$0xff] }
  0x79   : > { %9913 = vmatprep.mubr.bf16.mxu0 %v14219_v34  ;;  %10446 = vmatprep.mubr.bf16.mxu1 %v14219_v34  ;;  %v590_v31 = vld [vmem:[%s14108_s5 + $0x660] sm:$0xff] }
  0x7a   : > { %v12305_v42 = vcombine.low %v586_v30, %v590_v31 }
  0x7b   : > { %9884 = vmatpush1.bf16.msra.mxu0 %v12241_v36  ;;  %10417 = vmatpush1.bf16.msra.mxu1 %v12243_v37  ;;  %v12306_v36 = vcombine.high %v586_v30, %v590_v31  ;;  %v12308_v37 = vcombine.high %v587_v32, %v591_v33  ;;  %v646_v30 = vld [vmem:[%s14108_s5 + $0x820] sm:$0xff]  ;;  %v14288_v31 = vrot.slane %v14282_v23, %v14143_v53  ;;  %v643_v32 = vld [vmem:[%s14108_s5 + $0x808] sm:$0xff] }
  0x7c   : > { %9885 = vmatprep.subr.bf16.mxu0 %v12250_v38  ;;  %10418 = vmatprep.subr.bf16.mxu1 %v12252_v39  ;;  %v594_v38 = vld [vmem:[%s14108_s5 + $0x680] sm:$0xff]  ;;  %v647_v33 = vld [vmem:[%s14108_s5 + $0x828] sm:$0xff] }
  0x7d   : > { %v598_v39 = vld [vmem:[%s14108_s5 + $0x6a0] sm:$0xff] }
  0x7e   : > { %v12313_v51 = vcombine.low %v594_v38, %v598_v39 }
  0x7f   : > { %9886 = vmatpush1.bf16.msra.mxu0 %v12249_v45  ;;  %10419 = vmatpush1.bf16.msra.mxu1 %v12251_v46  ;;  %v12314_v45 = vcombine.high %v594_v38, %v598_v39  ;;  %v12316_v46 = vcombine.high %v595_v40, %v599_v41  ;;  %v650_v38 = vld [vmem:[%s14108_s5 + $0x840] sm:$0xff]  ;;  %v259_v40 = vcombine.high %v14288_v31, %v14288_v31 }
  0x80   : > { %9887 = vmatprep.subr.bf16.mxu0 %v12258_v47  ;;  %10420 = vmatprep.subr.bf16.mxu1 %v12260_v48  ;;  %v602_v47 = vld [vmem:[%s14108_s5 + $0x6c0] sm:$0xff]  ;;  %v14298_v41 = vpack.c.bf16 %v14203_v16, %v14203_v16  ;;  %v659_v16 = vld [vmem:[%s14108_s5 + $0x888] sm:$0xff] }
  0x81   : > { %v606_v48 = vld [vmem:[%s14108_s5 + $0x6e0] sm:$0xff] }
  0x82   : > { %v12321_v61 = vcombine.low %v602_v47, %v606_v48  ;;  %v654_v39 = vld [vmem:[%s14108_s5 + $0x860] sm:$0xff] }
  0x83   : > { %9888 = vmatpush1.bf16.msra.mxu0 %v12257_v54  ;;  %10421 = vmatpush1.bf16.msra.mxu1 %v12259_v55  ;;  %v12322_v54 = vcombine.high %v602_v47, %v606_v48  ;;  %v12324_v55 = vcombine.high %v603_v49, %v607_v50  ;;  %v12370_v47 = vcombine.high %v650_v38, %v654_v39  ;;  %v658_v49 = vld [vmem:[%s14108_s5 + $0x880] sm:$0xff] }
  0x84   : > { %9889 = vmatprep.subr.bf16.mxu0 %v12266_v56  ;;  %10422 = vmatprep.subr.bf16.mxu1 %v12268_v57  ;;  %v610_v56 = vld [vmem:[%s14108_s5 + $0x700] sm:$0xff] }
  0x85   : > { %v614_v57 = vld [vmem:[%s14108_s5 + $0x720] sm:$0xff] }
  0x86   : > { %v12329_v6 = vcombine.low %v610_v56, %v614_v57  ;;  %v662_v50 = vld [vmem:[%s14108_s5 + $0x8a0] sm:$0xff] }
  0x87   : > { %9890 = vmatpush1.bf16.msra.mxu0 %v12265_v0  ;;  %10423 = vmatpush1.bf16.msra.mxu1 %v12267_v1  ;;  %v12330_v0 = vcombine.high %v610_v56, %v614_v57  ;;  %v12332_v1 = vcombine.high %v611_v58, %v615_v60  ;;  %v12378_v56 = vcombine.high %v658_v49, %v662_v50  ;;  %v666_v58 = vld [vmem:[%s14108_s5 + $0x8c0] sm:$0xff] }
  0x88   : > { %9891 = vmatprep.subr.bf16.mxu0 %v12274_v2  ;;  %10424 = vmatprep.subr.bf16.mxu1 %v12276_v3  ;;  %v618_v2 = vld [vmem:[%s14108_s5 + $0x740] sm:$0xff] }
  0x89   : > { %v622_v3 = vld [vmem:[%s14108_s5 + $0x760] sm:$0xff] }
  0x8a   : > { %v12337_v15 = vcombine.low %v618_v2, %v622_v3  ;;  %v670_v60 = vld [vmem:[%s14108_s5 + $0x8e0] sm:$0xff] }
  0x8b   : > { %9892 = vmatpush1.bf16.msra.mxu0 %v12273_v8  ;;  %10425 = vmatpush1.bf16.msra.mxu1 %v12275_v10  ;;  %v12338_v8 = vcombine.high %v618_v2, %v622_v3  ;;  %v12340_v10 = vcombine.high %v619_v4, %v623_v5  ;;  %v12386_v2 = vcombine.high %v666_v58, %v670_v60  ;;  %v674_v4 = vld [vmem:[%s14108_s5 + $0x900] sm:$0xff] }
  0x8c   : > { %9893 = vmatprep.subr.bf16.mxu0 %v12282_v11  ;;  %10426 = vmatprep.subr.bf16.mxu1 %v12284_v12  ;;  %v626_v11 = vld [vmem:[%s14108_s5 + $0x780] sm:$0xff] }
  0x8d   : > { %v630_v12 = vld [vmem:[%s14108_s5 + $0x7a0] sm:$0xff] }
  0x8e   : > { %v12345_v24 = vcombine.low %v626_v11, %v630_v12  ;;  %v678_v5 = vld [vmem:[%s14108_s5 + $0x920] sm:$0xff] }
  0x8f   : > { %9894 = vmatpush1.bf16.msra.mxu0 %v12281_v17  ;;  %10427 = vmatpush1.bf16.msra.mxu1 %v12283_v18  ;;  %v12346_v17 = vcombine.high %v626_v11, %v630_v12  ;;  %v12348_v18 = vcombine.high %v627_v13, %v631_v14  ;;  %v12394_v11 = vcombine.high %v674_v4, %v678_v5 }
  0x90   : > { %9895 = vmatprep.subr.bf16.mxu0 %v12290_v19  ;;  %10428 = vmatprep.subr.bf16.mxu1 %v12292_v20  ;;  %v634_v19 = vld [vmem:[%s14108_s5 + $0x7c0] sm:$0xff] }
  0x91   : > { %v638_v20 = vld [vmem:[%s14108_s5 + $0x7e0] sm:$0xff] }
  0x93   : > { %9896 = vmatpush1.bf16.msra.mxu0 %v12289_v26  ;;  %10429 = vmatpush1.bf16.msra.mxu1 %v12291_v27  ;;  %v12347_v26 = vcombine.low %v627_v13, %v631_v14  ;;  %v12354_v27 = vcombine.high %v634_v19, %v638_v20  ;;  %v682_v13 = vld [vmem:[%s14108_s5 + $0x940] sm:$0xff] }
  0x94   : > { %9897 = vmatprep.subr.bf16.mxu0 %v12298_v28  ;;  %10430 = vmatprep.subr.bf16.mxu1 %v12300_v29  ;;  %v12356_v28 = vcombine.high %v635_v21, %v639_v22  ;;  %v642_v29 = vld [vmem:[%s14108_s5 + $0x800] sm:$0xff] }
  0x95   : > { %v686_v14 = vld [vmem:[%s14108_s5 + $0x960] sm:$0xff] }
  0x97   : > { %9898 = vmatpush1.bf16.msra.mxu0 %v12297_v63  ;;  %10431 = vmatpush1.bf16.msra.mxu1 %v12299_v35  ;;  %v12353_v63 = vcombine.low %v634_v19, %v638_v20  ;;  %v12355_v35 = vcombine.low %v635_v21, %v639_v22  ;;  %v12402_v19 = vcombine.high %v682_v13, %v686_v14  ;;  %v690_v21 = vld [vmem:[%s14108_s5 + $0x980] sm:$0xff] }
  0x98   : > { %9899 = vmatprep.subr.bf16.mxu0 %v12306_v36  ;;  %10432 = vmatprep.subr.bf16.mxu1 %v12308_v37  ;;  %v12362_v36 = vcombine.high %v642_v29, %v646_v30  ;;  %v12364_v37 = vcombine.high %v643_v32, %v647_v33  ;;  %v694_v22 = vld [vmem:[%s14108_s5 + $0x9a0] sm:$0xff] }
  0x9b   : > { %9900 = vmatpush1.bf16.msra.mxu0 %v12305_v42  ;;  %10433 = vmatpush1.bf16.msra.mxu1 %v12307_v43  ;;  %v651_v42 = vld [vmem:[%s14108_s5 + $0x848] sm:$0xff] }
  0x9c   : > { %9901 = vmatprep.subr.bf16.mxu0 %v12314_v45  ;;  %10434 = vmatprep.subr.bf16.mxu1 %v12316_v46  ;;  %v655_v43 = vld [vmem:[%s14108_s5 + $0x868] sm:$0xff]  ;;  %v12361_v45 = vcombine.low %v642_v29, %v646_v30  ;;  %v12363_v46 = vcombine.low %v643_v32, %v647_v33  ;;  %v12410_v29 = vcombine.high %v690_v21, %v694_v22  ;;  %v698_v32 = vld [vmem:[%s14108_s5 + $0x9c0] sm:$0xff] }
  0x9d   : > { %v12372_v48 = vcombine.high %v651_v42, %v655_v43  ;;  %v702_v33 = vld [vmem:[%s14108_s5 + $0x9e0] sm:$0xff] }
  0x9f   : > { %9902 = vmatpush1.bf16.msra.mxu0 %v12313_v51  ;;  %10435 = vmatpush1.bf16.msra.mxu1 %v12315_v52  ;;  %v14304_v51 = vpack.c.bf16 %v259_v40, %v259_v40  ;;  %v663_v52 = vld [vmem:[%s14108_s5 + $0x8a8] sm:$0xff]  ;;  %v706_v40 = vld [vmem:[%s14108_s5 + $0xa00] sm:$0xff] }
  0xa0   : > { %9903 = vmatprep.subr.bf16.mxu0 %v12322_v54  ;;  %10436 = vmatprep.subr.bf16.mxu1 %v12324_v55  ;;  %v12369_v54 = vcombine.low %v650_v38, %v654_v39  ;;  %v12371_v55 = vcombine.low %v651_v42, %v655_v43  ;;  %v12380_v57 = vcombine.high %v659_v16, %v663_v52  ;;  %v710_v42 = vld [vmem:[%s14108_s5 + $0xa20] sm:$0xff]  ;;  %v707_v43 = vld [vmem:[%s14108_s5 + $0xa08] sm:$0xff] }
  0xa1   : > { %v12418_v38 = vcombine.high %v698_v32, %v702_v33 }
  0xa3   : > { %9904 = vmatpush1.bf16.msra.mxu0 %v12321_v61  ;;  %10437 = vmatpush1.bf16.msra.mxu1 %v12323_v62  ;;  %v667_v61 = vld [vmem:[%s14108_s5 + $0x8c8] sm:$0xff] }
  0xa4   : > { %9905 = vmatprep.subr.bf16.mxu0 %v12330_v0  ;;  %10438 = vmatprep.subr.bf16.mxu1 %v12332_v1  ;;  %v671_v62 = vld [vmem:[%s14108_s5 + $0x8e8] sm:$0xff]  ;;  %v12377_v0 = vcombine.low %v658_v49, %v662_v50  ;;  %v12379_v1 = vcombine.low %v659_v16, %v663_v52  ;;  %v714_v50 = vld [vmem:[%s14108_s5 + $0xa40] sm:$0xff] }
  0xa5   : > { %v12388_v3 = vcombine.high %v667_v61, %v671_v62  ;;  %v718_v16 = vld [vmem:[%s14108_s5 + $0xa60] sm:$0xff]  ;;  %v715_v52 = vld [vmem:[%s14108_s5 + $0xa48] sm:$0xff] }
  0xa7   : > { %9906 = vmatpush1.bf16.msra.mxu0 %v12329_v6  ;;  %10439 = vmatpush1.bf16.msra.mxu1 %v12331_v7  ;;  %v675_v6 = vld [vmem:[%s14108_s5 + $0x908] sm:$0xff] }
  0xa8   : > { %9907 = vmatprep.subr.bf16.mxu0 %v12338_v8  ;;  %10440 = vmatprep.subr.bf16.mxu1 %v12340_v10  ;;  %v679_v7 = vld [vmem:[%s14108_s5 + $0x928] sm:$0xff]  ;;  %v12385_v8 = vcombine.low %v666_v58, %v670_v60  ;;  %v12387_v10 = vcombine.low %v667_v61, %v671_v62  ;;  %v722_v60 = vld [vmem:[%s14108_s5 + $0xa80] sm:$0xff] }
  0xa9   : > { %v12396_v12 = vcombine.high %v675_v6, %v679_v7  ;;  %v726_v61 = vld [vmem:[%s14108_s5 + $0xaa0] sm:$0xff]  ;;  %v723_v62 = vld [vmem:[%s14108_s5 + $0xa88] sm:$0xff] }
  0xab   : > { %9908 = vmatpush1.bf16.msra.mxu0 %v12337_v15  ;;  %10441 = vmatpush1.bf16.msra.mxu1 %v12339_v59  ;;  %v683_v15 = vld [vmem:[%s14108_s5 + $0x948] sm:$0xff] }
  0xac   : > { %9909 = vmatprep.subr.bf16.mxu0 %v12346_v17  ;;  %10442 = vmatprep.subr.bf16.mxu1 %v12348_v18  ;;  %v687_v59 = vld [vmem:[%s14108_s5 + $0x968] sm:$0xff]  ;;  %v12393_v17 = vcombine.low %v674_v4, %v678_v5  ;;  %v12395_v18 = vcombine.low %v675_v6, %v679_v7  ;;  %v730_v5 = vld [vmem:[%s14108_s5 + $0xac0] sm:$0xff] }
  0xad   : > { %v12404_v20 = vcombine.high %v683_v15, %v687_v59  ;;  %v734_v6 = vld [vmem:[%s14108_s5 + $0xae0] sm:$0xff]  ;;  %v731_v7 = vld [vmem:[%s14108_s5 + $0xac8] sm:$0xff] }
  0xaf   : > { %9910 = vmatpush1.bf16.msra.mxu0 %v12345_v24  ;;  %10443 = vmatpush1.bf16.msra.mxu1 %v12347_v26  ;;  %v691_v24 = vld [vmem:[%s14108_s5 + $0x988] sm:$0xff] }
  0xb0   : > { %9911 = vmatprep.subr.bf16.mxu0 %v12354_v27  ;;  %10444 = vmatprep.subr.bf16.mxu1 %v12356_v28  ;;  %v695_v26 = vld [vmem:[%s14108_s5 + $0x9a8] sm:$0xff]  ;;  %v12401_v27 = vcombine.low %v682_v13, %v686_v14  ;;  %v12403_v28 = vcombine.low %v683_v15, %v687_v59  ;;  %v738_v14 = vld [vmem:[%s14108_s5 + $0xb00] sm:$0xff] }
  0xb1   : > { %v12412_v30 = vcombine.high %v691_v24, %v695_v26  ;;  %v742_v15 = vld [vmem:[%s14108_s5 + $0xb20] sm:$0xff]  ;;  %v739_v59 = vld [vmem:[%s14108_s5 + $0xb08] sm:$0xff] }
  0xb3   : > { %9912 = vmatpush1.bf16.msra.mxu0 %v12353_v63  ;;  %10445 = vmatpush1.bf16.msra.mxu1 %v12355_v35  ;;  %v699_v63 = vld [vmem:[%s14108_s5 + $0x9c8] sm:$0xff] }
  0xb4   : > { %9922 = vmatprep.subr.bf16.mxu0 %v12362_v36  ;;  %10455 = vmatprep.subr.bf16.mxu1 %v12364_v37  ;;  %v703_v35 = vld [vmem:[%s14108_s5 + $0x9e8] sm:$0xff]  ;;  %v12409_v36 = vcombine.low %v690_v21, %v694_v22  ;;  %v12411_v37 = vcombine.low %v691_v24, %v695_v26  ;;  %v746_v22 = vld [vmem:[%s14108_s5 + $0xb40] sm:$0xff] }
  0xb5   : > { %v12420_v39 = vcombine.high %v699_v63, %v703_v35  ;;  %v750_v24 = vld [vmem:[%s14108_s5 + $0xb60] sm:$0xff]  ;;  %v747_v26 = vld [vmem:[%s14108_s5 + $0xb48] sm:$0xff] }
  0xb6   : > { %9914 = vmatmul.mubr.bf16.vlgmr.msra.gmra.mrb[0].mxu0 %v14298_v41  ;;  %10447 = vmatmul.mubr.bf16.vlgmr.msra.gmra.mrb[0].mxu1 %v14298_v41 }
  0xb7   : > { %9923 = vmatpush1.bf16.msra.mxu0 %v12361_v45  ;;  %10456 = vmatpush1.bf16.msra.mxu1 %v12363_v46  ;;  %v711_v45 = vld [vmem:[%s14108_s5 + $0xa28] sm:$0xff]  ;;  %v12417_v46 = vcombine.low %v698_v32, %v702_v33  ;;  %v754_v33 = vld [vmem:[%s14108_s5 + $0xb80] sm:$0xff] }
  0xb8   : > { %9924 = vmatprep.subr.bf16.mxu0 %v12370_v47  ;;  %10457 = vmatprep.subr.bf16.mxu1 %v12372_v48  ;;  %v12419_v47 = vcombine.low %v699_v63, %v703_v35  ;;  %v12426_v48 = vcombine.high %v706_v40, %v710_v42  ;;  %v12428_v49 = vcombine.high %v707_v43, %v711_v45  ;;  %v758_v63 = vld [vmem:[%s14108_s5 + $0xba0] sm:$0xff]  ;;  %v755_v35 = vld [vmem:[%s14108_s5 + $0xb88] sm:$0xff] }
  0xb9   : > { %9954 = vmatprep.mubr.bf16.mxu0 %v14304_v51  ;;  %10487 = vmatprep.mubr.bf16.mxu1 %v14304_v51 }
  0xbb   : > { %9925 = vmatpush1.bf16.msra.mxu0 %v12369_v54  ;;  %10458 = vmatpush1.bf16.msra.mxu1 %v12371_v55  ;;  %v719_v54 = vld [vmem:[%s14108_s5 + $0xa68] sm:$0xff]  ;;  %v12425_v55 = vcombine.low %v706_v40, %v710_v42  ;;  %v762_v42 = vld [vmem:[%s14108_s5 + $0xbc0] sm:$0xff] }
  0xbc   : > { %9926 = vmatprep.subr.bf16.mxu0 %v12378_v56  ;;  %10459 = vmatprep.subr.bf16.mxu1 %v12380_v57  ;;  %v12427_v56 = vcombine.low %v707_v43, %v711_v45  ;;  %v12434_v57 = vcombine.high %v714_v50, %v718_v16  ;;  %v12436_v58 = vcombine.high %v715_v52, %v719_v54  ;;  %v766_v43 = vld [vmem:[%s14108_s5 + $0xbe0] sm:$0xff] }
  0xbd   : > { %v244_v45 = vcombine.high %v14282_v23, %v14282_v23  ;;  %v771_v23 = vld [vmem:[%s14108_s5 + $0xc08] sm:$0xff] }
  0xbf   : > { %9927 = vmatpush1.bf16.msra.mxu0 %v12377_v0  ;;  %10460 = vmatpush1.bf16.msra.mxu1 %v12379_v1  ;;  %v727_v0 = vld [vmem:[%s14108_s5 + $0xaa8] sm:$0xff]  ;;  %v12433_v1 = vcombine.low %v714_v50, %v718_v16  ;;  %v12482_v50 = vcombine.high %v762_v42, %v766_v43 }
  0xc0   : > { %9928 = vmatprep.subr.bf16.mxu0 %v12386_v2  ;;  %10461 = vmatprep.subr.bf16.mxu1 %v12388_v3  ;;  %v12435_v2 = vcombine.low %v715_v52, %v719_v54  ;;  %v12442_v3 = vcombine.high %v722_v60, %v726_v61  ;;  %v12444_v4 = vcombine.high %v723_v62, %v727_v0  ;;  %v770_v52 = vld [vmem:[%s14108_s5 + $0xc00] sm:$0xff] }
  0xc1   : > { %v774_v54 = vld [vmem:[%s14108_s5 + $0xc20] sm:$0xff] }
  0xc3   : > { %9929 = vmatpush1.bf16.msra.mxu0 %v12385_v8  ;;  %10462 = vmatpush1.bf16.msra.mxu1 %v12387_v10  ;;  %v735_v8 = vld [vmem:[%s14108_s5 + $0xae8] sm:$0xff]  ;;  %v12441_v10 = vcombine.low %v722_v60, %v726_v61  ;;  %v12490_v60 = vcombine.high %v770_v52, %v774_v54 }
  0xc4   : > { %9930 = vmatprep.subr.bf16.mxu0 %v12394_v11  ;;  %10463 = vmatprep.subr.bf16.mxu1 %v12396_v12  ;;  %v12443_v11 = vcombine.low %v723_v62, %v727_v0  ;;  %v12450_v12 = vcombine.high %v730_v5, %v734_v6  ;;  %v12452_v13 = vcombine.high %v731_v7, %v735_v8  ;;  %v778_v62 = vld [vmem:[%s14108_s5 + $0xc40] sm:$0xff] }
  0xc5   : > { %v782_v0 = vld [vmem:[%s14108_s5 + $0xc60] sm:$0xff] }
  0xc7   : > { %9931 = vmatpush1.bf16.msra.mxu0 %v12393_v17  ;;  %10464 = vmatpush1.bf16.msra.mxu1 %v12395_v18  ;;  %v743_v17 = vld [vmem:[%s14108_s5 + $0xb28] sm:$0xff]  ;;  %v12449_v18 = vcombine.low %v730_v5, %v734_v6  ;;  %v12489_v5 = vcombine.low %v770_v52, %v774_v54 }
  0xc8   : > { %9932 = vmatprep.subr.bf16.mxu0 %v12402_v19  ;;  %10465 = vmatprep.subr.bf16.mxu1 %v12404_v20  ;;  %v12451_v19 = vcombine.low %v731_v7, %v735_v8  ;;  %v12458_v20 = vcombine.high %v738_v14, %v742_v15  ;;  %v12460_v21 = vcombine.high %v739_v59, %v743_v17 }
  0xc9   : > { %v12498_v7 = vcombine.high %v778_v62, %v782_v0 }
  0xcb   : > { %9933 = vmatpush1.bf16.msra.mxu0 %v12401_v27  ;;  %10466 = vmatpush1.bf16.msra.mxu1 %v12403_v28  ;;  %v751_v27 = vld [vmem:[%s14108_s5 + $0xb68] sm:$0xff]  ;;  %v12457_v28 = vcombine.low %v738_v14, %v742_v15  ;;  %v12497_v14 = vcombine.low %v778_v62, %v782_v0 }
  0xcc   : > { %9934 = vmatprep.subr.bf16.mxu0 %v12410_v29  ;;  %10467 = vmatprep.subr.bf16.mxu1 %v12412_v30  ;;  %v12459_v29 = vcombine.low %v739_v59, %v743_v17  ;;  %v12466_v30 = vcombine.high %v746_v22, %v750_v24  ;;  %v12468_v32 = vcombine.high %v747_v26, %v751_v27 }
  0xcf   : > { %9935 = vmatpush1.bf16.msra.mxu0 %v12409_v36  ;;  %10468 = vmatpush1.bf16.msra.mxu1 %v12411_v37  ;;  %v759_v36 = vld [vmem:[%s14108_s5 + $0xba8] sm:$0xff]  ;;  %v12465_v37 = vcombine.low %v746_v22, %v750_v24 }
  0xd0   : > { %9936 = vmatprep.subr.bf16.mxu0 %v12418_v38  ;;  %10469 = vmatprep.subr.bf16.mxu1 %v12420_v39  ;;  %v12467_v38 = vcombine.low %v747_v26, %v751_v27  ;;  %v12474_v39 = vcombine.high %v754_v33, %v758_v63  ;;  %v12476_v40 = vcombine.high %v755_v35, %v759_v36 }
  0xd3   : > { %9937 = vmatpush1.bf16.msra.mxu0 %v12417_v46  ;;  %10470 = vmatpush1.bf16.msra.mxu1 %v12419_v47  ;;  %v763_v46 = vld [vmem:[%s14108_s5 + $0xbc8] sm:$0xff] }
  0xd4   : > { %9938 = vmatprep.subr.bf16.mxu0 %v12426_v48  ;;  %10471 = vmatprep.subr.bf16.mxu1 %v12428_v49  ;;  %v767_v47 = vld [vmem:[%s14108_s5 + $0xbe8] sm:$0xff]  ;;  %v12473_v48 = vcombine.low %v754_v33, %v758_v63  ;;  %v12475_v49 = vcombine.low %v755_v35, %v759_v36 }
  0xd5   : > { %v12484_v16 = vcombine.high %v763_v46, %v767_v47 }
  0xd7   : > { %9939 = vmatpush1.bf16.msra.mxu0 %v12425_v55  ;;  %10472 = vmatpush1.bf16.msra.mxu1 %v12427_v56  ;;  %v14369_v55 = vrot.slane %v244_v45, %v14143_v53  ;;  %v775_v56 = vld [vmem:[%s14108_s5 + $0xc28] sm:$0xff] }
  0xd8   : > { %9940 = vmatprep.subr.bf16.mxu0 %v12434_v57  ;;  %10473 = vmatprep.subr.bf16.mxu1 %v12436_v58  ;;  %v12481_v57 = vcombine.low %v762_v42, %v766_v43  ;;  %v12483_v58 = vcombine.low %v763_v46, %v767_v47  ;;  %v12492_v61 = vcombine.high %v771_v23, %v775_v56  ;;  %v818_v47 = vld [vmem:[%s14108_s5 + $0xd80] sm:$0xff] }
  0xd9   : > { %v12491_v6 = vcombine.low %v771_v23, %v775_v56  ;;  %v826_v56 = vld [vmem:[%s14108_s5 + $0xdc0] sm:$0xff] }
  0xdb   : > { %9941 = vmatpush1.bf16.msra.mxu0 %v12433_v1  ;;  %10474 = vmatpush1.bf16.msra.mxu1 %v12435_v2  ;;  %v260_v1 = vcombine.high %v14369_v55, %v14369_v55  ;;  %v14379_v2 = vpack.c.bf16 %v14288_v31, %v14288_v31  ;;  %v787_v31 = vld [vmem:[%s14108_s5 + $0xc88] sm:$0xff] }
  0xdc   : > { %9942 = vmatprep.subr.bf16.mxu0 %v12442_v3  ;;  %10475 = vmatprep.subr.bf16.mxu1 %v12444_v4  ;;  %v779_v3 = vld [vmem:[%s14108_s5 + $0xc48] sm:$0xff] }
  0xdd   : > { %v783_v4 = vld [vmem:[%s14108_s5 + $0xc68] sm:$0xff] }
  0xde   : > { %v12500_v8 = vcombine.high %v779_v3, %v783_v4  ;;  %v12499_v15 = vcombine.low %v779_v3, %v783_v4  ;;  %v834_v3 = vld [vmem:[%s14108_s5 + $0xe00] sm:$0xff] }
  0xdf   : > { %9943 = vmatpush1.bf16.msra.mxu0 %v12441_v10  ;;  %10476 = vmatpush1.bf16.msra.mxu1 %v12443_v11  ;;  %v786_v10 = vld [vmem:[%s14108_s5 + $0xc80] sm:$0xff] }
  0xe0   : > { %9944 = vmatprep.subr.bf16.mxu0 %v12450_v12  ;;  %10477 = vmatprep.subr.bf16.mxu1 %v12452_v13  ;;  %v790_v11 = vld [vmem:[%s14108_s5 + $0xca0] sm:$0xff]  ;;  %v14385_v12 = vpack.c.bf16 %v260_v1, %v260_v1  ;;  %v791_v13 = vld [vmem:[%s14108_s5 + $0xca8] sm:$0xff] }
  0xe1   : > { %v12506_v59 = vcombine.high %v786_v10, %v790_v11  ;;  %v12508_v17 = vcombine.high %v787_v31, %v791_v13  ;;  %v12505_v22 = vcombine.low %v786_v10, %v790_v11  ;;  %v12507_v24 = vcombine.low %v787_v31, %v791_v13  ;;  %v838_v4 = vld [vmem:[%s14108_s5 + $0xe20] sm:$0xff] }
  0xe2   : > { %v12554_v10 = vcombine.high %v834_v3, %v838_v4  ;;  %v842_v31 = vld [vmem:[%s14108_s5 + $0xe40] sm:$0xff] }
  0xe3   : > { %9945 = vmatpush1.bf16.msra.mxu0 %v12449_v18  ;;  %10478 = vmatpush1.bf16.msra.mxu1 %v12451_v19  ;;  %v794_v18 = vld [vmem:[%s14108_s5 + $0xcc0] sm:$0xff] }
  0xe4   : > { %9946 = vmatprep.subr.bf16.mxu0 %v12458_v20  ;;  %10479 = vmatprep.subr.bf16.mxu1 %v12460_v21  ;;  %v798_v19 = vld [vmem:[%s14108_s5 + $0xce0] sm:$0xff]  ;;  %v795_v20 = vld [vmem:[%s14108_s5 + $0xcc8] sm:$0xff] }
  0xe5   : > { %v799_v21 = vld [vmem:[%s14108_s5 + $0xce8] sm:$0xff]  ;;  %v12514_v26 = vcombine.high %v794_v18, %v798_v19  ;;  %v12513_v33 = vcombine.low %v794_v18, %v798_v19  ;;  %v846_v13 = vld [vmem:[%s14108_s5 + $0xe60] sm:$0xff] }
  0xe6   : > { %v12516_v27 = vcombine.high %v795_v20, %v799_v21  ;;  %v12515_v63 = vcombine.low %v795_v20, %v799_v21  ;;  %v12562_v18 = vcombine.high %v842_v31, %v846_v13  ;;  %v850_v20 = vld [vmem:[%s14108_s5 + $0xe80] sm:$0xff] }
  0xe7   : > { %9947 = vmatpush1.bf16.msra.mxu0 %v12457_v28  ;;  %10480 = vmatpush1.bf16.msra.mxu1 %v12459_v29  ;;  %v802_v28 = vld [vmem:[%s14108_s5 + $0xd00] sm:$0xff] }
  0xe8   : > { %9948 = vmatprep.subr.bf16.mxu0 %v12466_v30  ;;  %10481 = vmatprep.subr.bf16.mxu1 %v12468_v32  ;;  %v806_v29 = vld [vmem:[%s14108_s5 + $0xd20] sm:$0xff]  ;;  %v803_v30 = vld [vmem:[%s14108_s5 + $0xd08] sm:$0xff] }
  0xe9   : > { %v807_v32 = vld [vmem:[%s14108_s5 + $0xd28] sm:$0xff]  ;;  %v12522_v35 = vcombine.high %v802_v28, %v806_v29  ;;  %v12521_v42 = vcombine.low %v802_v28, %v806_v29  ;;  %v854_v21 = vld [vmem:[%s14108_s5 + $0xea0] sm:$0xff] }
  0xea   : > { %v12524_v36 = vcombine.high %v803_v30, %v807_v32  ;;  %v12523_v43 = vcombine.low %v803_v30, %v807_v32  ;;  %v12570_v28 = vcombine.high %v850_v20, %v854_v21  ;;  %v858_v30 = vld [vmem:[%s14108_s5 + $0xec0] sm:$0xff] }
  0xeb   : > { %9949 = vmatpush1.bf16.msra.mxu0 %v12465_v37  ;;  %10482 = vmatpush1.bf16.msra.mxu1 %v12467_v38  ;;  %v810_v37 = vld [vmem:[%s14108_s5 + $0xd40] sm:$0xff] }
  0xec   : > { %9950 = vmatprep.subr.bf16.mxu0 %v12474_v39  ;;  %10483 = vmatprep.subr.bf16.mxu1 %v12476_v40  ;;  %v814_v38 = vld [vmem:[%s14108_s5 + $0xd60] sm:$0xff]  ;;  %v811_v39 = vld [vmem:[%s14108_s5 + $0xd48] sm:$0xff] }
  0xed   : > { %v815_v40 = vld [vmem:[%s14108_s5 + $0xd68] sm:$0xff]  ;;  %v12530_v45 = vcombine.high %v810_v37, %v814_v38  ;;  %v862_v32 = vld [vmem:[%s14108_s5 + $0xee0] sm:$0xff] }
  0xee   : > { %v12532_v46 = vcombine.high %v811_v39, %v815_v40  ;;  %v12531_v52 = vcombine.low %v811_v39, %v815_v40  ;;  %v866_v39 = vld [vmem:[%s14108_s5 + $0xf00] sm:$0xff] }
  0xef   : > { %9951 = vmatpush1.bf16.msra.mxu0 %v12473_v48  ;;  %10484 = vmatpush1.bf16.msra.mxu1 %v12475_v49  ;;  %v822_v48 = vld [vmem:[%s14108_s5 + $0xda0] sm:$0xff]  ;;  %v819_v49 = vld [vmem:[%s14108_s5 + $0xd88] sm:$0xff] }
  0xf0   : > { %9952 = vmatprep.subr.bf16.mxu0 %v12482_v50  ;;  %10485 = vmatprep.subr.bf16.mxu1 %v12484_v16  ;;  %v823_v50 = vld [vmem:[%s14108_s5 + $0xda8] sm:$0xff]  ;;  %v12529_v16 = vcombine.low %v810_v37, %v814_v38  ;;  %v12538_v54 = vcombine.high %v818_v47, %v822_v48  ;;  %v12578_v37 = vcombine.high %v858_v30, %v862_v32  ;;  %v870_v40 = vld [vmem:[%s14108_s5 + $0xf20] sm:$0xff] }
  0xf1   : > { %v12540_v23 = vcombine.high %v819_v49, %v823_v50  ;;  %v12539_v62 = vcombine.low %v819_v49, %v823_v50  ;;  %v874_v49 = vld [vmem:[%s14108_s5 + $0xf40] sm:$0xff] }
  0xf2   : > { %v878_v50 = vld [vmem:[%s14108_s5 + $0xf60] sm:$0xff] }
  0xf3   : > { %9953 = vmatpush1.bf16.msra.mxu0 %v12481_v57  ;;  %10486 = vmatpush1.bf16.msra.mxu1 %v12483_v58  ;;  %v830_v57 = vld [vmem:[%s14108_s5 + $0xde0] sm:$0xff]  ;;  %v827_v58 = vld [vmem:[%s14108_s5 + $0xdc8] sm:$0xff] }
  0xf4   : > { %9963 = vmatprep.subr.bf16.mxu0 %v12490_v60  ;;  %10496 = vmatprep.subr.bf16.mxu1 %v12492_v61  ;;  %v831_v60 = vld [vmem:[%s14108_s5 + $0xde8] sm:$0xff]  ;;  %v12537_v61 = vcombine.low %v818_v47, %v822_v48  ;;  %v12546_v0 = vcombine.high %v826_v56, %v830_v57  ;;  %v12586_v47 = vcombine.high %v866_v39, %v870_v40 }
  0xf5   : > { %v12548_v1 = vcombine.high %v827_v58, %v831_v60 }
  0xf6   : > { %9955 = vmatmul.mubr.bf16.vlgmr.msra.gmra.mrb[0].mxu0 %v14379_v2  ;;  %10488 = vmatmul.mubr.bf16.vlgmr.msra.gmra.mrb[0].mxu1 %v14379_v2 }
  0xf7   : > { %9964 = vmatpush1.bf16.msra.mxu0 %v12489_v5  ;;  %10497 = vmatpush1.bf16.msra.mxu1 %v12491_v6  ;;  %v835_v5 = vld [vmem:[%s14108_s5 + $0xe08] sm:$0xff] }
  0xf8   : > { %9965 = vmatprep.subr.bf16.mxu0 %v12498_v7  ;;  %10498 = vmatprep.subr.bf16.mxu1 %v12500_v8  ;;  %v839_v6 = vld [vmem:[%s14108_s5 + $0xe28] sm:$0xff]  ;;  %v12545_v7 = vcombine.low %v826_v56, %v830_v57  ;;  %v12547_v8 = vcombine.low %v827_v58, %v831_v60  ;;  %v12594_v56 = vcombine.high %v874_v49, %v878_v50  ;;  %v882_v58 = vld [vmem:[%s14108_s5 + $0xf80] sm:$0xff] }
  0xf9   : > { %9995 = vmatprep.mubr.bf16.mxu0 %v14385_v12  ;;  %10528 = vmatprep.mubr.bf16.mxu1 %v14385_v12  ;;  %v12556_v11 = vcombine.high %v835_v5, %v839_v6  ;;  %v886_v60 = vld [vmem:[%s14108_s5 + $0xfa0] sm:$0xff] }
  0xfb   : > { %9966 = vmatpush1.bf16.msra.mxu0 %v12497_v14  ;;  %10499 = vmatpush1.bf16.msra.mxu1 %v12499_v15  ;;  %v843_v14 = vld [vmem:[%s14108_s5 + $0xe48] sm:$0xff] }
  0xfc   : > { %9967 = vmatprep.subr.bf16.mxu0 %v12506_v59  ;;  %10500 = vmatprep.subr.bf16.mxu1 %v12508_v17  ;;  %v847_v15 = vld [vmem:[%s14108_s5 + $0xe68] sm:$0xff]  ;;  %v12553_v59 = vcombine.low %v834_v3, %v838_v4  ;;  %v12555_v17 = vcombine.low %v835_v5, %v839_v6  ;;  %v12602_v3 = vcombine.high %v882_v58, %v886_v60  ;;  %v890_v5 = vld [vmem:[%s14108_s5 + $0xfc0] sm:$0xff] }
  0xfd   : > { %v12564_v19 = vcombine.high %v843_v14, %v847_v15  ;;  %v894_v6 = vld [vmem:[%s14108_s5 + $0xfe0] sm:$0xff] }
  0xff   : > { %9968 = vmatpush1.bf16.msra.mxu0 %v12505_v22  ;;  %10501 = vmatpush1.bf16.msra.mxu1 %v12507_v24  ;;  %v851_v22 = vld [vmem:[%s14108_s5 + $0xe88] sm:$0xff] }
 0x100   : > { %9969 = vmatprep.subr.bf16.mxu0 %v12514_v26  ;;  %10502 = vmatprep.subr.bf16.mxu1 %v12516_v27  ;;  %v855_v24 = vld [vmem:[%s14108_s5 + $0xea8] sm:$0xff]  ;;  %v12561_v26 = vcombine.low %v842_v31, %v846_v13  ;;  %v12563_v27 = vcombine.low %v843_v14, %v847_v15  ;;  %v12610_v13 = vcombine.high %v890_v5, %v894_v6  ;;  %v898_v15 = vld [vmem:[%s14108_s5 + $0x1000] sm:$0xff] }
 0x101   : > { %v12572_v29 = vcombine.high %v851_v22, %v855_v24 }
 0x103   : > { %9970 = vmatpush1.bf16.msra.mxu0 %v12513_v33  ;;  %10503 = vmatpush1.bf16.msra.mxu1 %v12515_v63  ;;  %v859_v33 = vld [vmem:[%s14108_s5 + $0xec8] sm:$0xff] }
 0x104   : > { %9971 = vmatprep.subr.bf16.mxu0 %v12522_v35  ;;  %10504 = vmatprep.subr.bf16.mxu1 %v12524_v36  ;;  %v863_v63 = vld [vmem:[%s14108_s5 + $0xee8] sm:$0xff]  ;;  %v12569_v35 = vcombine.low %v850_v20, %v854_v21  ;;  %v12571_v36 = vcombine.low %v851_v22, %v855_v24  ;;  %v12609_v20 = vcombine.low %v890_v5, %v894_v6 }
 0x105   : > { %v12580_v38 = vcombine.high %v859_v33, %v863_v63  ;;  %v939_v5 = vld [vmem:[%s14108_s5 + $0x1148] sm:$0xff] }
 0x106   : > { %v943_v6 = vld [vmem:[%s14108_s5 + $0x1168] sm:$0xff] }
 0x107   : > { %9972 = vmatpush1.bf16.msra.mxu0 %v12521_v42  ;;  %10505 = vmatpush1.bf16.msra.mxu1 %v12523_v43  ;;  %v867_v42 = vld [vmem:[%s14108_s5 + $0xf08] sm:$0xff] }
 0x108   : > { %9973 = vmatprep.subr.bf16.mxu0 %v12530_v45  ;;  %10506 = vmatprep.subr.bf16.mxu1 %v12532_v46  ;;  %v871_v43 = vld [vmem:[%s14108_s5 + $0xf28] sm:$0xff]  ;;  %v12577_v45 = vcombine.low %v858_v30, %v862_v32  ;;  %v12579_v46 = vcombine.low %v859_v33, %v863_v63 }
 0x109   : > { %v12588_v48 = vcombine.high %v867_v42, %v871_v43  ;;  %v907_v30 = vld [vmem:[%s14108_s5 + $0x1048] sm:$0xff] }
 0x10a   : > { %v911_v32 = vld [vmem:[%s14108_s5 + $0x1068] sm:$0xff] }
 0x10b   : > { %9974 = vmatpush1.bf16.msra.mxu0 %v12529_v16  ;;  %10507 = vmatpush1.bf16.msra.mxu1 %v12531_v52  ;;  %v875_v16 = vld [vmem:[%s14108_s5 + $0xf48] sm:$0xff] }
 0x10c   : > { %9975 = vmatprep.subr.bf16.mxu0 %v12538_v54  ;;  %10508 = vmatprep.subr.bf16.mxu1 %v12540_v23  ;;  %v879_v52 = vld [vmem:[%s14108_s5 + $0xf68] sm:$0xff]  ;;  %v12585_v54 = vcombine.low %v866_v39, %v870_v40  ;;  %v12587_v23 = vcombine.low %v867_v42, %v871_v43  ;;  %v12627_v43 = vcombine.low %v907_v30, %v911_v32 }
 0x10d   : > { %v12596_v57 = vcombine.high %v875_v16, %v879_v52  ;;  %v919_v40 = vld [vmem:[%s14108_s5 + $0x10a8] sm:$0xff] }
 0x10f   : > { %9976 = vmatpush1.bf16.msra.mxu0 %v12537_v61  ;;  %10509 = vmatpush1.bf16.msra.mxu1 %v12539_v62  ;;  %v883_v61 = vld [vmem:[%s14108_s5 + $0xf88] sm:$0xff] }
 0x110   : > { %9977 = vmatprep.subr.bf16.mxu0 %v12546_v0  ;;  %10510 = vmatprep.subr.bf16.mxu1 %v12548_v1  ;;  %v887_v62 = vld [vmem:[%s14108_s5 + $0xfa8] sm:$0xff]  ;;  %v12593_v0 = vcombine.low %v874_v49, %v878_v50  ;;  %v12595_v1 = vcombine.low %v875_v16, %v879_v52 }
 0x111   : > { %v12604_v4 = vcombine.high %v883_v61, %v887_v62  ;;  %v12603_v31 = vcombine.low %v883_v61, %v887_v62  ;;  %v923_v49 = vld [vmem:[%s14108_s5 + $0x10c8] sm:$0xff] }
 0x112   : > { %v927_v50 = vld [vmem:[%s14108_s5 + $0x10e8] sm:$0xff] }
 0x113   : > { %9978 = vmatpush1.bf16.msra.mxu0 %v12545_v7  ;;  %10511 = vmatpush1.bf16.msra.mxu1 %v12547_v8  ;;  %v891_v7 = vld [vmem:[%s14108_s5 + $0xfc8] sm:$0xff]  ;;  %v12643_v62 = vcombine.low %v923_v49, %v927_v50 }
 0x114   : > { %9979 = vmatprep.subr.bf16.mxu0 %v12554_v10  ;;  %10512 = vmatprep.subr.bf16.mxu1 %v12556_v11  ;;  %v895_v8 = vld [vmem:[%s14108_s5 + $0xfe8] sm:$0xff]  ;;  %v14448_v10 = vld [vmem:[%s16026_s0 + $0x10] sm:$0xff]  ;;  %v12601_v11 = vcombine.low %v882_v58, %v886_v60 }
 0x115   : > { %v12612_v14 = vcombine.high %v891_v7, %v895_v8  ;;  %v12611_v21 = vcombine.low %v891_v7, %v895_v8  ;;  %v931_v58 = vld [vmem:[%s14108_s5 + $0x1108] sm:$0xff] }
 0x116   : > { %v935_v60 = vld [vmem:[%s14108_s5 + $0x1128] sm:$0xff] }
 0x117   : > { %9980 = vmatpush1.bf16.msra.mxu0 %v12553_v59  ;;  %10513 = vmatpush1.bf16.msra.mxu1 %v12555_v17  ;;  %v902_v59 = vld [vmem:[%s14108_s5 + $0x1020] sm:$0xff]  ;;  %v14454_v17 = vrot.slane %v14448_v10, %v14143_v53  ;;  %v12651_v8 = vcombine.low %v931_v58, %v935_v60 }
 0x118   : > { %9981 = vmatprep.subr.bf16.mxu0 %v12562_v18  ;;  %10514 = vmatprep.subr.bf16.mxu1 %v12564_v19  ;;  %v899_v18 = vld [vmem:[%s14108_s5 + $0x1008] sm:$0xff]  ;;  %v12618_v22 = vcombine.high %v898_v15, %v902_v59  ;;  %v12617_v33 = vcombine.low %v898_v15, %v902_v59 }
 0x119   : > { %v903_v19 = vld [vmem:[%s14108_s5 + $0x1028] sm:$0xff] }
 0x11a   : > { %v12620_v24 = vcombine.high %v899_v18, %v903_v19  ;;  %v12619_v63 = vcombine.low %v899_v18, %v903_v19  ;;  %v947_v15 = vld [vmem:[%s14108_s5 + $0x1188] sm:$0xff]  ;;  %v12659_v19 = vcombine.low %v939_v5, %v943_v6 }
 0x11b   : > { %9982 = vmatpush1.bf16.msra.mxu0 %v12561_v26  ;;  %10515 = vmatpush1.bf16.msra.mxu1 %v12563_v27  ;;  %v906_v26 = vld [vmem:[%s14108_s5 + $0x1040] sm:$0xff]  ;;  %v951_v59 = vld [vmem:[%s14108_s5 + $0x11a8] sm:$0xff] }
 0x11c   : > { %9983 = vmatprep.subr.bf16.mxu0 %v12570_v28  ;;  %10516 = vmatprep.subr.bf16.mxu1 %v12572_v29  ;;  %v910_v27 = vld [vmem:[%s14108_s5 + $0x1060] sm:$0xff]  ;;  %v276_v28 = vcombine.high %v14454_v17, %v14454_v17  ;;  %v14464_v29 = vpack.c.bf16 %v14369_v55, %v14369_v55  ;;  %v915_v55 = vld [vmem:[%s14108_s5 + $0x1088] sm:$0xff] }
 0x11d   : > { %v12625_v42 = vcombine.low %v906_v26, %v910_v27  ;;  %v12635_v52 = vcombine.low %v915_v55, %v919_v40 }
 0x11e   : > { %v14470_v39 = vpack.c.bf16 %v276_v28, %v276_v28 }
 0x11f   : > { %9984 = vmatpush1.bf16.msra.mxu0 %v12569_v35  ;;  %10517 = vmatpush1.bf16.msra.mxu1 %v12571_v36  ;;  %v12626_v35 = vcombine.high %v906_v26, %v910_v27  ;;  %v12628_v36 = vcombine.high %v907_v30, %v911_v32  ;;  %v955_v26 = vld [vmem:[%s14108_s5 + $0x11c8] sm:$0xff]  ;;  %v12667_v30 = vcombine.low %v947_v15, %v951_v59 }
 0x120   : > { %9985 = vmatprep.subr.bf16.mxu0 %v12578_v37  ;;  %10518 = vmatprep.subr.bf16.mxu1 %v12580_v38  ;;  %v914_v37 = vld [vmem:[%s14108_s5 + $0x1080] sm:$0xff]  ;;  %v959_v27 = vld [vmem:[%s14108_s5 + $0x11e8] sm:$0xff] }
 0x121   : > { %v918_v38 = vld [vmem:[%s14108_s5 + $0x10a0] sm:$0xff] }
 0x122   : > { %v12633_v16 = vcombine.low %v914_v37, %v918_v38 }
 0x123   : > { %9986 = vmatpush1.bf16.msra.mxu0 %v12577_v45  ;;  %10519 = vmatpush1.bf16.msra.mxu1 %v12579_v46  ;;  %v12634_v45 = vcombine.high %v914_v37, %v918_v38  ;;  %v12636_v46 = vcombine.high %v915_v55, %v919_v40  ;;  %v967_v37 = vld [vmem:[%s14108_s5 + $0x1228] sm:$0xff]  ;;  %v12675_v55 = vcombine.low %v955_v26, %v959_v27 }
 0x124   : > { %9987 = vmatprep.subr.bf16.mxu0 %v12586_v47  ;;  %10520 = vmatprep.subr.bf16.mxu1 %v12588_v48  ;;  %v922_v47 = vld [vmem:[%s14108_s5 + $0x10c0] sm:$0xff] }
 0x125   : > { %v926_v48 = vld [vmem:[%s14108_s5 + $0x10e0] sm:$0xff] }
 0x126   : > { %v12641_v61 = vcombine.low %v922_v47, %v926_v48 }
 0x127   : > { %9988 = vmatpush1.bf16.msra.mxu0 %v12585_v54  ;;  %10521 = vmatpush1.bf16.msra.mxu1 %v12587_v23  ;;  %v12642_v54 = vcombine.high %v922_v47, %v926_v48  ;;  %v12644_v23 = vcombine.high %v923_v49, %v927_v50  ;;  %v975_v47 = vld [vmem:[%s14108_s5 + $0x1268] sm:$0xff] }
 0x128   : > { %9989 = vmatprep.subr.bf16.mxu0 %v12594_v56  ;;  %10522 = vmatprep.subr.bf16.mxu1 %v12596_v57  ;;  %v930_v56 = vld [vmem:[%s14108_s5 + $0x1100] sm:$0xff] }
 0x129   : > { %v934_v57 = vld [vmem:[%s14108_s5 + $0x1120] sm:$0xff] }
 0x12a   : > { %v12649_v7 = vcombine.low %v930_v56, %v934_v57 }
 0x12b   : > { %9990 = vmatpush1.bf16.msra.mxu0 %v12593_v0  ;;  %10523 = vmatpush1.bf16.msra.mxu1 %v12595_v1  ;;  %v12650_v0 = vcombine.high %v930_v56, %v934_v57  ;;  %v12652_v1 = vcombine.high %v931_v58, %v935_v60  ;;  %v983_v56 = vld [vmem:[%s14108_s5 + $0x12a8] sm:$0xff] }
 0x12c   : > { %9991 = vmatprep.subr.bf16.mxu0 %v12602_v3  ;;  %10524 = vmatprep.subr.bf16.mxu1 %v12604_v4  ;;  %v938_v3 = vld [vmem:[%s14108_s5 + $0x1140] sm:$0xff] }
 0x12d   : > { %v942_v4 = vld [vmem:[%s14108_s5 + $0x1160] sm:$0xff] }
 0x12e   : > { %v12657_v18 = vcombine.low %v938_v3, %v942_v4 }
 0x12f   : > { %9992 = vmatpush1.bf16.msra.mxu0 %v12601_v11  ;;  %10525 = vmatpush1.bf16.msra.mxu1 %v12603_v31  ;;  %v12658_v11 = vcombine.high %v938_v3, %v942_v4  ;;  %v12660_v31 = vcombine.high %v939_v5, %v943_v6  ;;  %v991_v3 = vld [vmem:[%s14108_s5 + $0x12e8] sm:$0xff] }
 0x130   : > { %9993 = vmatprep.subr.bf16.mxu0 %v12610_v13  ;;  %10526 = vmatprep.subr.bf16.mxu1 %v12612_v14  ;;  %v946_v13 = vld [vmem:[%s14108_s5 + $0x1180] sm:$0xff] }
 0x131   : > { %v950_v14 = vld [vmem:[%s14108_s5 + $0x11a0] sm:$0xff] }
 0x132   : > { %v12665_v28 = vcombine.low %v946_v13, %v950_v14 }
 0x133   : > { %9994 = vmatpush1.bf16.msra.mxu0 %v12609_v20  ;;  %10527 = vmatpush1.bf16.msra.mxu1 %v12611_v21  ;;  %v12666_v20 = vcombine.high %v946_v13, %v950_v14  ;;  %v12668_v21 = vcombine.high %v947_v15, %v951_v59  ;;  %v999_v13 = vld [vmem:[%s14108_s5 + $0x1328] sm:$0xff] }
 0x134   : > { %10004 = vmatprep.subr.bf16.mxu0 %v12618_v22  ;;  %10537 = vmatprep.subr.bf16.mxu1 %v12620_v24  ;;  %v954_v22 = vld [vmem:[%s14108_s5 + $0x11c0] sm:$0xff] }
 0x135   : > { %v958_v24 = vld [vmem:[%s14108_s5 + $0x11e0] sm:$0xff] }
 0x136   : > { %9996 = vmatmul.mubr.bf16.vlgmr.msra.gmra.mrb[0].mxu0 %v14464_v29  ;;  %10529 = vmatmul.mubr.bf16.vlgmr.msra.gmra.mrb[0].mxu1 %v14464_v29  ;;  %v12674_v32 = vcombine.high %v954_v22, %v958_v24  ;;  %v12673_v38 = vcombine.low %v954_v22, %v958_v24  ;;  %v1007_v22 = vld [vmem:[%s14108_s5 + $0x1368] sm:$0xff] }
 0x137   : > { %10005 = vmatpush1.bf16.msra.mxu0 %v12617_v33  ;;  %10538 = vmatpush1.bf16.msra.mxu1 %v12619_v63  ;;  %v12676_v33 = vcombine.high %v955_v26, %v959_v27  ;;  %v962_v63 = vld [vmem:[%s14108_s5 + $0x1200] sm:$0xff] }
 0x138   : > { %10006 = vmatprep.subr.bf16.mxu0 %v12626_v35  ;;  %10539 = vmatprep.subr.bf16.mxu1 %v12628_v36  ;;  %v966_v35 = vld [vmem:[%s14108_s5 + $0x1220] sm:$0xff]  ;;  %v963_v36 = vld [vmem:[%s14108_s5 + $0x1208] sm:$0xff] }
 0x139   : > { %10036 = vmatprep.mubr.bf16.mxu0 %v14470_v39  ;;  %10569 = vmatprep.mubr.bf16.mxu1 %v14470_v39  ;;  %v12682_v40 = vcombine.high %v962_v63, %v966_v35  ;;  %v12681_v48 = vcombine.low %v962_v63, %v966_v35  ;;  %v12683_v49 = vcombine.low %v963_v36, %v967_v37  ;;  %v1015_v63 = vld [vmem:[%s14108_s5 + $0x13a8] sm:$0xff] }
 0x13b   : > { %10007 = vmatpush1.bf16.msra.mxu0 %v12625_v42  ;;  %10540 = vmatpush1.bf16.msra.mxu1 %v12627_v43  ;;  %v12684_v42 = vcombine.high %v963_v36, %v967_v37  ;;  %v970_v43 = vld [vmem:[%s14108_s5 + $0x1240] sm:$0xff] }
 0x13c   : > { %10008 = vmatprep.subr.bf16.mxu0 %v12634_v45  ;;  %10541 = vmatprep.subr.bf16.mxu1 %v12636_v46  ;;  %v974_v45 = vld [vmem:[%s14108_s5 + $0x1260] sm:$0xff]  ;;  %v971_v46 = vld [vmem:[%s14108_s5 + $0x1248] sm:$0xff] }
 0x13d   : > { %v12690_v50 = vcombine.high %v970_v43, %v974_v45  ;;  %v12689_v57 = vcombine.low %v970_v43, %v974_v45  ;;  %v12691_v58 = vcombine.low %v971_v46, %v975_v47  ;;  %v1019_v43 = vld [vmem:[%s14108_s5 + $0x13c8] sm:$0xff] }
 0x13e   : > { %v1023_v45 = vld [vmem:[%s14108_s5 + $0x13e8] sm:$0xff] }
 0x13f   : > { %10009 = vmatpush1.bf16.msra.mxu0 %v12633_v16  ;;  %10542 = vmatpush1.bf16.msra.mxu1 %v12635_v52  ;;  %v12692_v16 = vcombine.high %v971_v46, %v975_v47  ;;  %v978_v52 = vld [vmem:[%s14108_s5 + $0x1280] sm:$0xff] }
 0x140   : > { %10010 = vmatprep.subr.bf16.mxu0 %v12642_v54  ;;  %10543 = vmatprep.subr.bf16.mxu1 %v12644_v23  ;;  %v982_v54 = vld [vmem:[%s14108_s5 + $0x12a0] sm:$0xff]  ;;  %v979_v23 = vld [vmem:[%s14108_s5 + $0x1288] sm:$0xff] }
 0x141   : > { %v12698_v60 = vcombine.high %v978_v52, %v982_v54  ;;  %v12697_v4 = vcombine.low %v978_v52, %v982_v54  ;;  %v12699_v5 = vcombine.low %v979_v23, %v983_v56  ;;  %v1031_v54 = vld [vmem:[%s14108_s5 + $0x1428] sm:$0xff] }
 0x143   : > { %10011 = vmatpush1.bf16.msra.mxu0 %v12641_v61  ;;  %10544 = vmatpush1.bf16.msra.mxu1 %v12643_v62  ;;  %v12700_v61 = vcombine.high %v979_v23, %v983_v56  ;;  %v986_v62 = vld [vmem:[%s14108_s5 + $0x12c0] sm:$0xff]  ;;  %v12739_v56 = vcombine.low %v1019_v43, %v1023_v45 }
 0x144   : > { %10012 = vmatprep.subr.bf16.mxu0 %v12650_v0  ;;  %10545 = vmatprep.subr.bf16.mxu1 %v12652_v1  ;;  %v990_v0 = vld [vmem:[%s14108_s5 + $0x12e0] sm:$0xff]  ;;  %v987_v1 = vld [vmem:[%s14108_s5 + $0x12c8] sm:$0xff] }
 0x145   : > { %v12706_v6 = vcombine.high %v986_v62, %v990_v0  ;;  %v12705_v14 = vcombine.low %v986_v62, %v990_v0  ;;  %v12707_v15 = vcombine.low %v987_v1, %v991_v3  ;;  %v14545_v0 = vpack.c.bf16 %v14454_v17, %v14454_v17  ;;  %v1043_v17 = vld [vmem:[%s14108_s5 + $0x1488] sm:$0xff] }
 0x147   : > { %10013 = vmatpush1.bf16.msra.mxu0 %v12649_v7  ;;  %10546 = vmatpush1.bf16.msra.mxu1 %v12651_v8  ;;  %v12708_v7 = vcombine.high %v987_v1, %v991_v3  ;;  %v994_v8 = vld [vmem:[%s14108_s5 + $0x1300] sm:$0xff]  ;;  %v1035_v1 = vld [vmem:[%s14108_s5 + $0x1448] sm:$0xff] }
 0x148   : > { %10014 = vmatprep.subr.bf16.mxu0 %v12658_v11  ;;  %10547 = vmatprep.subr.bf16.mxu1 %v12660_v31  ;;  %v998_v11 = vld [vmem:[%s14108_s5 + $0x1320] sm:$0xff]  ;;  %v995_v31 = vld [vmem:[%s14108_s5 + $0x1308] sm:$0xff] }
 0x149   : > { %v12714_v59 = vcombine.high %v994_v8, %v998_v11  ;;  %v12713_v24 = vcombine.low %v994_v8, %v998_v11  ;;  %v12715_v26 = vcombine.low %v995_v31, %v999_v13  ;;  %v1039_v3 = vld [vmem:[%s14108_s5 + $0x1468] sm:$0xff]  ;;  %v1042_v8 = vld [vmem:[%s14108_s5 + $0x1480] sm:$0xff] }
 0x14a   : > { %v1046_v11 = vld [vmem:[%s14108_s5 + $0x14a0] sm:$0xff] }
 0x14b   : > { %10015 = vmatpush1.bf16.msra.mxu0 %v12657_v18  ;;  %10548 = vmatpush1.bf16.msra.mxu1 %v12659_v19  ;;  %v12716_v18 = vcombine.high %v995_v31, %v999_v13  ;;  %v1002_v19 = vld [vmem:[%s14108_s5 + $0x1340] sm:$0xff]  ;;  %v1047_v13 = vld [vmem:[%s14108_s5 + $0x14a8] sm:$0xff] }
 0x14c   : > { %10016 = vmatprep.subr.bf16.mxu0 %v12666_v20  ;;  %10549 = vmatprep.subr.bf16.mxu1 %v12668_v21  ;;  %v1006_v20 = vld [vmem:[%s14108_s5 + $0x1360] sm:$0xff]  ;;  %v1003_v21 = vld [vmem:[%s14108_s5 + $0x1348] sm:$0xff] }
 0x14d   : > { %v12722_v27 = vcombine.high %v1002_v19, %v1006_v20  ;;  %v12721_v35 = vcombine.low %v1002_v19, %v1006_v20  ;;  %v12723_v36 = vcombine.low %v1003_v21, %v1007_v22  ;;  %v1050_v19 = vld [vmem:[%s14108_s5 + $0x14c0] sm:$0xff] }
 0x14e   : > { %v1054_v20 = vld [vmem:[%s14108_s5 + $0x14e0] sm:$0xff] }
 0x14f   : > { %10017 = vmatpush1.bf16.msra.mxu0 %v12665_v28  ;;  %10550 = vmatpush1.bf16.msra.mxu1 %v12667_v30  ;;  %v12724_v28 = vcombine.high %v1003_v21, %v1007_v22  ;;  %v1010_v30 = vld [vmem:[%s14108_s5 + $0x1380] sm:$0xff]  ;;  %v1051_v21 = vld [vmem:[%s14108_s5 + $0x14c8] sm:$0xff] }
 0x150   : > { %10018 = vmatprep.subr.bf16.mxu0 %v12674_v32  ;;  %10551 = vmatprep.subr.bf16.mxu1 %v12676_v33  ;;  %v1014_v32 = vld [vmem:[%s14108_s5 + $0x13a0] sm:$0xff]  ;;  %v1011_v33 = vld [vmem:[%s14108_s5 + $0x1388] sm:$0xff] }
 0x151   : > { %v12730_v37 = vcombine.high %v1010_v30, %v1014_v32  ;;  %v12729_v46 = vcombine.low %v1010_v30, %v1014_v32  ;;  %v12731_v47 = vcombine.low %v1011_v33, %v1015_v63  ;;  %v1055_v22 = vld [vmem:[%s14108_s5 + $0x14e8] sm:$0xff]  ;;  %v1058_v30 = vld [vmem:[%s14108_s5 + $0x1500] sm:$0xff] }
 0x152   : > { %v1062_v32 = vld [vmem:[%s14108_s5 + $0x1520] sm:$0xff] }
 0x153   : > { %10019 = vmatpush1.bf16.msra.mxu0 %v12673_v38  ;;  %10552 = vmatpush1.bf16.msra.mxu1 %v12675_v55  ;;  %v12732_v38 = vcombine.high %v1011_v33, %v1015_v63  ;;  %v1018_v55 = vld [vmem:[%s14108_s5 + $0x13c0] sm:$0xff]  ;;  %v1059_v33 = vld [vmem:[%s14108_s5 + $0x1508] sm:$0xff] }
 0x154   : > { %10020 = vmatprep.subr.bf16.mxu0 %v12682_v40  ;;  %10553 = vmatprep.subr.bf16.mxu1 %v12684_v42  ;;  %v1022_v40 = vld [vmem:[%s14108_s5 + $0x13e0] sm:$0xff]  ;;  %v261_v42 = vcombine.high %v14448_v10, %v14448_v10  ;;  %v1027_v10 = vld [vmem:[%s14108_s5 + $0x1408] sm:$0xff] }
 0x155   : > { %v12737_v23 = vcombine.low %v1018_v55, %v1022_v40  ;;  %v1063_v63 = vld [vmem:[%s14108_s5 + $0x1528] sm:$0xff] }
 0x156   : > { %v14535_v52 = vrot.slane %v261_v42, %v14143_v53  ;;  %v1067_v42 = vld [vmem:[%s14108_s5 + $0x1548] sm:$0xff] }
 0x157   : > { %10021 = vmatpush1.bf16.msra.mxu0 %v12681_v48  ;;  %10554 = vmatpush1.bf16.msra.mxu1 %v12683_v49  ;;  %v12738_v48 = vcombine.high %v1018_v55, %v1022_v40  ;;  %v12740_v49 = vcombine.high %v1019_v43, %v1023_v45  ;;  %v1066_v55 = vld [vmem:[%s14108_s5 + $0x1540] sm:$0xff]  ;;  %v1071_v43 = vld [vmem:[%s14108_s5 + $0x1568] sm:$0xff]  ;;  %v12777_v45 = vcombine.low %v1058_v30, %v1062_v32 }
 0x158   : > { %10022 = vmatprep.subr.bf16.mxu0 %v12690_v50  ;;  %10555 = vmatprep.subr.bf16.mxu1 %v12692_v16  ;;  %v1026_v50 = vld [vmem:[%s14108_s5 + $0x1400] sm:$0xff]  ;;  %v277_v62 = vcombine.high %v14535_v52, %v14535_v52 }
 0x159   : > { %v1030_v16 = vld [vmem:[%s14108_s5 + $0x1420] sm:$0xff] }
 0x15a   : > { %v14551_v31 = vpack.c.bf16 %v277_v62, %v277_v62  ;;  %v1070_v40 = vld [vmem:[%s14108_s5 + $0x1560] sm:$0xff]  ;;  %v1087_v62 = vld [vmem:[%s14108_s5 + $0x15e8] sm:$0xff] }
 0x15b   : > { %10023 = vmatpush1.bf16.msra.mxu0 %v12689_v57  ;;  %10556 = vmatpush1.bf16.msra.mxu1 %v12691_v58  ;;  %v12746_v57 = vcombine.high %v1026_v50, %v1030_v16  ;;  %v12748_v58 = vcombine.high %v1027_v10, %v1031_v54 }
 0x15c   : > { %10024 = vmatprep.subr.bf16.mxu0 %v12698_v60  ;;  %10557 = vmatprep.subr.bf16.mxu1 %v12700_v61  ;;  %v1034_v60 = vld [vmem:[%s14108_s5 + $0x1440] sm:$0xff] }
 0x15d   : > { %v1038_v61 = vld [vmem:[%s14108_s5 + $0x1460] sm:$0xff] }
 0x15f   : > { %10025 = vmatpush1.bf16.msra.mxu0 %v12697_v4  ;;  %10558 = vmatpush1.bf16.msra.mxu1 %v12699_v5  ;;  %v12745_v4 = vcombine.low %v1026_v50, %v1030_v16  ;;  %v12747_v5 = vcombine.low %v1027_v10, %v1031_v54  ;;  %v1078_v50 = vld [vmem:[%s14108_s5 + $0x15a0] sm:$0xff]  ;;  %v1075_v16 = vld [vmem:[%s14108_s5 + $0x1588] sm:$0xff]  ;;  %v12785_v54 = vcombine.low %v1066_v55, %v1070_v40 }
 0x160   : > { %10026 = vmatprep.subr.bf16.mxu0 %v12706_v6  ;;  %10559 = vmatprep.subr.bf16.mxu1 %v12708_v7  ;;  %v12754_v6 = vcombine.high %v1034_v60, %v1038_v61  ;;  %v12756_v7 = vcombine.high %v1035_v1, %v1039_v3  ;;  %v1079_v10 = vld [vmem:[%s14108_s5 + $0x15a8] sm:$0xff] }
 0x163   : > { %10027 = vmatpush1.bf16.msra.mxu0 %v12705_v14  ;;  %10560 = vmatpush1.bf16.msra.mxu1 %v12707_v15  ;;  %v12753_v14 = vcombine.low %v1034_v60, %v1038_v61  ;;  %v12755_v15 = vcombine.low %v1035_v1, %v1039_v3  ;;  %v1086_v60 = vld [vmem:[%s14108_s5 + $0x15e0] sm:$0xff]  ;;  %v1083_v61 = vld [vmem:[%s14108_s5 + $0x15c8] sm:$0xff]  ;;  %v12795_v3 = vcombine.low %v1075_v16, %v1079_v10 }
 0x164   : > { %10028 = vmatprep.subr.bf16.mxu0 %v12714_v59  ;;  %10561 = vmatprep.subr.bf16.mxu1 %v12716_v18  ;;  %v12762_v59 = vcombine.high %v1042_v8, %v1046_v11  ;;  %v12764_v18 = vcombine.high %v1043_v17, %v1047_v13 }
 0x167   : > { %10029 = vmatpush1.bf16.msra.mxu0 %v12713_v24  ;;  %10562 = vmatpush1.bf16.msra.mxu1 %v12715_v26  ;;  %v12761_v24 = vcombine.low %v1042_v8, %v1046_v11  ;;  %v12763_v26 = vcombine.low %v1043_v17, %v1047_v13  ;;  %v1091_v8 = vld [vmem:[%s14108_s5 + $0x1608] sm:$0xff]  ;;  %v12803_v13 = vcombine.low %v1083_v61, %v1087_v62 }
 0x168   : > { %10030 = vmatprep.subr.bf16.mxu0 %v12722_v27  ;;  %10563 = vmatprep.subr.bf16.mxu1 %v12724_v28  ;;  %v12770_v27 = vcombine.high %v1050_v19, %v1054_v20  ;;  %v12772_v28 = vcombine.high %v1051_v21, %v1055_v22  ;;  %v1095_v11 = vld [vmem:[%s14108_s5 + $0x1628] sm:$0xff] }
 0x16b   : > { %10031 = vmatpush1.bf16.msra.mxu0 %v12721_v35  ;;  %10564 = vmatpush1.bf16.msra.mxu1 %v12723_v36  ;;  %v12769_v35 = vcombine.low %v1050_v19, %v1054_v20  ;;  %v12771_v36 = vcombine.low %v1051_v21, %v1055_v22  ;;  %v1099_v19 = vld [vmem:[%s14108_s5 + $0x1648] sm:$0xff]  ;;  %v12811_v22 = vcombine.low %v1091_v8, %v1095_v11 }
 0x16c   : > { %10032 = vmatprep.subr.bf16.mxu0 %v12730_v37  ;;  %10565 = vmatprep.subr.bf16.mxu1 %v12732_v38  ;;  %v12778_v37 = vcombine.high %v1058_v30, %v1062_v32  ;;  %v12780_v38 = vcombine.high %v1059_v33, %v1063_v63  ;;  %v1103_v20 = vld [vmem:[%s14108_s5 + $0x1668] sm:$0xff] }
 0x16d   : > { %v1107_v30 = vld [vmem:[%s14108_s5 + $0x1688] sm:$0xff] }
 0x16e   : > { %v1111_v32 = vld [vmem:[%s14108_s5 + $0x16a8] sm:$0xff] }
 0x16f   : > { %10033 = vmatpush1.bf16.msra.mxu0 %v12729_v46  ;;  %10566 = vmatpush1.bf16.msra.mxu1 %v12731_v47  ;;  %v12779_v46 = vcombine.low %v1059_v33, %v1063_v63  ;;  %v12786_v47 = vcombine.high %v1066_v55, %v1070_v40  ;;  %v12819_v63 = vcombine.low %v1099_v19, %v1103_v20  ;;  %v1115_v55 = vld [vmem:[%s14108_s5 + $0x16c8] sm:$0xff] }
 0x170   : > { %10034 = vmatprep.subr.bf16.mxu0 %v12738_v48  ;;  %10567 = vmatprep.subr.bf16.mxu1 %v12740_v49  ;;  %v12788_v48 = vcombine.high %v1067_v42, %v1071_v43  ;;  %v1074_v49 = vld [vmem:[%s14108_s5 + $0x1580] sm:$0xff]  ;;  %v1119_v40 = vld [vmem:[%s14108_s5 + $0x16e8] sm:$0xff] }
 0x171   : > { %v12793_v1 = vcombine.low %v1074_v49, %v1078_v50 }
 0x173   : > { %10035 = vmatpush1.bf16.msra.mxu0 %v12737_v23  ;;  %10568 = vmatpush1.bf16.msra.mxu1 %v12739_v56  ;;  %v12787_v23 = vcombine.low %v1067_v42, %v1071_v43  ;;  %v12794_v56 = vcombine.high %v1074_v49, %v1078_v50  ;;  %v12827_v43 = vcombine.low %v1107_v30, %v1111_v32  ;;  %v1123_v49 = vld [vmem:[%s14108_s5 + $0x1708] sm:$0xff] }
 0x174   : > { %10045 = vmatprep.subr.bf16.mxu0 %v12746_v57  ;;  %10578 = vmatprep.subr.bf16.mxu1 %v12748_v58  ;;  %v12796_v57 = vcombine.high %v1075_v16, %v1079_v10  ;;  %v1082_v58 = vld [vmem:[%s14108_s5 + $0x15c0] sm:$0xff]  ;;  %v1127_v50 = vld [vmem:[%s14108_s5 + $0x1728] sm:$0xff]  ;;  %v12835_v10 = vcombine.low %v1115_v55, %v1119_v40 }
 0x175   : > { %v12801_v17 = vcombine.low %v1082_v58, %v1086_v60 }
 0x176   : > { %10037 = vmatmul.mubr.bf16.vlgmr.msra.gmra.mrb[0].mxu0 %v14545_v0  ;;  %10570 = vmatmul.mubr.bf16.vlgmr.msra.gmra.mrb[0].mxu1 %v14545_v0 }
 0x177   : > { %10046 = vmatpush1.bf16.msra.mxu0 %v12745_v4  ;;  %10579 = vmatpush1.bf16.msra.mxu1 %v12747_v5  ;;  %v12802_v4 = vcombine.high %v1082_v58, %v1086_v60  ;;  %v12804_v5 = vcombine.high %v1083_v61, %v1087_v62  ;;  %v1131_v58 = vld [vmem:[%s14108_s5 + $0x1748] sm:$0xff]  ;;  %v12843_v62 = vcombine.low %v1123_v49, %v1127_v50 }
 0x178   : > { %10047 = vmatprep.subr.bf16.mxu0 %v12754_v6  ;;  %10580 = vmatprep.subr.bf16.mxu1 %v12756_v7  ;;  %v1090_v6 = vld [vmem:[%s14108_s5 + $0x1600] sm:$0xff]  ;;  %v1135_v60 = vld [vmem:[%s14108_s5 + $0x1768] sm:$0xff] }
 0x179   : > { %10077 = vmatprep.mubr.bf16.mxu0 %v14551_v31  ;;  %10610 = vmatprep.mubr.bf16.mxu1 %v14551_v31  ;;  %v1094_v7 = vld [vmem:[%s14108_s5 + $0x1620] sm:$0xff] }
 0x17a   : > { %v12809_v21 = vcombine.low %v1090_v6, %v1094_v7 }
 0x17b   : > { %10048 = vmatpush1.bf16.msra.mxu0 %v12753_v14  ;;  %10581 = vmatpush1.bf16.msra.mxu1 %v12755_v15  ;;  %v12810_v14 = vcombine.high %v1090_v6, %v1094_v7  ;;  %v12812_v15 = vcombine.high %v1091_v8, %v1095_v11  ;;  %v1139_v6 = vld [vmem:[%s14108_s5 + $0x1788] sm:$0xff]  ;;  %v12851_v11 = vcombine.low %v1131_v58, %v1135_v60 }
 0x17c   : > { %10049 = vmatprep.subr.bf16.mxu0 %v12762_v59  ;;  %10582 = vmatprep.subr.bf16.mxu1 %v12764_v18  ;;  %v1098_v59 = vld [vmem:[%s14108_s5 + $0x1640] sm:$0xff]  ;;  %v1143_v7 = vld [vmem:[%s14108_s5 + $0x17a8] sm:$0xff] }
 0x17d   : > { %v1102_v18 = vld [vmem:[%s14108_s5 + $0x1660] sm:$0xff] }
 0x17e   : > { %v12817_v33 = vcombine.low %v1098_v59, %v1102_v18 }
 0x17f   : > { %10050 = vmatpush1.bf16.msra.mxu0 %v12761_v24  ;;  %10583 = vmatpush1.bf16.msra.mxu1 %v12763_v26  ;;  %v12818_v24 = vcombine.high %v1098_v59, %v1102_v18  ;;  %v12820_v26 = vcombine.high %v1099_v19, %v1103_v20  ;;  %v1147_v59 = vld [vmem:[%s14108_s5 + $0x17c8] sm:$0xff] }
 0x180   : > { %10051 = vmatprep.subr.bf16.mxu0 %v12770_v27  ;;  %10584 = vmatprep.subr.bf16.mxu1 %v12772_v28  ;;  %v1106_v27 = vld [vmem:[%s14108_s5 + $0x1680] sm:$0xff]  ;;  %v1151_v18 = vld [vmem:[%s14108_s5 + $0x17e8] sm:$0xff] }
 0x181   : > { %v1110_v28 = vld [vmem:[%s14108_s5 + $0x16a0] sm:$0xff]  ;;  %v14614_v19 = vld [vmem:[%s16026_s0 + $0x18] sm:$0xff] }
 0x182   : > { %v12825_v42 = vcombine.low %v1106_v27, %v1110_v28 }
 0x183   : > { %10052 = vmatpush1.bf16.msra.mxu0 %v12769_v35  ;;  %10585 = vmatpush1.bf16.msra.mxu1 %v12771_v36  ;;  %v12826_v35 = vcombine.high %v1106_v27, %v1110_v28  ;;  %v12828_v36 = vcombine.high %v1107_v30, %v1111_v32  ;;  %v1158_v27 = vld [vmem:[%s14108_s5 + $0x1820] sm:$0xff]  ;;  %v14620_v28 = vrot.slane %v14614_v19, %v14143_v53  ;;  %v1155_v30 = vld [vmem:[%s14108_s5 + $0x1808] sm:$0xff] }
 0x184   : > { %10053 = vmatprep.subr.bf16.mxu0 %v12778_v37  ;;  %10586 = vmatprep.subr.bf16.mxu1 %v12780_v38  ;;  %v1114_v37 = vld [vmem:[%s14108_s5 + $0x16c0] sm:$0xff]  ;;  %v1159_v32 = vld [vmem:[%s14108_s5 + $0x1828] sm:$0xff] }
 0x185   : > { %v1118_v38 = vld [vmem:[%s14108_s5 + $0x16e0] sm:$0xff] }
 0x186   : > { %v12833_v16 = vcombine.low %v1114_v37, %v1118_v38 }
 0x187   : > { %10054 = vmatpush1.bf16.msra.mxu0 %v12777_v45  ;;  %10587 = vmatpush1.bf16.msra.mxu1 %v12779_v46  ;;  %v12834_v45 = vcombine.high %v1114_v37, %v1118_v38  ;;  %v12836_v46 = vcombine.high %v1115_v55, %v1119_v40  ;;  %v1162_v37 = vld [vmem:[%s14108_s5 + $0x1840] sm:$0xff]  ;;  %v293_v55 = vcombine.high %v14620_v28, %v14620_v28 }
 0x188   : > { %10055 = vmatprep.subr.bf16.mxu0 %v12786_v47  ;;  %10588 = vmatprep.subr.bf16.mxu1 %v12788_v48  ;;  %v1122_v47 = vld [vmem:[%s14108_s5 + $0x1700] sm:$0xff]  ;;  %v14630_v40 = vpack.c.bf16 %v14535_v52, %v14535_v52  ;;  %v1171_v52 = vld [vmem:[%s14108_s5 + $0x1888] sm:$0xff] }
 0x189   : > { %v1126_v48 = vld [vmem:[%s14108_s5 + $0x1720] sm:$0xff] }
 0x18a   : > { %v12841_v61 = vcombine.low %v1122_v47, %v1126_v48  ;;  %v1166_v38 = vld [vmem:[%s14108_s5 + $0x1860] sm:$0xff] }
 0x18b   : > { %10056 = vmatpush1.bf16.msra.mxu0 %v12785_v54  ;;  %10589 = vmatpush1.bf16.msra.mxu1 %v12787_v23  ;;  %v12842_v54 = vcombine.high %v1122_v47, %v1126_v48  ;;  %v12844_v23 = vcombine.high %v1123_v49, %v1127_v50  ;;  %v12882_v47 = vcombine.high %v1162_v37, %v1166_v38  ;;  %v1170_v49 = vld [vmem:[%s14108_s5 + $0x1880] sm:$0xff] }
 0x18c   : > { %10057 = vmatprep.subr.bf16.mxu0 %v12794_v56  ;;  %10590 = vmatprep.subr.bf16.mxu1 %v12796_v57  ;;  %v1130_v56 = vld [vmem:[%s14108_s5 + $0x1740] sm:$0xff] }
 0x18d   : > { %v1134_v57 = vld [vmem:[%s14108_s5 + $0x1760] sm:$0xff] }
 0x18e   : > { %v12849_v8 = vcombine.low %v1130_v56, %v1134_v57  ;;  %v1174_v50 = vld [vmem:[%s14108_s5 + $0x18a0] sm:$0xff] }
 0x18f   : > { %10058 = vmatpush1.bf16.msra.mxu0 %v12793_v1  ;;  %10591 = vmatpush1.bf16.msra.mxu1 %v12795_v3  ;;  %v12850_v1 = vcombine.high %v1130_v56, %v1134_v57  ;;  %v12852_v3 = vcombine.high %v1131_v58, %v1135_v60  ;;  %v12890_v56 = vcombine.high %v1170_v49, %v1174_v50  ;;  %v1178_v58 = vld [vmem:[%s14108_s5 + $0x18c0] sm:$0xff] }
 0x190   : > { %10059 = vmatprep.subr.bf16.mxu0 %v12802_v4  ;;  %10592 = vmatprep.subr.bf16.mxu1 %v12804_v5  ;;  %v1138_v4 = vld [vmem:[%s14108_s5 + $0x1780] sm:$0xff] }
 0x191   : > { %v1142_v5 = vld [vmem:[%s14108_s5 + $0x17a0] sm:$0xff] }
 0x192   : > { %v12857_v20 = vcombine.low %v1138_v4, %v1142_v5  ;;  %v1182_v60 = vld [vmem:[%s14108_s5 + $0x18e0] sm:$0xff] }
 0x193   : > { %10060 = vmatpush1.bf16.msra.mxu0 %v12801_v17  ;;  %10593 = vmatpush1.bf16.msra.mxu1 %v12803_v13  ;;  %v12858_v17 = vcombine.high %v1138_v4, %v1142_v5  ;;  %v12860_v13 = vcombine.high %v1139_v6, %v1143_v7  ;;  %v12898_v4 = vcombine.high %v1178_v58, %v1182_v60 }
 0x194   : > { %10061 = vmatprep.subr.bf16.mxu0 %v12810_v14  ;;  %10594 = vmatprep.subr.bf16.mxu1 %v12812_v15  ;;  %v1146_v14 = vld [vmem:[%s14108_s5 + $0x17c0] sm:$0xff] }
 0x195   : > { %v1150_v15 = vld [vmem:[%s14108_s5 + $0x17e0] sm:$0xff] }
 0x197   : > { %10062 = vmatpush1.bf16.msra.mxu0 %v12809_v21  ;;  %10595 = vmatpush1.bf16.msra.mxu1 %v12811_v22  ;;  %v12859_v21 = vcombine.low %v1139_v6, %v1143_v7  ;;  %v12866_v22 = vcombine.high %v1146_v14, %v1150_v15  ;;  %v1186_v6 = vld [vmem:[%s14108_s5 + $0x1900] sm:$0xff] }
 0x198   : > { %10063 = vmatprep.subr.bf16.mxu0 %v12818_v24  ;;  %10596 = vmatprep.subr.bf16.mxu1 %v12820_v26  ;;  %v12868_v24 = vcombine.high %v1147_v59, %v1151_v18  ;;  %v1154_v26 = vld [vmem:[%s14108_s5 + $0x1800] sm:$0xff] }
 0x199   : > { %v1190_v7 = vld [vmem:[%s14108_s5 + $0x1920] sm:$0xff] }
 0x19b   : > { %10064 = vmatpush1.bf16.msra.mxu0 %v12817_v33  ;;  %10597 = vmatpush1.bf16.msra.mxu1 %v12819_v63  ;;  %v12865_v33 = vcombine.low %v1146_v14, %v1150_v15  ;;  %v12867_v63 = vcombine.low %v1147_v59, %v1151_v18  ;;  %v12906_v14 = vcombine.high %v1186_v6, %v1190_v7  ;;  %v1194_v59 = vld [vmem:[%s14108_s5 + $0x1940] sm:$0xff] }
 0x19c   : > { %10065 = vmatprep.subr.bf16.mxu0 %v12826_v35  ;;  %10598 = vmatprep.subr.bf16.mxu1 %v12828_v36  ;;  %v12874_v35 = vcombine.high %v1154_v26, %v1158_v27  ;;  %v12876_v36 = vcombine.high %v1155_v30, %v1159_v32  ;;  %v1198_v18 = vld [vmem:[%s14108_s5 + $0x1960] sm:$0xff] }
 0x19f   : > { %10066 = vmatpush1.bf16.msra.mxu0 %v12825_v42  ;;  %10599 = vmatpush1.bf16.msra.mxu1 %v12827_v43  ;;  %v1163_v42 = vld [vmem:[%s14108_s5 + $0x1848] sm:$0xff] }
 0x1a0   : > { %10067 = vmatprep.subr.bf16.mxu0 %v12834_v45  ;;  %10600 = vmatprep.subr.bf16.mxu1 %v12836_v46  ;;  %v1167_v43 = vld [vmem:[%s14108_s5 + $0x1868] sm:$0xff]  ;;  %v12873_v45 = vcombine.low %v1154_v26, %v1158_v27  ;;  %v12875_v46 = vcombine.low %v1155_v30, %v1159_v32  ;;  %v12914_v26 = vcombine.high %v1194_v59, %v1198_v18  ;;  %v1202_v30 = vld [vmem:[%s14108_s5 + $0x1980] sm:$0xff] }
 0x1a1   : > { %v12884_v48 = vcombine.high %v1163_v42, %v1167_v43  ;;  %v1206_v32 = vld [vmem:[%s14108_s5 + $0x19a0] sm:$0xff] }
 0x1a3   : > { %10068 = vmatpush1.bf16.msra.mxu0 %v12833_v16  ;;  %10601 = vmatpush1.bf16.msra.mxu1 %v12835_v10  ;;  %v14636_v16 = vpack.c.bf16 %v293_v55, %v293_v55  ;;  %v1175_v10 = vld [vmem:[%s14108_s5 + $0x18a8] sm:$0xff]  ;;  %v1210_v55 = vld [vmem:[%s14108_s5 + $0x19c0] sm:$0xff] }
 0x1a4   : > { %10069 = vmatprep.subr.bf16.mxu0 %v12842_v54  ;;  %10602 = vmatprep.subr.bf16.mxu1 %v12844_v23  ;;  %v12881_v54 = vcombine.low %v1162_v37, %v1166_v38  ;;  %v12883_v23 = vcombine.low %v1163_v42, %v1167_v43  ;;  %v12892_v57 = vcombine.high %v1171_v52, %v1175_v10  ;;  %v1214_v42 = vld [vmem:[%s14108_s5 + $0x19e0] sm:$0xff]  ;;  %v1211_v43 = vld [vmem:[%s14108_s5 + $0x19c8] sm:$0xff] }
 0x1a5   : > { %v12922_v37 = vcombine.high %v1202_v30, %v1206_v32 }
 0x1a7   : > { %10070 = vmatpush1.bf16.msra.mxu0 %v12841_v61  ;;  %10603 = vmatpush1.bf16.msra.mxu1 %v12843_v62  ;;  %v1179_v61 = vld [vmem:[%s14108_s5 + $0x18c8] sm:$0xff] }
 0x1a8   : > { %10071 = vmatprep.subr.bf16.mxu0 %v12850_v1  ;;  %10604 = vmatprep.subr.bf16.mxu1 %v12852_v3  ;;  %v1183_v62 = vld [vmem:[%s14108_s5 + $0x18e8] sm:$0xff]  ;;  %v12889_v1 = vcombine.low %v1170_v49, %v1174_v50  ;;  %v12891_v3 = vcombine.low %v1171_v52, %v1175_v10  ;;  %v1218_v50 = vld [vmem:[%s14108_s5 + $0x1a00] sm:$0xff] }
 0x1a9   : > { %v12900_v5 = vcombine.high %v1179_v61, %v1183_v62  ;;  %v1222_v52 = vld [vmem:[%s14108_s5 + $0x1a20] sm:$0xff]  ;;  %v1219_v10 = vld [vmem:[%s14108_s5 + $0x1a08] sm:$0xff] }
 0x1ab   : > { %10072 = vmatpush1.bf16.msra.mxu0 %v12849_v8  ;;  %10605 = vmatpush1.bf16.msra.mxu1 %v12851_v11  ;;  %v1187_v8 = vld [vmem:[%s14108_s5 + $0x1908] sm:$0xff] }
 0x1ac   : > { %10073 = vmatprep.subr.bf16.mxu0 %v12858_v17  ;;  %10606 = vmatprep.subr.bf16.mxu1 %v12860_v13  ;;  %v1191_v11 = vld [vmem:[%s14108_s5 + $0x1928] sm:$0xff]  ;;  %v12897_v17 = vcombine.low %v1178_v58, %v1182_v60  ;;  %v12899_v13 = vcombine.low %v1179_v61, %v1183_v62  ;;  %v1226_v60 = vld [vmem:[%s14108_s5 + $0x1a40] sm:$0xff] }
 0x1ad   : > { %v12908_v15 = vcombine.high %v1187_v8, %v1191_v11  ;;  %v1230_v61 = vld [vmem:[%s14108_s5 + $0x1a60] sm:$0xff]  ;;  %v1227_v62 = vld [vmem:[%s14108_s5 + $0x1a48] sm:$0xff] }
 0x1af   : > { %10074 = vmatpush1.bf16.msra.mxu0 %v12857_v20  ;;  %10607 = vmatpush1.bf16.msra.mxu1 %v12859_v21  ;;  %v1195_v20 = vld [vmem:[%s14108_s5 + $0x1948] sm:$0xff] }
 0x1b0   : > { %10075 = vmatprep.subr.bf16.mxu0 %v12866_v22  ;;  %10608 = vmatprep.subr.bf16.mxu1 %v12868_v24  ;;  %v1199_v21 = vld [vmem:[%s14108_s5 + $0x1968] sm:$0xff]  ;;  %v12905_v22 = vcombine.low %v1186_v6, %v1190_v7  ;;  %v12907_v24 = vcombine.low %v1187_v8, %v1191_v11  ;;  %v1234_v7 = vld [vmem:[%s14108_s5 + $0x1a80] sm:$0xff] }
 0x1b1   : > { %v12916_v27 = vcombine.high %v1195_v20, %v1199_v21  ;;  %v1238_v8 = vld [vmem:[%s14108_s5 + $0x1aa0] sm:$0xff]  ;;  %v1235_v11 = vld [vmem:[%s14108_s5 + $0x1a88] sm:$0xff] }
 0x1b3   : > { %10076 = vmatpush1.bf16.msra.mxu0 %v12865_v33  ;;  %10609 = vmatpush1.bf16.msra.mxu1 %v12867_v63  ;;  %v1203_v33 = vld [vmem:[%s14108_s5 + $0x1988] sm:$0xff] }
 0x1b4   : > { %10086 = vmatprep.subr.bf16.mxu0 %v12874_v35  ;;  %10619 = vmatprep.subr.bf16.mxu1 %v12876_v36  ;;  %v1207_v63 = vld [vmem:[%s14108_s5 + $0x19a8] sm:$0xff]  ;;  %v12913_v35 = vcombine.low %v1194_v59, %v1198_v18  ;;  %v12915_v36 = vcombine.low %v1195_v20, %v1199_v21  ;;  %v1242_v18 = vld [vmem:[%s14108_s5 + $0x1ac0] sm:$0xff] }
 0x1b5   : > { %v12924_v38 = vcombine.high %v1203_v33, %v1207_v63  ;;  %v1246_v20 = vld [vmem:[%s14108_s5 + $0x1ae0] sm:$0xff]  ;;  %v1243_v21 = vld [vmem:[%s14108_s5 + $0x1ac8] sm:$0xff] }
 0x1b6   : > { %10078 = vmatmul.mubr.bf16.vlgmr.msra.gmra.mrb[0].mxu0 %v14630_v40  ;;  %10611 = vmatmul.mubr.bf16.vlgmr.msra.gmra.mrb[0].mxu1 %v14630_v40 }
 0x1b7   : > { %10087 = vmatpush1.bf16.msra.mxu0 %v12873_v45  ;;  %10620 = vmatpush1.bf16.msra.mxu1 %v12875_v46  ;;  %v1215_v45 = vld [vmem:[%s14108_s5 + $0x19e8] sm:$0xff]  ;;  %v12921_v46 = vcombine.low %v1202_v30, %v1206_v32  ;;  %v1250_v32 = vld [vmem:[%s14108_s5 + $0x1b00] sm:$0xff] }
 0x1b8   : > { %10088 = vmatprep.subr.bf16.mxu0 %v12882_v47  ;;  %10621 = vmatprep.subr.bf16.mxu1 %v12884_v48  ;;  %v12923_v47 = vcombine.low %v1203_v33, %v1207_v63  ;;  %v12930_v48 = vcombine.high %v1210_v55, %v1214_v42  ;;  %v12932_v49 = vcombine.high %v1211_v43, %v1215_v45  ;;  %v1254_v33 = vld [vmem:[%s14108_s5 + $0x1b20] sm:$0xff]  ;;  %v1251_v63 = vld [vmem:[%s14108_s5 + $0x1b08] sm:$0xff] }
 0x1b9   : > { %10118 = vmatprep.mubr.bf16.mxu0 %v14636_v16  ;;  %10651 = vmatprep.mubr.bf16.mxu1 %v14636_v16 }
 0x1bb   : > { %10089 = vmatpush1.bf16.msra.mxu0 %v12881_v54  ;;  %10622 = vmatpush1.bf16.msra.mxu1 %v12883_v23  ;;  %v1223_v54 = vld [vmem:[%s14108_s5 + $0x1a28] sm:$0xff]  ;;  %v12929_v23 = vcombine.low %v1210_v55, %v1214_v42  ;;  %v1258_v42 = vld [vmem:[%s14108_s5 + $0x1b40] sm:$0xff] }
 0x1bc   : > { %10090 = vmatprep.subr.bf16.mxu0 %v12890_v56  ;;  %10623 = vmatprep.subr.bf16.mxu1 %v12892_v57  ;;  %v12931_v56 = vcombine.low %v1211_v43, %v1215_v45  ;;  %v12938_v57 = vcombine.high %v1218_v50, %v1222_v52  ;;  %v12940_v58 = vcombine.high %v1219_v10, %v1223_v54  ;;  %v1262_v43 = vld [vmem:[%s14108_s5 + $0x1b60] sm:$0xff]  ;;  %v1259_v45 = vld [vmem:[%s14108_s5 + $0x1b48] sm:$0xff] }
 0x1bf   : > { %10091 = vmatpush1.bf16.msra.mxu0 %v12889_v1  ;;  %10624 = vmatpush1.bf16.msra.mxu1 %v12891_v3  ;;  %v1231_v1 = vld [vmem:[%s14108_s5 + $0x1a68] sm:$0xff]  ;;  %v12937_v3 = vcombine.low %v1218_v50, %v1222_v52  ;;  %v1266_v52 = vld [vmem:[%s14108_s5 + $0x1b80] sm:$0xff] }
 0x1c0   : > { %10092 = vmatprep.subr.bf16.mxu0 %v12898_v4  ;;  %10625 = vmatprep.subr.bf16.mxu1 %v12900_v5  ;;  %v12939_v4 = vcombine.low %v1219_v10, %v1223_v54  ;;  %v12946_v5 = vcombine.high %v1226_v60, %v1230_v61  ;;  %v12948_v6 = vcombine.high %v1227_v62, %v1231_v1  ;;  %v1270_v10 = vld [vmem:[%s14108_s5 + $0x1ba0] sm:$0xff]  ;;  %v1267_v54 = vld [vmem:[%s14108_s5 + $0x1b88] sm:$0xff] }
 0x1c3   : > { %10093 = vmatpush1.bf16.msra.mxu0 %v12897_v17  ;;  %10626 = vmatpush1.bf16.msra.mxu1 %v12899_v13  ;;  %v1239_v17 = vld [vmem:[%s14108_s5 + $0x1aa8] sm:$0xff]  ;;  %v12945_v13 = vcombine.low %v1226_v60, %v1230_v61  ;;  %v1274_v61 = vld [vmem:[%s14108_s5 + $0x1bc0] sm:$0xff] }
 0x1c4   : > { %10094 = vmatprep.subr.bf16.mxu0 %v12906_v14  ;;  %10627 = vmatprep.subr.bf16.mxu1 %v12908_v15  ;;  %v12947_v14 = vcombine.low %v1227_v62, %v1231_v1  ;;  %v12954_v15 = vcombine.high %v1234_v7, %v1238_v8  ;;  %v12956_v59 = vcombine.high %v1235_v11, %v1239_v17  ;;  %v1278_v62 = vld [vmem:[%s14108_s5 + $0x1be0] sm:$0xff] }
 0x1c5   : > { %v278_v1 = vcombine.high %v14614_v19, %v14614_v19  ;;  %v1283_v19 = vld [vmem:[%s14108_s5 + $0x1c08] sm:$0xff] }
 0x1c7   : > { %10095 = vmatpush1.bf16.msra.mxu0 %v12905_v22  ;;  %10628 = vmatpush1.bf16.msra.mxu1 %v12907_v24  ;;  %v1247_v22 = vld [vmem:[%s14108_s5 + $0x1ae8] sm:$0xff]  ;;  %v12953_v24 = vcombine.low %v1234_v7, %v1238_v8  ;;  %v12994_v7 = vcombine.high %v1274_v61, %v1278_v62 }
 0x1c8   : > { %10096 = vmatprep.subr.bf16.mxu0 %v12914_v26  ;;  %10629 = vmatprep.subr.bf16.mxu1 %v12916_v27  ;;  %v12955_v26 = vcombine.low %v1235_v11, %v1239_v17  ;;  %v12962_v27 = vcombine.high %v1242_v18, %v1246_v20  ;;  %v12964_v30 = vcombine.high %v1243_v21, %v1247_v22  ;;  %v1282_v11 = vld [vmem:[%s14108_s5 + $0x1c00] sm:$0xff] }
 0x1c9   : > { %v1286_v17 = vld [vmem:[%s14108_s5 + $0x1c20] sm:$0xff] }
 0x1cb   : > { %10097 = vmatpush1.bf16.msra.mxu0 %v12913_v35  ;;  %10630 = vmatpush1.bf16.msra.mxu1 %v12915_v36  ;;  %v1255_v35 = vld [vmem:[%s14108_s5 + $0x1b28] sm:$0xff]  ;;  %v12961_v36 = vcombine.low %v1242_v18, %v1246_v20  ;;  %v13002_v18 = vcombine.high %v1282_v11, %v1286_v17 }
 0x1cc   : > { %10098 = vmatprep.subr.bf16.mxu0 %v12922_v37  ;;  %10631 = vmatprep.subr.bf16.mxu1 %v12924_v38  ;;  %v12963_v37 = vcombine.low %v1243_v21, %v1247_v22  ;;  %v12970_v38 = vcombine.high %v1250_v32, %v1254_v33  ;;  %v12972_v55 = vcombine.high %v1251_v63, %v1255_v35  ;;  %v1290_v21 = vld [vmem:[%s14108_s5 + $0x1c40] sm:$0xff] }
 0x1cd   : > { %v1294_v22 = vld [vmem:[%s14108_s5 + $0x1c60] sm:$0xff] }
 0x1cf   : > { %10099 = vmatpush1.bf16.msra.mxu0 %v12921_v46  ;;  %10632 = vmatpush1.bf16.msra.mxu1 %v12923_v47  ;;  %v1263_v46 = vld [vmem:[%s14108_s5 + $0x1b68] sm:$0xff]  ;;  %v12969_v47 = vcombine.low %v1250_v32, %v1254_v33  ;;  %v13001_v32 = vcombine.low %v1282_v11, %v1286_v17 }
 0x1d0   : > { %10100 = vmatprep.subr.bf16.mxu0 %v12930_v48  ;;  %10633 = vmatprep.subr.bf16.mxu1 %v12932_v49  ;;  %v12971_v48 = vcombine.low %v1251_v63, %v1255_v35  ;;  %v12978_v49 = vcombine.high %v1258_v42, %v1262_v43  ;;  %v12980_v50 = vcombine.high %v1259_v45, %v1263_v46 }
 0x1d1   : > { %v13010_v63 = vcombine.high %v1290_v21, %v1294_v22 }
 0x1d3   : > { %10101 = vmatpush1.bf16.msra.mxu0 %v12929_v23  ;;  %10634 = vmatpush1.bf16.msra.mxu1 %v12931_v56  ;;  %v1271_v23 = vld [vmem:[%s14108_s5 + $0x1ba8] sm:$0xff]  ;;  %v12977_v56 = vcombine.low %v1258_v42, %v1262_v43  ;;  %v13009_v42 = vcombine.low %v1290_v21, %v1294_v22 }
 0x1d4   : > { %10102 = vmatprep.subr.bf16.mxu0 %v12938_v57  ;;  %10635 = vmatprep.subr.bf16.mxu1 %v12940_v58  ;;  %v12979_v57 = vcombine.low %v1259_v45, %v1263_v46  ;;  %v12986_v58 = vcombine.high %v1266_v52, %v1270_v10  ;;  %v12988_v60 = vcombine.high %v1267_v54, %v1271_v23 }
 0x1d7   : > { %10103 = vmatpush1.bf16.msra.mxu0 %v12937_v3  ;;  %10636 = vmatpush1.bf16.msra.mxu1 %v12939_v4  ;;  %v1275_v3 = vld [vmem:[%s14108_s5 + $0x1bc8] sm:$0xff] }
 0x1d8   : > { %10104 = vmatprep.subr.bf16.mxu0 %v12946_v5  ;;  %10637 = vmatprep.subr.bf16.mxu1 %v12948_v6  ;;  %v1279_v4 = vld [vmem:[%s14108_s5 + $0x1be8] sm:$0xff]  ;;  %v12985_v5 = vcombine.low %v1266_v52, %v1270_v10  ;;  %v12987_v6 = vcombine.low %v1267_v54, %v1271_v23 }
 0x1d9   : > { %v12996_v8 = vcombine.high %v1275_v3, %v1279_v4 }
 0x1db   : > { %10105 = vmatpush1.bf16.msra.mxu0 %v12945_v13  ;;  %10638 = vmatpush1.bf16.msra.mxu1 %v12947_v14  ;;  %v14701_v13 = vrot.slane %v278_v1, %v14143_v53  ;;  %v1287_v14 = vld [vmem:[%s14108_s5 + $0x1c28] sm:$0xff] }
 0x1dc   : > { %10106 = vmatprep.subr.bf16.mxu0 %v12954_v15  ;;  %10639 = vmatprep.subr.bf16.mxu1 %v12956_v59  ;;  %v12993_v15 = vcombine.low %v1274_v61, %v1278_v62  ;;  %v12995_v59 = vcombine.low %v1275_v3, %v1279_v4  ;;  %v13004_v20 = vcombine.high %v1283_v19, %v1287_v14  ;;  %v1322_v4 = vld [vmem:[%s14108_s5 + $0x1d40] sm:$0xff] }
 0x1dd   : > { %v13003_v33 = vcombine.low %v1283_v19, %v1287_v14  ;;  %v1330_v14 = vld [vmem:[%s14108_s5 + $0x1d80] sm:$0xff] }
 0x1df   : > { %10107 = vmatpush1.bf16.msra.mxu0 %v12953_v24  ;;  %10640 = vmatpush1.bf16.msra.mxu1 %v12955_v26  ;;  %v294_v24 = vcombine.high %v14701_v13, %v14701_v13  ;;  %v14711_v26 = vpack.c.bf16 %v14620_v28, %v14620_v28  ;;  %v1299_v28 = vld [vmem:[%s14108_s5 + $0x1c88] sm:$0xff] }
 0x1e0   : > { %10108 = vmatprep.subr.bf16.mxu0 %v12962_v27  ;;  %10641 = vmatprep.subr.bf16.mxu1 %v12964_v30  ;;  %v1291_v27 = vld [vmem:[%s14108_s5 + $0x1c48] sm:$0xff] }
 0x1e1   : > { %v1295_v30 = vld [vmem:[%s14108_s5 + $0x1c68] sm:$0xff] }
 0x1e2   : > { %v13012_v35 = vcombine.high %v1291_v27, %v1295_v30  ;;  %v13011_v43 = vcombine.low %v1291_v27, %v1295_v30  ;;  %v1338_v27 = vld [vmem:[%s14108_s5 + $0x1dc0] sm:$0xff] }
 0x1e3   : > { %10109 = vmatpush1.bf16.msra.mxu0 %v12961_v36  ;;  %10642 = vmatpush1.bf16.msra.mxu1 %v12963_v37  ;;  %v1298_v36 = vld [vmem:[%s14108_s5 + $0x1c80] sm:$0xff] }
 0x1e4   : > { %10110 = vmatprep.subr.bf16.mxu0 %v12970_v38  ;;  %10643 = vmatprep.subr.bf16.mxu1 %v12972_v55  ;;  %v1302_v37 = vld [vmem:[%s14108_s5 + $0x1ca0] sm:$0xff]  ;;  %v14717_v38 = vpack.c.bf16 %v294_v24, %v294_v24  ;;  %v1303_v55 = vld [vmem:[%s14108_s5 + $0x1ca8] sm:$0xff] }
 0x1e5   : > { %v13018_v45 = vcombine.high %v1298_v36, %v1302_v37  ;;  %v13020_v46 = vcombine.high %v1299_v28, %v1303_v55  ;;  %v13017_v52 = vcombine.low %v1298_v36, %v1302_v37  ;;  %v13019_v10 = vcombine.low %v1299_v28, %v1303_v55  ;;  %v1342_v30 = vld [vmem:[%s14108_s5 + $0x1de0] sm:$0xff] }
 0x1e6   : > { %v13058_v36 = vcombine.high %v1338_v27, %v1342_v30  ;;  %v1346_v28 = vld [vmem:[%s14108_s5 + $0x1e00] sm:$0xff] }
 0x1e7   : > { %10111 = vmatpush1.bf16.msra.mxu0 %v12969_v47  ;;  %10644 = vmatpush1.bf16.msra.mxu1 %v12971_v48  ;;  %v1306_v47 = vld [vmem:[%s14108_s5 + $0x1cc0] sm:$0xff] }
 0x1e8   : > { %10112 = vmatprep.subr.bf16.mxu0 %v12978_v49  ;;  %10645 = vmatprep.subr.bf16.mxu1 %v12980_v50  ;;  %v1310_v48 = vld [vmem:[%s14108_s5 + $0x1ce0] sm:$0xff]  ;;  %v1307_v49 = vld [vmem:[%s14108_s5 + $0x1cc8] sm:$0xff] }
 0x1e9   : > { %v1311_v50 = vld [vmem:[%s14108_s5 + $0x1ce8] sm:$0xff]  ;;  %v13026_v54 = vcombine.high %v1306_v47, %v1310_v48  ;;  %v13025_v61 = vcombine.low %v1306_v47, %v1310_v48  ;;  %v1350_v55 = vld [vmem:[%s14108_s5 + $0x1e20] sm:$0xff] }
 0x1ea   : > { %v13028_v23 = vcombine.high %v1307_v49, %v1311_v50  ;;  %v13027_v62 = vcombine.low %v1307_v49, %v1311_v50  ;;  %v13066_v47 = vcombine.high %v1346_v28, %v1350_v55  ;;  %v1354_v49 = vld [vmem:[%s14108_s5 + $0x1e40] sm:$0xff] }
 0x1eb   : > { %10113 = vmatpush1.bf16.msra.mxu0 %v12977_v56  ;;  %10646 = vmatpush1.bf16.msra.mxu1 %v12979_v57  ;;  %v1314_v56 = vld [vmem:[%s14108_s5 + $0x1d00] sm:$0xff] }
 0x1ec   : > { %10114 = vmatprep.subr.bf16.mxu0 %v12986_v58  ;;  %10647 = vmatprep.subr.bf16.mxu1 %v12988_v60  ;;  %v1318_v57 = vld [vmem:[%s14108_s5 + $0x1d20] sm:$0xff]  ;;  %v1315_v58 = vld [vmem:[%s14108_s5 + $0x1d08] sm:$0xff] }
 0x1ed   : > { %v1319_v60 = vld [vmem:[%s14108_s5 + $0x1d28] sm:$0xff]  ;;  %v13034_v1 = vcombine.high %v1314_v56, %v1318_v57  ;;  %v1358_v50 = vld [vmem:[%s14108_s5 + $0x1e60] sm:$0xff] }
 0x1ee   : > { %v13036_v3 = vcombine.high %v1315_v58, %v1319_v60  ;;  %v13035_v11 = vcombine.low %v1315_v58, %v1319_v60  ;;  %v1362_v58 = vld [vmem:[%s14108_s5 + $0x1e80] sm:$0xff] }
 0x1ef   : > { %10115 = vmatpush1.bf16.msra.mxu0 %v12985_v5  ;;  %10648 = vmatpush1.bf16.msra.mxu1 %v12987_v6  ;;  %v1326_v5 = vld [vmem:[%s14108_s5 + $0x1d60] sm:$0xff]  ;;  %v1323_v6 = vld [vmem:[%s14108_s5 + $0x1d48] sm:$0xff] }
 0x1f0   : > { %10116 = vmatprep.subr.bf16.mxu0 %v12994_v7  ;;  %10649 = vmatprep.subr.bf16.mxu1 %v12996_v8  ;;  %v1327_v7 = vld [vmem:[%s14108_s5 + $0x1d68] sm:$0xff]  ;;  %v13033_v8 = vcombine.low %v1314_v56, %v1318_v57  ;;  %v13042_v17 = vcombine.high %v1322_v4, %v1326_v5  ;;  %v13074_v56 = vcombine.high %v1354_v49, %v1358_v50  ;;  %v1366_v60 = vld [vmem:[%s14108_s5 + $0x1ea0] sm:$0xff] }
 0x1f1   : > { %v13044_v19 = vcombine.high %v1323_v6, %v1327_v7  ;;  %v13043_v21 = vcombine.low %v1323_v6, %v1327_v7  ;;  %v1370_v6 = vld [vmem:[%s14108_s5 + $0x1ec0] sm:$0xff] }
 0x1f2   : > { %v1374_v7 = vld [vmem:[%s14108_s5 + $0x1ee0] sm:$0xff] }
 0x1f3   : > { %10117 = vmatpush1.bf16.msra.mxu0 %v12993_v15  ;;  %10650 = vmatpush1.bf16.msra.mxu1 %v12995_v59  ;;  %v1334_v15 = vld [vmem:[%s14108_s5 + $0x1da0] sm:$0xff]  ;;  %v1331_v59 = vld [vmem:[%s14108_s5 + $0x1d88] sm:$0xff] }
 0x1f4   : > { %10127 = vmatprep.subr.bf16.mxu0 %v13002_v18  ;;  %10660 = vmatprep.subr.bf16.mxu1 %v13004_v20  ;;  %v1335_v18 = vld [vmem:[%s14108_s5 + $0x1da8] sm:$0xff]  ;;  %v13041_v20 = vcombine.low %v1322_v4, %v1326_v5  ;;  %v13050_v22 = vcombine.high %v1330_v14, %v1334_v15  ;;  %v13082_v4 = vcombine.high %v1362_v58, %v1366_v60 }
 0x1f5   : > { %v13052_v24 = vcombine.high %v1331_v59, %v1335_v18 }
 0x1f6   : > { %10119 = vmatmul.mubr.bf16.vlgmr.msra.gmra.mrb[0].mxu0 %v14711_v26  ;;  %10652 = vmatmul.mubr.bf16.vlgmr.msra.gmra.mrb[0].mxu1 %v14711_v26 }
 0x1f7   : > { %10128 = vmatpush1.bf16.msra.mxu0 %v13001_v32  ;;  %10661 = vmatpush1.bf16.msra.mxu1 %v13003_v33  ;;  %v1339_v32 = vld [vmem:[%s14108_s5 + $0x1dc8] sm:$0xff] }
 0x1f8   : > { %10129 = vmatprep.subr.bf16.mxu0 %v13010_v63  ;;  %10662 = vmatprep.subr.bf16.mxu1 %v13012_v35  ;;  %v1343_v33 = vld [vmem:[%s14108_s5 + $0x1de8] sm:$0xff]  ;;  %v13049_v63 = vcombine.low %v1330_v14, %v1334_v15  ;;  %v13051_v35 = vcombine.low %v1331_v59, %v1335_v18  ;;  %v13090_v14 = vcombine.high %v1370_v6, %v1374_v7  ;;  %v1378_v59 = vld [vmem:[%s14108_s5 + $0x1f00] sm:$0xff] }
 0x1f9   : > { %10159 = vmatprep.mubr.bf16.mxu0 %v14717_v38  ;;  %10692 = vmatprep.mubr.bf16.mxu1 %v14717_v38  ;;  %v13060_v37 = vcombine.high %v1339_v32, %v1343_v33  ;;  %v1382_v18 = vld [vmem:[%s14108_s5 + $0x1f20] sm:$0xff] }
 0x1fb   : > { %10130 = vmatpush1.bf16.msra.mxu0 %v13009_v42  ;;  %10663 = vmatpush1.bf16.msra.mxu1 %v13011_v43  ;;  %v1347_v42 = vld [vmem:[%s14108_s5 + $0x1e08] sm:$0xff] }
 0x1fc   : > { %10131 = vmatprep.subr.bf16.mxu0 %v13018_v45  ;;  %10664 = vmatprep.subr.bf16.mxu1 %v13020_v46  ;;  %v1351_v43 = vld [vmem:[%s14108_s5 + $0x1e28] sm:$0xff]  ;;  %v13057_v45 = vcombine.low %v1338_v27, %v1342_v30  ;;  %v13059_v46 = vcombine.low %v1339_v32, %v1343_v33  ;;  %v13098_v27 = vcombine.high %v1378_v59, %v1382_v18  ;;  %v1386_v32 = vld [vmem:[%s14108_s5 + $0x1f40] sm:$0xff] }
 0x1fd   : > { %v13068_v48 = vcombine.high %v1347_v42, %v1351_v43  ;;  %v1390_v33 = vld [vmem:[%s14108_s5 + $0x1f60] sm:$0xff] }
 0x1ff   : > { %10132 = vmatpush1.bf16.msra.mxu0 %v13017_v52  ;;  %10665 = vmatpush1.bf16.msra.mxu1 %v13019_v10  ;;  %v1355_v52 = vld [vmem:[%s14108_s5 + $0x1e48] sm:$0xff] }
 0x200   : > { %10133 = vmatprep.subr.bf16.mxu0 %v13026_v54  ;;  %10666 = vmatprep.subr.bf16.mxu1 %v13028_v23  ;;  %v1359_v10 = vld [vmem:[%s14108_s5 + $0x1e68] sm:$0xff]  ;;  %v13065_v54 = vcombine.low %v1346_v28, %v1350_v55  ;;  %v13067_v23 = vcombine.low %v1347_v42, %v1351_v43  ;;  %v13106_v28 = vcombine.high %v1386_v32, %v1390_v33  ;;  %v1394_v42 = vld [vmem:[%s14108_s5 + $0x1f80] sm:$0xff] }
 0x201   : > { %v13076_v57 = vcombine.high %v1355_v52, %v1359_v10  ;;  %v1398_v43 = vld [vmem:[%s14108_s5 + $0x1fa0] sm:$0xff] }
 0x203   : > { %10134 = vmatpush1.bf16.msra.mxu0 %v13025_v61  ;;  %10667 = vmatpush1.bf16.msra.mxu1 %v13027_v62  ;;  %v1363_v61 = vld [vmem:[%s14108_s5 + $0x1e88] sm:$0xff] }
 0x204   : > { %10135 = vmatprep.subr.bf16.mxu0 %v13034_v1  ;;  %10668 = vmatprep.subr.bf16.mxu1 %v13036_v3  ;;  %v1367_v62 = vld [vmem:[%s14108_s5 + $0x1ea8] sm:$0xff]  ;;  %v13073_v1 = vcombine.low %v1354_v49, %v1358_v50  ;;  %v13075_v3 = vcombine.low %v1355_v52, %v1359_v10  ;;  %v13114_v49 = vcombine.high %v1394_v42, %v1398_v43  ;;  %v1402_v52 = vld [vmem:[%s14108_s5 + $0x1fc0] sm:$0xff] }
 0x205   : > { %v13084_v5 = vcombine.high %v1363_v61, %v1367_v62  ;;  %v1406_v10 = vld [vmem:[%s14108_s5 + $0x1fe0] sm:$0xff] }
 0x207   : > { %10136 = vmatpush1.bf16.msra.mxu0 %v13033_v8  ;;  %10669 = vmatpush1.bf16.msra.mxu1 %v13035_v11  ;;  %v1371_v8 = vld [vmem:[%s14108_s5 + $0x1ec8] sm:$0xff] }
 0x208   : > { %10137 = vmatprep.subr.bf16.mxu0 %v13042_v17  ;;  %10670 = vmatprep.subr.bf16.mxu1 %v13044_v19  ;;  %v1375_v11 = vld [vmem:[%s14108_s5 + $0x1ee8] sm:$0xff]  ;;  %v13081_v17 = vcombine.low %v1362_v58, %v1366_v60  ;;  %v13083_v19 = vcombine.low %v1363_v61, %v1367_v62  ;;  %v13122_v60 = vcombine.high %v1402_v52, %v1406_v10  ;;  %v1410_v62 = vld [vmem:[%s14108_s5 + $0x2000] sm:$0xff] }
 0x209   : > { %v13092_v15 = vcombine.high %v1371_v8, %v1375_v11 }
 0x20b   : > { %10138 = vmatpush1.bf16.msra.mxu0 %v13041_v20  ;;  %10671 = vmatpush1.bf16.msra.mxu1 %v13043_v21  ;;  %v1379_v20 = vld [vmem:[%s14108_s5 + $0x1f08] sm:$0xff] }
 0x20c   : > { %10139 = vmatprep.subr.bf16.mxu0 %v13050_v22  ;;  %10672 = vmatprep.subr.bf16.mxu1 %v13052_v24  ;;  %v1383_v21 = vld [vmem:[%s14108_s5 + $0x1f28] sm:$0xff]  ;;  %v13089_v22 = vcombine.low %v1370_v6, %v1374_v7  ;;  %v13091_v24 = vcombine.low %v1371_v8, %v1375_v11  ;;  %v13121_v6 = vcombine.low %v1402_v52, %v1406_v10 }
 0x20d   : > { %v13100_v30 = vcombine.high %v1379_v20, %v1383_v21  ;;  %v1443_v52 = vld [vmem:[%s14108_s5 + $0x2108] sm:$0xff] }
 0x20e   : > { %v1447_v10 = vld [vmem:[%s14108_s5 + $0x2128] sm:$0xff] }
 0x20f   : > { %10140 = vmatpush1.bf16.msra.mxu0 %v13049_v63  ;;  %10673 = vmatpush1.bf16.msra.mxu1 %v13051_v35  ;;  %v1387_v63 = vld [vmem:[%s14108_s5 + $0x1f48] sm:$0xff] }
 0x210   : > { %10141 = vmatprep.subr.bf16.mxu0 %v13058_v36  ;;  %10674 = vmatprep.subr.bf16.mxu1 %v13060_v37  ;;  %v1391_v35 = vld [vmem:[%s14108_s5 + $0x1f68] sm:$0xff]  ;;  %v13097_v36 = vcombine.low %v1378_v59, %v1382_v18  ;;  %v13099_v37 = vcombine.low %v1379_v20, %v1383_v21 }
 0x211   : > { %v13108_v55 = vcombine.high %v1387_v63, %v1391_v35  ;;  %v1419_v59 = vld [vmem:[%s14108_s5 + $0x2048] sm:$0xff] }
 0x212   : > { %v1423_v18 = vld [vmem:[%s14108_s5 + $0x2068] sm:$0xff] }
 0x213   : > { %10142 = vmatpush1.bf16.msra.mxu0 %v13057_v45  ;;  %10675 = vmatpush1.bf16.msra.mxu1 %v13059_v46  ;;  %v1395_v45 = vld [vmem:[%s14108_s5 + $0x1f88] sm:$0xff] }
 0x214   : > { %10143 = vmatprep.subr.bf16.mxu0 %v13066_v47  ;;  %10676 = vmatprep.subr.bf16.mxu1 %v13068_v48  ;;  %v1399_v46 = vld [vmem:[%s14108_s5 + $0x1fa8] sm:$0xff]  ;;  %v13105_v47 = vcombine.low %v1386_v32, %v1390_v33  ;;  %v13107_v48 = vcombine.low %v1387_v63, %v1391_v35  ;;  %v13139_v35 = vcombine.low %v1419_v59, %v1423_v18 }
 0x215   : > { %v13116_v50 = vcombine.high %v1395_v45, %v1399_v46  ;;  %v13115_v58 = vcombine.low %v1395_v45, %v1399_v46  ;;  %v1431_v33 = vld [vmem:[%s14108_s5 + $0x20a8] sm:$0xff] }
 0x217   : > { %10144 = vmatpush1.bf16.msra.mxu0 %v13065_v54  ;;  %10677 = vmatpush1.bf16.msra.mxu1 %v13067_v23  ;;  %v1403_v54 = vld [vmem:[%s14108_s5 + $0x1fc8] sm:$0xff] }
 0x218   : > { %10145 = vmatprep.subr.bf16.mxu0 %v13074_v56  ;;  %10678 = vmatprep.subr.bf16.mxu1 %v13076_v57  ;;  %v1407_v23 = vld [vmem:[%s14108_s5 + $0x1fe8] sm:$0xff]  ;;  %v14780_v56 = vld [vmem:[%s16026_s0 + $0x20] sm:$0xff]  ;;  %v13113_v57 = vcombine.low %v1394_v42, %v1398_v43 }
 0x219   : > { %v13124_v61 = vcombine.high %v1403_v54, %v1407_v23  ;;  %v13123_v7 = vcombine.low %v1403_v54, %v1407_v23  ;;  %v1435_v42 = vld [vmem:[%s14108_s5 + $0x20c8] sm:$0xff] }
 0x21a   : > { %v1439_v43 = vld [vmem:[%s14108_s5 + $0x20e8] sm:$0xff] }
 0x21b   : > { %10146 = vmatpush1.bf16.msra.mxu0 %v13073_v1  ;;  %10679 = vmatpush1.bf16.msra.mxu1 %v13075_v3  ;;  %v1414_v1 = vld [vmem:[%s14108_s5 + $0x2020] sm:$0xff]  ;;  %v14786_v3 = vrot.slane %v14780_v56, %v14143_v53  ;;  %v13155_v23 = vcombine.low %v1435_v42, %v1439_v43 }
 0x21c   : > { %10147 = vmatprep.subr.bf16.mxu0 %v13082_v4  ;;  %10680 = vmatprep.subr.bf16.mxu1 %v13084_v5  ;;  %v1411_v4 = vld [vmem:[%s14108_s5 + $0x2008] sm:$0xff]  ;;  %v13130_v8 = vcombine.high %v1410_v62, %v1414_v1  ;;  %v13129_v20 = vcombine.low %v1410_v62, %v1414_v1 }
 0x21d   : > { %v1415_v5 = vld [vmem:[%s14108_s5 + $0x2028] sm:$0xff] }
 0x21e   : > { %v13132_v11 = vcombine.high %v1411_v4, %v1415_v5  ;;  %v13131_v21 = vcombine.low %v1411_v4, %v1415_v5  ;;  %v1451_v62 = vld [vmem:[%s14108_s5 + $0x2148] sm:$0xff]  ;;  %v13163_v5 = vcombine.low %v1443_v52, %v1447_v10 }
 0x21f   : > { %10148 = vmatpush1.bf16.msra.mxu0 %v13081_v17  ;;  %10681 = vmatpush1.bf16.msra.mxu1 %v13083_v19  ;;  %v1418_v17 = vld [vmem:[%s14108_s5 + $0x2040] sm:$0xff]  ;;  %v1455_v1 = vld [vmem:[%s14108_s5 + $0x2168] sm:$0xff] }
 0x220   : > { %10149 = vmatprep.subr.bf16.mxu0 %v13090_v14  ;;  %10682 = vmatprep.subr.bf16.mxu1 %v13092_v15  ;;  %v1422_v19 = vld [vmem:[%s14108_s5 + $0x2060] sm:$0xff]  ;;  %v310_v14 = vcombine.high %v14786_v3, %v14786_v3  ;;  %v14796_v15 = vpack.c.bf16 %v14701_v13, %v14701_v13  ;;  %v1427_v13 = vld [vmem:[%s14108_s5 + $0x2088] sm:$0xff] }
 0x221   : > { %v13137_v63 = vcombine.low %v1418_v17, %v1422_v19  ;;  %v13147_v46 = vcombine.low %v1427_v13, %v1431_v33 }
 0x222   : > { %v14802_v32 = vpack.c.bf16 %v310_v14, %v310_v14 }
 0x223   : > { %10150 = vmatpush1.bf16.msra.mxu0 %v13089_v22  ;;  %10683 = vmatpush1.bf16.msra.mxu1 %v13091_v24  ;;  %v13138_v22 = vcombine.high %v1418_v17, %v1422_v19  ;;  %v13140_v24 = vcombine.high %v1419_v59, %v1423_v18  ;;  %v1459_v17 = vld [vmem:[%s14108_s5 + $0x2188] sm:$0xff]  ;;  %v13171_v59 = vcombine.low %v1451_v62, %v1455_v1 }
 0x224   : > { %10151 = vmatprep.subr.bf16.mxu0 %v13098_v27  ;;  %10684 = vmatprep.subr.bf16.mxu1 %v13100_v30  ;;  %v1426_v27 = vld [vmem:[%s14108_s5 + $0x2080] sm:$0xff]  ;;  %v1463_v19 = vld [vmem:[%s14108_s5 + $0x21a8] sm:$0xff] }
 0x225   : > { %v1430_v30 = vld [vmem:[%s14108_s5 + $0x20a0] sm:$0xff] }
 0x226   : > { %v13145_v45 = vcombine.low %v1426_v27, %v1430_v30 }
 0x227   : > { %10152 = vmatpush1.bf16.msra.mxu0 %v13097_v36  ;;  %10685 = vmatpush1.bf16.msra.mxu1 %v13099_v37  ;;  %v13146_v36 = vcombine.high %v1426_v27, %v1430_v30  ;;  %v13148_v37 = vcombine.high %v1427_v13, %v1431_v33  ;;  %v1471_v27 = vld [vmem:[%s14108_s5 + $0x21e8] sm:$0xff]  ;;  %v13179_v13 = vcombine.low %v1459_v17, %v1463_v19 }
 0x228   : > { %10153 = vmatprep.subr.bf16.mxu0 %v13106_v28  ;;  %10686 = vmatprep.subr.bf16.mxu1 %v13108_v55  ;;  %v1434_v28 = vld [vmem:[%s14108_s5 + $0x20c0] sm:$0xff] }
 0x229   : > { %v1438_v55 = vld [vmem:[%s14108_s5 + $0x20e0] sm:$0xff] }
 0x22a   : > { %v13153_v54 = vcombine.low %v1434_v28, %v1438_v55 }
 0x22b   : > { %10154 = vmatpush1.bf16.msra.mxu0 %v13105_v47  ;;  %10687 = vmatpush1.bf16.msra.mxu1 %v13107_v48  ;;  %v13154_v47 = vcombine.high %v1434_v28, %v1438_v55  ;;  %v13156_v48 = vcombine.high %v1435_v42, %v1439_v43  ;;  %v1479_v28 = vld [vmem:[%s14108_s5 + $0x2228] sm:$0xff] }
 0x22c   : > { %10155 = vmatprep.subr.bf16.mxu0 %v13114_v49  ;;  %10688 = vmatprep.subr.bf16.mxu1 %v13116_v50  ;;  %v1442_v49 = vld [vmem:[%s14108_s5 + $0x2100] sm:$0xff] }
 0x22d   : > { %v1446_v50 = vld [vmem:[%s14108_s5 + $0x2120] sm:$0xff] }
 0x22e   : > { %v13161_v4 = vcombine.low %v1442_v49, %v1446_v50 }
 0x22f   : > { %10156 = vmatpush1.bf16.msra.mxu0 %v13113_v57  ;;  %10689 = vmatpush1.bf16.msra.mxu1 %v13115_v58  ;;  %v13162_v57 = vcombine.high %v1442_v49, %v1446_v50  ;;  %v13164_v58 = vcombine.high %v1443_v52, %v1447_v10  ;;  %v1487_v49 = vld [vmem:[%s14108_s5 + $0x2268] sm:$0xff] }
 0x230   : > { %10157 = vmatprep.subr.bf16.mxu0 %v13122_v60  ;;  %10690 = vmatprep.subr.bf16.mxu1 %v13124_v61  ;;  %v1450_v60 = vld [vmem:[%s14108_s5 + $0x2140] sm:$0xff] }
 0x231   : > { %v1454_v61 = vld [vmem:[%s14108_s5 + $0x2160] sm:$0xff] }
 0x232   : > { %v13169_v14 = vcombine.low %v1450_v60, %v1454_v61 }
 0x233   : > { %10158 = vmatpush1.bf16.msra.mxu0 %v13121_v6  ;;  %10691 = vmatpush1.bf16.msra.mxu1 %v13123_v7  ;;  %v13170_v6 = vcombine.high %v1450_v60, %v1454_v61  ;;  %v13172_v7 = vcombine.high %v1451_v62, %v1455_v1  ;;  %v1495_v60 = vld [vmem:[%s14108_s5 + $0x22a8] sm:$0xff] }
 0x234   : > { %10168 = vmatprep.subr.bf16.mxu0 %v13130_v8  ;;  %10701 = vmatprep.subr.bf16.mxu1 %v13132_v11  ;;  %v1458_v8 = vld [vmem:[%s14108_s5 + $0x2180] sm:$0xff] }
 0x235   : > { %v1462_v11 = vld [vmem:[%s14108_s5 + $0x21a0] sm:$0xff] }
 0x236   : > { %10160 = vmatmul.mubr.bf16.vlgmr.msra.gmra.mrb[0].mxu0 %v14796_v15  ;;  %10693 = vmatmul.mubr.bf16.vlgmr.msra.gmra.mrb[0].mxu1 %v14796_v15  ;;  %v13178_v18 = vcombine.high %v1458_v8, %v1462_v11  ;;  %v13177_v30 = vcombine.low %v1458_v8, %v1462_v11  ;;  %v1503_v8 = vld [vmem:[%s14108_s5 + $0x22e8] sm:$0xff] }
 0x237   : > { %10169 = vmatpush1.bf16.msra.mxu0 %v13129_v20  ;;  %10702 = vmatpush1.bf16.msra.mxu1 %v13131_v21  ;;  %v13180_v20 = vcombine.high %v1459_v17, %v1463_v19  ;;  %v1466_v21 = vld [vmem:[%s14108_s5 + $0x21c0] sm:$0xff] }
 0x238   : > { %10170 = vmatprep.subr.bf16.mxu0 %v13138_v22  ;;  %10703 = vmatprep.subr.bf16.mxu1 %v13140_v24  ;;  %v1470_v22 = vld [vmem:[%s14108_s5 + $0x21e0] sm:$0xff]  ;;  %v1467_v24 = vld [vmem:[%s14108_s5 + $0x21c8] sm:$0xff] }
 0x239   : > { %10200 = vmatprep.mubr.bf16.mxu0 %v14802_v32  ;;  %10733 = vmatprep.mubr.bf16.mxu1 %v14802_v32  ;;  %v13186_v33 = vcombine.high %v1466_v21, %v1470_v22  ;;  %v13185_v55 = vcombine.low %v1466_v21, %v1470_v22  ;;  %v13187_v42 = vcombine.low %v1467_v24, %v1471_v27  ;;  %v1511_v21 = vld [vmem:[%s14108_s5 + $0x2328] sm:$0xff] }
 0x23b   : > { %10171 = vmatpush1.bf16.msra.mxu0 %v13137_v63  ;;  %10704 = vmatpush1.bf16.msra.mxu1 %v13139_v35  ;;  %v13188_v63 = vcombine.high %v1467_v24, %v1471_v27  ;;  %v1474_v35 = vld [vmem:[%s14108_s5 + $0x2200] sm:$0xff] }
 0x23c   : > { %10172 = vmatprep.subr.bf16.mxu0 %v13146_v36  ;;  %10705 = vmatprep.subr.bf16.mxu1 %v13148_v37  ;;  %v1478_v36 = vld [vmem:[%s14108_s5 + $0x2220] sm:$0xff]  ;;  %v1475_v37 = vld [vmem:[%s14108_s5 + $0x2208] sm:$0xff] }
 0x23d   : > { %v13194_v43 = vcombine.high %v1474_v35, %v1478_v36  ;;  %v13193_v50 = vcombine.low %v1474_v35, %v1478_v36  ;;  %v13195_v52 = vcombine.low %v1475_v37, %v1479_v28  ;;  %v1519_v35 = vld [vmem:[%s14108_s5 + $0x2368] sm:$0xff] }
 0x23f   : > { %10173 = vmatpush1.bf16.msra.mxu0 %v13145_v45  ;;  %10706 = vmatpush1.bf16.msra.mxu1 %v13147_v46  ;;  %v13196_v45 = vcombine.high %v1475_v37, %v1479_v28  ;;  %v1482_v46 = vld [vmem:[%s14108_s5 + $0x2240] sm:$0xff] }
 0x240   : > { %10174 = vmatprep.subr.bf16.mxu0 %v13154_v47  ;;  %10707 = vmatprep.subr.bf16.mxu1 %v13156_v48  ;;  %v1486_v47 = vld [vmem:[%s14108_s5 + $0x2260] sm:$0xff]  ;;  %v1483_v48 = vld [vmem:[%s14108_s5 + $0x2248] sm:$0xff] }
 0x241   : > { %v13202_v10 = vcombine.high %v1482_v46, %v1486_v47  ;;  %v13201_v61 = vcombine.low %v1482_v46, %v1486_v47  ;;  %v13203_v62 = vcombine.low %v1483_v48, %v1487_v49  ;;  %v1527_v46 = vld [vmem:[%s14108_s5 + $0x23a8] sm:$0xff] }
 0x243   : > { %10175 = vmatpush1.bf16.msra.mxu0 %v13153_v54  ;;  %10708 = vmatpush1.bf16.msra.mxu1 %v13155_v23  ;;  %v13204_v54 = vcombine.high %v1483_v48, %v1487_v49  ;;  %v1490_v23 = vld [vmem:[%s14108_s5 + $0x2280] sm:$0xff] }
 0x244   : > { %10176 = vmatprep.subr.bf16.mxu0 %v13162_v57  ;;  %10709 = vmatprep.subr.bf16.mxu1 %v13164_v58  ;;  %v1494_v57 = vld [vmem:[%s14108_s5 + $0x22a0] sm:$0xff]  ;;  %v1491_v58 = vld [vmem:[%s14108_s5 + $0x2288] sm:$0xff] }
 0x245   : > { %v13210_v1 = vcombine.high %v1490_v23, %v1494_v57  ;;  %v13209_v11 = vcombine.low %v1490_v23, %v1494_v57  ;;  %v13211_v17 = vcombine.low %v1491_v58, %v1495_v60  ;;  %v1531_v23 = vld [vmem:[%s14108_s5 + $0x23c8] sm:$0xff] }
 0x246   : > { %v1535_v57 = vld [vmem:[%s14108_s5 + $0x23e8] sm:$0xff] }
 0x247   : > { %10177 = vmatpush1.bf16.msra.mxu0 %v13161_v4  ;;  %10710 = vmatpush1.bf16.msra.mxu1 %v13163_v5  ;;  %v13212_v4 = vcombine.high %v1491_v58, %v1495_v60  ;;  %v1498_v5 = vld [vmem:[%s14108_s5 + $0x22c0] sm:$0xff] }
 0x248   : > { %10178 = vmatprep.subr.bf16.mxu0 %v13170_v6  ;;  %10711 = vmatprep.subr.bf16.mxu1 %v13172_v7  ;;  %v1502_v6 = vld [vmem:[%s14108_s5 + $0x22e0] sm:$0xff]  ;;  %v1499_v7 = vld [vmem:[%s14108_s5 + $0x22c8] sm:$0xff] }
 0x249   : > { %v13218_v19 = vcombine.high %v1498_v5, %v1502_v6  ;;  %v13217_v22 = vcombine.low %v1498_v5, %v1502_v6  ;;  %v13219_v24 = vcombine.low %v1499_v7, %v1503_v8  ;;  %v1543_v6 = vld [vmem:[%s14108_s5 + $0x2428] sm:$0xff] }
 0x24b   : > { %10179 = vmatpush1.bf16.msra.mxu0 %v13169_v14  ;;  %10712 = vmatpush1.bf16.msra.mxu1 %v13171_v59  ;;  %v13220_v14 = vcombine.high %v1499_v7, %v1503_v8  ;;  %v1506_v59 = vld [vmem:[%s14108_s5 + $0x2300] sm:$0xff]  ;;  %v13251_v8 = vcombine.low %v1531_v23, %v1535_v57 }
 0x24c   : > { %10180 = vmatprep.subr.bf16.mxu0 %v13178_v18  ;;  %10713 = vmatprep.subr.bf16.mxu1 %v13180_v20  ;;  %v1510_v18 = vld [vmem:[%s14108_s5 + $0x2320] sm:$0xff]  ;;  %v1507_v20 = vld [vmem:[%s14108_s5 + $0x2308] sm:$0xff] }
 0x24d   : > { %v13226_v27 = vcombine.high %v1506_v59, %v1510_v18  ;;  %v13225_v36 = vcombine.low %v1506_v59, %v1510_v18  ;;  %v13227_v37 = vcombine.low %v1507_v20, %v1511_v21  ;;  %v14877_v18 = vpack.c.bf16 %v14786_v3, %v14786_v3  ;;  %v1555_v3 = vld [vmem:[%s14108_s5 + $0x2488] sm:$0xff] }
 0x24f   : > { %10181 = vmatpush1.bf16.msra.mxu0 %v13177_v30  ;;  %10714 = vmatpush1.bf16.msra.mxu1 %v13179_v13  ;;  %v13228_v30 = vcombine.high %v1507_v20, %v1511_v21  ;;  %v1514_v13 = vld [vmem:[%s14108_s5 + $0x2340] sm:$0xff]  ;;  %v1547_v20 = vld [vmem:[%s14108_s5 + $0x2448] sm:$0xff] }
 0x250   : > { %10182 = vmatprep.subr.bf16.mxu0 %v13186_v33  ;;  %10715 = vmatprep.subr.bf16.mxu1 %v13188_v63  ;;  %v1518_v33 = vld [vmem:[%s14108_s5 + $0x2360] sm:$0xff]  ;;  %v1515_v63 = vld [vmem:[%s14108_s5 + $0x2348] sm:$0xff] }
 0x251   : > { %v13234_v28 = vcombine.high %v1514_v13, %v1518_v33  ;;  %v13233_v47 = vcombine.low %v1514_v13, %v1518_v33  ;;  %v13235_v48 = vcombine.low %v1515_v63, %v1519_v35  ;;  %v1551_v21 = vld [vmem:[%s14108_s5 + $0x2468] sm:$0xff]  ;;  %v1554_v13 = vld [vmem:[%s14108_s5 + $0x2480] sm:$0xff] }
 0x252   : > { %v1558_v33 = vld [vmem:[%s14108_s5 + $0x24a0] sm:$0xff] }
 0x253   : > { %10183 = vmatpush1.bf16.msra.mxu0 %v13185_v55  ;;  %10716 = vmatpush1.bf16.msra.mxu1 %v13187_v42  ;;  %v13236_v55 = vcombine.high %v1515_v63, %v1519_v35  ;;  %v1522_v42 = vld [vmem:[%s14108_s5 + $0x2380] sm:$0xff]  ;;  %v1559_v35 = vld [vmem:[%s14108_s5 + $0x24a8] sm:$0xff] }
 0x254   : > { %10184 = vmatprep.subr.bf16.mxu0 %v13194_v43  ;;  %10717 = vmatprep.subr.bf16.mxu1 %v13196_v45  ;;  %v1526_v43 = vld [vmem:[%s14108_s5 + $0x23a0] sm:$0xff]  ;;  %v1523_v45 = vld [vmem:[%s14108_s5 + $0x2388] sm:$0xff] }
 0x255   : > { %v13242_v49 = vcombine.high %v1522_v42, %v1526_v43  ;;  %v13241_v58 = vcombine.low %v1522_v42, %v1526_v43  ;;  %v13243_v60 = vcombine.low %v1523_v45, %v1527_v46  ;;  %v1562_v42 = vld [vmem:[%s14108_s5 + $0x24c0] sm:$0xff] }
 0x256   : > { %v1566_v43 = vld [vmem:[%s14108_s5 + $0x24e0] sm:$0xff] }
 0x257   : > { %10185 = vmatpush1.bf16.msra.mxu0 %v13193_v50  ;;  %10718 = vmatpush1.bf16.msra.mxu1 %v13195_v52  ;;  %v13244_v50 = vcombine.high %v1523_v45, %v1527_v46  ;;  %v1530_v52 = vld [vmem:[%s14108_s5 + $0x23c0] sm:$0xff]  ;;  %v1563_v45 = vld [vmem:[%s14108_s5 + $0x24c8] sm:$0xff] }
 0x258   : > { %10186 = vmatprep.subr.bf16.mxu0 %v13202_v10  ;;  %10719 = vmatprep.subr.bf16.mxu1 %v13204_v54  ;;  %v1534_v10 = vld [vmem:[%s14108_s5 + $0x23e0] sm:$0xff]  ;;  %v295_v54 = vcombine.high %v14780_v56, %v14780_v56  ;;  %v1539_v56 = vld [vmem:[%s14108_s5 + $0x2408] sm:$0xff] }
 0x259   : > { %v13249_v7 = vcombine.low %v1530_v52, %v1534_v10  ;;  %v1567_v46 = vld [vmem:[%s14108_s5 + $0x24e8] sm:$0xff] }
 0x25a   : > { %v14867_v5 = vrot.slane %v295_v54, %v14143_v53  ;;  %v1571_v54 = vld [vmem:[%s14108_s5 + $0x2508] sm:$0xff] }
 0x25b   : > { %10187 = vmatpush1.bf16.msra.mxu0 %v13201_v61  ;;  %10720 = vmatpush1.bf16.msra.mxu1 %v13203_v62  ;;  %v13250_v61 = vcombine.high %v1530_v52, %v1534_v10  ;;  %v13252_v62 = vcombine.high %v1531_v23, %v1535_v57  ;;  %v1570_v52 = vld [vmem:[%s14108_s5 + $0x2500] sm:$0xff]  ;;  %v1575_v23 = vld [vmem:[%s14108_s5 + $0x2528] sm:$0xff]  ;;  %v13281_v57 = vcombine.low %v1562_v42, %v1566_v43 }
 0x25c   : > { %10188 = vmatprep.subr.bf16.mxu0 %v13210_v1  ;;  %10721 = vmatprep.subr.bf16.mxu1 %v13212_v4  ;;  %v1538_v1 = vld [vmem:[%s14108_s5 + $0x2400] sm:$0xff]  ;;  %v311_v59 = vcombine.high %v14867_v5, %v14867_v5 }
 0x25d   : > { %v1542_v4 = vld [vmem:[%s14108_s5 + $0x2420] sm:$0xff] }
 0x25e   : > { %v14883_v63 = vpack.c.bf16 %v311_v59, %v311_v59  ;;  %v1574_v10 = vld [vmem:[%s14108_s5 + $0x2520] sm:$0xff]  ;;  %v1591_v59 = vld [vmem:[%s14108_s5 + $0x25a8] sm:$0xff] }
 0x25f   : > { %10189 = vmatpush1.bf16.msra.mxu0 %v13209_v11  ;;  %10722 = vmatpush1.bf16.msra.mxu1 %v13211_v17  ;;  %v13258_v11 = vcombine.high %v1538_v1, %v1542_v4  ;;  %v13260_v17 = vcombine.high %v1539_v56, %v1543_v6 }
 0x260   : > { %10190 = vmatprep.subr.bf16.mxu0 %v13218_v19  ;;  %10723 = vmatprep.subr.bf16.mxu1 %v13220_v14  ;;  %v1546_v19 = vld [vmem:[%s14108_s5 + $0x2440] sm:$0xff] }
 0x261   : > { %v1550_v14 = vld [vmem:[%s14108_s5 + $0x2460] sm:$0xff] }
 0x263   : > { %10191 = vmatpush1.bf16.msra.mxu0 %v13217_v22  ;;  %10724 = vmatpush1.bf16.msra.mxu1 %v13219_v24  ;;  %v13257_v22 = vcombine.low %v1538_v1, %v1542_v4  ;;  %v13259_v24 = vcombine.low %v1539_v56, %v1543_v6  ;;  %v1582_v1 = vld [vmem:[%s14108_s5 + $0x2560] sm:$0xff]  ;;  %v1579_v4 = vld [vmem:[%s14108_s5 + $0x2548] sm:$0xff]  ;;  %v13289_v6 = vcombine.low %v1570_v52, %v1574_v10 }
 0x264   : > { %10192 = vmatprep.subr.bf16.mxu0 %v13226_v27  ;;  %10725 = vmatprep.subr.bf16.mxu1 %v13228_v30  ;;  %v13266_v27 = vcombine.high %v1546_v19, %v1550_v14  ;;  %v13268_v30 = vcombine.high %v1547_v20, %v1551_v21  ;;  %v1583_v56 = vld [vmem:[%s14108_s5 + $0x2568] sm:$0xff] }
 0x267   : > { %10193 = vmatpush1.bf16.msra.mxu0 %v13225_v36  ;;  %10726 = vmatpush1.bf16.msra.mxu1 %v13227_v37  ;;  %v13265_v36 = vcombine.low %v1546_v19, %v1550_v14  ;;  %v13267_v37 = vcombine.low %v1547_v20, %v1551_v21  ;;  %v1590_v19 = vld [vmem:[%s14108_s5 + $0x25a0] sm:$0xff]  ;;  %v1587_v14 = vld [vmem:[%s14108_s5 + $0x2588] sm:$0xff]  ;;  %v13299_v21 = vcombine.low %v1579_v4, %v1583_v56 }
 0x268   : > { %10194 = vmatprep.subr.bf16.mxu0 %v13234_v28  ;;  %10727 = vmatprep.subr.bf16.mxu1 %v13236_v55  ;;  %v13274_v28 = vcombine.high %v1554_v13, %v1558_v33  ;;  %v13276_v55 = vcombine.high %v1555_v3, %v1559_v35 }
 0x26b   : > { %10195 = vmatpush1.bf16.msra.mxu0 %v13233_v47  ;;  %10728 = vmatpush1.bf16.msra.mxu1 %v13235_v48  ;;  %v13273_v47 = vcombine.low %v1554_v13, %v1558_v33  ;;  %v13275_v48 = vcombine.low %v1555_v3, %v1559_v35  ;;  %v1595_v13 = vld [vmem:[%s14108_s5 + $0x25c8] sm:$0xff]  ;;  %v13307_v35 = vcombine.low %v1587_v14, %v1591_v59 }
 0x26c   : > { %10196 = vmatprep.subr.bf16.mxu0 %v13242_v49  ;;  %10729 = vmatprep.subr.bf16.mxu1 %v13244_v50  ;;  %v13282_v49 = vcombine.high %v1562_v42, %v1566_v43  ;;  %v13284_v50 = vcombine.high %v1563_v45, %v1567_v46  ;;  %v1599_v33 = vld [vmem:[%s14108_s5 + $0x25e8] sm:$0xff] }
 0x26d   : > { %v1603_v42 = vld [vmem:[%s14108_s5 + $0x2608] sm:$0xff] }
 0x26e   : > { %v1607_v43 = vld [vmem:[%s14108_s5 + $0x2628] sm:$0xff] }
 0x26f   : > { %10197 = vmatpush1.bf16.msra.mxu0 %v13241_v58  ;;  %10730 = vmatpush1.bf16.msra.mxu1 %v13243_v60  ;;  %v13283_v58 = vcombine.low %v1563_v45, %v1567_v46  ;;  %v13290_v60 = vcombine.high %v1570_v52, %v1574_v10  ;;  %v13315_v46 = vcombine.low %v1595_v13, %v1599_v33  ;;  %v1611_v52 = vld [vmem:[%s14108_s5 + $0x2648] sm:$0xff] }
 0x270   : > { %10198 = vmatprep.subr.bf16.mxu0 %v13250_v61  ;;  %10731 = vmatprep.subr.bf16.mxu1 %v13252_v62  ;;  %v13292_v61 = vcombine.high %v1571_v54, %v1575_v23  ;;  %v1578_v62 = vld [vmem:[%s14108_s5 + $0x2540] sm:$0xff]  ;;  %v1615_v10 = vld [vmem:[%s14108_s5 + $0x2668] sm:$0xff] }
 0x271   : > { %v13297_v20 = vcombine.low %v1578_v62, %v1582_v1 }
 0x273   : > { %10199 = vmatpush1.bf16.msra.mxu0 %v13249_v7  ;;  %10732 = vmatpush1.bf16.msra.mxu1 %v13251_v8  ;;  %v13291_v7 = vcombine.low %v1571_v54, %v1575_v23  ;;  %v13298_v8 = vcombine.high %v1578_v62, %v1582_v1  ;;  %v13323_v23 = vcombine.low %v1603_v42, %v1607_v43  ;;  %v1619_v62 = vld [vmem:[%s14108_s5 + $0x2688] sm:$0xff] }
 0x274   : > { %10209 = vmatprep.subr.bf16.mxu0 %v13258_v11  ;;  %10742 = vmatprep.subr.bf16.mxu1 %v13260_v17  ;;  %v13300_v11 = vcombine.high %v1579_v4, %v1583_v56  ;;  %v1586_v17 = vld [vmem:[%s14108_s5 + $0x2580] sm:$0xff]  ;;  %v1623_v1 = vld [vmem:[%s14108_s5 + $0x26a8] sm:$0xff]  ;;  %v13331_v56 = vcombine.low %v1611_v52, %v1615_v10 }
 0x275   : > { %v13305_v3 = vcombine.low %v1586_v17, %v1590_v19 }
 0x276   : > { %10201 = vmatmul.mubr.bf16.vlgmr.msra.gmra.mrb[0].mxu0 %v14877_v18  ;;  %10734 = vmatmul.mubr.bf16.vlgmr.msra.gmra.mrb[0].mxu1 %v14877_v18 }
 0x277   : > { %10210 = vmatpush1.bf16.msra.mxu0 %v13257_v22  ;;  %10743 = vmatpush1.bf16.msra.mxu1 %v13259_v24  ;;  %v13306_v22 = vcombine.high %v1586_v17, %v1590_v19  ;;  %v13308_v24 = vcombine.high %v1587_v14, %v1591_v59  ;;  %v1627_v17 = vld [vmem:[%s14108_s5 + $0x26c8] sm:$0xff]  ;;  %v13339_v59 = vcombine.low %v1619_v62, %v1623_v1 }
 0x278   : > { %10211 = vmatprep.subr.bf16.mxu0 %v13266_v27  ;;  %10744 = vmatprep.subr.bf16.mxu1 %v13268_v30  ;;  %v1594_v27 = vld [vmem:[%s14108_s5 + $0x25c0] sm:$0xff]  ;;  %v1631_v19 = vld [vmem:[%s14108_s5 + $0x26e8] sm:$0xff] }
 0x279   : > { %10241 = vmatprep.mubr.bf16.mxu0 %v14883_v63  ;;  %10774 = vmatprep.mubr.bf16.mxu1 %v14883_v63  ;;  %v1598_v30 = vld [vmem:[%s14108_s5 + $0x25e0] sm:$0xff] }
 0x27a   : > { %v13313_v45 = vcombine.low %v1594_v27, %v1598_v30 }
 0x27b   : > { %10212 = vmatpush1.bf16.msra.mxu0 %v13265_v36  ;;  %10745 = vmatpush1.bf16.msra.mxu1 %v13267_v37  ;;  %v13314_v36 = vcombine.high %v1594_v27, %v1598_v30  ;;  %v13316_v37 = vcombine.high %v1595_v13, %v1599_v33  ;;  %v1635_v27 = vld [vmem:[%s14108_s5 + $0x2708] sm:$0xff]  ;;  %v13347_v33 = vcombine.low %v1627_v17, %v1631_v19 }
 0x27c   : > { %10213 = vmatprep.subr.bf16.mxu0 %v13274_v28  ;;  %10746 = vmatprep.subr.bf16.mxu1 %v13276_v55  ;;  %v1602_v28 = vld [vmem:[%s14108_s5 + $0x2600] sm:$0xff]  ;;  %v1639_v30 = vld [vmem:[%s14108_s5 + $0x2728] sm:$0xff] }
 0x27d   : > { %v1606_v55 = vld [vmem:[%s14108_s5 + $0x2620] sm:$0xff] }
 0x27e   : > { %v13321_v54 = vcombine.low %v1602_v28, %v1606_v55 }
 0x27f   : > { %10214 = vmatpush1.bf16.msra.mxu0 %v13273_v47  ;;  %10747 = vmatpush1.bf16.msra.mxu1 %v13275_v48  ;;  %v13322_v47 = vcombine.high %v1602_v28, %v1606_v55  ;;  %v13324_v48 = vcombine.high %v1603_v42, %v1607_v43  ;;  %v1643_v28 = vld [vmem:[%s14108_s5 + $0x2748] sm:$0xff]  ;;  %v13355_v43 = vcombine.low %v1635_v27, %v1639_v30 }
 0x280   : > { %10215 = vmatprep.subr.bf16.mxu0 %v13282_v49  ;;  %10748 = vmatprep.subr.bf16.mxu1 %v13284_v50  ;;  %v1610_v49 = vld [vmem:[%s14108_s5 + $0x2640] sm:$0xff]  ;;  %v1647_v55 = vld [vmem:[%s14108_s5 + $0x2768] sm:$0xff] }
 0x281   : > { %v1614_v50 = vld [vmem:[%s14108_s5 + $0x2660] sm:$0xff] }
 0x282   : > { %v13329_v4 = vcombine.low %v1610_v49, %v1614_v50 }
 0x283   : > { %10216 = vmatpush1.bf16.msra.mxu0 %v13281_v57  ;;  %10749 = vmatpush1.bf16.msra.mxu1 %v13283_v58  ;;  %v13330_v57 = vcombine.high %v1610_v49, %v1614_v50  ;;  %v13332_v58 = vcombine.high %v1611_v52, %v1615_v10  ;;  %v1651_v49 = vld [vmem:[%s14108_s5 + $0x2788] sm:$0xff]  ;;  %v13363_v10 = vcombine.low %v1643_v28, %v1647_v55 }
 0x284   : > { %10217 = vmatprep.subr.bf16.mxu0 %v13290_v60  ;;  %10750 = vmatprep.subr.bf16.mxu1 %v13292_v61  ;;  %v1618_v60 = vld [vmem:[%s14108_s5 + $0x2680] sm:$0xff]  ;;  %v1655_v50 = vld [vmem:[%s14108_s5 + $0x27a8] sm:$0xff] }
 0x285   : > { %v1622_v61 = vld [vmem:[%s14108_s5 + $0x26a0] sm:$0xff] }
 0x286   : > { %v13337_v14 = vcombine.low %v1618_v60, %v1622_v61 }
 0x287   : > { %10218 = vmatpush1.bf16.msra.mxu0 %v13289_v6  ;;  %10751 = vmatpush1.bf16.msra.mxu1 %v13291_v7  ;;  %v13338_v6 = vcombine.high %v1618_v60, %v1622_v61  ;;  %v13340_v7 = vcombine.high %v1619_v62, %v1623_v1  ;;  %v1659_v60 = vld [vmem:[%s14108_s5 + $0x27c8] sm:$0xff]  ;;  %v14946_v62 = vld [vmem:[%s16026_s0 + $0x28] sm:$0xff] }
 0x288   : > { %10219 = vmatprep.subr.bf16.mxu0 %v13298_v8  ;;  %10752 = vmatprep.subr.bf16.mxu1 %v13300_v11  ;;  %v1626_v8 = vld [vmem:[%s14108_s5 + $0x26c0] sm:$0xff]  ;;  %v1663_v61 = vld [vmem:[%s14108_s5 + $0x27e8] sm:$0xff] }
 0x289   : > { %v1630_v11 = vld [vmem:[%s14108_s5 + $0x26e0] sm:$0xff] }
 0x28a   : > { %v13345_v13 = vcombine.low %v1626_v8, %v1630_v11 }
 0x28b   : > { %10220 = vmatpush1.bf16.msra.mxu0 %v13297_v20  ;;  %10753 = vmatpush1.bf16.msra.mxu1 %v13299_v21  ;;  %v13346_v20 = vcombine.high %v1626_v8, %v1630_v11  ;;  %v13348_v21 = vcombine.high %v1627_v17, %v1631_v19  ;;  %v1670_v8 = vld [vmem:[%s14108_s5 + $0x2820] sm:$0xff]  ;;  %v14952_v11 = vrot.slane %v14946_v62, %v14143_v53  ;;  %v1667_v17 = vld [vmem:[%s14108_s5 + $0x2808] sm:$0xff] }
 0x28c   : > { %10221 = vmatprep.subr.bf16.mxu0 %v13306_v22  ;;  %10754 = vmatprep.subr.bf16.mxu1 %v13308_v24  ;;  %v1634_v22 = vld [vmem:[%s14108_s5 + $0x2700] sm:$0xff]  ;;  %v1671_v19 = vld [vmem:[%s14108_s5 + $0x2828] sm:$0xff] }
 0x28d   : > { %v1638_v24 = vld [vmem:[%s14108_s5 + $0x2720] sm:$0xff] }
 0x28e   : > { %v13353_v42 = vcombine.low %v1634_v22, %v1638_v24 }
 0x28f   : > { %10222 = vmatpush1.bf16.msra.mxu0 %v13305_v3  ;;  %10755 = vmatpush1.bf16.msra.mxu1 %v13307_v35  ;;  %v13354_v3 = vcombine.high %v1634_v22, %v1638_v24  ;;  %v13356_v35 = vcombine.high %v1635_v27, %v1639_v30  ;;  %v1674_v22 = vld [vmem:[%s14108_s5 + $0x2840] sm:$0xff]  ;;  %v327_v27 = vcombine.high %v14952_v11, %v14952_v11 }
 0x290   : > { %10223 = vmatprep.subr.bf16.mxu0 %v13314_v36  ;;  %10756 = vmatprep.subr.bf16.mxu1 %v13316_v37  ;;  %v1642_v36 = vld [vmem:[%s14108_s5 + $0x2740] sm:$0xff]  ;;  %v14962_v30 = vpack.c.bf16 %v14867_v5, %v14867_v5  ;;  %v1683_v5 = vld [vmem:[%s14108_s5 + $0x2888] sm:$0xff] }
 0x291   : > { %v1646_v37 = vld [vmem:[%s14108_s5 + $0x2760] sm:$0xff] }
 0x292   : > { %v13361_v52 = vcombine.low %v1642_v36, %v1646_v37  ;;  %v1678_v24 = vld [vmem:[%s14108_s5 + $0x2860] sm:$0xff] }
 0x293   : > { %10224 = vmatpush1.bf16.msra.mxu0 %v13313_v45  ;;  %10757 = vmatpush1.bf16.msra.mxu1 %v13315_v46  ;;  %v13362_v45 = vcombine.high %v1642_v36, %v1646_v37  ;;  %v13364_v46 = vcombine.high %v1643_v28, %v1647_v55  ;;  %v13394_v36 = vcombine.high %v1674_v22, %v1678_v24  ;;  %v1682_v28 = vld [vmem:[%s14108_s5 + $0x2880] sm:$0xff] }
 0x294   : > { %10225 = vmatprep.subr.bf16.mxu0 %v13322_v47  ;;  %10758 = vmatprep.subr.bf16.mxu1 %v13324_v48  ;;  %v1650_v47 = vld [vmem:[%s14108_s5 + $0x2780] sm:$0xff] }
 0x295   : > { %v1654_v48 = vld [vmem:[%s14108_s5 + $0x27a0] sm:$0xff] }
 0x296   : > { %v13369_v1 = vcombine.low %v1650_v47, %v1654_v48  ;;  %v1686_v55 = vld [vmem:[%s14108_s5 + $0x28a0] sm:$0xff] }
 0x297   : > { %10226 = vmatpush1.bf16.msra.mxu0 %v13321_v54  ;;  %10759 = vmatpush1.bf16.msra.mxu1 %v13323_v23  ;;  %v13370_v54 = vcombine.high %v1650_v47, %v1654_v48  ;;  %v13372_v23 = vcombine.high %v1651_v49, %v1655_v50  ;;  %v13402_v47 = vcombine.high %v1682_v28, %v1686_v55 }
 0x298   : > { %10227 = vmatprep.subr.bf16.mxu0 %v13330_v57  ;;  %10760 = vmatprep.subr.bf16.mxu1 %v13332_v58  ;;  %v1658_v57 = vld [vmem:[%s14108_s5 + $0x27c0] sm:$0xff] }
 0x299   : > { %v1662_v58 = vld [vmem:[%s14108_s5 + $0x27e0] sm:$0xff] }
 0x29b   : > { %10228 = vmatpush1.bf16.msra.mxu0 %v13329_v4  ;;  %10761 = vmatpush1.bf16.msra.mxu1 %v13331_v56  ;;  %v13371_v4 = vcombine.low %v1651_v49, %v1655_v50  ;;  %v13378_v56 = vcombine.high %v1658_v57, %v1662_v58  ;;  %v1690_v49 = vld [vmem:[%s14108_s5 + $0x28c0] sm:$0xff] }
 0x29c   : > { %10229 = vmatprep.subr.bf16.mxu0 %v13338_v6  ;;  %10762 = vmatprep.subr.bf16.mxu1 %v13340_v7  ;;  %v13380_v6 = vcombine.high %v1659_v60, %v1663_v61  ;;  %v1666_v7 = vld [vmem:[%s14108_s5 + $0x2800] sm:$0xff] }
 0x29d   : > { %v1694_v50 = vld [vmem:[%s14108_s5 + $0x28e0] sm:$0xff] }
 0x29f   : > { %10230 = vmatpush1.bf16.msra.mxu0 %v13337_v14  ;;  %10763 = vmatpush1.bf16.msra.mxu1 %v13339_v59  ;;  %v13377_v14 = vcombine.low %v1658_v57, %v1662_v58  ;;  %v13379_v59 = vcombine.low %v1659_v60, %v1663_v61  ;;  %v13410_v57 = vcombine.high %v1690_v49, %v1694_v50  ;;  %v1698_v60 = vld [vmem:[%s14108_s5 + $0x2900] sm:$0xff] }
 0x2a0   : > { %10231 = vmatprep.subr.bf16.mxu0 %v13346_v20  ;;  %10764 = vmatprep.subr.bf16.mxu1 %v13348_v21  ;;  %v13386_v20 = vcombine.high %v1666_v7, %v1670_v8  ;;  %v13388_v21 = vcombine.high %v1667_v17, %v1671_v19  ;;  %v1702_v61 = vld [vmem:[%s14108_s5 + $0x2920] sm:$0xff] }
 0x2a3   : > { %10232 = vmatpush1.bf16.msra.mxu0 %v13345_v13  ;;  %10765 = vmatpush1.bf16.msra.mxu1 %v13347_v33  ;;  %v1675_v13 = vld [vmem:[%s14108_s5 + $0x2848] sm:$0xff] }
 0x2a4   : > { %10233 = vmatprep.subr.bf16.mxu0 %v13354_v3  ;;  %10766 = vmatprep.subr.bf16.mxu1 %v13356_v35  ;;  %v1679_v33 = vld [vmem:[%s14108_s5 + $0x2868] sm:$0xff]  ;;  %v13385_v3 = vcombine.low %v1666_v7, %v1670_v8  ;;  %v13387_v35 = vcombine.low %v1667_v17, %v1671_v19  ;;  %v13418_v7 = vcombine.high %v1698_v60, %v1702_v61  ;;  %v1706_v17 = vld [vmem:[%s14108_s5 + $0x2940] sm:$0xff] }
 0x2a5   : > { %v13396_v37 = vcombine.high %v1675_v13, %v1679_v33  ;;  %v1710_v19 = vld [vmem:[%s14108_s5 + $0x2960] sm:$0xff] }
 0x2a7   : > { %10234 = vmatpush1.bf16.msra.mxu0 %v13353_v42  ;;  %10767 = vmatpush1.bf16.msra.mxu1 %v13355_v43  ;;  %v14968_v42 = vpack.c.bf16 %v327_v27, %v327_v27  ;;  %v1687_v43 = vld [vmem:[%s14108_s5 + $0x28a8] sm:$0xff]  ;;  %v1714_v27 = vld [vmem:[%s14108_s5 + $0x2980] sm:$0xff] }
 0x2a8   : > { %10235 = vmatprep.subr.bf16.mxu0 %v13362_v45  ;;  %10768 = vmatprep.subr.bf16.mxu1 %v13364_v46  ;;  %v13393_v45 = vcombine.low %v1674_v22, %v1678_v24  ;;  %v13395_v46 = vcombine.low %v1675_v13, %v1679_v33  ;;  %v13404_v48 = vcombine.high %v1683_v5, %v1687_v43  ;;  %v1718_v13 = vld [vmem:[%s14108_s5 + $0x29a0] sm:$0xff]  ;;  %v1715_v33 = vld [vmem:[%s14108_s5 + $0x2988] sm:$0xff] }
 0x2a9   : > { %v13426_v22 = vcombine.high %v1706_v17, %v1710_v19 }
 0x2ab   : > { %10236 = vmatpush1.bf16.msra.mxu0 %v13361_v52  ;;  %10769 = vmatpush1.bf16.msra.mxu1 %v13363_v10  ;;  %v1691_v52 = vld [vmem:[%s14108_s5 + $0x28c8] sm:$0xff] }
 0x2ac   : > { %10237 = vmatprep.subr.bf16.mxu0 %v13370_v54  ;;  %10770 = vmatprep.subr.bf16.mxu1 %v13372_v23  ;;  %v1695_v10 = vld [vmem:[%s14108_s5 + $0x28e8] sm:$0xff]  ;;  %v13401_v54 = vcombine.low %v1682_v28, %v1686_v55  ;;  %v13403_v23 = vcombine.low %v1683_v5, %v1687_v43  ;;  %v1722_v55 = vld [vmem:[%s14108_s5 + $0x29c0] sm:$0xff] }
 0x2ad   : > { %v13412_v58 = vcombine.high %v1691_v52, %v1695_v10  ;;  %v1726_v5 = vld [vmem:[%s14108_s5 + $0x29e0] sm:$0xff]  ;;  %v1723_v43 = vld [vmem:[%s14108_s5 + $0x29c8] sm:$0xff] }
 0x2af   : > { %10238 = vmatpush1.bf16.msra.mxu0 %v13369_v1  ;;  %10771 = vmatpush1.bf16.msra.mxu1 %v13371_v4  ;;  %v1699_v1 = vld [vmem:[%s14108_s5 + $0x2908] sm:$0xff] }
 0x2b0   : > { %10239 = vmatprep.subr.bf16.mxu0 %v13378_v56  ;;  %10772 = vmatprep.subr.bf16.mxu1 %v13380_v6  ;;  %v1703_v4 = vld [vmem:[%s14108_s5 + $0x2928] sm:$0xff]  ;;  %v13409_v56 = vcombine.low %v1690_v49, %v1694_v50  ;;  %v13411_v6 = vcombine.low %v1691_v52, %v1695_v10  ;;  %v1730_v50 = vld [vmem:[%s14108_s5 + $0x2a00] sm:$0xff] }
 0x2b1   : > { %v13420_v8 = vcombine.high %v1699_v1, %v1703_v4  ;;  %v1734_v52 = vld [vmem:[%s14108_s5 + $0x2a20] sm:$0xff]  ;;  %v1731_v10 = vld [vmem:[%s14108_s5 + $0x2a08] sm:$0xff] }
 0x2b3   : > { %10240 = vmatpush1.bf16.msra.mxu0 %v13377_v14  ;;  %10773 = vmatpush1.bf16.msra.mxu1 %v13379_v59  ;;  %v1707_v14 = vld [vmem:[%s14108_s5 + $0x2948] sm:$0xff] }
 0x2b4   : > { %10250 = vmatprep.subr.bf16.mxu0 %v13386_v20  ;;  %10783 = vmatprep.subr.bf16.mxu1 %v13388_v21  ;;  %v1711_v59 = vld [vmem:[%s14108_s5 + $0x2968] sm:$0xff]  ;;  %v13417_v20 = vcombine.low %v1698_v60, %v1702_v61  ;;  %v13419_v21 = vcombine.low %v1699_v1, %v1703_v4  ;;  %v1738_v61 = vld [vmem:[%s14108_s5 + $0x2a40] sm:$0xff] }
 0x2b5   : > { %v13428_v24 = vcombine.high %v1707_v14, %v1711_v59  ;;  %v1742_v1 = vld [vmem:[%s14108_s5 + $0x2a60] sm:$0xff]  ;;  %v1739_v4 = vld [vmem:[%s14108_s5 + $0x2a48] sm:$0xff] }
 0x2b6   : > { %10242 = vmatmul.mubr.bf16.vlgmr.msra.gmra.mrb[0].mxu0 %v14962_v30  ;;  %10775 = vmatmul.mubr.bf16.vlgmr.msra.gmra.mrb[0].mxu1 %v14962_v30 }
 0x2b7   : > { %10251 = vmatpush1.bf16.msra.mxu0 %v13385_v3  ;;  %10784 = vmatpush1.bf16.msra.mxu1 %v13387_v35  ;;  %v1719_v3 = vld [vmem:[%s14108_s5 + $0x29a8] sm:$0xff]  ;;  %v13425_v35 = vcombine.low %v1706_v17, %v1710_v19  ;;  %v1746_v19 = vld [vmem:[%s14108_s5 + $0x2a80] sm:$0xff] }
 0x2b8   : > { %10252 = vmatprep.subr.bf16.mxu0 %v13394_v36  ;;  %10785 = vmatprep.subr.bf16.mxu1 %v13396_v37  ;;  %v13427_v36 = vcombine.low %v1707_v14, %v1711_v59  ;;  %v13434_v37 = vcombine.high %v1714_v27, %v1718_v13  ;;  %v13436_v28 = vcombine.high %v1715_v33, %v1719_v3  ;;  %v1750_v14 = vld [vmem:[%s14108_s5 + $0x2aa0] sm:$0xff]  ;;  %v1747_v59 = vld [vmem:[%s14108_s5 + $0x2a88] sm:$0xff] }
 0x2b9   : > { %10282 = vmatprep.mubr.bf16.mxu0 %v14968_v42  ;;  %10815 = vmatprep.mubr.bf16.mxu1 %v14968_v42 }
 0x2bb   : > { %10253 = vmatpush1.bf16.msra.mxu0 %v13393_v45  ;;  %10786 = vmatpush1.bf16.msra.mxu1 %v13395_v46  ;;  %v1727_v45 = vld [vmem:[%s14108_s5 + $0x29e8] sm:$0xff]  ;;  %v13433_v46 = vcombine.low %v1714_v27, %v1718_v13  ;;  %v1754_v13 = vld [vmem:[%s14108_s5 + $0x2ac0] sm:$0xff] }
 0x2bc   : > { %10254 = vmatprep.subr.bf16.mxu0 %v13402_v47  ;;  %10787 = vmatprep.subr.bf16.mxu1 %v13404_v48  ;;  %v13435_v47 = vcombine.low %v1715_v33, %v1719_v3  ;;  %v13442_v48 = vcombine.high %v1722_v55, %v1726_v5  ;;  %v13444_v49 = vcombine.high %v1723_v43, %v1727_v45  ;;  %v1758_v33 = vld [vmem:[%s14108_s5 + $0x2ae0] sm:$0xff]  ;;  %v1755_v3 = vld [vmem:[%s14108_s5 + $0x2ac8] sm:$0xff] }
 0x2bf   : > { %10255 = vmatpush1.bf16.msra.mxu0 %v13401_v54  ;;  %10788 = vmatpush1.bf16.msra.mxu1 %v13403_v23  ;;  %v1735_v54 = vld [vmem:[%s14108_s5 + $0x2a28] sm:$0xff]  ;;  %v13441_v23 = vcombine.low %v1722_v55, %v1726_v5  ;;  %v1762_v5 = vld [vmem:[%s14108_s5 + $0x2b00] sm:$0xff] }
 0x2c0   : > { %10256 = vmatprep.subr.bf16.mxu0 %v13410_v57  ;;  %10789 = vmatprep.subr.bf16.mxu1 %v13412_v58  ;;  %v13443_v57 = vcombine.low %v1723_v43, %v1727_v45  ;;  %v13450_v58 = vcombine.high %v1730_v50, %v1734_v52  ;;  %v13452_v60 = vcombine.high %v1731_v10, %v1735_v54  ;;  %v1766_v43 = vld [vmem:[%s14108_s5 + $0x2b20] sm:$0xff]  ;;  %v1763_v45 = vld [vmem:[%s14108_s5 + $0x2b08] sm:$0xff] }
 0x2c3   : > { %10257 = vmatpush1.bf16.msra.mxu0 %v13409_v56  ;;  %10790 = vmatpush1.bf16.msra.mxu1 %v13411_v6  ;;  %v1743_v56 = vld [vmem:[%s14108_s5 + $0x2a68] sm:$0xff]  ;;  %v13449_v6 = vcombine.low %v1730_v50, %v1734_v52  ;;  %v1770_v52 = vld [vmem:[%s14108_s5 + $0x2b40] sm:$0xff] }
 0x2c4   : > { %10258 = vmatprep.subr.bf16.mxu0 %v13418_v7  ;;  %10791 = vmatprep.subr.bf16.mxu1 %v13420_v8  ;;  %v13451_v7 = vcombine.low %v1731_v10, %v1735_v54  ;;  %v13458_v8 = vcombine.high %v1738_v61, %v1742_v1  ;;  %v13460_v17 = vcombine.high %v1739_v4, %v1743_v56  ;;  %v1774_v10 = vld [vmem:[%s14108_s5 + $0x2b60] sm:$0xff]  ;;  %v1771_v54 = vld [vmem:[%s14108_s5 + $0x2b48] sm:$0xff] }
 0x2c7   : > { %10259 = vmatpush1.bf16.msra.mxu0 %v13417_v20  ;;  %10792 = vmatpush1.bf16.msra.mxu1 %v13419_v21  ;;  %v1751_v20 = vld [vmem:[%s14108_s5 + $0x2aa8] sm:$0xff]  ;;  %v13457_v21 = vcombine.low %v1738_v61, %v1742_v1  ;;  %v1778_v1 = vld [vmem:[%s14108_s5 + $0x2b80] sm:$0xff] }
 0x2c8   : > { %10260 = vmatprep.subr.bf16.mxu0 %v13426_v22  ;;  %10793 = vmatprep.subr.bf16.mxu1 %v13428_v24  ;;  %v13459_v22 = vcombine.low %v1739_v4, %v1743_v56  ;;  %v13466_v24 = vcombine.high %v1746_v19, %v1750_v14  ;;  %v13468_v27 = vcombine.high %v1747_v59, %v1751_v20  ;;  %v1782_v4 = vld [vmem:[%s14108_s5 + $0x2ba0] sm:$0xff]  ;;  %v1779_v56 = vld [vmem:[%s14108_s5 + $0x2b88] sm:$0xff] }
 0x2cb   : > { %10261 = vmatpush1.bf16.msra.mxu0 %v13425_v35  ;;  %10794 = vmatpush1.bf16.msra.mxu1 %v13427_v36  ;;  %v1759_v35 = vld [vmem:[%s14108_s5 + $0x2ae8] sm:$0xff]  ;;  %v13465_v36 = vcombine.low %v1746_v19, %v1750_v14  ;;  %v1786_v14 = vld [vmem:[%s14108_s5 + $0x2bc0] sm:$0xff] }
 0x2cc   : > { %10262 = vmatprep.subr.bf16.mxu0 %v13434_v37  ;;  %10795 = vmatprep.subr.bf16.mxu1 %v13436_v28  ;;  %v13467_v37 = vcombine.low %v1747_v59, %v1751_v20  ;;  %v13474_v28 = vcombine.high %v1754_v13, %v1758_v33  ;;  %v13476_v55 = vcombine.high %v1755_v3, %v1759_v35  ;;  %v1790_v59 = vld [vmem:[%s14108_s5 + $0x2be0] sm:$0xff] }
 0x2cd   : > { %v312_v20 = vcombine.high %v14946_v62, %v14946_v62  ;;  %v1795_v62 = vld [vmem:[%s14108_s5 + $0x2c08] sm:$0xff] }
 0x2cf   : > { %10263 = vmatpush1.bf16.msra.mxu0 %v13433_v46  ;;  %10796 = vmatpush1.bf16.msra.mxu1 %v13435_v47  ;;  %v1767_v46 = vld [vmem:[%s14108_s5 + $0x2b28] sm:$0xff]  ;;  %v13473_v47 = vcombine.low %v1754_v13, %v1758_v33  ;;  %v13506_v13 = vcombine.high %v1786_v14, %v1790_v59 }
 0x2d0   : > { %10264 = vmatprep.subr.bf16.mxu0 %v13442_v48  ;;  %10797 = vmatprep.subr.bf16.mxu1 %v13444_v49  ;;  %v13475_v48 = vcombine.low %v1755_v3, %v1759_v35  ;;  %v13482_v49 = vcombine.high %v1762_v5, %v1766_v43  ;;  %v13484_v50 = vcombine.high %v1763_v45, %v1767_v46  ;;  %v1794_v3 = vld [vmem:[%s14108_s5 + $0x2c00] sm:$0xff] }
 0x2d1   : > { %v1798_v35 = vld [vmem:[%s14108_s5 + $0x2c20] sm:$0xff] }
 0x2d3   : > { %10265 = vmatpush1.bf16.msra.mxu0 %v13441_v23  ;;  %10798 = vmatpush1.bf16.msra.mxu1 %v13443_v57  ;;  %v1775_v23 = vld [vmem:[%s14108_s5 + $0x2b68] sm:$0xff]  ;;  %v13481_v57 = vcombine.low %v1762_v5, %v1766_v43  ;;  %v13514_v5 = vcombine.high %v1794_v3, %v1798_v35 }
 0x2d4   : > { %10266 = vmatprep.subr.bf16.mxu0 %v13450_v58  ;;  %10799 = vmatprep.subr.bf16.mxu1 %v13452_v60  ;;  %v13483_v58 = vcombine.low %v1763_v45, %v1767_v46  ;;  %v13490_v60 = vcombine.high %v1770_v52, %v1774_v10  ;;  %v13492_v61 = vcombine.high %v1771_v54, %v1775_v23  ;;  %v1802_v45 = vld [vmem:[%s14108_s5 + $0x2c40] sm:$0xff] }
 0x2d5   : > { %v1806_v46 = vld [vmem:[%s14108_s5 + $0x2c60] sm:$0xff] }
 0x2d7   : > { %10267 = vmatpush1.bf16.msra.mxu0 %v13449_v6  ;;  %10800 = vmatpush1.bf16.msra.mxu1 %v13451_v7  ;;  %v1783_v6 = vld [vmem:[%s14108_s5 + $0x2ba8] sm:$0xff]  ;;  %v13489_v7 = vcombine.low %v1770_v52, %v1774_v10  ;;  %v13513_v52 = vcombine.low %v1794_v3, %v1798_v35 }
 0x2d8   : > { %10268 = vmatprep.subr.bf16.mxu0 %v13458_v8  ;;  %10801 = vmatprep.subr.bf16.mxu1 %v13460_v17  ;;  %v13491_v8 = vcombine.low %v1771_v54, %v1775_v23  ;;  %v13498_v17 = vcombine.high %v1778_v1, %v1782_v4  ;;  %v13500_v19 = vcombine.high %v1779_v56, %v1783_v6 }
 0x2d9   : > { %v13522_v54 = vcombine.high %v1802_v45, %v1806_v46 }
 0x2db   : > { %10269 = vmatpush1.bf16.msra.mxu0 %v13457_v21  ;;  %10802 = vmatpush1.bf16.msra.mxu1 %v13459_v22  ;;  %v1787_v21 = vld [vmem:[%s14108_s5 + $0x2bc8] sm:$0xff] }
 0x2dc   : > { %10270 = vmatprep.subr.bf16.mxu0 %v13466_v24  ;;  %10803 = vmatprep.subr.bf16.mxu1 %v13468_v27  ;;  %v1791_v22 = vld [vmem:[%s14108_s5 + $0x2be8] sm:$0xff]  ;;  %v13497_v24 = vcombine.low %v1778_v1, %v1782_v4  ;;  %v13499_v27 = vcombine.low %v1779_v56, %v1783_v6  ;;  %v13521_v1 = vcombine.low %v1802_v45, %v1806_v46 }
 0x2dd   : > { %v13508_v33 = vcombine.high %v1787_v21, %v1791_v22 }
 0x2df   : > { %10271 = vmatpush1.bf16.msra.mxu0 %v13465_v36  ;;  %10804 = vmatpush1.bf16.msra.mxu1 %v13467_v37  ;;  %v15033_v36 = vrot.slane %v312_v20, %v14143_v53  ;;  %v1799_v37 = vld [vmem:[%s14108_s5 + $0x2c28] sm:$0xff] }
 0x2e0   : > { %10272 = vmatprep.subr.bf16.mxu0 %v13474_v28  ;;  %10805 = vmatprep.subr.bf16.mxu1 %v13476_v55  ;;  %v13505_v28 = vcombine.low %v1786_v14, %v1790_v59  ;;  %v13507_v55 = vcombine.low %v1787_v21, %v1791_v22  ;;  %v13516_v43 = vcombine.high %v1795_v62, %v1799_v37  ;;  %v1826_v22 = vld [vmem:[%s14108_s5 + $0x2d00] sm:$0xff] }
 0x2e1   : > { %v13515_v10 = vcombine.low %v1795_v62, %v1799_v37  ;;  %v1834_v37 = vld [vmem:[%s14108_s5 + $0x2d40] sm:$0xff] }
 0x2e3   : > { %10273 = vmatpush1.bf16.msra.mxu0 %v13473_v47  ;;  %10806 = vmatpush1.bf16.msra.mxu1 %v13475_v48  ;;  %v328_v47 = vcombine.high %v15033_v36, %v15033_v36  ;;  %v15043_v48 = vpack.c.bf16 %v14952_v11, %v14952_v11  ;;  %v1811_v11 = vld [vmem:[%s14108_s5 + $0x2c88] sm:$0xff] }
 0x2e4   : > { %10274 = vmatprep.subr.bf16.mxu0 %v13482_v49  ;;  %10807 = vmatprep.subr.bf16.mxu1 %v13484_v50  ;;  %v1803_v49 = vld [vmem:[%s14108_s5 + $0x2c48] sm:$0xff] }
 0x2e5   : > { %v1807_v50 = vld [vmem:[%s14108_s5 + $0x2c68] sm:$0xff] }
 0x2e6   : > { %v13524_v23 = vcombine.high %v1803_v49, %v1807_v50  ;;  %v13523_v4 = vcombine.low %v1803_v49, %v1807_v50  ;;  %v1842_v49 = vld [vmem:[%s14108_s5 + $0x2d80] sm:$0xff] }
 0x2e7   : > { %10275 = vmatpush1.bf16.msra.mxu0 %v13481_v57  ;;  %10808 = vmatpush1.bf16.msra.mxu1 %v13483_v58  ;;  %v1810_v57 = vld [vmem:[%s14108_s5 + $0x2c80] sm:$0xff] }
 0x2e8   : > { %10276 = vmatprep.subr.bf16.mxu0 %v13490_v60  ;;  %10809 = vmatprep.subr.bf16.mxu1 %v13492_v61  ;;  %v1814_v58 = vld [vmem:[%s14108_s5 + $0x2ca0] sm:$0xff]  ;;  %v15049_v60 = vpack.c.bf16 %v328_v47, %v328_v47  ;;  %v1815_v61 = vld [vmem:[%s14108_s5 + $0x2ca8] sm:$0xff] }
 0x2e9   : > { %v13530_v56 = vcombine.high %v1810_v57, %v1814_v58  ;;  %v13532_v6 = vcombine.high %v1811_v11, %v1815_v61  ;;  %v13529_v14 = vcombine.low %v1810_v57, %v1814_v58  ;;  %v13531_v59 = vcombine.low %v1811_v11, %v1815_v61  ;;  %v1846_v50 = vld [vmem:[%s14108_s5 + $0x2da0] sm:$0xff] }
 0x2ea   : > { %v13562_v57 = vcombine.high %v1842_v49, %v1846_v50  ;;  %v1850_v11 = vld [vmem:[%s14108_s5 + $0x2dc0] sm:$0xff] }
 0x2eb   : > { %10277 = vmatpush1.bf16.msra.mxu0 %v13489_v7  ;;  %10810 = vmatpush1.bf16.msra.mxu1 %v13491_v8  ;;  %v1818_v7 = vld [vmem:[%s14108_s5 + $0x2cc0] sm:$0xff] }
 0x2ec   : > { %10278 = vmatprep.subr.bf16.mxu0 %v13498_v17  ;;  %10811 = vmatprep.subr.bf16.mxu1 %v13500_v19  ;;  %v1822_v8 = vld [vmem:[%s14108_s5 + $0x2ce0] sm:$0xff]  ;;  %v1819_v17 = vld [vmem:[%s14108_s5 + $0x2cc8] sm:$0xff] }
 0x2ed   : > { %v1823_v19 = vld [vmem:[%s14108_s5 + $0x2ce8] sm:$0xff]  ;;  %v13538_v20 = vcombine.high %v1818_v7, %v1822_v8  ;;  %v1854_v61 = vld [vmem:[%s14108_s5 + $0x2de0] sm:$0xff] }
 0x2ee   : > { %v13540_v21 = vcombine.high %v1819_v17, %v1823_v19  ;;  %v13539_v3 = vcombine.low %v1819_v17, %v1823_v19  ;;  %v1858_v17 = vld [vmem:[%s14108_s5 + $0x2e00] sm:$0xff] }
 0x2ef   : > { %10279 = vmatpush1.bf16.msra.mxu0 %v13497_v24  ;;  %10812 = vmatpush1.bf16.msra.mxu1 %v13499_v27  ;;  %v1830_v24 = vld [vmem:[%s14108_s5 + $0x2d20] sm:$0xff]  ;;  %v1827_v27 = vld [vmem:[%s14108_s5 + $0x2d08] sm:$0xff] }
 0x2f0   : > { %10280 = vmatprep.subr.bf16.mxu0 %v13506_v13  ;;  %10813 = vmatprep.subr.bf16.mxu1 %v13508_v33  ;;  %v1831_v13 = vld [vmem:[%s14108_s5 + $0x2d28] sm:$0xff]  ;;  %v13537_v33 = vcombine.low %v1818_v7, %v1822_v8  ;;  %v13546_v35 = vcombine.high %v1826_v22, %v1830_v24  ;;  %v13570_v7 = vcombine.high %v1850_v11, %v1854_v61  ;;  %v1862_v19 = vld [vmem:[%s14108_s5 + $0x2e20] sm:$0xff] }
 0x2f1   : > { %v13548_v62 = vcombine.high %v1827_v27, %v1831_v13  ;;  %v13547_v45 = vcombine.low %v1827_v27, %v1831_v13  ;;  %v1866_v27 = vld [vmem:[%s14108_s5 + $0x2e40] sm:$0xff] }
 0x2f2   : > { %v1870_v13 = vld [vmem:[%s14108_s5 + $0x2e60] sm:$0xff] }
 0x2f3   : > { %10281 = vmatpush1.bf16.msra.mxu0 %v13505_v28  ;;  %10814 = vmatpush1.bf16.msra.mxu1 %v13507_v55  ;;  %v1838_v28 = vld [vmem:[%s14108_s5 + $0x2d60] sm:$0xff]  ;;  %v1835_v55 = vld [vmem:[%s14108_s5 + $0x2d48] sm:$0xff] }
 0x2f4   : > { %10291 = vmatprep.subr.bf16.mxu0 %v13514_v5  ;;  %10824 = vmatprep.subr.bf16.mxu1 %v13516_v43  ;;  %v1839_v5 = vld [vmem:[%s14108_s5 + $0x2d68] sm:$0xff]  ;;  %v13545_v43 = vcombine.low %v1826_v22, %v1830_v24  ;;  %v13554_v46 = vcombine.high %v1834_v37, %v1838_v28  ;;  %v13578_v22 = vcombine.high %v1858_v17, %v1862_v19 }
 0x2f5   : > { %v13556_v47 = vcombine.high %v1835_v55, %v1839_v5 }
 0x2f6   : > { %10283 = vmatmul.mubr.bf16.vlgmr.msra.gmra.mrb[0].mxu0 %v15043_v48  ;;  %10816 = vmatmul.mubr.bf16.vlgmr.msra.gmra.mrb[0].mxu1 %v15043_v48 }
 0x2f7   : > { %10292 = vmatpush1.bf16.msra.mxu0 %v13513_v52  ;;  %10825 = vmatpush1.bf16.msra.mxu1 %v13515_v10  ;;  %v1843_v52 = vld [vmem:[%s14108_s5 + $0x2d88] sm:$0xff] }
 0x2f8   : > { %10293 = vmatprep.subr.bf16.mxu0 %v13522_v54  ;;  %10826 = vmatprep.subr.bf16.mxu1 %v13524_v23  ;;  %v1847_v10 = vld [vmem:[%s14108_s5 + $0x2da8] sm:$0xff]  ;;  %v13553_v54 = vcombine.low %v1834_v37, %v1838_v28  ;;  %v13555_v23 = vcombine.low %v1835_v55, %v1839_v5  ;;  %v13586_v37 = vcombine.high %v1866_v27, %v1870_v13  ;;  %v1874_v55 = vld [vmem:[%s14108_s5 + $0x2e80] sm:$0xff] }
 0x2f9   : > { %10323 = vmatprep.mubr.bf16.mxu0 %v15049_v60  ;;  %10856 = vmatprep.mubr.bf16.mxu1 %v15049_v60  ;;  %v13564_v58 = vcombine.high %v1843_v52, %v1847_v10  ;;  %v1878_v5 = vld [vmem:[%s14108_s5 + $0x2ea0] sm:$0xff] }
 0x2fb   : > { %10294 = vmatpush1.bf16.msra.mxu0 %v13521_v1  ;;  %10827 = vmatpush1.bf16.msra.mxu1 %v13523_v4  ;;  %v1851_v1 = vld [vmem:[%s14108_s5 + $0x2dc8] sm:$0xff] }
 0x2fc   : > { %10295 = vmatprep.subr.bf16.mxu0 %v13530_v56  ;;  %10828 = vmatprep.subr.bf16.mxu1 %v13532_v6  ;;  %v1855_v4 = vld [vmem:[%s14108_s5 + $0x2de8] sm:$0xff]  ;;  %v13561_v56 = vcombine.low %v1842_v49, %v1846_v50  ;;  %v13563_v6 = vcombine.low %v1843_v52, %v1847_v10  ;;  %v13594_v49 = vcombine.high %v1874_v55, %v1878_v5  ;;  %v1882_v52 = vld [vmem:[%s14108_s5 + $0x2ec0] sm:$0xff] }
 0x2fd   : > { %v13572_v8 = vcombine.high %v1851_v1, %v1855_v4  ;;  %v1886_v10 = vld [vmem:[%s14108_s5 + $0x2ee0] sm:$0xff] }
 0x2ff   : > { %10296 = vmatpush1.bf16.msra.mxu0 %v13529_v14  ;;  %10829 = vmatpush1.bf16.msra.mxu1 %v13531_v59  ;;  %v1859_v14 = vld [vmem:[%s14108_s5 + $0x2e08] sm:$0xff] }
 0x300   : > { %10297 = vmatprep.subr.bf16.mxu0 %v13538_v20  ;;  %10830 = vmatprep.subr.bf16.mxu1 %v13540_v21  ;;  %v1863_v59 = vld [vmem:[%s14108_s5 + $0x2e28] sm:$0xff]  ;;  %v13569_v20 = vcombine.low %v1850_v11, %v1854_v61  ;;  %v13571_v21 = vcombine.low %v1851_v1, %v1855_v4  ;;  %v13602_v11 = vcombine.high %v1882_v52, %v1886_v10  ;;  %v1890_v1 = vld [vmem:[%s14108_s5 + $0x2f00] sm:$0xff] }
 0x301   : > { %v13580_v24 = vcombine.high %v1859_v14, %v1863_v59  ;;  %v1894_v4 = vld [vmem:[%s14108_s5 + $0x2f20] sm:$0xff] }
 0x303   : > { %10298 = vmatpush1.bf16.msra.mxu0 %v13537_v33  ;;  %10831 = vmatpush1.bf16.msra.mxu1 %v13539_v3  ;;  %v1867_v33 = vld [vmem:[%s14108_s5 + $0x2e48] sm:$0xff] }
 0x304   : > { %10299 = vmatprep.subr.bf16.mxu0 %v13546_v35  ;;  %10832 = vmatprep.subr.bf16.mxu1 %v13548_v62  ;;  %v1871_v3 = vld [vmem:[%s14108_s5 + $0x2e68] sm:$0xff]  ;;  %v13577_v35 = vcombine.low %v1858_v17, %v1862_v19  ;;  %v13579_v62 = vcombine.low %v1859_v14, %v1863_v59  ;;  %v13610_v17 = vcombine.high %v1890_v1, %v1894_v4  ;;  %v1898_v14 = vld [vmem:[%s14108_s5 + $0x2f40] sm:$0xff] }
 0x305   : > { %v13588_v28 = vcombine.high %v1867_v33, %v1871_v3  ;;  %v1902_v59 = vld [vmem:[%s14108_s5 + $0x2f60] sm:$0xff] }
 0x307   : > { %10300 = vmatpush1.bf16.msra.mxu0 %v13545_v43  ;;  %10833 = vmatpush1.bf16.msra.mxu1 %v13547_v45  ;;  %v1875_v43 = vld [vmem:[%s14108_s5 + $0x2e88] sm:$0xff] }
 0x308   : > { %10301 = vmatprep.subr.bf16.mxu0 %v13554_v46  ;;  %10834 = vmatprep.subr.bf16.mxu1 %v13556_v47  ;;  %v1879_v45 = vld [vmem:[%s14108_s5 + $0x2ea8] sm:$0xff]  ;;  %v13585_v46 = vcombine.low %v1866_v27, %v1870_v13  ;;  %v13587_v47 = vcombine.low %v1867_v33, %v1871_v3  ;;  %v13618_v27 = vcombine.high %v1898_v14, %v1902_v59  ;;  %v1906_v33 = vld [vmem:[%s14108_s5 + $0x2f80] sm:$0xff] }
 0x309   : > { %v13596_v50 = vcombine.high %v1875_v43, %v1879_v45  ;;  %v1910_v3 = vld [vmem:[%s14108_s5 + $0x2fa0] sm:$0xff] }
 0x30b   : > { %10302 = vmatpush1.bf16.msra.mxu0 %v13553_v54  ;;  %10835 = vmatpush1.bf16.msra.mxu1 %v13555_v23  ;;  %v1883_v54 = vld [vmem:[%s14108_s5 + $0x2ec8] sm:$0xff] }
 0x30c   : > { %10303 = vmatprep.subr.bf16.mxu0 %v13562_v57  ;;  %10836 = vmatprep.subr.bf16.mxu1 %v13564_v58  ;;  %v1887_v23 = vld [vmem:[%s14108_s5 + $0x2ee8] sm:$0xff]  ;;  %v13593_v57 = vcombine.low %v1874_v55, %v1878_v5  ;;  %v13595_v58 = vcombine.low %v1875_v43, %v1879_v45  ;;  %v13626_v55 = vcombine.high %v1906_v33, %v1910_v3  ;;  %v1914_v43 = vld [vmem:[%s14108_s5 + $0x2fc0] sm:$0xff] }
 0x30d   : > { %v13604_v61 = vcombine.high %v1883_v54, %v1887_v23  ;;  %v1918_v45 = vld [vmem:[%s14108_s5 + $0x2fe0] sm:$0xff] }
 0x30f   : > { %10304 = vmatpush1.bf16.msra.mxu0 %v13561_v56  ;;  %10837 = vmatpush1.bf16.msra.mxu1 %v13563_v6  ;;  %v1891_v56 = vld [vmem:[%s14108_s5 + $0x2f08] sm:$0xff] }
 0x310   : > { %10305 = vmatprep.subr.bf16.mxu0 %v13570_v7  ;;  %10838 = vmatprep.subr.bf16.mxu1 %v13572_v8  ;;  %v1895_v6 = vld [vmem:[%s14108_s5 + $0x2f28] sm:$0xff]  ;;  %v13601_v7 = vcombine.low %v1882_v52, %v1886_v10  ;;  %v13603_v8 = vcombine.low %v1883_v54, %v1887_v23  ;;  %v13634_v52 = vcombine.high %v1914_v43, %v1918_v45  ;;  %v1922_v54 = vld [vmem:[%s14108_s5 + $0x3000] sm:$0xff] }
 0x311   : > { %v13612_v19 = vcombine.high %v1891_v56, %v1895_v6  ;;  %v1926_v23 = vld [vmem:[%s14108_s5 + $0x3020] sm:$0xff] }
 0x313   : > { %10306 = vmatpush1.bf16.msra.mxu0 %v13569_v20  ;;  %10839 = vmatpush1.bf16.msra.mxu1 %v13571_v21  ;;  %v1899_v20 = vld [vmem:[%s14108_s5 + $0x2f48] sm:$0xff] }
 0x314   : > { %10307 = vmatprep.subr.bf16.mxu0 %v13578_v22  ;;  %10840 = vmatprep.subr.bf16.mxu1 %v13580_v24  ;;  %v1903_v21 = vld [vmem:[%s14108_s5 + $0x2f68] sm:$0xff]  ;;  %v13609_v22 = vcombine.low %v1890_v1, %v1894_v4  ;;  %v13611_v24 = vcombine.low %v1891_v56, %v1895_v6  ;;  %v13642_v1 = vcombine.high %v1922_v54, %v1926_v23  ;;  %v1930_v56 = vld [vmem:[%s14108_s5 + $0x3040] sm:$0xff] }
 0x315   : > { %v13620_v13 = vcombine.high %v1899_v20, %v1903_v21  ;;  %v1934_v6 = vld [vmem:[%s14108_s5 + $0x3060] sm:$0xff] }
 0x317   : > { %10308 = vmatpush1.bf16.msra.mxu0 %v13577_v35  ;;  %10841 = vmatpush1.bf16.msra.mxu1 %v13579_v62  ;;  %v1907_v35 = vld [vmem:[%s14108_s5 + $0x2f88] sm:$0xff] }
 0x318   : > { %10309 = vmatprep.subr.bf16.mxu0 %v13586_v37  ;;  %10842 = vmatprep.subr.bf16.mxu1 %v13588_v28  ;;  %v1911_v62 = vld [vmem:[%s14108_s5 + $0x2fa8] sm:$0xff]  ;;  %v13617_v37 = vcombine.low %v1898_v14, %v1902_v59  ;;  %v13619_v28 = vcombine.low %v1899_v20, %v1903_v21  ;;  %v13650_v59 = vcombine.high %v1930_v56, %v1934_v6  ;;  %v1938_v21 = vld [vmem:[%s14108_s5 + $0x3080] sm:$0xff] }
 0x319   : > { %v13628_v5 = vcombine.high %v1907_v35, %v1911_v62 }
 0x31b   : > { %10310 = vmatpush1.bf16.msra.mxu0 %v13585_v46  ;;  %10843 = vmatpush1.bf16.msra.mxu1 %v13587_v47  ;;  %v1915_v46 = vld [vmem:[%s14108_s5 + $0x2fc8] sm:$0xff] }
 0x31c   : > { %10311 = vmatprep.subr.bf16.mxu0 %v13594_v49  ;;  %10844 = vmatprep.subr.bf16.mxu1 %v13596_v50  ;;  %v1919_v47 = vld [vmem:[%s14108_s5 + $0x2fe8] sm:$0xff]  ;;  %v13625_v49 = vcombine.low %v1906_v33, %v1910_v3  ;;  %v13627_v50 = vcombine.low %v1907_v35, %v1911_v62  ;;  %v1946_v35 = vld [vmem:[%s14108_s5 + $0x30c0] sm:$0xff] }
 0x31d   : > { %v13636_v10 = vcombine.high %v1915_v46, %v1919_v47  ;;  %v1950_v62 = vld [vmem:[%s14108_s5 + $0x30e0] sm:$0xff] }
 0x31f   : > { %10312 = vmatpush1.bf16.msra.mxu0 %v13593_v57  ;;  %10845 = vmatpush1.bf16.msra.mxu1 %v13595_v58  ;;  %v1923_v57 = vld [vmem:[%s14108_s5 + $0x3008] sm:$0xff] }
 0x320   : > { %10313 = vmatprep.subr.bf16.mxu0 %v13602_v11  ;;  %10846 = vmatprep.subr.bf16.mxu1 %v13604_v61  ;;  %v1927_v58 = vld [vmem:[%s14108_s5 + $0x3028] sm:$0xff]  ;;  %v13633_v11 = vcombine.low %v1914_v43, %v1918_v45  ;;  %v13635_v61 = vcombine.low %v1915_v46, %v1919_v47  ;;  %v13666_v45 = vcombine.high %v1946_v35, %v1950_v62  ;;  %v388_v47 = vld [vmem:[%s14108_s5 + $0x10] sm:$0xff] }
 0x321   : > { %v13644_v4 = vcombine.high %v1923_v57, %v1927_v58  ;;  %v13643_v14 = vcombine.low %v1923_v57, %v1927_v58 }
 0x323   : > { %10314 = vmatpush1.bf16.msra.mxu0 %v13601_v7  ;;  %10847 = vmatpush1.bf16.msra.mxu1 %v13603_v8  ;;  %v15117_v7 = vpack.c.bf16 %v15033_v36, %v15033_v36  ;;  %v1931_v8 = vld [vmem:[%s14108_s5 + $0x3048] sm:$0xff] }
 0x324   : > { %10315 = vmatprep.subr.bf16.mxu0 %v13610_v17  ;;  %10848 = vmatprep.subr.bf16.mxu1 %v13612_v19  ;;  %v1935_v17 = vld [vmem:[%s14108_s5 + $0x3068] sm:$0xff]  ;;  %v13641_v19 = vcombine.low %v1922_v54, %v1926_v23  ;;  %v12104_v54 = vld.sshfl [vmem:[%s16026_s0 + $0x30] sm:$0x3 pattern:$0x76325410] }
 0x325   : > { %v13652_v20 = vcombine.high %v1931_v8, %v1935_v17  ;;  %v1943_v36 = vld [vmem:[%s14108_s5 + $0x30a8] sm:$0xff] }
 0x327   : > { %10316 = vmatpush1.bf16.msra.mxu0 %v13609_v22  ;;  %10849 = vmatpush1.bf16.msra.mxu1 %v13611_v24  ;;  %v1942_v22 = vld [vmem:[%s14108_s5 + $0x30a0] sm:$0xff]  ;;  %v1939_v24 = vld [vmem:[%s14108_s5 + $0x3088] sm:$0xff] }
 0x328   : > { %10317 = vmatprep.subr.bf16.mxu0 %v13618_v27  ;;  %10850 = vmatprep.subr.bf16.mxu1 %v13620_v13  ;;  %v13649_v27 = vcombine.low %v1930_v56, %v1934_v6  ;;  %v13651_v13 = vcombine.low %v1931_v8, %v1935_v17  ;;  %v13658_v33 = vcombine.high %v1938_v21, %v1942_v22  ;;  %v401_v56 = vld [vmem:[%s14108_s5 + $0x78] sm:$0xff] }
 0x329   : > { %v13660_v3 = vcombine.high %v1939_v24, %v1943_v36  ;;  %v13659_v43 = vcombine.low %v1939_v24, %v1943_v36 }
 0x32b   : > { %10318 = vmatpush1.bf16.msra.mxu0 %v13617_v37  ;;  %10851 = vmatpush1.bf16.msra.mxu1 %v13619_v28  ;;  %v14004_v37 = vmov 0   ;;  %v1947_v28 = vld [vmem:[%s14108_s5 + $0x30c8] sm:$0xff] }
 0x32c   : > { %10319 = vmatprep.subr.bf16.mxu0 %v13626_v55  ;;  %10852 = vmatprep.subr.bf16.mxu1 %v13628_v5  ;;  %v1951_v55 = vld [vmem:[%s14108_s5 + $0x30e8] sm:$0xff]  ;;  %v13657_v5 = vcombine.low %v1938_v21, %v1942_v22  ;;  %v409_v21 = vld [vmem:[%s14108_s5 + $0xb8] sm:$0xff] }
 0x32d   : > { %v13668_v46 = vcombine.high %v1947_v28, %v1951_v55  ;;  %v13667_v23 = vcombine.low %v1947_v28, %v1951_v55 }
 0x32f   : > { %10320 = vmatpush1.bf16.msra.mxu0 %v13625_v49  ;;  %10853 = vmatpush1.bf16.msra.mxu1 %v13627_v50  ;;  %v392_v49 = vld [vmem:[%s14108_s5 + $0x30] sm:$0xff]  ;;  %v389_v50 = vld [vmem:[%s14108_s5 + $0x18] sm:$0xff] }
 0x330   : > { %10321 = vmatprep.subr.bf16.mxu0 %v13634_v52  ;;  %10854 = vmatprep.subr.bf16.mxu1 %v13636_v10  ;;  %v393_v52 = vld [vmem:[%s14108_s5 + $0x38] sm:$0xff]  ;;  %v13665_v10 = vcombine.low %v1946_v35, %v1950_v62  ;;  %v12110_v57 = vcombine.high %v388_v47, %v392_v49  ;;  %v12109_v6 = vcombine.low %v388_v47, %v392_v49 }
 0x331   : > { %v12112_v58 = vcombine.high %v389_v50, %v393_v52  ;;  %v12111_v8 = vcombine.low %v389_v50, %v393_v52  ;;  %v417_v35 = vld [vmem:[%s14108_s5 + $0xf8] sm:$0xff] }
 0x332   : > { %v425_v47 = vld [vmem:[%s14108_s5 + $0x138] sm:$0xff] }
 0x333   : > { %10322 = vmatpush1.bf16.msra.mxu0 %v13633_v11  ;;  %10855 = vmatpush1.bf16.msra.mxu1 %v13635_v61  ;;  %v396_v11 = vld [vmem:[%s14108_s5 + $0x50] sm:$0xff] }
 0x334   : > { %10332 = vmatprep.subr.bf16.mxu0 %v13642_v1  ;;  %10865 = vmatprep.subr.bf16.mxu1 %v13644_v4  ;;  %v400_v61 = vld [vmem:[%s14108_s5 + $0x70] sm:$0xff]  ;;  %v15142_v1 = vpack.c.bf16 %v12104_v54, %v12104_v54  ;;  %v397_v4 = vld [vmem:[%s14108_s5 + $0x58] sm:$0xff] }
 0x335   : > { %v12118_v17 = vcombine.high %v396_v11, %v400_v61  ;;  %v12117_v22 = vcombine.low %v396_v11, %v400_v61  ;;  %v12119_v24 = vcombine.low %v397_v4, %v401_v56  ;;  %v432_v54 = vld [vmem:[%s14108_s5 + $0x170] sm:$0xff] }
 0x336   : > { %10324 = vmatmul.mubr.bf16.vlgmr.msra.gmra.mrb[0].mxu0 %v15117_v7  ;;  %10857 = vmatmul.mubr.bf16.vlgmr.msra.gmra.mrb[0].mxu1 %v15117_v7 }
 0x337   : > { %10333 = vmatpush1.bf16.msra.mxu0 %v13641_v19  ;;  %10866 = vmatpush1.bf16.msra.mxu1 %v13643_v14  ;;  %v12120_v19 = vcombine.high %v397_v4, %v401_v56  ;;  %v404_v14 = vld [vmem:[%s14108_s5 + $0x90] sm:$0xff] }
 0x338   : > { %10334 = vmatprep.subr.bf16.mxu0 %v13650_v59  ;;  %10867 = vmatprep.subr.bf16.mxu1 %v13652_v20  ;;  %v408_v59 = vld [vmem:[%s14108_s5 + $0xb0] sm:$0xff]  ;;  %v405_v20 = vld [vmem:[%s14108_s5 + $0x98] sm:$0xff] }
 0x339   : > { %10364 = vmatprep.mubr.bf16.mxu0 %v14004_v37  ;;  %10897 = vmatprep.mubr.bf16.mxu1 %v14004_v37  ;;  %v12126_v36 = vcombine.high %v404_v14, %v408_v59  ;;  %v12125_v62 = vcombine.low %v404_v14, %v408_v59  ;;  %v12127_v28 = vcombine.low %v405_v20, %v409_v21  ;;  %v436_v56 = vld [vmem:[%s14108_s5 + $0x190] sm:$0xff] }
 0x33b   : > { %10335 = vmatpush1.bf16.msra.mxu0 %v13649_v27  ;;  %10868 = vmatpush1.bf16.msra.mxu1 %v13651_v13  ;;  %v12128_v27 = vcombine.high %v405_v20, %v409_v21  ;;  %v412_v13 = vld [vmem:[%s14108_s5 + $0xd0] sm:$0xff] }
 0x33c   : > { %10336 = vmatprep.subr.bf16.mxu0 %v13658_v33  ;;  %10869 = vmatprep.subr.bf16.mxu1 %v13660_v3  ;;  %v416_v33 = vld [vmem:[%s14108_s5 + $0xf0] sm:$0xff]  ;;  %v413_v3 = vld [vmem:[%s14108_s5 + $0xd8] sm:$0xff] }
 0x33d   : > { %v12134_v55 = vcombine.high %v412_v13, %v416_v33  ;;  %v12133_v49 = vcombine.low %v412_v13, %v416_v33  ;;  %v444_v21 = vld [vmem:[%s14108_s5 + $0x1d0] sm:$0xff] }
 0x33f   : > { %10337 = vmatpush1.bf16.msra.mxu0 %v13657_v5  ;;  %10870 = vmatpush1.bf16.msra.mxu1 %v13659_v43  ;;  %v12136_v5 = vcombine.high %v413_v3, %v417_v35  ;;  %v420_v43 = vld [vmem:[%s14108_s5 + $0x110] sm:$0xff] }
 0x340   : > { %10338 = vmatprep.subr.bf16.mxu0 %v13666_v45  ;;  %10871 = vmatprep.subr.bf16.mxu1 %v13668_v46  ;;  %v424_v45 = vld [vmem:[%s14108_s5 + $0x130] sm:$0xff]  ;;  %v421_v46 = vld [vmem:[%s14108_s5 + $0x118] sm:$0xff] }
 0x341   : > { %v12142_v50 = vcombine.high %v420_v43, %v424_v45  ;;  %v12144_v52 = vcombine.high %v421_v46, %v425_v47  ;;  %v12143_v11 = vcombine.low %v421_v46, %v425_v47  ;;  %v460_v47 = vld [vmem:[%s14108_s5 + $0x250] sm:$0xff] }
 0x343   : > { %10339 = vmatpush1.bf16.msra.mxu0 %v13665_v10  ;;  %10872 = vmatpush1.bf16.msra.mxu1 %v13667_v23  ;;  %v428_v10 = vld [vmem:[%s14108_s5 + $0x150] sm:$0xff]  ;;  %v429_v23 = vld [vmem:[%s14108_s5 + $0x158] sm:$0xff] }
 0x344   : > { %10906 = vmatprep.subr.bf16.mxu0 %v12110_v57  ;;  %11439 = vmatprep.subr.bf16.mxu1 %v12112_v58  ;;  %v433_v57 = vld [vmem:[%s14108_s5 + $0x178] sm:$0xff]  ;;  %v12141_v58 = vcombine.low %v420_v43, %v424_v45  ;;  %v12150_v61 = vcombine.high %v428_v10, %v432_v54 }
 0x345   : > { %v12152_v4 = vcombine.high %v429_v23, %v433_v57  ;;  %v12151_v14 = vcombine.low %v429_v23, %v433_v57  ;;  %v468_v57 = vld [vmem:[%s14108_s5 + $0x290] sm:$0xff] }
 0x346   : > { %13673 = vmatmul.mubr.msk.bf16.vlgmr.msra.gmra.mrb[0].mxu0 %vm9836_vm0, %v15142_v1  ;;  %13674 = vmatmul.mubr.msk.bf16.vlgmr.msra.gmra.mrb[0].mxu1 %vm9836_vm0, %v15142_v1 }
 0x347   : > { %10907 = vmatpush1.bf16.msra.mxu0 %v12109_v6  ;;  %11440 = vmatpush1.bf16.msra.mxu1 %v12111_v8  ;;  %v440_v6 = vld [vmem:[%s14108_s5 + $0x1b0] sm:$0xff]  ;;  %v437_v8 = vld [vmem:[%s14108_s5 + $0x198] sm:$0xff] }
 0x348   : > { %10908 = vmatprep.subr.bf16.mxu0 %v12118_v17  ;;  %11441 = vmatprep.subr.bf16.mxu1 %v12120_v19  ;;  %v441_v17 = vld [vmem:[%s14108_s5 + $0x1b8] sm:$0xff]  ;;  %v12149_v19 = vcombine.low %v428_v10, %v432_v54  ;;  %v12158_v59 = vcombine.high %v436_v56, %v440_v6 }
 0x349   : > { %10938 = vmatprep.mubr.bf16.mxu0 %v14164_v9  ;;  %11471 = vmatprep.mubr.bf16.mxu1 %v14164_v9  ;;  %v12135_v9 = vcombine.low %v413_v3, %v417_v35  ;;  %v12160_v20 = vcombine.high %v437_v8, %v441_v17  ;;  %v12159_v13 = vcombine.low %v437_v8, %v441_v17  ;;  %v452_v35 = vld [vmem:[%s14108_s5 + $0x210] sm:$0xff] }
 0x34a   : > { %v476_v17 = vld [vmem:[%s14108_s5 + $0x2d0] sm:$0xff] }
 0x34b   : > { %10909 = vmatpush1.bf16.msra.mxu0 %v12117_v22  ;;  %11442 = vmatpush1.bf16.msra.mxu1 %v12119_v24  ;;  %v448_v22 = vld [vmem:[%s14108_s5 + $0x1f0] sm:$0xff]  ;;  %v445_v24 = vld [vmem:[%s14108_s5 + $0x1d8] sm:$0xff] }
 0x34c   : > { %10910 = vmatprep.subr.bf16.mxu0 %v12126_v36  ;;  %11443 = vmatprep.subr.bf16.mxu1 %v12128_v27  ;;  %v449_v36 = vld [vmem:[%s14108_s5 + $0x1f8] sm:$0xff]  ;;  %v12157_v27 = vcombine.low %v436_v56, %v440_v6  ;;  %v12166_v33 = vcombine.high %v444_v21, %v448_v22 }
 0x34d   : > { %v12168_v3 = vcombine.high %v445_v24, %v449_v36  ;;  %v12167_v43 = vcombine.low %v445_v24, %v449_v36  ;;  %v484_v36 = vld [vmem:[%s14108_s5 + $0x310] sm:$0xff] }
 0x34f   : > { %10911 = vmatpush1.bf16.msra.mxu0 %v12125_v62  ;;  %11444 = vmatpush1.bf16.msra.mxu1 %v12127_v28  ;;  %v456_v62 = vld [vmem:[%s14108_s5 + $0x230] sm:$0xff]  ;;  %v453_v28 = vld [vmem:[%s14108_s5 + $0x218] sm:$0xff] }
 0x350   : > { %10912 = vmatprep.subr.bf16.mxu0 %v12134_v55  ;;  %11445 = vmatprep.subr.bf16.mxu1 %v12136_v5  ;;  %v457_v55 = vld [vmem:[%s14108_s5 + $0x238] sm:$0xff]  ;;  %v12165_v5 = vcombine.low %v444_v21, %v448_v22  ;;  %v12174_v45 = vcombine.high %v452_v35, %v456_v62 }
 0x351   : > { %v12176_v46 = vcombine.high %v453_v28, %v457_v55  ;;  %v12175_v10 = vcombine.low %v453_v28, %v457_v55  ;;  %v492_v55 = vld [vmem:[%s14108_s5 + $0x350] sm:$0xff] }
 0x353   : > { %10913 = vmatpush1.bf16.msra.mxu0 %v12133_v49  ;;  %11446 = vmatpush1.bf16.msra.mxu1 %v12135_v9  ;;  %v464_v49 = vld [vmem:[%s14108_s5 + $0x270] sm:$0xff]  ;;  %v461_v9 = vld [vmem:[%s14108_s5 + $0x258] sm:$0xff] }
 0x354   : > { %10914 = vmatprep.subr.bf16.mxu0 %v12142_v50  ;;  %11447 = vmatprep.subr.bf16.mxu1 %v12144_v52  ;;  %v465_v50 = vld [vmem:[%s14108_s5 + $0x278] sm:$0xff]  ;;  %v12173_v52 = vcombine.low %v452_v35, %v456_v62  ;;  %v12182_v54 = vcombine.high %v460_v47, %v464_v49 }
 0x355   : > { %v12184_v23 = vcombine.high %v461_v9, %v465_v50  ;;  %v12183_v56 = vcombine.low %v461_v9, %v465_v50  ;;  %v500_v50 = vld [vmem:[%s14108_s5 + $0x390] sm:$0xff] }
 0x357   : > { %10915 = vmatpush1.bf16.msra.mxu0 %v12141_v58  ;;  %11448 = vmatpush1.bf16.msra.mxu1 %v12143_v11  ;;  %v472_v58 = vld [vmem:[%s14108_s5 + $0x2b0] sm:$0xff]  ;;  %v469_v11 = vld [vmem:[%s14108_s5 + $0x298] sm:$0xff] }
 0x358   : > { %10916 = vmatprep.subr.bf16.mxu0 %v12150_v61  ;;  %11449 = vmatprep.subr.bf16.mxu1 %v12152_v4  ;;  %v473_v61 = vld [vmem:[%s14108_s5 + $0x2b8] sm:$0xff]  ;;  %v12181_v4 = vcombine.low %v460_v47, %v464_v49  ;;  %v12190_v6 = vcombine.high %v468_v57, %v472_v58 }
 0x359   : > { %v12192_v8 = vcombine.high %v469_v11, %v473_v61  ;;  %v12191_v21 = vcombine.low %v469_v11, %v473_v61  ;;  %v508_v61 = vld [vmem:[%s14108_s5 + $0x3d0] sm:$0xff] }
 0x35b   : > { %10917 = vmatpush1.bf16.msra.mxu0 %v12149_v19  ;;  %11450 = vmatpush1.bf16.msra.mxu1 %v12151_v14  ;;  %v480_v19 = vld [vmem:[%s14108_s5 + $0x2f0] sm:$0xff]  ;;  %v477_v14 = vld [vmem:[%s14108_s5 + $0x2d8] sm:$0xff] }
 0x35c   : > { %10918 = vmatprep.subr.bf16.mxu0 %v12158_v59  ;;  %11451 = vmatprep.subr.bf16.mxu1 %v12160_v20  ;;  %v481_v59 = vld [vmem:[%s14108_s5 + $0x2f8] sm:$0xff]  ;;  %v12189_v20 = vcombine.low %v468_v57, %v472_v58  ;;  %v12198_v22 = vcombine.high %v476_v17, %v480_v19 }
 0x35d   : > { %v12200_v24 = vcombine.high %v477_v14, %v481_v59  ;;  %v12199_v35 = vcombine.low %v477_v14, %v481_v59  ;;  %v516_v59 = vld [vmem:[%s14108_s5 + $0x410] sm:$0xff] }
 0x35f   : > { %10919 = vmatpush1.bf16.msra.mxu0 %v12157_v27  ;;  %11452 = vmatpush1.bf16.msra.mxu1 %v12159_v13  ;;  %v488_v27 = vld [vmem:[%s14108_s5 + $0x330] sm:$0xff]  ;;  %v485_v13 = vld [vmem:[%s14108_s5 + $0x318] sm:$0xff] }
 0x360   : > { %10920 = vmatprep.subr.bf16.mxu0 %v12166_v33  ;;  %11453 = vmatprep.subr.bf16.mxu1 %v12168_v3  ;;  %v489_v33 = vld [vmem:[%s14108_s5 + $0x338] sm:$0xff]  ;;  %v12197_v3 = vcombine.low %v476_v17, %v480_v19  ;;  %v12206_v62 = vcombine.high %v484_v36, %v488_v27 }
 0x361   : > { %v12208_v28 = vcombine.high %v485_v13, %v489_v33  ;;  %v12207_v47 = vcombine.low %v485_v13, %v489_v33  ;;  %v524_v33 = vld [vmem:[%s14108_s5 + $0x450] sm:$0xff] }
 0x363   : > { %10921 = vmatpush1.bf16.msra.mxu0 %v12165_v5  ;;  %11454 = vmatpush1.bf16.msra.mxu1 %v12167_v43  ;;  %v496_v5 = vld [vmem:[%s14108_s5 + $0x370] sm:$0xff]  ;;  %v493_v43 = vld [vmem:[%s14108_s5 + $0x358] sm:$0xff] }
 0x364   : > { %10922 = vmatprep.subr.bf16.mxu0 %v12174_v45  ;;  %11455 = vmatprep.subr.bf16.mxu1 %v12176_v46  ;;  %v497_v45 = vld [vmem:[%s14108_s5 + $0x378] sm:$0xff]  ;;  %v12205_v46 = vcombine.low %v484_v36, %v488_v27  ;;  %v12214_v49 = vcombine.high %v492_v55, %v496_v5 }
 0x365   : > { %v12216_v9 = vcombine.high %v493_v43, %v497_v45  ;;  %v12215_v57 = vcombine.low %v493_v43, %v497_v45  ;;  %v532_v45 = vld [vmem:[%s14108_s5 + $0x490] sm:$0xff] }
 0x367   : > { %10923 = vmatpush1.bf16.msra.mxu0 %v12173_v52  ;;  %11456 = vmatpush1.bf16.msra.mxu1 %v12175_v10  ;;  %v504_v52 = vld [vmem:[%s14108_s5 + $0x3b0] sm:$0xff]  ;;  %v501_v10 = vld [vmem:[%s14108_s5 + $0x398] sm:$0xff] }
 0x368   : > { %10924 = vmatprep.subr.bf16.mxu0 %v12182_v54  ;;  %11457 = vmatprep.subr.bf16.mxu1 %v12184_v23  ;;  %v505_v54 = vld [vmem:[%s14108_s5 + $0x3b8] sm:$0xff]  ;;  %v12213_v23 = vcombine.low %v492_v55, %v496_v5  ;;  %v12222_v58 = vcombine.high %v500_v50, %v504_v52 }
 0x369   : > { %v12224_v11 = vcombine.high %v501_v10, %v505_v54  ;;  %v12223_v17 = vcombine.low %v501_v10, %v505_v54  ;;  %v540_v54 = vld [vmem:[%s14108_s5 + $0x4d0] sm:$0xff] }
 0x36b   : > { %10925 = vmatpush1.bf16.msra.mxu0 %v12181_v4  ;;  %11458 = vmatpush1.bf16.msra.mxu1 %v12183_v56  ;;  %v512_v4 = vld [vmem:[%s14108_s5 + $0x3f0] sm:$0xff]  ;;  %v509_v56 = vld [vmem:[%s14108_s5 + $0x3d8] sm:$0xff] }
 0x36c   : > { %10926 = vmatprep.subr.bf16.mxu0 %v12190_v6  ;;  %11459 = vmatprep.subr.bf16.mxu1 %v12192_v8  ;;  %v513_v6 = vld [vmem:[%s14108_s5 + $0x3f8] sm:$0xff]  ;;  %v12221_v8 = vcombine.low %v500_v50, %v504_v52  ;;  %v12230_v19 = vcombine.high %v508_v61, %v512_v4 }
 0x36d   : > { %v12232_v14 = vcombine.high %v509_v56, %v513_v6  ;;  %v12231_v36 = vcombine.low %v509_v56, %v513_v6  ;;  %v548_v56 = vld [vmem:[%s14108_s5 + $0x510] sm:$0xff] }
 0x36e   : > { %v552_v6 = vld [vmem:[%s14108_s5 + $0x530] sm:$0xff] }
 0x36f   : > { %10927 = vmatpush1.bf16.msra.mxu0 %v12189_v20  ;;  %11460 = vmatpush1.bf16.msra.mxu1 %v12191_v21  ;;  %v520_v20 = vld [vmem:[%s14108_s5 + $0x430] sm:$0xff]  ;;  %v517_v21 = vld [vmem:[%s14108_s5 + $0x418] sm:$0xff] }
 0x370   : > { %10928 = vmatprep.subr.bf16.mxu0 %v12198_v22  ;;  %11461 = vmatprep.subr.bf16.mxu1 %v12200_v24  ;;  %v521_v22 = vld [vmem:[%s14108_s5 + $0x438] sm:$0xff]  ;;  %v12229_v24 = vcombine.low %v508_v61, %v512_v4  ;;  %v12238_v27 = vcombine.high %v516_v59, %v520_v20 }
 0x371   : > { %v12240_v13 = vcombine.high %v517_v21, %v521_v22  ;;  %v12239_v55 = vcombine.low %v517_v21, %v521_v22  ;;  %v560_v21 = vld [vmem:[%s14108_s5 + $0x570] sm:$0xff]  ;;  %v557_v22 = vld [vmem:[%s14108_s5 + $0x558] sm:$0xff] }
 0x373   : > { %10929 = vmatpush1.bf16.msra.mxu0 %v12197_v3  ;;  %11462 = vmatpush1.bf16.msra.mxu1 %v12199_v35  ;;  %v528_v3 = vld [vmem:[%s14108_s5 + $0x470] sm:$0xff]  ;;  %v525_v35 = vld [vmem:[%s14108_s5 + $0x458] sm:$0xff] }
 0x374   : > { %10930 = vmatprep.subr.bf16.mxu0 %v12206_v62  ;;  %11463 = vmatprep.subr.bf16.mxu1 %v12208_v28  ;;  %v529_v62 = vld [vmem:[%s14108_s5 + $0x478] sm:$0xff]  ;;  %v12237_v28 = vcombine.low %v516_v59, %v520_v20  ;;  %v12246_v5 = vcombine.high %v524_v33, %v528_v3  ;;  %v556_v20 = vld [vmem:[%s14108_s5 + $0x550] sm:$0xff] }
 0x375   : > { %v12248_v43 = vcombine.high %v525_v35, %v529_v62  ;;  %v12247_v50 = vcombine.low %v525_v35, %v529_v62  ;;  %v568_v35 = vld [vmem:[%s14108_s5 + $0x5b0] sm:$0xff]  ;;  %v565_v62 = vld [vmem:[%s14108_s5 + $0x598] sm:$0xff] }
 0x377   : > { %10931 = vmatpush1.bf16.msra.mxu0 %v12205_v46  ;;  %11464 = vmatpush1.bf16.msra.mxu1 %v12207_v47  ;;  %v536_v46 = vld [vmem:[%s14108_s5 + $0x4b0] sm:$0xff]  ;;  %v533_v47 = vld [vmem:[%s14108_s5 + $0x498] sm:$0xff] }
 0x378   : > { %10932 = vmatprep.subr.bf16.mxu0 %v12214_v49  ;;  %11465 = vmatprep.subr.bf16.mxu1 %v12216_v9  ;;  %v537_v49 = vld [vmem:[%s14108_s5 + $0x4b8] sm:$0xff]  ;;  %v12245_v9 = vcombine.low %v524_v33, %v528_v3  ;;  %v12254_v52 = vcombine.high %v532_v45, %v536_v46  ;;  %v564_v3 = vld [vmem:[%s14108_s5 + $0x590] sm:$0xff] }
 0x379   : > { %v12256_v10 = vcombine.high %v533_v47, %v537_v49 }
 0x37b   : > { %10933 = vmatpush1.bf16.msra.mxu0 %v12213_v23  ;;  %11466 = vmatpush1.bf16.msra.mxu1 %v12215_v57  ;;  %v544_v23 = vld [vmem:[%s14108_s5 + $0x4f0] sm:$0xff]  ;;  %v541_v57 = vld [vmem:[%s14108_s5 + $0x4d8] sm:$0xff] }
 0x37c   : > { %10934 = vmatprep.subr.bf16.mxu0 %v12222_v58  ;;  %11467 = vmatprep.subr.bf16.mxu1 %v12224_v11  ;;  %v545_v58 = vld [vmem:[%s14108_s5 + $0x4f8] sm:$0xff]  ;;  %v12255_v11 = vcombine.low %v533_v47, %v537_v49  ;;  %v12262_v61 = vcombine.high %v540_v54, %v544_v23  ;;  %v576_v47 = vld [vmem:[%s14108_s5 + $0x5f0] sm:$0xff] }
 0x37d   : > { %v12264_v4 = vcombine.high %v541_v57, %v545_v58  ;;  %v573_v49 = vld [vmem:[%s14108_s5 + $0x5d8] sm:$0xff] }
 0x37f   : > { %10935 = vmatpush1.bf16.msra.mxu0 %v12221_v8  ;;  %11468 = vmatpush1.bf16.msra.mxu1 %v12223_v17  ;;  %v549_v8 = vld [vmem:[%s14108_s5 + $0x518] sm:$0xff] }
 0x380   : > { %10936 = vmatprep.subr.bf16.mxu0 %v12230_v19  ;;  %11469 = vmatprep.subr.bf16.mxu1 %v12232_v14  ;;  %v553_v17 = vld [vmem:[%s14108_s5 + $0x538] sm:$0xff]  ;;  %v12261_v19 = vcombine.low %v540_v54, %v544_v23  ;;  %v12270_v14 = vcombine.high %v548_v56, %v552_v6  ;;  %v580_v23 = vld [vmem:[%s14108_s5 + $0x610] sm:$0xff] }
 0x381   : > { %v12272_v59 = vcombine.high %v549_v8, %v553_v17 }
 0x383   : > { %10937 = vmatpush1.bf16.msra.mxu0 %v12229_v24  ;;  %11470 = vmatpush1.bf16.msra.mxu1 %v12231_v36  ;;  %v561_v24 = vld [vmem:[%s14108_s5 + $0x578] sm:$0xff]  ;;  %v12269_v36 = vcombine.low %v548_v56, %v552_v6  ;;  %v588_v6 = vld [vmem:[%s14108_s5 + $0x650] sm:$0xff] }
 0x384   : > { %10947 = vmatprep.subr.bf16.mxu0 %v12238_v27  ;;  %11480 = vmatprep.subr.bf16.mxu1 %v12240_v13  ;;  %v12271_v27 = vcombine.low %v549_v8, %v553_v17  ;;  %v12278_v13 = vcombine.high %v556_v20, %v560_v21  ;;  %v12280_v33 = vcombine.high %v557_v22, %v561_v24  ;;  %v592_v8 = vld [vmem:[%s14108_s5 + $0x670] sm:$0xff]  ;;  %v589_v17 = vld [vmem:[%s14108_s5 + $0x658] sm:$0xff] }
 0x386   : > { %10939 = vmatmul.mubr.bf16.vlgmr.msra.gmra.mrb[4].mxu0 %v14213_v25  ;;  %11472 = vmatmul.mubr.bf16.vlgmr.msra.gmra.mrb[4].mxu1 %v14213_v25  ;;  %v12253_v25 = vcombine.low %v532_v45, %v536_v46  ;;  %v572_v46 = vld [vmem:[%s14108_s5 + $0x5d0] sm:$0xff] }
 0x387   : > { %10948 = vmatpush1.bf16.msra.mxu0 %v12237_v28  ;;  %11481 = vmatpush1.bf16.msra.mxu1 %v12239_v55  ;;  %v569_v28 = vld [vmem:[%s14108_s5 + $0x5b8] sm:$0xff]  ;;  %v12277_v55 = vcombine.low %v556_v20, %v560_v21  ;;  %v596_v21 = vld [vmem:[%s14108_s5 + $0x690] sm:$0xff] }
 0x388   : > { %10949 = vmatprep.subr.bf16.mxu0 %v12246_v5  ;;  %11482 = vmatprep.subr.bf16.mxu1 %v12248_v43  ;;  %v12279_v5 = vcombine.low %v557_v22, %v561_v24  ;;  %v12286_v43 = vcombine.high %v564_v3, %v568_v35  ;;  %v12288_v45 = vcombine.high %v565_v62, %v569_v28  ;;  %v600_v22 = vld [vmem:[%s14108_s5 + $0x6b0] sm:$0xff]  ;;  %v597_v24 = vld [vmem:[%s14108_s5 + $0x698] sm:$0xff] }
 0x389   : > { %10979 = vmatprep.mubr.bf16.mxu0 %v14219_v34  ;;  %11512 = vmatprep.mubr.bf16.mxu1 %v14219_v34  ;;  %v12263_v34 = vcombine.low %v541_v57, %v545_v58  ;;  %v584_v57 = vld [vmem:[%s14108_s5 + $0x630] sm:$0xff]  ;;  %v581_v58 = vld [vmem:[%s14108_s5 + $0x618] sm:$0xff] }
 0x38b   : > { %10950 = vmatpush1.bf16.msra.mxu0 %v12245_v9  ;;  %11483 = vmatpush1.bf16.msra.mxu1 %v12247_v50  ;;  %v577_v9 = vld [vmem:[%s14108_s5 + $0x5f8] sm:$0xff]  ;;  %v12285_v50 = vcombine.low %v564_v3, %v568_v35  ;;  %v604_v35 = vld [vmem:[%s14108_s5 + $0x6d0] sm:$0xff] }
 0x38c   : > { %10951 = vmatprep.subr.bf16.mxu0 %v12254_v52  ;;  %11484 = vmatprep.subr.bf16.mxu1 %v12256_v10  ;;  %v12287_v52 = vcombine.low %v565_v62, %v569_v28  ;;  %v12294_v10 = vcombine.high %v572_v46, %v576_v47  ;;  %v12296_v54 = vcombine.high %v573_v49, %v577_v9  ;;  %v608_v62 = vld [vmem:[%s14108_s5 + $0x6f0] sm:$0xff]  ;;  %v605_v28 = vld [vmem:[%s14108_s5 + $0x6d8] sm:$0xff] }
 0x38f   : > { %10952 = vmatpush1.bf16.msra.mxu0 %v12253_v25  ;;  %11485 = vmatpush1.bf16.msra.mxu1 %v12255_v11  ;;  %v585_v25 = vld [vmem:[%s14108_s5 + $0x638] sm:$0xff]  ;;  %v12293_v11 = vcombine.low %v572_v46, %v576_v47  ;;  %v612_v47 = vld [vmem:[%s14108_s5 + $0x710] sm:$0xff] }
 0x390   : > { %10953 = vmatprep.subr.bf16.mxu0 %v12262_v61  ;;  %11486 = vmatprep.subr.bf16.mxu1 %v12264_v4  ;;  %v12295_v61 = vcombine.low %v573_v49, %v577_v9  ;;  %v12302_v4 = vcombine.high %v580_v23, %v584_v57  ;;  %v12304_v56 = vcombine.high %v581_v58, %v585_v25  ;;  %v616_v49 = vld [vmem:[%s14108_s5 + $0x730] sm:$0xff]  ;;  %v613_v9 = vld [vmem:[%s14108_s5 + $0x718] sm:$0xff] }
 0x393   : > { %10954 = vmatpush1.bf16.msra.mxu0 %v12261_v19  ;;  %11487 = vmatpush1.bf16.msra.mxu1 %v12263_v34  ;;  %v593_v19 = vld [vmem:[%s14108_s5 + $0x678] sm:$0xff]  ;;  %v12301_v34 = vcombine.low %v580_v23, %v584_v57  ;;  %v620_v57 = vld [vmem:[%s14108_s5 + $0x750] sm:$0xff] }
 0x394   : > { %10955 = vmatprep.subr.bf16.mxu0 %v12270_v14  ;;  %11488 = vmatprep.subr.bf16.mxu1 %v12272_v59  ;;  %v12303_v14 = vcombine.low %v581_v58, %v585_v25  ;;  %v12310_v59 = vcombine.high %v588_v6, %v592_v8  ;;  %v12312_v20 = vcombine.high %v589_v17, %v593_v19  ;;  %v624_v58 = vld [vmem:[%s14108_s5 + $0x770] sm:$0xff]  ;;  %v621_v25 = vld [vmem:[%s14108_s5 + $0x758] sm:$0xff] }
 0x397   : > { %10956 = vmatpush1.bf16.msra.mxu0 %v12269_v36  ;;  %11489 = vmatpush1.bf16.msra.mxu1 %v12271_v27  ;;  %v601_v36 = vld [vmem:[%s14108_s5 + $0x6b8] sm:$0xff]  ;;  %v12309_v27 = vcombine.low %v588_v6, %v592_v8  ;;  %v628_v8 = vld [vmem:[%s14108_s5 + $0x790] sm:$0xff] }
 0x398   : > { %10957 = vmatprep.subr.bf16.mxu0 %v12278_v13  ;;  %11490 = vmatprep.subr.bf16.mxu1 %v12280_v33  ;;  %v12311_v13 = vcombine.low %v589_v17, %v593_v19  ;;  %v12318_v33 = vcombine.high %v596_v21, %v600_v22  ;;  %v12320_v3 = vcombine.high %v597_v24, %v601_v36  ;;  %v632_v17 = vld [vmem:[%s14108_s5 + $0x7b0] sm:$0xff]  ;;  %v629_v19 = vld [vmem:[%s14108_s5 + $0x798] sm:$0xff] }
 0x39b   : > { %10958 = vmatpush1.bf16.msra.mxu0 %v12277_v55  ;;  %11491 = vmatpush1.bf16.msra.mxu1 %v12279_v5  ;;  %v609_v55 = vld [vmem:[%s14108_s5 + $0x6f8] sm:$0xff]  ;;  %v12317_v5 = vcombine.low %v596_v21, %v600_v22  ;;  %v636_v22 = vld [vmem:[%s14108_s5 + $0x7d0] sm:$0xff] }
 0x39c   : > { %10959 = vmatprep.subr.bf16.mxu0 %v12286_v43  ;;  %11492 = vmatprep.subr.bf16.mxu1 %v12288_v45  ;;  %v12319_v43 = vcombine.low %v597_v24, %v601_v36  ;;  %v12326_v45 = vcombine.high %v604_v35, %v608_v62  ;;  %v12328_v46 = vcombine.high %v605_v28, %v609_v55  ;;  %v640_v24 = vld [vmem:[%s14108_s5 + $0x7f0] sm:$0xff]  ;;  %v637_v36 = vld [vmem:[%s14108_s5 + $0x7d8] sm:$0xff] }
 0x39f   : > { %10960 = vmatpush1.bf16.msra.mxu0 %v12285_v50  ;;  %11493 = vmatpush1.bf16.msra.mxu1 %v12287_v52  ;;  %v617_v50 = vld [vmem:[%s14108_s5 + $0x738] sm:$0xff]  ;;  %v12325_v52 = vcombine.low %v604_v35, %v608_v62  ;;  %v644_v62 = vld [vmem:[%s14108_s5 + $0x810] sm:$0xff] }
 0x3a0   : > { %10961 = vmatprep.subr.bf16.mxu0 %v12294_v10  ;;  %11494 = vmatprep.subr.bf16.mxu1 %v12296_v54  ;;  %v12327_v10 = vcombine.low %v605_v28, %v609_v55  ;;  %v12334_v54 = vcombine.high %v612_v47, %v616_v49  ;;  %v12336_v23 = vcombine.high %v613_v9, %v617_v50  ;;  %v648_v28 = vld [vmem:[%s14108_s5 + $0x830] sm:$0xff]  ;;  %v645_v55 = vld [vmem:[%s14108_s5 + $0x818] sm:$0xff] }
 0x3a3   : > { %10962 = vmatpush1.bf16.msra.mxu0 %v12293_v11  ;;  %11495 = vmatpush1.bf16.msra.mxu1 %v12295_v61  ;;  %v625_v11 = vld [vmem:[%s14108_s5 + $0x778] sm:$0xff]  ;;  %v12333_v61 = vcombine.low %v612_v47, %v616_v49  ;;  %v652_v49 = vld [vmem:[%s14108_s5 + $0x850] sm:$0xff] }
 0x3a4   : > { %10963 = vmatprep.subr.bf16.mxu0 %v12302_v4  ;;  %11496 = vmatprep.subr.bf16.mxu1 %v12304_v56  ;;  %v12335_v4 = vcombine.low %v613_v9, %v617_v50  ;;  %v12342_v56 = vcombine.high %v620_v57, %v624_v58  ;;  %v12344_v6 = vcombine.high %v621_v25, %v625_v11  ;;  %v656_v9 = vld [vmem:[%s14108_s5 + $0x870] sm:$0xff]  ;;  %v653_v50 = vld [vmem:[%s14108_s5 + $0x858] sm:$0xff] }
 0x3a7   : > { %10964 = vmatpush1.bf16.msra.mxu0 %v12301_v34  ;;  %11497 = vmatpush1.bf16.msra.mxu1 %v12303_v14  ;;  %v633_v34 = vld [vmem:[%s14108_s5 + $0x7b8] sm:$0xff]  ;;  %v12341_v14 = vcombine.low %v620_v57, %v624_v58  ;;  %v660_v58 = vld [vmem:[%s14108_s5 + $0x890] sm:$0xff] }
 0x3a8   : > { %10965 = vmatprep.subr.bf16.mxu0 %v12310_v59  ;;  %11498 = vmatprep.subr.bf16.mxu1 %v12312_v20  ;;  %v12343_v59 = vcombine.low %v621_v25, %v625_v11  ;;  %v12350_v20 = vcombine.high %v628_v8, %v632_v17  ;;  %v12352_v21 = vcombine.high %v629_v19, %v633_v34  ;;  %v664_v25 = vld [vmem:[%s14108_s5 + $0x8b0] sm:$0xff]  ;;  %v661_v11 = vld [vmem:[%s14108_s5 + $0x898] sm:$0xff] }
 0x3ab   : > { %10966 = vmatpush1.bf16.msra.mxu0 %v12309_v27  ;;  %11499 = vmatpush1.bf16.msra.mxu1 %v12311_v13  ;;  %v641_v27 = vld [vmem:[%s14108_s5 + $0x7f8] sm:$0xff]  ;;  %v12349_v13 = vcombine.low %v628_v8, %v632_v17  ;;  %v668_v17 = vld [vmem:[%s14108_s5 + $0x8d0] sm:$0xff] }
 0x3ac   : > { %10967 = vmatprep.subr.bf16.mxu0 %v12318_v33  ;;  %11500 = vmatprep.subr.bf16.mxu1 %v12320_v3  ;;  %v12351_v33 = vcombine.low %v629_v19, %v633_v34  ;;  %v12358_v3 = vcombine.high %v636_v22, %v640_v24  ;;  %v12360_v35 = vcombine.high %v637_v36, %v641_v27  ;;  %v672_v19 = vld [vmem:[%s14108_s5 + $0x8f0] sm:$0xff]  ;;  %v669_v34 = vld [vmem:[%s14108_s5 + $0x8d8] sm:$0xff] }
 0x3af   : > { %10968 = vmatpush1.bf16.msra.mxu0 %v12317_v5  ;;  %11501 = vmatpush1.bf16.msra.mxu1 %v12319_v43  ;;  %v649_v5 = vld [vmem:[%s14108_s5 + $0x838] sm:$0xff]  ;;  %v12357_v43 = vcombine.low %v636_v22, %v640_v24  ;;  %v676_v22 = vld [vmem:[%s14108_s5 + $0x910] sm:$0xff] }
 0x3b0   : > { %10969 = vmatprep.subr.bf16.mxu0 %v12326_v45  ;;  %11502 = vmatprep.subr.bf16.mxu1 %v12328_v46  ;;  %v12359_v45 = vcombine.low %v637_v36, %v641_v27  ;;  %v12366_v46 = vcombine.high %v644_v62, %v648_v28  ;;  %v12368_v47 = vcombine.high %v645_v55, %v649_v5  ;;  %v680_v24 = vld [vmem:[%s14108_s5 + $0x930] sm:$0xff]  ;;  %v677_v36 = vld [vmem:[%s14108_s5 + $0x918] sm:$0xff] }
 0x3b1   : > { %v681_v27 = vld [vmem:[%s14108_s5 + $0x938] sm:$0xff] }
 0x3b3   : > { %10970 = vmatpush1.bf16.msra.mxu0 %v12325_v52  ;;  %11503 = vmatpush1.bf16.msra.mxu1 %v12327_v10  ;;  %v657_v52 = vld [vmem:[%s14108_s5 + $0x878] sm:$0xff]  ;;  %v12365_v10 = vcombine.low %v644_v62, %v648_v28  ;;  %v688_v62 = vld [vmem:[%s14108_s5 + $0x970] sm:$0xff] }
 0x3b4   : > { %10971 = vmatprep.subr.bf16.mxu0 %v12334_v54  ;;  %11504 = vmatprep.subr.bf16.mxu1 %v12336_v23  ;;  %v12367_v54 = vcombine.low %v645_v55, %v649_v5  ;;  %v12374_v23 = vcombine.high %v652_v49, %v656_v9  ;;  %v12376_v57 = vcombine.high %v653_v50, %v657_v52  ;;  %v685_v28 = vld [vmem:[%s14108_s5 + $0x958] sm:$0xff] }
 0x3b5   : > { %v689_v55 = vld [vmem:[%s14108_s5 + $0x978] sm:$0xff]  ;;  %v12397_v5 = vcombine.low %v676_v22, %v680_v24 }
 0x3b7   : > { %10972 = vmatpush1.bf16.msra.mxu0 %v12333_v61  ;;  %11505 = vmatpush1.bf16.msra.mxu1 %v12335_v4  ;;  %v665_v61 = vld [vmem:[%s14108_s5 + $0x8b8] sm:$0xff]  ;;  %v12373_v4 = vcombine.low %v652_v49, %v656_v9  ;;  %v696_v49 = vld [vmem:[%s14108_s5 + $0x9b0] sm:$0xff] }
 0x3b8   : > { %10973 = vmatprep.subr.bf16.mxu0 %v12342_v56  ;;  %11506 = vmatprep.subr.bf16.mxu1 %v12344_v6  ;;  %v12375_v56 = vcombine.low %v653_v50, %v657_v52  ;;  %v12382_v6 = vcombine.high %v660_v58, %v664_v25  ;;  %v12384_v8 = vcombine.high %v661_v11, %v665_v61  ;;  %v693_v9 = vld [vmem:[%s14108_s5 + $0x998] sm:$0xff] }
 0x3b9   : > { %v697_v50 = vld [vmem:[%s14108_s5 + $0x9b8] sm:$0xff] }
 0x3bb   : > { %10974 = vmatpush1.bf16.msra.mxu0 %v12341_v14  ;;  %11507 = vmatpush1.bf16.msra.mxu1 %v12343_v59  ;;  %v673_v14 = vld [vmem:[%s14108_s5 + $0x8f8] sm:$0xff]  ;;  %v12383_v59 = vcombine.low %v661_v11, %v665_v61 }
 0x3bc   : > { %10975 = vmatprep.subr.bf16.mxu0 %v12350_v20  ;;  %11508 = vmatprep.subr.bf16.mxu1 %v12352_v21  ;;  %v12390_v20 = vcombine.high %v668_v17, %v672_v19  ;;  %v12392_v21 = vcombine.high %v669_v34, %v673_v14  ;;  %v705_v11 = vld [vmem:[%s14108_s5 + $0x9f8] sm:$0xff] }
 0x3bf   : > { %10976 = vmatpush1.bf16.msra.mxu0 %v12349_v13  ;;  %11509 = vmatpush1.bf16.msra.mxu1 %v12351_v33  ;;  %v12389_v13 = vcombine.low %v668_v17, %v672_v19  ;;  %v12398_v33 = vcombine.high %v676_v22, %v680_v24  ;;  %v712_v17 = vld [vmem:[%s14108_s5 + $0xa30] sm:$0xff]  ;;  %v709_v19 = vld [vmem:[%s14108_s5 + $0xa18] sm:$0xff] }
 0x3c0   : > { %10977 = vmatprep.subr.bf16.mxu0 %v12358_v3  ;;  %11510 = vmatprep.subr.bf16.mxu1 %v12360_v35  ;;  %v12400_v3 = vcombine.high %v677_v36, %v681_v27  ;;  %v684_v35 = vld [vmem:[%s14108_s5 + $0x950] sm:$0xff]  ;;  %v717_v24 = vld [vmem:[%s14108_s5 + $0xa58] sm:$0xff] }
 0x3c1   : > { %v12405_v52 = vcombine.low %v684_v35, %v688_v62  ;;  %v720_v22 = vld [vmem:[%s14108_s5 + $0xa70] sm:$0xff] }
 0x3c3   : > { %10978 = vmatpush1.bf16.msra.mxu0 %v12357_v43  ;;  %11511 = vmatpush1.bf16.msra.mxu1 %v12359_v45  ;;  %v12399_v43 = vcombine.low %v677_v36, %v681_v27  ;;  %v12406_v45 = vcombine.high %v684_v35, %v688_v62  ;;  %v721_v36 = vld [vmem:[%s14108_s5 + $0xa78] sm:$0xff]  ;;  %v728_v35 = vld [vmem:[%s14108_s5 + $0xab0] sm:$0xff] }
 0x3c4   : > { %10988 = vmatprep.subr.bf16.mxu0 %v12366_v46  ;;  %11521 = vmatprep.subr.bf16.mxu1 %v12368_v47  ;;  %v12408_v46 = vcombine.high %v685_v28, %v689_v55  ;;  %v692_v47 = vld [vmem:[%s14108_s5 + $0x990] sm:$0xff]  ;;  %v725_v62 = vld [vmem:[%s14108_s5 + $0xa98] sm:$0xff] }
 0x3c5   : > { %v12413_v61 = vcombine.low %v692_v47, %v696_v49 }
 0x3c6   : > { %10980 = vmatmul.mubr.bf16.vlgmr.msra.gmra.mrb[4].mxu0 %v14298_v41  ;;  %11513 = vmatmul.mubr.bf16.vlgmr.msra.gmra.mrb[4].mxu1 %v14298_v41  ;;  %v12381_v41 = vcombine.low %v660_v58, %v664_v25  ;;  %v704_v58 = vld [vmem:[%s14108_s5 + $0x9f0] sm:$0xff]  ;;  %v701_v25 = vld [vmem:[%s14108_s5 + $0x9d8] sm:$0xff] }
 0x3c7   : > { %10989 = vmatpush1.bf16.msra.mxu0 %v12365_v10  ;;  %11522 = vmatpush1.bf16.msra.mxu1 %v12367_v54  ;;  %v12407_v10 = vcombine.low %v685_v28, %v689_v55  ;;  %v12414_v54 = vcombine.high %v692_v47, %v696_v49  ;;  %v729_v28 = vld [vmem:[%s14108_s5 + $0xab8] sm:$0xff]  ;;  %v736_v47 = vld [vmem:[%s14108_s5 + $0xaf0] sm:$0xff] }
 0x3c8   : > { %10990 = vmatprep.subr.bf16.mxu0 %v12374_v23  ;;  %11523 = vmatprep.subr.bf16.mxu1 %v12376_v57  ;;  %v12416_v23 = vcombine.high %v693_v9, %v697_v50  ;;  %v700_v57 = vld [vmem:[%s14108_s5 + $0x9d0] sm:$0xff]  ;;  %v733_v49 = vld [vmem:[%s14108_s5 + $0xad8] sm:$0xff] }
 0x3c9   : > { %11020 = vmatprep.mubr.bf16.mxu0 %v14304_v51  ;;  %11553 = vmatprep.mubr.bf16.mxu1 %v14304_v51  ;;  %v12391_v51 = vcombine.low %v669_v34, %v673_v14  ;;  %v713_v34 = vld [vmem:[%s14108_s5 + $0xa38] sm:$0xff]  ;;  %v12421_v14 = vcombine.low %v700_v57, %v704_v58 }
 0x3cb   : > { %10991 = vmatpush1.bf16.msra.mxu0 %v12373_v4  ;;  %11524 = vmatpush1.bf16.msra.mxu1 %v12375_v56  ;;  %v12415_v4 = vcombine.low %v693_v9, %v697_v50  ;;  %v12422_v56 = vcombine.high %v700_v57, %v704_v58  ;;  %v737_v9 = vld [vmem:[%s14108_s5 + $0xaf8] sm:$0xff]  ;;  %v744_v57 = vld [vmem:[%s14108_s5 + $0xb30] sm:$0xff] }
 0x3cc   : > { %10992 = vmatprep.subr.bf16.mxu0 %v12382_v6  ;;  %11525 = vmatprep.subr.bf16.mxu1 %v12384_v8  ;;  %v12424_v6 = vcombine.high %v701_v25, %v705_v11  ;;  %v708_v8 = vld [vmem:[%s14108_s5 + $0xa10] sm:$0xff]  ;;  %v741_v58 = vld [vmem:[%s14108_s5 + $0xb18] sm:$0xff] }
 0x3cd   : > { %v12429_v27 = vcombine.low %v708_v8, %v712_v17 }
 0x3cf   : > { %10993 = vmatpush1.bf16.msra.mxu0 %v12381_v41  ;;  %11526 = vmatpush1.bf16.msra.mxu1 %v12383_v59  ;;  %v12423_v41 = vcombine.low %v701_v25, %v705_v11  ;;  %v12430_v59 = vcombine.high %v708_v8, %v712_v17  ;;  %v745_v25 = vld [vmem:[%s14108_s5 + $0xb38] sm:$0xff]  ;;  %v752_v8 = vld [vmem:[%s14108_s5 + $0xb70] sm:$0xff] }
 0x3d0   : > { %10994 = vmatprep.subr.bf16.mxu0 %v12390_v20  ;;  %11527 = vmatprep.subr.bf16.mxu1 %v12392_v21  ;;  %v12432_v20 = vcombine.high %v709_v19, %v713_v34  ;;  %v716_v21 = vld [vmem:[%s14108_s5 + $0xa50] sm:$0xff]  ;;  %v749_v17 = vld [vmem:[%s14108_s5 + $0xb58] sm:$0xff] }
 0x3d1   : > { %v12437_v55 = vcombine.low %v716_v21, %v720_v22 }
 0x3d3   : > { %10995 = vmatpush1.bf16.msra.mxu0 %v12389_v13  ;;  %11528 = vmatpush1.bf16.msra.mxu1 %v12391_v51  ;;  %v12431_v13 = vcombine.low %v709_v19, %v713_v34  ;;  %v12438_v51 = vcombine.high %v716_v21, %v720_v22  ;;  %v753_v19 = vld [vmem:[%s14108_s5 + $0xb78] sm:$0xff]  ;;  %v760_v21 = vld [vmem:[%s14108_s5 + $0xbb0] sm:$0xff] }
 0x3d4   : > { %10996 = vmatprep.subr.bf16.mxu0 %v12398_v33  ;;  %11529 = vmatprep.subr.bf16.mxu1 %v12400_v3  ;;  %v12440_v33 = vcombine.high %v717_v24, %v721_v36  ;;  %v724_v3 = vld [vmem:[%s14108_s5 + $0xa90] sm:$0xff]  ;;  %v757_v22 = vld [vmem:[%s14108_s5 + $0xb98] sm:$0xff] }
 0x3d5   : > { %v12445_v50 = vcombine.low %v724_v3, %v728_v35 }
 0x3d7   : > { %10997 = vmatpush1.bf16.msra.mxu0 %v12397_v5  ;;  %11530 = vmatpush1.bf16.msra.mxu1 %v12399_v43  ;;  %v12439_v5 = vcombine.low %v717_v24, %v721_v36  ;;  %v12446_v43 = vcombine.high %v724_v3, %v728_v35  ;;  %v761_v24 = vld [vmem:[%s14108_s5 + $0xbb8] sm:$0xff]  ;;  %v768_v3 = vld [vmem:[%s14108_s5 + $0xbf0] sm:$0xff] }
 0x3d8   : > { %10998 = vmatprep.subr.bf16.mxu0 %v12406_v45  ;;  %11531 = vmatprep.subr.bf16.mxu1 %v12408_v46  ;;  %v12448_v45 = vcombine.high %v725_v62, %v729_v28  ;;  %v732_v46 = vld [vmem:[%s14108_s5 + $0xad0] sm:$0xff]  ;;  %v765_v35 = vld [vmem:[%s14108_s5 + $0xbd8] sm:$0xff] }
 0x3d9   : > { %v12453_v11 = vcombine.low %v732_v46, %v736_v47 }
 0x3db   : > { %10999 = vmatpush1.bf16.msra.mxu0 %v12405_v52  ;;  %11532 = vmatpush1.bf16.msra.mxu1 %v12407_v10  ;;  %v12447_v52 = vcombine.low %v725_v62, %v729_v28  ;;  %v12454_v10 = vcombine.high %v732_v46, %v736_v47  ;;  %v769_v62 = vld [vmem:[%s14108_s5 + $0xbf8] sm:$0xff]  ;;  %v776_v46 = vld [vmem:[%s14108_s5 + $0xc30] sm:$0xff] }
 0x3dc   : > { %11000 = vmatprep.subr.bf16.mxu0 %v12414_v54  ;;  %11533 = vmatprep.subr.bf16.mxu1 %v12416_v23  ;;  %v12456_v54 = vcombine.high %v733_v49, %v737_v9  ;;  %v740_v23 = vld [vmem:[%s14108_s5 + $0xb10] sm:$0xff]  ;;  %v773_v47 = vld [vmem:[%s14108_s5 + $0xc18] sm:$0xff] }
 0x3dd   : > { %v12461_v34 = vcombine.low %v740_v23, %v744_v57 }
 0x3df   : > { %11001 = vmatpush1.bf16.msra.mxu0 %v12413_v61  ;;  %11534 = vmatpush1.bf16.msra.mxu1 %v12415_v4  ;;  %v12455_v61 = vcombine.low %v733_v49, %v737_v9  ;;  %v12462_v4 = vcombine.high %v740_v23, %v744_v57  ;;  %v777_v49 = vld [vmem:[%s14108_s5 + $0xc38] sm:$0xff]  ;;  %v784_v23 = vld [vmem:[%s14108_s5 + $0xc70] sm:$0xff] }
 0x3e0   : > { %11002 = vmatprep.subr.bf16.mxu0 %v12422_v56  ;;  %11535 = vmatprep.subr.bf16.mxu1 %v12424_v6  ;;  %v12464_v56 = vcombine.high %v741_v58, %v745_v25  ;;  %v748_v6 = vld [vmem:[%s14108_s5 + $0xb50] sm:$0xff]  ;;  %v781_v57 = vld [vmem:[%s14108_s5 + $0xc58] sm:$0xff] }
 0x3e1   : > { %v12469_v36 = vcombine.low %v748_v6, %v752_v8 }
 0x3e3   : > { %11003 = vmatpush1.bf16.msra.mxu0 %v12421_v14  ;;  %11536 = vmatpush1.bf16.msra.mxu1 %v12423_v41  ;;  %v12463_v14 = vcombine.low %v741_v58, %v745_v25  ;;  %v12470_v41 = vcombine.high %v748_v6, %v752_v8  ;;  %v785_v58 = vld [vmem:[%s14108_s5 + $0xc78] sm:$0xff]  ;;  %v792_v6 = vld [vmem:[%s14108_s5 + $0xcb0] sm:$0xff] }
 0x3e4   : > { %11004 = vmatprep.subr.bf16.mxu0 %v12430_v59  ;;  %11537 = vmatprep.subr.bf16.mxu1 %v12432_v20  ;;  %v12472_v59 = vcombine.high %v749_v17, %v753_v19  ;;  %v756_v20 = vld [vmem:[%s14108_s5 + $0xb90] sm:$0xff]  ;;  %v789_v8 = vld [vmem:[%s14108_s5 + $0xc98] sm:$0xff] }
 0x3e5   : > { %v12477_v28 = vcombine.low %v756_v20, %v760_v21 }
 0x3e7   : > { %11005 = vmatpush1.bf16.msra.mxu0 %v12429_v27  ;;  %11538 = vmatpush1.bf16.msra.mxu1 %v12431_v13  ;;  %v12471_v27 = vcombine.low %v749_v17, %v753_v19  ;;  %v12478_v13 = vcombine.high %v756_v20, %v760_v21  ;;  %v793_v17 = vld [vmem:[%s14108_s5 + $0xcb8] sm:$0xff]  ;;  %v800_v20 = vld [vmem:[%s14108_s5 + $0xcf0] sm:$0xff] }
 0x3e8   : > { %11006 = vmatprep.subr.bf16.mxu0 %v12438_v51  ;;  %11539 = vmatprep.subr.bf16.mxu1 %v12440_v33  ;;  %v12480_v51 = vcombine.high %v757_v22, %v761_v24  ;;  %v764_v33 = vld [vmem:[%s14108_s5 + $0xbd0] sm:$0xff]  ;;  %v797_v21 = vld [vmem:[%s14108_s5 + $0xcd8] sm:$0xff] }
 0x3e9   : > { %v12485_v9 = vcombine.low %v764_v33, %v768_v3 }
 0x3eb   : > { %11007 = vmatpush1.bf16.msra.mxu0 %v12437_v55  ;;  %11540 = vmatpush1.bf16.msra.mxu1 %v12439_v5  ;;  %v12479_v55 = vcombine.low %v757_v22, %v761_v24  ;;  %v12486_v5 = vcombine.high %v764_v33, %v768_v3  ;;  %v801_v22 = vld [vmem:[%s14108_s5 + $0xcf8] sm:$0xff]  ;;  %v12511_v24 = vcombine.low %v789_v8, %v793_v17 }
 0x3ec   : > { %11008 = vmatprep.subr.bf16.mxu0 %v12446_v43  ;;  %11541 = vmatprep.subr.bf16.mxu1 %v12448_v45  ;;  %v12488_v43 = vcombine.high %v765_v35, %v769_v62  ;;  %v772_v45 = vld [vmem:[%s14108_s5 + $0xc10] sm:$0xff]  ;;  %v805_v33 = vld [vmem:[%s14108_s5 + $0xd18] sm:$0xff] }
 0x3ed   : > { %v12493_v25 = vcombine.low %v772_v45, %v776_v46 }
 0x3ef   : > { %11009 = vmatpush1.bf16.msra.mxu0 %v12445_v50  ;;  %11542 = vmatpush1.bf16.msra.mxu1 %v12447_v52  ;;  %v12487_v50 = vcombine.low %v765_v35, %v769_v62  ;;  %v12494_v52 = vcombine.high %v772_v45, %v776_v46  ;;  %v12519_v35 = vcombine.low %v797_v21, %v801_v22  ;;  %v813_v45 = vld [vmem:[%s14108_s5 + $0xd58] sm:$0xff] }
 0x3f0   : > { %11010 = vmatprep.subr.bf16.mxu0 %v12454_v10  ;;  %11543 = vmatprep.subr.bf16.mxu1 %v12456_v54  ;;  %v12496_v10 = vcombine.high %v773_v47, %v777_v49  ;;  %v780_v54 = vld [vmem:[%s14108_s5 + $0xc50] sm:$0xff]  ;;  %v817_v46 = vld [vmem:[%s14108_s5 + $0xd78] sm:$0xff] }
 0x3f1   : > { %v12501_v19 = vcombine.low %v780_v54, %v784_v23 }
 0x3f3   : > { %11011 = vmatpush1.bf16.msra.mxu0 %v12453_v11  ;;  %11544 = vmatpush1.bf16.msra.mxu1 %v12455_v61  ;;  %v12495_v11 = vcombine.low %v773_v47, %v777_v49  ;;  %v12502_v61 = vcombine.high %v780_v54, %v784_v23  ;;  %v1954_v49 = vld [vmem:[%s15377_s23] sm:$0xff]  ;;  %v12536_v23 = vcombine.high %v813_v45, %v817_v46 }
 0x3f4   : > { %11012 = vmatprep.subr.bf16.mxu0 %v12462_v4  ;;  %11545 = vmatprep.subr.bf16.mxu1 %v12464_v56  ;;  %v12504_v4 = vcombine.high %v781_v57, %v785_v58  ;;  %v788_v56 = vld [vmem:[%s14108_s5 + $0xc90] sm:$0xff] }
 0x3f7   : > { %11013 = vmatpush1.bf16.msra.mxu0 %v12461_v34  ;;  %11546 = vmatpush1.bf16.msra.mxu1 %v12463_v14  ;;  %v12503_v34 = vcombine.low %v781_v57, %v785_v58  ;;  %v12510_v14 = vcombine.high %v788_v56, %v792_v6  ;;  %v820_v57 = vld [vmem:[%s14108_s5 + $0xd90] sm:$0xff] }
 0x3f8   : > { %11014 = vmatprep.subr.bf16.mxu0 %v12470_v41  ;;  %11547 = vmatprep.subr.bf16.mxu1 %v12472_v59  ;;  %v12512_v41 = vcombine.high %v789_v8, %v793_v17  ;;  %v796_v59 = vld [vmem:[%s14108_s5 + $0xcd0] sm:$0xff]  ;;  %v12535_v17 = vcombine.low %v813_v45, %v817_v46 }
 0x3f9   : > { %v12517_v3 = vcombine.low %v796_v59, %v800_v20  ;;  %v824_v58 = vld [vmem:[%s14108_s5 + $0xdb0] sm:$0xff] }
 0x3fa   : > { %v836_v45 = vld [vmem:[%s14108_s5 + $0xe10] sm:$0xff] }
 0x3fb   : > { %11015 = vmatpush1.bf16.msra.mxu0 %v12469_v36  ;;  %11548 = vmatpush1.bf16.msra.mxu1 %v12471_v27  ;;  %v12518_v36 = vcombine.high %v796_v59, %v800_v20  ;;  %v12520_v27 = vcombine.high %v797_v21, %v801_v22  ;;  %v832_v59 = vld [vmem:[%s14108_s5 + $0xdf0] sm:$0xff] }
 0x3fc   : > { %11016 = vmatprep.subr.bf16.mxu0 %v12478_v13  ;;  %11549 = vmatprep.subr.bf16.mxu1 %v12480_v51  ;;  %v804_v13 = vld [vmem:[%s14108_s5 + $0xd10] sm:$0xff] }
 0x3fd   : > { %v808_v51 = vld [vmem:[%s14108_s5 + $0xd30] sm:$0xff] }
 0x3fe   : > { %v12526_v62 = vcombine.high %v804_v13, %v808_v51  ;;  %v12525_v47 = vcombine.low %v804_v13, %v808_v51  ;;  %v840_v46 = vld [vmem:[%s14108_s5 + $0xe30] sm:$0xff] }
 0x3ff   : > { %11017 = vmatpush1.bf16.msra.mxu0 %v12477_v28  ;;  %11550 = vmatpush1.bf16.msra.mxu1 %v12479_v55  ;;  %v812_v55 = vld [vmem:[%s14108_s5 + $0xd50] sm:$0xff] }
 0x400   : > { %11018 = vmatprep.subr.bf16.mxu0 %v12486_v5  ;;  %11551 = vmatprep.subr.bf16.mxu1 %v12488_v43  ;;  %v816_v5 = vld [vmem:[%s14108_s5 + $0xd70] sm:$0xff]  ;;  %v1958_v43 = vsub.s32 0, %v14136_v44 }
 0x401   : > { %v12534_v54 = vcombine.high %v812_v55, %v816_v5 }
 0x403   : > { %11019 = vmatpush1.bf16.msra.mxu0 %v12485_v9  ;;  %11552 = vmatpush1.bf16.msra.mxu1 %v12487_v50  ;;  %v1966_v9 = vsub.s32 2, %v14136_v44  ;;  %v1962_v50 = vsub.s32 1, %v14136_v44 }
 0x404   : > { %11029 = vmatprep.subr.bf16.mxu0 %v12494_v52  ;;  %11562 = vmatprep.subr.bf16.mxu1 %v12496_v10  ;;  %v1970_v10 = vsub.s32 3, %v14136_v44 }
 0x406   : > { %11021 = vmatmul.mubr.bf16.vlgmr.msra.gmra.mrb[4].mxu0 %v14379_v2  ;;  %11554 = vmatmul.mubr.bf16.vlgmr.msra.gmra.mrb[4].mxu1 %v14379_v2  ;;  %v12509_v2 = vcombine.low %v788_v56, %v792_v6  ;;  %v1963_v56 = vrot.slane %v1954_v49, %v1962_v50  ;;  %v12533_v6 = vcombine.low %v812_v55, %v816_v5 }
 0x407   : > { %11030 = vmatpush1.bf16.msra.mxu0 %v12493_v25  ;;  %11563 = vmatpush1.bf16.msra.mxu1 %v12495_v11  ;;  %v1959_v25 = vrot.slane %v1954_v49, %v1958_v43  ;;  %v821_v11 = vld [vmem:[%s14108_s5 + $0xd98] sm:$0xff]  ;;  %v1971_v8 = vrot.slane %v1954_v49, %v1970_v10 }
 0x408   : > { %11031 = vmatprep.subr.bf16.mxu0 %v12502_v61  ;;  %11564 = vmatprep.subr.bf16.mxu1 %v12504_v4  ;;  %v825_v61 = vld [vmem:[%s14108_s5 + $0xdb8] sm:$0xff]  ;;  %v1967_v4 = vrot.slane %v1954_v49, %v1966_v9 }
 0x409   : > { %11061 = vmatprep.mubr.bf16.mxu0 %v14385_v12  ;;  %11594 = vmatprep.mubr.bf16.mxu1 %v14385_v12  ;;  %v809_v12 = vld [vmem:[%s14108_s5 + $0xd38] sm:$0xff] }
 0x40a   : > { %v12528_v28 = vcombine.high %v805_v33, %v809_v12  ;;  %v12527_v52 = vcombine.low %v805_v33, %v809_v12  ;;  %v12541_v33 = vcombine.low %v820_v57, %v824_v58  ;;  %v837_v49 = vld [vmem:[%s14108_s5 + $0xe18] sm:$0xff] }
 0x40b   : > { %11032 = vmatpush1.bf16.msra.mxu0 %v12501_v19  ;;  %11565 = vmatpush1.bf16.msra.mxu1 %v12503_v34  ;;  %v12542_v19 = vcombine.high %v820_v57, %v824_v58  ;;  %v841_v9 = vld [vmem:[%s14108_s5 + $0xe38] sm:$0xff]  ;;  %v844_v58 = vld [vmem:[%s14108_s5 + $0xe50] sm:$0xff] }
 0x40c   : > { %11033 = vmatprep.subr.bf16.mxu0 %v12510_v14  ;;  %11566 = vmatprep.subr.bf16.mxu1 %v12512_v41  ;;  %v12544_v14 = vcombine.high %v821_v11, %v825_v61  ;;  %v828_v41 = vld [vmem:[%s14108_s5 + $0xdd0] sm:$0xff]  ;;  %v12560_v57 = vcombine.high %v837_v49, %v841_v9 }
 0x40f   : > { %11034 = vmatpush1.bf16.msra.mxu0 %v12509_v2  ;;  %11567 = vmatpush1.bf16.msra.mxu1 %v12511_v24  ;;  %v829_v2 = vld [vmem:[%s14108_s5 + $0xdd8] sm:$0xff] }
 0x410   : > { %11035 = vmatprep.subr.bf16.mxu0 %v12518_v36  ;;  %11568 = vmatprep.subr.bf16.mxu1 %v12520_v27  ;;  %v833_v24 = vld [vmem:[%s14108_s5 + $0xdf8] sm:$0xff] }
 0x411   : > { %v12552_v43 = vcombine.high %v829_v2, %v833_v24 }
 0x413   : > { %11036 = vmatpush1.bf16.msra.mxu0 %v12517_v3  ;;  %11569 = vmatpush1.bf16.msra.mxu1 %v12519_v35 }
 0x414   : > { %11037 = vmatprep.subr.bf16.mxu0 %v12526_v62  ;;  %11570 = vmatprep.subr.bf16.mxu1 %v12528_v28  ;;  %v12543_v62 = vcombine.low %v821_v11, %v825_v61  ;;  %v12550_v28 = vcombine.high %v828_v41, %v832_v59  ;;  %v845_v61 = vld [vmem:[%s14108_s5 + $0xe58] sm:$0xff] }
 0x417   : > { %11038 = vmatpush1.bf16.msra.mxu0 %v12525_v47  ;;  %11571 = vmatpush1.bf16.msra.mxu1 %v12527_v52  ;;  %v12549_v52 = vcombine.low %v828_v41, %v832_v59  ;;  %v857_v41 = vld [vmem:[%s14108_s5 + $0xeb8] sm:$0xff] }
 0x418   : > { %11039 = vmatprep.subr.bf16.mxu0 %v12534_v54  ;;  %11572 = vmatprep.subr.bf16.mxu1 %v12536_v23  ;;  %v12551_v54 = vcombine.low %v829_v2, %v833_v24  ;;  %v12558_v23 = vcombine.high %v836_v45, %v840_v46  ;;  %v860_v2 = vld [vmem:[%s14108_s5 + $0xed0] sm:$0xff] }
 0x419   : > { %v10366_v34 = vpop.f32.mrb[0].mxu0  ;;  %v10899_v21 = vpop.f32.mrb[0].mxu1  ;;  %v864_v24 = vld [vmem:[%s14108_s5 + $0xef0] sm:$0xff] }
 0x41a   : > { %v13680_v20 = vadd.f32 %v10366_v34, %v1959_v25  ;;  %v10368_v22 = vpop.f32.mrb[1].mxu0  ;;  %v13682_v36 = vadd.f32 %v10899_v21, %v1967_v4  ;;  %v10901_v13 = vpop.f32.mrb[1].mxu1  ;;  %v848_v25 = vld [vmem:[%s14108_s5 + $0xe70] sm:$0xff]  ;;  %v849_v4 = vld [vmem:[%s14108_s5 + $0xe78] sm:$0xff] }
 0x41b   : > { %v13681_v27 = vadd.f32 %v10368_v22, %v1963_v56  ;;  %v10370_v51 = vpop.f32.mrb[2].mxu0  ;;  %11040 = vmatpush1.bf16.msra.mxu0 %v12533_v6  ;;  %v13683_v12 = vadd.f32 %v10901_v13, %v1971_v8  ;;  %v10903_v3 = vpop.f32.mrb[2].mxu1  ;;  %11573 = vmatpush1.bf16.msra.mxu1 %v12535_v17  ;;  %v12557_v56 = vcombine.low %v836_v45, %v840_v46  ;;  %v856_v34 = vld [vmem:[%s14108_s5 + $0xeb0] sm:$0xff] }
 0x41c   : > { %v10371_v35 = vpop.f32.mrb[3].mxu0  ;;  %11041 = vmatprep.subr.bf16.mxu0 %v12542_v19  ;;  %v10904_v5 = vpop.f32.mrb[3].mxu1  ;;  %11574 = vmatprep.subr.bf16.mxu1 %v12544_v14  ;;  %v12559_v6 = vcombine.low %v837_v49, %v841_v9  ;;  %v12566_v8 = vcombine.high %v844_v58, %v848_v25  ;;  %v12568_v17 = vcombine.high %v845_v61, %v849_v4  ;;  %v852_v19 = vld [vmem:[%s14108_s5 + $0xe90] sm:$0xff]  ;;  %v853_v14 = vld [vmem:[%s14108_s5 + $0xe98] sm:$0xff] }
 0x41d   : > { %v11980_v55 = vcombine.low %v13680_v20, %v13681_v27  ;;  %v11981_v47 = vcombine.low %v13682_v36, %v13683_v12  ;;  %v12565_v59 = vcombine.low %v844_v58, %v848_v25  ;;  %v12567_v20 = vcombine.low %v845_v61, %v849_v4  ;;  %v861_v36 = vld [vmem:[%s14108_s5 + $0xed8] sm:$0xff]  ;;  %v868_v3 = vld [vmem:[%s14108_s5 + $0xf10] sm:$0xff] }
 0x41e   : > { %v12574_v21 = vcombine.high %v852_v19, %v856_v34  ;;  %v12576_v22 = vcombine.high %v853_v14, %v857_v41  ;;  %v865_v27 = vld [vmem:[%s14108_s5 + $0xef8] sm:$0xff]  ;;  %v12573_v13 = vcombine.low %v852_v19, %v856_v34  ;;  %v12575_v51 = vcombine.low %v853_v14, %v857_v41  ;;  %v872_v35 = vld [vmem:[%s14108_s5 + $0xf30] sm:$0xff] }
 0x41f   : > { %v11988_v50 = vrot.slane %v11980_v55, %v14143_v53  ;;  %11042 = vmatpush1.bf16.msra.mxu0 %v12541_v33  ;;  %v11995_v10 = vrot.slane %v11981_v47, %v14143_v53  ;;  %11575 = vmatpush1.bf16.msra.mxu1 %v12543_v62  ;;  %v12582_v33 = vcombine.high %v860_v2, %v864_v24  ;;  %v869_v62 = vld [vmem:[%s14108_s5 + $0xf18] sm:$0xff]  ;;  %v876_v46 = vld [vmem:[%s14108_s5 + $0xf50] sm:$0xff] }
 0x420   : > { %11043 = vmatprep.subr.bf16.mxu0 %v12550_v28  ;;  %11576 = vmatprep.subr.bf16.mxu1 %v12552_v43  ;;  %v12584_v12 = vcombine.high %v861_v36, %v865_v27  ;;  %v873_v28 = vld [vmem:[%s14108_s5 + $0xf38] sm:$0xff]  ;;  %v12581_v55 = vcombine.low %v860_v2, %v864_v24  ;;  %v12583_v5 = vcombine.low %v861_v36, %v865_v27  ;;  %v880_v47 = vld [vmem:[%s14108_s5 + $0xf70] sm:$0xff] }
 0x421   : > { %v11996_v11 = vcombine.low %v11988_v50, %v11995_v10  ;;  %v12590_v43 = vcombine.high %v868_v3, %v872_v35  ;;  %v12592_v45 = vcombine.high %v869_v62, %v873_v28  ;;  %v877_v49 = vld [vmem:[%s14108_s5 + $0xf58] sm:$0xff]  ;;  %v12589_v50 = vcombine.low %v868_v3, %v872_v35 }
 0x422   : > { %v881_v9 = vld [vmem:[%s14108_s5 + $0xf78] sm:$0xff]  ;;  %v12598_v10 = vcombine.high %v876_v46, %v880_v47 }
 0x423   : > { %11044 = vmatpush1.bf16.msra.mxu0 %v12549_v52  ;;  %12016 = vst [vmem:[%s15406_s29] sm:$0xff] %v11996_v11  ;;  %11577 = vmatpush1.bf16.msra.mxu1 %v12551_v54  ;;  %v12591_v52 = vcombine.low %v869_v62, %v873_v28  ;;  %v12600_v54 = vcombine.high %v877_v49, %v881_v9  ;;  %v885_v58 = vld [vmem:[%s14108_s5 + $0xf98] sm:$0xff] }
 0x424   : > { %11045 = vmatprep.subr.bf16.mxu0 %v12558_v23  ;;  %11578 = vmatprep.subr.bf16.mxu1 %v12560_v57  ;;  %v884_v23 = vld [vmem:[%s14108_s5 + $0xf90] sm:$0xff]  ;;  %v889_v25 = vld [vmem:[%s14108_s5 + $0xfb8] sm:$0xff]  ;;  %v12597_v11 = vcombine.low %v876_v46, %v880_v47  ;;  %v12599_v61 = vcombine.low %v877_v49, %v881_v9 }
 0x425   : > { %v888_v57 = vld [vmem:[%s14108_s5 + $0xfb0] sm:$0xff]  ;;  %v897_v19 = vld [vmem:[%s14108_s5 + $0xff8] sm:$0xff]  ;;  %v12607_v14 = vcombine.low %v885_v58, %v889_v25 }
 0x426   : > { %v12606_v4 = vcombine.high %v884_v23, %v888_v57  ;;  %v12605_v34 = vcombine.low %v884_v23, %v888_v57  ;;  %v905_v2 = vld [vmem:[%s14108_s5 + $0x1038] sm:$0xff] }
 0x427   : > { %11046 = vmatpush1.bf16.msra.mxu0 %v12557_v56  ;;  %11579 = vmatpush1.bf16.msra.mxu1 %v12559_v6  ;;  %v12608_v56 = vcombine.high %v885_v58, %v889_v25  ;;  %v892_v6 = vld [vmem:[%s14108_s5 + $0xfd0] sm:$0xff]  ;;  %v913_v3 = vld [vmem:[%s14108_s5 + $0x1078] sm:$0xff] }
 0x428   : > { %11047 = vmatprep.subr.bf16.mxu0 %v12566_v8  ;;  %11580 = vmatprep.subr.bf16.mxu1 %v12568_v17  ;;  %v896_v8 = vld [vmem:[%s14108_s5 + $0xff0] sm:$0xff]  ;;  %v893_v17 = vld [vmem:[%s14108_s5 + $0xfd8] sm:$0xff] }
 0x429   : > { %v12614_v41 = vcombine.high %v892_v6, %v896_v8  ;;  %v12613_v24 = vcombine.low %v892_v6, %v896_v8  ;;  %v12615_v36 = vcombine.low %v893_v17, %v897_v19  ;;  %v921_v46 = vld [vmem:[%s14108_s5 + $0x10b8] sm:$0xff] }
 0x42a   : > { %v929_v23 = vld [vmem:[%s14108_s5 + $0x10f8] sm:$0xff] }
 0x42b   : > { %11048 = vmatpush1.bf16.msra.mxu0 %v12565_v59  ;;  %11581 = vmatpush1.bf16.msra.mxu1 %v12567_v20  ;;  %v12616_v59 = vcombine.high %v893_v17, %v897_v19  ;;  %v900_v20 = vld [vmem:[%s14108_s5 + $0x1010] sm:$0xff] }
 0x42c   : > { %11049 = vmatprep.subr.bf16.mxu0 %v12574_v21  ;;  %11582 = vmatprep.subr.bf16.mxu1 %v12576_v22  ;;  %v904_v21 = vld [vmem:[%s14108_s5 + $0x1030] sm:$0xff]  ;;  %v901_v22 = vld [vmem:[%s14108_s5 + $0x1018] sm:$0xff] }
 0x42d   : > { %v12622_v27 = vcombine.high %v900_v20, %v904_v21  ;;  %v12621_v35 = vcombine.low %v900_v20, %v904_v21  ;;  %v12623_v62 = vcombine.low %v901_v22, %v905_v2  ;;  %v940_v19 = vld [vmem:[%s14108_s5 + $0x1150] sm:$0xff] }
 0x42f   : > { %11050 = vmatpush1.bf16.msra.mxu0 %v12573_v13  ;;  %11583 = vmatpush1.bf16.msra.mxu1 %v12575_v51  ;;  %v12624_v13 = vcombine.high %v901_v22, %v905_v2  ;;  %v908_v51 = vld [vmem:[%s14108_s5 + $0x1050] sm:$0xff] }
 0x430   : > { %11051 = vmatprep.subr.bf16.mxu0 %v12582_v33  ;;  %11584 = vmatprep.subr.bf16.mxu1 %v12584_v12  ;;  %v912_v33 = vld [vmem:[%s14108_s5 + $0x1070] sm:$0xff]  ;;  %v909_v12 = vld [vmem:[%s14108_s5 + $0x1058] sm:$0xff] }
 0x431   : > { %v12630_v28 = vcombine.high %v908_v51, %v912_v33  ;;  %v12629_v47 = vcombine.low %v908_v51, %v912_v33  ;;  %v12631_v49 = vcombine.low %v909_v12, %v913_v3  ;;  %v948_v2 = vld [vmem:[%s14108_s5 + $0x1190] sm:$0xff] }
 0x433   : > { %11052 = vmatpush1.bf16.msra.mxu0 %v12581_v55  ;;  %11585 = vmatpush1.bf16.msra.mxu1 %v12583_v5  ;;  %v12632_v55 = vcombine.high %v909_v12, %v913_v3  ;;  %v916_v5 = vld [vmem:[%s14108_s5 + $0x1090] sm:$0xff] }
 0x434   : > { %11053 = vmatprep.subr.bf16.mxu0 %v12590_v43  ;;  %11586 = vmatprep.subr.bf16.mxu1 %v12592_v45  ;;  %v920_v43 = vld [vmem:[%s14108_s5 + $0x10b0] sm:$0xff]  ;;  %v917_v45 = vld [vmem:[%s14108_s5 + $0x1098] sm:$0xff] }
 0x435   : > { %v12638_v9 = vcombine.high %v916_v5, %v920_v43  ;;  %v12639_v57 = vcombine.low %v917_v45, %v921_v46  ;;  %v956_v3 = vld [vmem:[%s14108_s5 + $0x11d0] sm:$0xff] }
 0x437   : > { %11054 = vmatpush1.bf16.msra.mxu0 %v12589_v50  ;;  %11587 = vmatpush1.bf16.msra.mxu1 %v12591_v52  ;;  %v12640_v50 = vcombine.high %v917_v45, %v921_v46  ;;  %v924_v52 = vld [vmem:[%s14108_s5 + $0x10d0] sm:$0xff] }
 0x438   : > { %11055 = vmatprep.subr.bf16.mxu0 %v12598_v10  ;;  %11588 = vmatprep.subr.bf16.mxu1 %v12600_v54  ;;  %v928_v10 = vld [vmem:[%s14108_s5 + $0x10f0] sm:$0xff]  ;;  %v925_v54 = vld [vmem:[%s14108_s5 + $0x10d8] sm:$0xff] }
 0x439   : > { %v12646_v58 = vcombine.high %v924_v52, %v928_v10  ;;  %v12648_v25 = vcombine.high %v925_v54, %v929_v23  ;;  %v12645_v6 = vcombine.low %v924_v52, %v928_v10  ;;  %v964_v46 = vld [vmem:[%s14108_s5 + $0x1210] sm:$0xff] }
 0x43b   : > { %11056 = vmatpush1.bf16.msra.mxu0 %v12597_v11  ;;  %11589 = vmatpush1.bf16.msra.mxu1 %v12599_v61  ;;  %v932_v11 = vld [vmem:[%s14108_s5 + $0x1110] sm:$0xff] }
 0x43c   : > { %11057 = vmatprep.subr.bf16.mxu0 %v12606_v4  ;;  %11590 = vmatprep.subr.bf16.mxu1 %v12608_v56  ;;  %v936_v61 = vld [vmem:[%s14108_s5 + $0x1130] sm:$0xff]  ;;  %v933_v4 = vld [vmem:[%s14108_s5 + $0x1118] sm:$0xff] }
 0x43d   : > { %v937_v56 = vld [vmem:[%s14108_s5 + $0x1138] sm:$0xff]  ;;  %v12654_v8 = vcombine.high %v932_v11, %v936_v61 }
 0x43e   : > { %v12656_v17 = vcombine.high %v933_v4, %v937_v56  ;;  %v12655_v20 = vcombine.low %v933_v4, %v937_v56  ;;  %v980_v56 = vld [vmem:[%s14108_s5 + $0x1290] sm:$0xff] }
 0x43f   : > { %11058 = vmatpush1.bf16.msra.mxu0 %v12605_v34  ;;  %11591 = vmatpush1.bf16.msra.mxu1 %v12607_v14  ;;  %v944_v34 = vld [vmem:[%s14108_s5 + $0x1170] sm:$0xff]  ;;  %v941_v14 = vld [vmem:[%s14108_s5 + $0x1158] sm:$0xff] }
 0x440   : > { %11059 = vmatprep.subr.bf16.mxu0 %v12614_v41  ;;  %11592 = vmatprep.subr.bf16.mxu1 %v12616_v59  ;;  %v945_v41 = vld [vmem:[%s14108_s5 + $0x1178] sm:$0xff]  ;;  %v12653_v59 = vcombine.low %v932_v11, %v936_v61  ;;  %v12662_v21 = vcombine.high %v940_v19, %v944_v34 }
 0x441   : > { %v12664_v22 = vcombine.high %v941_v14, %v945_v41  ;;  %v12663_v51 = vcombine.low %v941_v14, %v945_v41  ;;  %v988_v41 = vld [vmem:[%s14108_s5 + $0x12d0] sm:$0xff] }
 0x443   : > { %11060 = vmatpush1.bf16.msra.mxu0 %v12613_v24  ;;  %11593 = vmatpush1.bf16.msra.mxu1 %v12615_v36  ;;  %v952_v24 = vld [vmem:[%s14108_s5 + $0x11b0] sm:$0xff]  ;;  %v949_v36 = vld [vmem:[%s14108_s5 + $0x1198] sm:$0xff] }
 0x444   : > { %11070 = vmatprep.subr.bf16.mxu0 %v12622_v27  ;;  %11603 = vmatprep.subr.bf16.mxu1 %v12624_v13  ;;  %v953_v27 = vld [vmem:[%s14108_s5 + $0x11b8] sm:$0xff]  ;;  %v12661_v13 = vcombine.low %v940_v19, %v944_v34  ;;  %v12670_v33 = vcombine.high %v948_v2, %v952_v24 }
 0x445   : > { %v12672_v12 = vcombine.high %v949_v36, %v953_v27 }
 0x446   : > { %11062 = vmatmul.mubr.bf16.vlgmr.msra.gmra.mrb[4].mxu0 %v14464_v29  ;;  %11595 = vmatmul.mubr.bf16.vlgmr.msra.gmra.mrb[4].mxu1 %v14464_v29  ;;  %v12637_v29 = vcombine.low %v916_v5, %v920_v43  ;;  %v12671_v5 = vcombine.low %v949_v36, %v953_v27  ;;  %v996_v27 = vld [vmem:[%s14108_s5 + $0x1310] sm:$0xff] }
 0x447   : > { %11071 = vmatpush1.bf16.msra.mxu0 %v12621_v35  ;;  %11604 = vmatpush1.bf16.msra.mxu1 %v12623_v62  ;;  %v960_v35 = vld [vmem:[%s14108_s5 + $0x11f0] sm:$0xff]  ;;  %v957_v62 = vld [vmem:[%s14108_s5 + $0x11d8] sm:$0xff] }
 0x448   : > { %11072 = vmatprep.subr.bf16.mxu0 %v12630_v28  ;;  %11605 = vmatprep.subr.bf16.mxu1 %v12632_v55  ;;  %v961_v28 = vld [vmem:[%s14108_s5 + $0x11f8] sm:$0xff]  ;;  %v12669_v55 = vcombine.low %v948_v2, %v952_v24  ;;  %v12678_v43 = vcombine.high %v956_v3, %v960_v35 }
 0x449   : > { %11102 = vmatprep.mubr.bf16.mxu0 %v14470_v39  ;;  %11635 = vmatprep.mubr.bf16.mxu1 %v14470_v39  ;;  %v12647_v39 = vcombine.low %v925_v54, %v929_v23  ;;  %v12680_v45 = vcombine.high %v957_v62, %v961_v28  ;;  %v12679_v52 = vcombine.low %v957_v62, %v961_v28  ;;  %v972_v23 = vld [vmem:[%s14108_s5 + $0x1250] sm:$0xff] }
 0x44a   : > { %v1004_v28 = vld [vmem:[%s14108_s5 + $0x1350] sm:$0xff] }
 0x44b   : > { %11073 = vmatpush1.bf16.msra.mxu0 %v12629_v47  ;;  %11606 = vmatpush1.bf16.msra.mxu1 %v12631_v49  ;;  %v968_v47 = vld [vmem:[%s14108_s5 + $0x1230] sm:$0xff]  ;;  %v965_v49 = vld [vmem:[%s14108_s5 + $0x1218] sm:$0xff] }
 0x44c   : > { %11074 = vmatprep.subr.bf16.mxu0 %v12638_v9  ;;  %11607 = vmatprep.subr.bf16.mxu1 %v12640_v50  ;;  %v969_v9 = vld [vmem:[%s14108_s5 + $0x1238] sm:$0xff]  ;;  %v12677_v50 = vcombine.low %v956_v3, %v960_v35  ;;  %v12686_v10 = vcombine.high %v964_v46, %v968_v47 }
 0x44d   : > { %v12688_v54 = vcombine.high %v965_v49, %v969_v9  ;;  %v12687_v11 = vcombine.low %v965_v49, %v969_v9  ;;  %v1012_v9 = vld [vmem:[%s14108_s5 + $0x1390] sm:$0xff] }
 0x44f   : > { %11075 = vmatpush1.bf16.msra.mxu0 %v12637_v29  ;;  %11608 = vmatpush1.bf16.msra.mxu1 %v12639_v57  ;;  %v976_v29 = vld [vmem:[%s14108_s5 + $0x1270] sm:$0xff]  ;;  %v973_v57 = vld [vmem:[%s14108_s5 + $0x1258] sm:$0xff] }
 0x450   : > { %11076 = vmatprep.subr.bf16.mxu0 %v12646_v58  ;;  %11609 = vmatprep.subr.bf16.mxu1 %v12648_v25  ;;  %v977_v58 = vld [vmem:[%s14108_s5 + $0x1278] sm:$0xff]  ;;  %v12685_v25 = vcombine.low %v964_v46, %v968_v47  ;;  %v12694_v61 = vcombine.high %v972_v23, %v976_v29 }
 0x451   : > { %v12696_v4 = vcombine.high %v973_v57, %v977_v58  ;;  %v12695_v19 = vcombine.low %v973_v57, %v977_v58  ;;  %v1020_v58 = vld [vmem:[%s14108_s5 + $0x13d0] sm:$0xff] }
 0x453   : > { %11077 = vmatpush1.bf16.msra.mxu0 %v12645_v6  ;;  %11610 = vmatpush1.bf16.msra.mxu1 %v12647_v39  ;;  %v984_v6 = vld [vmem:[%s14108_s5 + $0x12b0] sm:$0xff]  ;;  %v981_v39 = vld [vmem:[%s14108_s5 + $0x1298] sm:$0xff] }
 0x454   : > { %11078 = vmatprep.subr.bf16.mxu0 %v12654_v8  ;;  %11611 = vmatprep.subr.bf16.mxu1 %v12656_v17  ;;  %v985_v8 = vld [vmem:[%s14108_s5 + $0x12b8] sm:$0xff]  ;;  %v12693_v17 = vcombine.low %v972_v23, %v976_v29  ;;  %v12702_v34 = vcombine.high %v980_v56, %v984_v6 }
 0x455   : > { %v12704_v14 = vcombine.high %v981_v39, %v985_v8  ;;  %v12703_v2 = vcombine.low %v981_v39, %v985_v8  ;;  %v1028_v8 = vld [vmem:[%s14108_s5 + $0x1410] sm:$0xff] }
 0x457   : > { %11079 = vmatpush1.bf16.msra.mxu0 %v12653_v59  ;;  %11612 = vmatpush1.bf16.msra.mxu1 %v12655_v20  ;;  %v992_v59 = vld [vmem:[%s14108_s5 + $0x12f0] sm:$0xff]  ;;  %v989_v20 = vld [vmem:[%s14108_s5 + $0x12d8] sm:$0xff] }
 0x458   : > { %11080 = vmatprep.subr.bf16.mxu0 %v12662_v21  ;;  %11613 = vmatprep.subr.bf16.mxu1 %v12664_v22  ;;  %v993_v21 = vld [vmem:[%s14108_s5 + $0x12f8] sm:$0xff]  ;;  %v12701_v22 = vcombine.low %v980_v56, %v984_v6  ;;  %v12710_v24 = vcombine.high %v988_v41, %v992_v59 }
 0x459   : > { %v12712_v36 = vcombine.high %v989_v20, %v993_v21  ;;  %v12711_v3 = vcombine.low %v989_v20, %v993_v21  ;;  %v1036_v21 = vld [vmem:[%s14108_s5 + $0x1450] sm:$0xff] }
 0x45b   : > { %11081 = vmatpush1.bf16.msra.mxu0 %v12661_v13  ;;  %11614 = vmatpush1.bf16.msra.mxu1 %v12663_v51  ;;  %v1000_v13 = vld [vmem:[%s14108_s5 + $0x1330] sm:$0xff]  ;;  %v997_v51 = vld [vmem:[%s14108_s5 + $0x1318] sm:$0xff] }
 0x45c   : > { %11082 = vmatprep.subr.bf16.mxu0 %v12670_v33  ;;  %11615 = vmatprep.subr.bf16.mxu1 %v12672_v12  ;;  %v1001_v33 = vld [vmem:[%s14108_s5 + $0x1338] sm:$0xff]  ;;  %v12709_v12 = vcombine.low %v988_v41, %v992_v59  ;;  %v12718_v35 = vcombine.high %v996_v27, %v1000_v13 }
 0x45d   : > { %v12720_v62 = vcombine.high %v997_v51, %v1001_v33  ;;  %v12719_v46 = vcombine.low %v997_v51, %v1001_v33  ;;  %v1044_v33 = vld [vmem:[%s14108_s5 + $0x1490] sm:$0xff] }
 0x45f   : > { %11083 = vmatpush1.bf16.msra.mxu0 %v12669_v55  ;;  %11616 = vmatpush1.bf16.msra.mxu1 %v12671_v5  ;;  %v1008_v55 = vld [vmem:[%s14108_s5 + $0x1370] sm:$0xff]  ;;  %v1005_v5 = vld [vmem:[%s14108_s5 + $0x1358] sm:$0xff] }
 0x460   : > { %11084 = vmatprep.subr.bf16.mxu0 %v12678_v43  ;;  %11617 = vmatprep.subr.bf16.mxu1 %v12680_v45  ;;  %v1009_v43 = vld [vmem:[%s14108_s5 + $0x1378] sm:$0xff]  ;;  %v12717_v45 = vcombine.low %v996_v27, %v1000_v13  ;;  %v12726_v47 = vcombine.high %v1004_v28, %v1008_v55 }
 0x461   : > { %v12728_v49 = vcombine.high %v1005_v5, %v1009_v43  ;;  %v12727_v23 = vcombine.low %v1005_v5, %v1009_v43  ;;  %v1052_v43 = vld [vmem:[%s14108_s5 + $0x14d0] sm:$0xff] }
 0x463   : > { %11085 = vmatpush1.bf16.msra.mxu0 %v12677_v50  ;;  %11618 = vmatpush1.bf16.msra.mxu1 %v12679_v52  ;;  %v1016_v50 = vld [vmem:[%s14108_s5 + $0x13b0] sm:$0xff]  ;;  %v1013_v52 = vld [vmem:[%s14108_s5 + $0x1398] sm:$0xff] }
 0x464   : > { %11086 = vmatprep.subr.bf16.mxu0 %v12686_v10  ;;  %11619 = vmatprep.subr.bf16.mxu1 %v12688_v54  ;;  %v1017_v10 = vld [vmem:[%s14108_s5 + $0x13b8] sm:$0xff]  ;;  %v12725_v54 = vcombine.low %v1004_v28, %v1008_v55  ;;  %v12734_v29 = vcombine.high %v1012_v9, %v1016_v50 }
 0x465   : > { %v12736_v57 = vcombine.high %v1013_v52, %v1017_v10  ;;  %v12735_v56 = vcombine.low %v1013_v52, %v1017_v10  ;;  %v1060_v52 = vld [vmem:[%s14108_s5 + $0x1510] sm:$0xff] }
 0x466   : > { %v1064_v10 = vld [vmem:[%s14108_s5 + $0x1530] sm:$0xff] }
 0x467   : > { %11087 = vmatpush1.bf16.msra.mxu0 %v12685_v25  ;;  %11620 = vmatpush1.bf16.msra.mxu1 %v12687_v11  ;;  %v1024_v25 = vld [vmem:[%s14108_s5 + $0x13f0] sm:$0xff]  ;;  %v1021_v11 = vld [vmem:[%s14108_s5 + $0x13d8] sm:$0xff] }
 0x468   : > { %11088 = vmatprep.subr.bf16.mxu0 %v12694_v61  ;;  %11621 = vmatprep.subr.bf16.mxu1 %v12696_v4  ;;  %v1025_v61 = vld [vmem:[%s14108_s5 + $0x13f8] sm:$0xff]  ;;  %v12733_v4 = vcombine.low %v1012_v9, %v1016_v50  ;;  %v12742_v6 = vcombine.high %v1020_v58, %v1024_v25 }
 0x469   : > { %v12744_v39 = vcombine.high %v1021_v11, %v1025_v61  ;;  %v12743_v41 = vcombine.low %v1021_v11, %v1025_v61  ;;  %v1072_v11 = vld [vmem:[%s14108_s5 + $0x1570] sm:$0xff]  ;;  %v1069_v61 = vld [vmem:[%s14108_s5 + $0x1558] sm:$0xff] }
 0x46b   : > { %11089 = vmatpush1.bf16.msra.mxu0 %v12693_v17  ;;  %11622 = vmatpush1.bf16.msra.mxu1 %v12695_v19  ;;  %v1032_v17 = vld [vmem:[%s14108_s5 + $0x1430] sm:$0xff]  ;;  %v1029_v19 = vld [vmem:[%s14108_s5 + $0x1418] sm:$0xff] }
 0x46c   : > { %11090 = vmatprep.subr.bf16.mxu0 %v12702_v34  ;;  %11623 = vmatprep.subr.bf16.mxu1 %v12704_v14  ;;  %v1033_v34 = vld [vmem:[%s14108_s5 + $0x1438] sm:$0xff]  ;;  %v12741_v14 = vcombine.low %v1020_v58, %v1024_v25  ;;  %v12750_v59 = vcombine.high %v1028_v8, %v1032_v17  ;;  %v1068_v25 = vld [vmem:[%s14108_s5 + $0x1550] sm:$0xff] }
 0x46d   : > { %v12752_v20 = vcombine.high %v1029_v19, %v1033_v34  ;;  %v12751_v27 = vcombine.low %v1029_v19, %v1033_v34  ;;  %v1080_v19 = vld [vmem:[%s14108_s5 + $0x15b0] sm:$0xff]  ;;  %v1077_v34 = vld [vmem:[%s14108_s5 + $0x1598] sm:$0xff] }
 0x46f   : > { %11091 = vmatpush1.bf16.msra.mxu0 %v12701_v22  ;;  %11624 = vmatpush1.bf16.msra.mxu1 %v12703_v2  ;;  %v1040_v22 = vld [vmem:[%s14108_s5 + $0x1470] sm:$0xff]  ;;  %v1037_v2 = vld [vmem:[%s14108_s5 + $0x1458] sm:$0xff] }
 0x470   : > { %11092 = vmatprep.subr.bf16.mxu0 %v12710_v24  ;;  %11625 = vmatprep.subr.bf16.mxu1 %v12712_v36  ;;  %v1041_v24 = vld [vmem:[%s14108_s5 + $0x1478] sm:$0xff]  ;;  %v12749_v36 = vcombine.low %v1028_v8, %v1032_v17  ;;  %v12758_v13 = vcombine.high %v1036_v21, %v1040_v22  ;;  %v1076_v17 = vld [vmem:[%s14108_s5 + $0x1590] sm:$0xff] }
 0x471   : > { %v12760_v51 = vcombine.high %v1037_v2, %v1041_v24  ;;  %v12759_v28 = vcombine.low %v1037_v2, %v1041_v24  ;;  %v1088_v2 = vld [vmem:[%s14108_s5 + $0x15f0] sm:$0xff]  ;;  %v1085_v24 = vld [vmem:[%s14108_s5 + $0x15d8] sm:$0xff] }
 0x473   : > { %11093 = vmatpush1.bf16.msra.mxu0 %v12709_v12  ;;  %11626 = vmatpush1.bf16.msra.mxu1 %v12711_v3  ;;  %v1048_v12 = vld [vmem:[%s14108_s5 + $0x14b0] sm:$0xff]  ;;  %v1045_v3 = vld [vmem:[%s14108_s5 + $0x1498] sm:$0xff] }
 0x474   : > { %11094 = vmatprep.subr.bf16.mxu0 %v12718_v35  ;;  %11627 = vmatprep.subr.bf16.mxu1 %v12720_v62  ;;  %v1049_v35 = vld [vmem:[%s14108_s5 + $0x14b8] sm:$0xff]  ;;  %v12757_v62 = vcombine.low %v1036_v21, %v1040_v22  ;;  %v12766_v55 = vcombine.high %v1044_v33, %v1048_v12  ;;  %v1084_v22 = vld [vmem:[%s14108_s5 + $0x15d0] sm:$0xff] }
 0x475   : > { %v12768_v5 = vcombine.high %v1045_v3, %v1049_v35 }
 0x477   : > { %11095 = vmatpush1.bf16.msra.mxu0 %v12717_v45  ;;  %11628 = vmatpush1.bf16.msra.mxu1 %v12719_v46  ;;  %v1056_v45 = vld [vmem:[%s14108_s5 + $0x14f0] sm:$0xff]  ;;  %v1053_v46 = vld [vmem:[%s14108_s5 + $0x14d8] sm:$0xff] }
 0x478   : > { %11096 = vmatprep.subr.bf16.mxu0 %v12726_v47  ;;  %11629 = vmatprep.subr.bf16.mxu1 %v12728_v49  ;;  %v1057_v47 = vld [vmem:[%s14108_s5 + $0x14f8] sm:$0xff]  ;;  %v12767_v49 = vcombine.low %v1045_v3, %v1049_v35  ;;  %v12774_v9 = vcombine.high %v1052_v43, %v1056_v45  ;;  %v1096_v3 = vld [vmem:[%s14108_s5 + $0x1630] sm:$0xff] }
 0x479   : > { %v12776_v50 = vcombine.high %v1053_v46, %v1057_v47  ;;  %v1093_v35 = vld [vmem:[%s14108_s5 + $0x1618] sm:$0xff] }
 0x47b   : > { %11097 = vmatpush1.bf16.msra.mxu0 %v12725_v54  ;;  %11630 = vmatpush1.bf16.msra.mxu1 %v12727_v23  ;;  %v1061_v54 = vld [vmem:[%s14108_s5 + $0x1518] sm:$0xff] }
 0x47c   : > { %11098 = vmatprep.subr.bf16.mxu0 %v12734_v29  ;;  %11631 = vmatprep.subr.bf16.mxu1 %v12736_v57  ;;  %v1065_v23 = vld [vmem:[%s14108_s5 + $0x1538] sm:$0xff]  ;;  %v12773_v29 = vcombine.low %v1052_v43, %v1056_v45  ;;  %v12782_v57 = vcombine.high %v1060_v52, %v1064_v10  ;;  %v1100_v45 = vld [vmem:[%s14108_s5 + $0x1650] sm:$0xff] }
 0x47d   : > { %v12784_v58 = vcombine.high %v1061_v54, %v1065_v23 }
 0x47f   : > { %11099 = vmatpush1.bf16.msra.mxu0 %v12733_v4  ;;  %11632 = vmatpush1.bf16.msra.mxu1 %v12735_v56  ;;  %v1073_v4 = vld [vmem:[%s14108_s5 + $0x1578] sm:$0xff]  ;;  %v12781_v56 = vcombine.low %v1060_v52, %v1064_v10  ;;  %v1108_v10 = vld [vmem:[%s14108_s5 + $0x1690] sm:$0xff] }
 0x480   : > { %11100 = vmatprep.subr.bf16.mxu0 %v12742_v6  ;;  %11633 = vmatprep.subr.bf16.mxu1 %v12744_v39  ;;  %v12783_v6 = vcombine.low %v1061_v54, %v1065_v23  ;;  %v12790_v39 = vcombine.high %v1068_v25, %v1072_v11  ;;  %v12792_v8 = vcombine.high %v1069_v61, %v1073_v4  ;;  %v1112_v54 = vld [vmem:[%s14108_s5 + $0x16b0] sm:$0xff]  ;;  %v1109_v23 = vld [vmem:[%s14108_s5 + $0x1698] sm:$0xff] }
 0x483   : > { %11101 = vmatpush1.bf16.msra.mxu0 %v12741_v14  ;;  %11634 = vmatpush1.bf16.msra.mxu1 %v12743_v41  ;;  %v1081_v14 = vld [vmem:[%s14108_s5 + $0x15b8] sm:$0xff]  ;;  %v12789_v41 = vcombine.low %v1068_v25, %v1072_v11  ;;  %v1116_v11 = vld [vmem:[%s14108_s5 + $0x16d0] sm:$0xff] }
 0x484   : > { %11111 = vmatprep.subr.bf16.mxu0 %v12750_v59  ;;  %11644 = vmatprep.subr.bf16.mxu1 %v12752_v20  ;;  %v12791_v59 = vcombine.low %v1069_v61, %v1073_v4  ;;  %v12798_v20 = vcombine.high %v1076_v17, %v1080_v19  ;;  %v12800_v21 = vcombine.high %v1077_v34, %v1081_v14  ;;  %v1120_v61 = vld [vmem:[%s14108_s5 + $0x16f0] sm:$0xff]  ;;  %v1117_v4 = vld [vmem:[%s14108_s5 + $0x16d8] sm:$0xff] }
 0x486   : > { %11103 = vmatmul.mubr.bf16.vlgmr.msra.gmra.mrb[4].mxu0 %v14545_v0  ;;  %11636 = vmatmul.mubr.bf16.vlgmr.msra.gmra.mrb[4].mxu1 %v14545_v0  ;;  %v12765_v0 = vcombine.low %v1044_v33, %v1048_v12  ;;  %v1092_v12 = vld [vmem:[%s14108_s5 + $0x1610] sm:$0xff] }
 0x487   : > { %11112 = vmatpush1.bf16.msra.mxu0 %v12749_v36  ;;  %11645 = vmatpush1.bf16.msra.mxu1 %v12751_v27  ;;  %v1089_v36 = vld [vmem:[%s14108_s5 + $0x15f8] sm:$0xff]  ;;  %v12797_v27 = vcombine.low %v1076_v17, %v1080_v19  ;;  %v1124_v19 = vld [vmem:[%s14108_s5 + $0x1710] sm:$0xff] }
 0x488   : > { %11113 = vmatprep.subr.bf16.mxu0 %v12758_v13  ;;  %11646 = vmatprep.subr.bf16.mxu1 %v12760_v51  ;;  %v12799_v13 = vcombine.low %v1077_v34, %v1081_v14  ;;  %v12806_v51 = vcombine.high %v1084_v22, %v1088_v2  ;;  %v12808_v33 = vcombine.high %v1085_v24, %v1089_v36  ;;  %v1128_v34 = vld [vmem:[%s14108_s5 + $0x1730] sm:$0xff]  ;;  %v1125_v14 = vld [vmem:[%s14108_s5 + $0x1718] sm:$0xff] }
 0x489   : > { %11143 = vmatprep.mubr.bf16.mxu0 %v14551_v31  ;;  %11676 = vmatprep.mubr.bf16.mxu1 %v14551_v31  ;;  %v12775_v31 = vcombine.low %v1053_v46, %v1057_v47  ;;  %v1104_v46 = vld [vmem:[%s14108_s5 + $0x1670] sm:$0xff]  ;;  %v1101_v47 = vld [vmem:[%s14108_s5 + $0x1658] sm:$0xff] }
 0x48b   : > { %11114 = vmatpush1.bf16.msra.mxu0 %v12757_v62  ;;  %11647 = vmatpush1.bf16.msra.mxu1 %v12759_v28  ;;  %v1097_v62 = vld [vmem:[%s14108_s5 + $0x1638] sm:$0xff]  ;;  %v12805_v28 = vcombine.low %v1084_v22, %v1088_v2  ;;  %v1132_v2 = vld [vmem:[%s14108_s5 + $0x1750] sm:$0xff] }
 0x48c   : > { %11115 = vmatprep.subr.bf16.mxu0 %v12766_v55  ;;  %11648 = vmatprep.subr.bf16.mxu1 %v12768_v5  ;;  %v12807_v55 = vcombine.low %v1085_v24, %v1089_v36  ;;  %v12814_v5 = vcombine.high %v1092_v12, %v1096_v3  ;;  %v12816_v43 = vcombine.high %v1093_v35, %v1097_v62  ;;  %v1136_v24 = vld [vmem:[%s14108_s5 + $0x1770] sm:$0xff]  ;;  %v1133_v36 = vld [vmem:[%s14108_s5 + $0x1758] sm:$0xff] }
 0x48f   : > { %11116 = vmatpush1.bf16.msra.mxu0 %v12765_v0  ;;  %11649 = vmatpush1.bf16.msra.mxu1 %v12767_v49  ;;  %v1105_v0 = vld [vmem:[%s14108_s5 + $0x1678] sm:$0xff]  ;;  %v12813_v49 = vcombine.low %v1092_v12, %v1096_v3  ;;  %v1140_v3 = vld [vmem:[%s14108_s5 + $0x1790] sm:$0xff] }
 0x490   : > { %11117 = vmatprep.subr.bf16.mxu0 %v12774_v9  ;;  %11650 = vmatprep.subr.bf16.mxu1 %v12776_v50  ;;  %v12815_v9 = vcombine.low %v1093_v35, %v1097_v62  ;;  %v12822_v50 = vcombine.high %v1100_v45, %v1104_v46  ;;  %v12824_v52 = vcombine.high %v1101_v47, %v1105_v0  ;;  %v1144_v35 = vld [vmem:[%s14108_s5 + $0x17b0] sm:$0xff]  ;;  %v1141_v62 = vld [vmem:[%s14108_s5 + $0x1798] sm:$0xff] }
 0x493   : > { %11118 = vmatpush1.bf16.msra.mxu0 %v12773_v29  ;;  %11651 = vmatpush1.bf16.msra.mxu1 %v12775_v31  ;;  %v1113_v29 = vld [vmem:[%s14108_s5 + $0x16b8] sm:$0xff]  ;;  %v12821_v31 = vcombine.low %v1100_v45, %v1104_v46  ;;  %v1148_v46 = vld [vmem:[%s14108_s5 + $0x17d0] sm:$0xff] }
 0x494   : > { %11119 = vmatprep.subr.bf16.mxu0 %v12782_v57  ;;  %11652 = vmatprep.subr.bf16.mxu1 %v12784_v58  ;;  %v12823_v57 = vcombine.low %v1101_v47, %v1105_v0  ;;  %v12830_v58 = vcombine.high %v1108_v10, %v1112_v54  ;;  %v12832_v25 = vcombine.high %v1109_v23, %v1113_v29  ;;  %v1152_v47 = vld [vmem:[%s14108_s5 + $0x17f0] sm:$0xff]  ;;  %v1149_v0 = vld [vmem:[%s14108_s5 + $0x17d8] sm:$0xff] }
 0x497   : > { %11120 = vmatpush1.bf16.msra.mxu0 %v12781_v56  ;;  %11653 = vmatpush1.bf16.msra.mxu1 %v12783_v6  ;;  %v1121_v56 = vld [vmem:[%s14108_s5 + $0x16f8] sm:$0xff]  ;;  %v12829_v6 = vcombine.low %v1108_v10, %v1112_v54  ;;  %v1156_v54 = vld [vmem:[%s14108_s5 + $0x1810] sm:$0xff] }
 0x498   : > { %11121 = vmatprep.subr.bf16.mxu0 %v12790_v39  ;;  %11654 = vmatprep.subr.bf16.mxu1 %v12792_v8  ;;  %v12831_v39 = vcombine.low %v1109_v23, %v1113_v29  ;;  %v12838_v8 = vcombine.high %v1116_v11, %v1120_v61  ;;  %v12840_v17 = vcombine.high %v1117_v4, %v1121_v56  ;;  %v1160_v23 = vld [vmem:[%s14108_s5 + $0x1830] sm:$0xff]  ;;  %v1157_v29 = vld [vmem:[%s14108_s5 + $0x1818] sm:$0xff] }
 0x49b   : > { %11122 = vmatpush1.bf16.msra.mxu0 %v12789_v41  ;;  %11655 = vmatpush1.bf16.msra.mxu1 %v12791_v59  ;;  %v1129_v41 = vld [vmem:[%s14108_s5 + $0x1738] sm:$0xff]  ;;  %v12837_v59 = vcombine.low %v1116_v11, %v1120_v61  ;;  %v1164_v61 = vld [vmem:[%s14108_s5 + $0x1850] sm:$0xff] }
 0x49c   : > { %11123 = vmatprep.subr.bf16.mxu0 %v12798_v20  ;;  %11656 = vmatprep.subr.bf16.mxu1 %v12800_v21  ;;  %v12839_v20 = vcombine.low %v1117_v4, %v1121_v56  ;;  %v12846_v21 = vcombine.high %v1124_v19, %v1128_v34  ;;  %v12848_v22 = vcombine.high %v1125_v14, %v1129_v41  ;;  %v1168_v4 = vld [vmem:[%s14108_s5 + $0x1870] sm:$0xff]  ;;  %v1165_v56 = vld [vmem:[%s14108_s5 + $0x1858] sm:$0xff] }
 0x49f   : > { %11124 = vmatpush1.bf16.msra.mxu0 %v12797_v27  ;;  %11657 = vmatpush1.bf16.msra.mxu1 %v12799_v13  ;;  %v1137_v27 = vld [vmem:[%s14108_s5 + $0x1778] sm:$0xff]  ;;  %v12845_v13 = vcombine.low %v1124_v19, %v1128_v34  ;;  %v1172_v34 = vld [vmem:[%s14108_s5 + $0x1890] sm:$0xff] }
 0x4a0   : > { %11125 = vmatprep.subr.bf16.mxu0 %v12806_v51  ;;  %11658 = vmatprep.subr.bf16.mxu1 %v12808_v33  ;;  %v12847_v51 = vcombine.low %v1125_v14, %v1129_v41  ;;  %v12854_v33 = vcombine.high %v1132_v2, %v1136_v24  ;;  %v12856_v12 = vcombine.high %v1133_v36, %v1137_v27  ;;  %v1176_v14 = vld [vmem:[%s14108_s5 + $0x18b0] sm:$0xff]  ;;  %v1173_v41 = vld [vmem:[%s14108_s5 + $0x1898] sm:$0xff] }
 0x4a3   : > { %11126 = vmatpush1.bf16.msra.mxu0 %v12805_v28  ;;  %11659 = vmatpush1.bf16.msra.mxu1 %v12807_v55  ;;  %v1145_v28 = vld [vmem:[%s14108_s5 + $0x17b8] sm:$0xff]  ;;  %v12853_v55 = vcombine.low %v1132_v2, %v1136_v24  ;;  %v1180_v24 = vld [vmem:[%s14108_s5 + $0x18d0] sm:$0xff] }
 0x4a4   : > { %11127 = vmatprep.subr.bf16.mxu0 %v12814_v5  ;;  %11660 = vmatprep.subr.bf16.mxu1 %v12816_v43  ;;  %v12855_v5 = vcombine.low %v1133_v36, %v1137_v27  ;;  %v12862_v43 = vcombine.high %v1140_v3, %v1144_v35  ;;  %v12864_v45 = vcombine.high %v1141_v62, %v1145_v28  ;;  %v1184_v36 = vld [vmem:[%s14108_s5 + $0x18f0] sm:$0xff]  ;;  %v1181_v27 = vld [vmem:[%s14108_s5 + $0x18d8] sm:$0xff] }
 0x4a7   : > { %11128 = vmatpush1.bf16.msra.mxu0 %v12813_v49  ;;  %11661 = vmatpush1.bf16.msra.mxu1 %v12815_v9  ;;  %v1153_v49 = vld [vmem:[%s14108_s5 + $0x17f8] sm:$0xff]  ;;  %v12861_v9 = vcombine.low %v1140_v3, %v1144_v35  ;;  %v1188_v3 = vld [vmem:[%s14108_s5 + $0x1910] sm:$0xff] }
 0x4a8   : > { %11129 = vmatprep.subr.bf16.mxu0 %v12822_v50  ;;  %11662 = vmatprep.subr.bf16.mxu1 %v12824_v52  ;;  %v12863_v50 = vcombine.low %v1141_v62, %v1145_v28  ;;  %v12870_v52 = vcombine.high %v1148_v46, %v1152_v47  ;;  %v12872_v10 = vcombine.high %v1149_v0, %v1153_v49  ;;  %v1192_v35 = vld [vmem:[%s14108_s5 + $0x1930] sm:$0xff]  ;;  %v1189_v62 = vld [vmem:[%s14108_s5 + $0x1918] sm:$0xff] }
 0x4a9   : > { %v1193_v28 = vld [vmem:[%s14108_s5 + $0x1938] sm:$0xff] }
 0x4ab   : > { %11130 = vmatpush1.bf16.msra.mxu0 %v12821_v31  ;;  %11663 = vmatpush1.bf16.msra.mxu1 %v12823_v57  ;;  %v1161_v31 = vld [vmem:[%s14108_s5 + $0x1838] sm:$0xff]  ;;  %v12869_v57 = vcombine.low %v1148_v46, %v1152_v47  ;;  %v1200_v46 = vld [vmem:[%s14108_s5 + $0x1970] sm:$0xff] }
 0x4ac   : > { %11131 = vmatprep.subr.bf16.mxu0 %v12830_v58  ;;  %11664 = vmatprep.subr.bf16.mxu1 %v12832_v25  ;;  %v12871_v58 = vcombine.low %v1149_v0, %v1153_v49  ;;  %v12878_v25 = vcombine.high %v1156_v54, %v1160_v23  ;;  %v12880_v11 = vcombine.high %v1157_v29, %v1161_v31  ;;  %v1197_v47 = vld [vmem:[%s14108_s5 + $0x1958] sm:$0xff] }
 0x4ad   : > { %v1201_v0 = vld [vmem:[%s14108_s5 + $0x1978] sm:$0xff]  ;;  %v12909_v49 = vcombine.low %v1188_v3, %v1192_v35 }
 0x4af   : > { %11132 = vmatpush1.bf16.msra.mxu0 %v12829_v6  ;;  %11665 = vmatpush1.bf16.msra.mxu1 %v12831_v39  ;;  %v1169_v6 = vld [vmem:[%s14108_s5 + $0x1878] sm:$0xff]  ;;  %v12877_v39 = vcombine.low %v1156_v54, %v1160_v23  ;;  %v1208_v54 = vld [vmem:[%s14108_s5 + $0x19b0] sm:$0xff] }
 0x4b0   : > { %11133 = vmatprep.subr.bf16.mxu0 %v12838_v8  ;;  %11666 = vmatprep.subr.bf16.mxu1 %v12840_v17  ;;  %v12879_v8 = vcombine.low %v1157_v29, %v1161_v31  ;;  %v12886_v17 = vcombine.high %v1164_v61, %v1168_v4  ;;  %v12888_v19 = vcombine.high %v1165_v56, %v1169_v6  ;;  %v1205_v23 = vld [vmem:[%s14108_s5 + $0x1998] sm:$0xff] }
 0x4b1   : > { %v1209_v29 = vld [vmem:[%s14108_s5 + $0x19b8] sm:$0xff] }
 0x4b3   : > { %11134 = vmatpush1.bf16.msra.mxu0 %v12837_v59  ;;  %11667 = vmatpush1.bf16.msra.mxu1 %v12839_v20  ;;  %v1177_v59 = vld [vmem:[%s14108_s5 + $0x18b8] sm:$0xff]  ;;  %v12885_v20 = vcombine.low %v1164_v61, %v1168_v4  ;;  %v1216_v61 = vld [vmem:[%s14108_s5 + $0x19f0] sm:$0xff] }
 0x4b4   : > { %11135 = vmatprep.subr.bf16.mxu0 %v12846_v21  ;;  %11668 = vmatprep.subr.bf16.mxu1 %v12848_v22  ;;  %v12887_v21 = vcombine.low %v1165_v56, %v1169_v6  ;;  %v12894_v22 = vcombine.high %v1172_v34, %v1176_v14  ;;  %v12896_v2 = vcombine.high %v1173_v41, %v1177_v59  ;;  %v1213_v4 = vld [vmem:[%s14108_s5 + $0x19d8] sm:$0xff] }
 0x4b5   : > { %v1217_v56 = vld [vmem:[%s14108_s5 + $0x19f8] sm:$0xff] }
 0x4b7   : > { %11136 = vmatpush1.bf16.msra.mxu0 %v12845_v13  ;;  %11669 = vmatpush1.bf16.msra.mxu1 %v12847_v51  ;;  %v1185_v13 = vld [vmem:[%s14108_s5 + $0x18f8] sm:$0xff]  ;;  %v12895_v51 = vcombine.low %v1173_v41, %v1177_v59 }
 0x4b8   : > { %11137 = vmatprep.subr.bf16.mxu0 %v12854_v33  ;;  %11670 = vmatprep.subr.bf16.mxu1 %v12856_v12  ;;  %v12902_v33 = vcombine.high %v1180_v24, %v1184_v36  ;;  %v12904_v12 = vcombine.high %v1181_v27, %v1185_v13  ;;  %v1225_v41 = vld [vmem:[%s14108_s5 + $0x1a38] sm:$0xff] }
 0x4bb   : > { %11138 = vmatpush1.bf16.msra.mxu0 %v12853_v55  ;;  %11671 = vmatpush1.bf16.msra.mxu1 %v12855_v5  ;;  %v12901_v55 = vcombine.low %v1180_v24, %v1184_v36  ;;  %v12910_v5 = vcombine.high %v1188_v3, %v1192_v35  ;;  %v1232_v24 = vld [vmem:[%s14108_s5 + $0x1a70] sm:$0xff]  ;;  %v1229_v36 = vld [vmem:[%s14108_s5 + $0x1a58] sm:$0xff] }
 0x4bc   : > { %11139 = vmatprep.subr.bf16.mxu0 %v12862_v43  ;;  %11672 = vmatprep.subr.bf16.mxu1 %v12864_v45  ;;  %v12912_v43 = vcombine.high %v1189_v62, %v1193_v28  ;;  %v1196_v45 = vld [vmem:[%s14108_s5 + $0x1950] sm:$0xff]  ;;  %v1237_v35 = vld [vmem:[%s14108_s5 + $0x1a98] sm:$0xff] }
 0x4bd   : > { %v12917_v31 = vcombine.low %v1196_v45, %v1200_v46  ;;  %v1240_v3 = vld [vmem:[%s14108_s5 + $0x1ab0] sm:$0xff] }
 0x4bf   : > { %11140 = vmatpush1.bf16.msra.mxu0 %v12861_v9  ;;  %11673 = vmatpush1.bf16.msra.mxu1 %v12863_v50  ;;  %v12911_v9 = vcombine.low %v1189_v62, %v1193_v28  ;;  %v12918_v50 = vcombine.high %v1196_v45, %v1200_v46  ;;  %v1241_v62 = vld [vmem:[%s14108_s5 + $0x1ab8] sm:$0xff]  ;;  %v1248_v45 = vld [vmem:[%s14108_s5 + $0x1af0] sm:$0xff] }
 0x4c0   : > { %11141 = vmatprep.subr.bf16.mxu0 %v12870_v52  ;;  %11674 = vmatprep.subr.bf16.mxu1 %v12872_v10  ;;  %v12920_v52 = vcombine.high %v1197_v47, %v1201_v0  ;;  %v1204_v10 = vld [vmem:[%s14108_s5 + $0x1990] sm:$0xff]  ;;  %v1245_v46 = vld [vmem:[%s14108_s5 + $0x1ad8] sm:$0xff] }
 0x4c1   : > { %v12925_v6 = vcombine.low %v1204_v10, %v1208_v54 }
 0x4c3   : > { %11142 = vmatpush1.bf16.msra.mxu0 %v12869_v57  ;;  %11675 = vmatpush1.bf16.msra.mxu1 %v12871_v58  ;;  %v12919_v57 = vcombine.low %v1197_v47, %v1201_v0  ;;  %v12926_v58 = vcombine.high %v1204_v10, %v1208_v54  ;;  %v1249_v47 = vld [vmem:[%s14108_s5 + $0x1af8] sm:$0xff]  ;;  %v1256_v10 = vld [vmem:[%s14108_s5 + $0x1b30] sm:$0xff] }
 0x4c4   : > { %11152 = vmatprep.subr.bf16.mxu0 %v12878_v25  ;;  %11685 = vmatprep.subr.bf16.mxu1 %v12880_v11  ;;  %v12928_v25 = vcombine.high %v1205_v23, %v1209_v29  ;;  %v1212_v11 = vld [vmem:[%s14108_s5 + $0x19d0] sm:$0xff]  ;;  %v1253_v54 = vld [vmem:[%s14108_s5 + $0x1b18] sm:$0xff] }
 0x4c5   : > { %v12933_v59 = vcombine.low %v1212_v11, %v1216_v61 }
 0x4c6   : > { %11144 = vmatmul.mubr.bf16.vlgmr.msra.gmra.mrb[4].mxu0 %v14630_v40  ;;  %11677 = vmatmul.mubr.bf16.vlgmr.msra.gmra.mrb[4].mxu1 %v14630_v40  ;;  %v12893_v40 = vcombine.low %v1172_v34, %v1176_v14  ;;  %v1224_v34 = vld [vmem:[%s14108_s5 + $0x1a30] sm:$0xff]  ;;  %v1221_v14 = vld [vmem:[%s14108_s5 + $0x1a18] sm:$0xff] }
 0x4c7   : > { %11153 = vmatpush1.bf16.msra.mxu0 %v12877_v39  ;;  %11686 = vmatpush1.bf16.msra.mxu1 %v12879_v8  ;;  %v12927_v39 = vcombine.low %v1205_v23, %v1209_v29  ;;  %v12934_v8 = vcombine.high %v1212_v11, %v1216_v61  ;;  %v1257_v23 = vld [vmem:[%s14108_s5 + $0x1b38] sm:$0xff]  ;;  %v1264_v11 = vld [vmem:[%s14108_s5 + $0x1b70] sm:$0xff] }
 0x4c8   : > { %11154 = vmatprep.subr.bf16.mxu0 %v12886_v17  ;;  %11687 = vmatprep.subr.bf16.mxu1 %v12888_v19  ;;  %v12936_v17 = vcombine.high %v1213_v4, %v1217_v56  ;;  %v1220_v19 = vld [vmem:[%s14108_s5 + $0x1a10] sm:$0xff]  ;;  %v1261_v61 = vld [vmem:[%s14108_s5 + $0x1b58] sm:$0xff] }
 0x4c9   : > { %11184 = vmatprep.mubr.bf16.mxu0 %v14636_v16  ;;  %11717 = vmatprep.mubr.bf16.mxu1 %v14636_v16  ;;  %v12903_v16 = vcombine.low %v1181_v27, %v1185_v13  ;;  %v1233_v27 = vld [vmem:[%s14108_s5 + $0x1a78] sm:$0xff]  ;;  %v12941_v13 = vcombine.low %v1220_v19, %v1224_v34 }
 0x4cb   : > { %11155 = vmatpush1.bf16.msra.mxu0 %v12885_v20  ;;  %11688 = vmatpush1.bf16.msra.mxu1 %v12887_v21  ;;  %v12935_v20 = vcombine.low %v1213_v4, %v1217_v56  ;;  %v12942_v21 = vcombine.high %v1220_v19, %v1224_v34  ;;  %v1265_v4 = vld [vmem:[%s14108_s5 + $0x1b78] sm:$0xff]  ;;  %v1272_v19 = vld [vmem:[%s14108_s5 + $0x1bb0] sm:$0xff] }
 0x4cc   : > { %11156 = vmatprep.subr.bf16.mxu0 %v12894_v22  ;;  %11689 = vmatprep.subr.bf16.mxu1 %v12896_v2  ;;  %v12944_v22 = vcombine.high %v1221_v14, %v1225_v41  ;;  %v1228_v2 = vld [vmem:[%s14108_s5 + $0x1a50] sm:$0xff]  ;;  %v1269_v34 = vld [vmem:[%s14108_s5 + $0x1b98] sm:$0xff] }
 0x4cd   : > { %v12949_v28 = vcombine.low %v1228_v2, %v1232_v24 }
 0x4cf   : > { %11157 = vmatpush1.bf16.msra.mxu0 %v12893_v40  ;;  %11690 = vmatpush1.bf16.msra.mxu1 %v12895_v51  ;;  %v12943_v40 = vcombine.low %v1221_v14, %v1225_v41  ;;  %v12950_v51 = vcombine.high %v1228_v2, %v1232_v24  ;;  %v1273_v14 = vld [vmem:[%s14108_s5 + $0x1bb8] sm:$0xff]  ;;  %v1280_v2 = vld [vmem:[%s14108_s5 + $0x1bf0] sm:$0xff] }
 0x4d0   : > { %11158 = vmatprep.subr.bf16.mxu0 %v12902_v33  ;;  %11691 = vmatprep.subr.bf16.mxu1 %v12904_v12  ;;  %v12952_v33 = vcombine.high %v1229_v36, %v1233_v27  ;;  %v1236_v12 = vld [vmem:[%s14108_s5 + $0x1a90] sm:$0xff]  ;;  %v1277_v24 = vld [vmem:[%s14108_s5 + $0x1bd8] sm:$0xff] }
 0x4d1   : > { %v12957_v0 = vcombine.low %v1236_v12, %v1240_v3 }
 0x4d3   : > { %11159 = vmatpush1.bf16.msra.mxu0 %v12901_v55  ;;  %11692 = vmatpush1.bf16.msra.mxu1 %v12903_v16  ;;  %v12951_v55 = vcombine.low %v1229_v36, %v1233_v27  ;;  %v12958_v16 = vcombine.high %v1236_v12, %v1240_v3  ;;  %v1281_v36 = vld [vmem:[%s14108_s5 + $0x1bf8] sm:$0xff]  ;;  %v1288_v12 = vld [vmem:[%s14108_s5 + $0x1c30] sm:$0xff] }
 0x4d4   : > { %11160 = vmatprep.subr.bf16.mxu0 %v12910_v5  ;;  %11693 = vmatprep.subr.bf16.mxu1 %v12912_v43  ;;  %v12960_v5 = vcombine.high %v1237_v35, %v1241_v62  ;;  %v1244_v43 = vld [vmem:[%s14108_s5 + $0x1ad0] sm:$0xff]  ;;  %v1285_v3 = vld [vmem:[%s14108_s5 + $0x1c18] sm:$0xff] }
 0x4d5   : > { %v12965_v29 = vcombine.low %v1244_v43, %v1248_v45 }
 0x4d7   : > { %11161 = vmatpush1.bf16.msra.mxu0 %v12909_v49  ;;  %11694 = vmatpush1.bf16.msra.mxu1 %v12911_v9  ;;  %v12959_v49 = vcombine.low %v1237_v35, %v1241_v62  ;;  %v12966_v9 = vcombine.high %v1244_v43, %v1248_v45  ;;  %v1289_v35 = vld [vmem:[%s14108_s5 + $0x1c38] sm:$0xff]  ;;  %v1296_v43 = vld [vmem:[%s14108_s5 + $0x1c70] sm:$0xff] }
 0x4d8   : > { %11162 = vmatprep.subr.bf16.mxu0 %v12918_v50  ;;  %11695 = vmatprep.subr.bf16.mxu1 %v12920_v52  ;;  %v12968_v50 = vcombine.high %v1245_v46, %v1249_v47  ;;  %v1252_v52 = vld [vmem:[%s14108_s5 + $0x1b10] sm:$0xff]  ;;  %v1293_v45 = vld [vmem:[%s14108_s5 + $0x1c58] sm:$0xff] }
 0x4d9   : > { %v12973_v56 = vcombine.low %v1252_v52, %v1256_v10 }
 0x4db   : > { %11163 = vmatpush1.bf16.msra.mxu0 %v12917_v31  ;;  %11696 = vmatpush1.bf16.msra.mxu1 %v12919_v57  ;;  %v12967_v31 = vcombine.low %v1245_v46, %v1249_v47  ;;  %v12974_v57 = vcombine.high %v1252_v52, %v1256_v10  ;;  %v1297_v46 = vld [vmem:[%s14108_s5 + $0x1c78] sm:$0xff]  ;;  %v1304_v52 = vld [vmem:[%s14108_s5 + $0x1cb0] sm:$0xff] }
 0x4dc   : > { %11164 = vmatprep.subr.bf16.mxu0 %v12926_v58  ;;  %11697 = vmatprep.subr.bf16.mxu1 %v12928_v25  ;;  %v12976_v58 = vcombine.high %v1253_v54, %v1257_v23  ;;  %v1260_v25 = vld [vmem:[%s14108_s5 + $0x1b50] sm:$0xff]  ;;  %v1301_v10 = vld [vmem:[%s14108_s5 + $0x1c98] sm:$0xff] }
 0x4dd   : > { %v12981_v41 = vcombine.low %v1260_v25, %v1264_v11 }
 0x4df   : > { %11165 = vmatpush1.bf16.msra.mxu0 %v12925_v6  ;;  %11698 = vmatpush1.bf16.msra.mxu1 %v12927_v39  ;;  %v12975_v6 = vcombine.low %v1253_v54, %v1257_v23  ;;  %v12982_v39 = vcombine.high %v1260_v25, %v1264_v11  ;;  %v1305_v54 = vld [vmem:[%s14108_s5 + $0x1cb8] sm:$0xff]  ;;  %v1312_v25 = vld [vmem:[%s14108_s5 + $0x1cf0] sm:$0xff] }
 0x4e0   : > { %11166 = vmatprep.subr.bf16.mxu0 %v12934_v8  ;;  %11699 = vmatprep.subr.bf16.mxu1 %v12936_v17  ;;  %v12984_v8 = vcombine.high %v1261_v61, %v1265_v4  ;;  %v1268_v17 = vld [vmem:[%s14108_s5 + $0x1b90] sm:$0xff]  ;;  %v1309_v11 = vld [vmem:[%s14108_s5 + $0x1cd8] sm:$0xff] }
 0x4e1   : > { %v12989_v27 = vcombine.low %v1268_v17, %v1272_v19 }
 0x4e3   : > { %11167 = vmatpush1.bf16.msra.mxu0 %v12933_v59  ;;  %11700 = vmatpush1.bf16.msra.mxu1 %v12935_v20  ;;  %v12983_v59 = vcombine.low %v1261_v61, %v1265_v4  ;;  %v12990_v20 = vcombine.high %v1268_v17, %v1272_v19  ;;  %v1313_v61 = vld [vmem:[%s14108_s5 + $0x1cf8] sm:$0xff]  ;;  %v13023_v4 = vcombine.low %v1301_v10, %v1305_v54 }
 0x4e4   : > { %11168 = vmatprep.subr.bf16.mxu0 %v12942_v21  ;;  %11701 = vmatprep.subr.bf16.mxu1 %v12944_v22  ;;  %v12992_v21 = vcombine.high %v1269_v34, %v1273_v14  ;;  %v1276_v22 = vld [vmem:[%s14108_s5 + $0x1bd0] sm:$0xff]  ;;  %v1317_v17 = vld [vmem:[%s14108_s5 + $0x1d18] sm:$0xff] }
 0x4e5   : > { %v12997_v62 = vcombine.low %v1276_v22, %v1280_v2  ;;  %v1321_v19 = vld [vmem:[%s14108_s5 + $0x1d38] sm:$0xff] }
 0x4e7   : > { %11169 = vmatpush1.bf16.msra.mxu0 %v12941_v13  ;;  %11702 = vmatpush1.bf16.msra.mxu1 %v12943_v40  ;;  %v12991_v13 = vcombine.low %v1269_v34, %v1273_v14  ;;  %v12998_v40 = vcombine.high %v1276_v22, %v1280_v2  ;;  %v1329_v22 = vld [vmem:[%s14108_s5 + $0x1d78] sm:$0xff] }
 0x4e8   : > { %11170 = vmatprep.subr.bf16.mxu0 %v12950_v51  ;;  %11703 = vmatprep.subr.bf16.mxu1 %v12952_v33  ;;  %v13000_v51 = vcombine.high %v1277_v24, %v1281_v36  ;;  %v1284_v33 = vld [vmem:[%s14108_s5 + $0x1c10] sm:$0xff] }
 0x4e9   : > { %v13005_v47 = vcombine.low %v1284_v33, %v1288_v12 }
 0x4eb   : > { %11171 = vmatpush1.bf16.msra.mxu0 %v12949_v28  ;;  %11704 = vmatpush1.bf16.msra.mxu1 %v12951_v55  ;;  %v12999_v28 = vcombine.low %v1277_v24, %v1281_v36  ;;  %v13006_v55 = vcombine.high %v1284_v33, %v1288_v12  ;;  %v13039_v24 = vcombine.low %v1317_v17, %v1321_v19  ;;  %v1337_v33 = vld [vmem:[%s14108_s5 + $0x1db8] sm:$0xff] }
 0x4ec   : > { %11172 = vmatprep.subr.bf16.mxu0 %v12958_v16  ;;  %11705 = vmatprep.subr.bf16.mxu1 %v12960_v5  ;;  %v13008_v16 = vcombine.high %v1285_v3, %v1289_v35  ;;  %v1292_v5 = vld [vmem:[%s14108_s5 + $0x1c50] sm:$0xff] }
 0x4ed   : > { %v13013_v23 = vcombine.low %v1292_v5, %v1296_v43 }
 0x4ef   : > { %11173 = vmatpush1.bf16.msra.mxu0 %v12957_v0  ;;  %11706 = vmatpush1.bf16.msra.mxu1 %v12959_v49  ;;  %v13007_v0 = vcombine.low %v1285_v3, %v1289_v35  ;;  %v13014_v49 = vcombine.high %v1292_v5, %v1296_v43  ;;  %v1345_v5 = vld [vmem:[%s14108_s5 + $0x1df8] sm:$0xff] }
 0x4f0   : > { %11174 = vmatprep.subr.bf16.mxu0 %v12966_v9  ;;  %11707 = vmatprep.subr.bf16.mxu1 %v12968_v50  ;;  %v13016_v9 = vcombine.high %v1293_v45, %v1297_v46  ;;  %v1300_v50 = vld [vmem:[%s14108_s5 + $0x1c90] sm:$0xff] }
 0x4f3   : > { %11175 = vmatpush1.bf16.msra.mxu0 %v12965_v29  ;;  %11708 = vmatpush1.bf16.msra.mxu1 %v12967_v31  ;;  %v13015_v29 = vcombine.low %v1293_v45, %v1297_v46  ;;  %v13022_v31 = vcombine.high %v1300_v50, %v1304_v52 }
 0x4f4   : > { %11176 = vmatprep.subr.bf16.mxu0 %v12974_v57  ;;  %11709 = vmatprep.subr.bf16.mxu1 %v12976_v58  ;;  %v13024_v57 = vcombine.high %v1301_v10, %v1305_v54  ;;  %v1308_v58 = vld [vmem:[%s14108_s5 + $0x1cd0] sm:$0xff] }
 0x4f5   : > { %v13029_v34 = vcombine.low %v1308_v58, %v1312_v25 }
 0x4f7   : > { %11177 = vmatpush1.bf16.msra.mxu0 %v12973_v56  ;;  %11710 = vmatpush1.bf16.msra.mxu1 %v12975_v6  ;;  %v13030_v56 = vcombine.high %v1308_v58, %v1312_v25  ;;  %v13032_v6 = vcombine.high %v1309_v11, %v1313_v61  ;;  %v1361_v58 = vld [vmem:[%s14108_s5 + $0x1e78] sm:$0xff] }
 0x4f8   : > { %11178 = vmatprep.subr.bf16.mxu0 %v12982_v39  ;;  %11711 = vmatprep.subr.bf16.mxu1 %v12984_v8  ;;  %v1316_v39 = vld [vmem:[%s14108_s5 + $0x1d10] sm:$0xff] }
 0x4f9   : > { %v1320_v8 = vld [vmem:[%s14108_s5 + $0x1d30] sm:$0xff] }
 0x4fa   : > { %v13038_v14 = vcombine.high %v1316_v39, %v1320_v8  ;;  %v13037_v2 = vcombine.low %v1316_v39, %v1320_v8  ;;  %v1369_v39 = vld [vmem:[%s14108_s5 + $0x1eb8] sm:$0xff] }
 0x4fb   : > { %11179 = vmatpush1.bf16.msra.mxu0 %v12981_v41  ;;  %11712 = vmatpush1.bf16.msra.mxu1 %v12983_v59  ;;  %v13040_v41 = vcombine.high %v1317_v17, %v1321_v19  ;;  %v1324_v59 = vld [vmem:[%s14108_s5 + $0x1d50] sm:$0xff] }
 0x4fc   : > { %11180 = vmatprep.subr.bf16.mxu0 %v12990_v20  ;;  %11713 = vmatprep.subr.bf16.mxu1 %v12992_v21  ;;  %v1328_v20 = vld [vmem:[%s14108_s5 + $0x1d70] sm:$0xff]  ;;  %v1325_v21 = vld [vmem:[%s14108_s5 + $0x1d58] sm:$0xff] }
 0x4fd   : > { %v13046_v36 = vcombine.high %v1324_v59, %v1328_v20  ;;  %v13045_v12 = vcombine.low %v1324_v59, %v1328_v20  ;;  %v13047_v3 = vcombine.low %v1325_v21, %v1329_v22  ;;  %v1377_v59 = vld [vmem:[%s14108_s5 + $0x1ef8] sm:$0xff] }
 0x4ff   : > { %11181 = vmatpush1.bf16.msra.mxu0 %v12989_v27  ;;  %11714 = vmatpush1.bf16.msra.mxu1 %v12991_v13  ;;  %v13048_v27 = vcombine.high %v1325_v21, %v1329_v22  ;;  %v1332_v13 = vld [vmem:[%s14108_s5 + $0x1d90] sm:$0xff] }
 0x500   : > { %11182 = vmatprep.subr.bf16.mxu0 %v12998_v40  ;;  %11715 = vmatprep.subr.bf16.mxu1 %v13000_v51  ;;  %v1336_v40 = vld [vmem:[%s14108_s5 + $0x1db0] sm:$0xff]  ;;  %v1333_v51 = vld [vmem:[%s14108_s5 + $0x1d98] sm:$0xff] }
 0x501   : > { %v13054_v35 = vcombine.high %v1332_v13, %v1336_v40  ;;  %v13053_v43 = vcombine.low %v1332_v13, %v1336_v40  ;;  %v13055_v45 = vcombine.low %v1333_v51, %v1337_v33  ;;  %v1385_v13 = vld [vmem:[%s14108_s5 + $0x1f38] sm:$0xff] }
 0x503   : > { %11183 = vmatpush1.bf16.msra.mxu0 %v12997_v62  ;;  %11716 = vmatpush1.bf16.msra.mxu1 %v12999_v28  ;;  %v13056_v62 = vcombine.high %v1333_v51, %v1337_v33  ;;  %v1340_v28 = vld [vmem:[%s14108_s5 + $0x1dd0] sm:$0xff] }
 0x504   : > { %11193 = vmatprep.subr.bf16.mxu0 %v13006_v55  ;;  %11726 = vmatprep.subr.bf16.mxu1 %v13008_v16  ;;  %v1344_v55 = vld [vmem:[%s14108_s5 + $0x1df0] sm:$0xff]  ;;  %v1341_v16 = vld [vmem:[%s14108_s5 + $0x1dd8] sm:$0xff] }
 0x505   : > { %v13062_v46 = vcombine.high %v1340_v28, %v1344_v55  ;;  %v13063_v10 = vcombine.low %v1341_v16, %v1345_v5 }
 0x506   : > { %11185 = vmatmul.mubr.bf16.vlgmr.msra.gmra.mrb[4].mxu0 %v14711_v26  ;;  %11718 = vmatmul.mubr.bf16.vlgmr.msra.gmra.mrb[4].mxu1 %v14711_v26  ;;  %v13021_v26 = vcombine.low %v1300_v50, %v1304_v52  ;;  %v1353_v50 = vld [vmem:[%s14108_s5 + $0x1e38] sm:$0xff]  ;;  %v13061_v52 = vcombine.low %v1340_v28, %v1344_v55 }
 0x507   : > { %11194 = vmatpush1.bf16.msra.mxu0 %v13005_v47  ;;  %11727 = vmatpush1.bf16.msra.mxu1 %v13007_v0  ;;  %v13064_v47 = vcombine.high %v1341_v16, %v1345_v5  ;;  %v1348_v0 = vld [vmem:[%s14108_s5 + $0x1e10] sm:$0xff]  ;;  %v1393_v28 = vld [vmem:[%s14108_s5 + $0x1f78] sm:$0xff] }
 0x508   : > { %11195 = vmatprep.subr.bf16.mxu0 %v13014_v49  ;;  %11728 = vmatprep.subr.bf16.mxu1 %v13016_v9  ;;  %v1352_v49 = vld [vmem:[%s14108_s5 + $0x1e30] sm:$0xff]  ;;  %v1349_v9 = vld [vmem:[%s14108_s5 + $0x1e18] sm:$0xff] }
 0x509   : > { %11225 = vmatprep.mubr.bf16.mxu0 %v14717_v38  ;;  %11758 = vmatprep.mubr.bf16.mxu1 %v14717_v38  ;;  %v13031_v38 = vcombine.low %v1309_v11, %v1313_v61  ;;  %v13070_v54 = vcombine.high %v1348_v0, %v1352_v49  ;;  %v13069_v25 = vcombine.low %v1348_v0, %v1352_v49  ;;  %v1401_v0 = vld [vmem:[%s14108_s5 + $0x1fb8] sm:$0xff] }
 0x50a   : > { %v13071_v11 = vcombine.low %v1349_v9, %v1353_v50 }
 0x50b   : > { %11196 = vmatpush1.bf16.msra.mxu0 %v13013_v23  ;;  %11729 = vmatpush1.bf16.msra.mxu1 %v13015_v29  ;;  %v13072_v23 = vcombine.high %v1349_v9, %v1353_v50  ;;  %v1356_v29 = vld [vmem:[%s14108_s5 + $0x1e50] sm:$0xff] }
 0x50c   : > { %11197 = vmatprep.subr.bf16.mxu0 %v13022_v31  ;;  %11730 = vmatprep.subr.bf16.mxu1 %v13024_v57  ;;  %v1360_v31 = vld [vmem:[%s14108_s5 + $0x1e70] sm:$0xff]  ;;  %v1357_v57 = vld [vmem:[%s14108_s5 + $0x1e58] sm:$0xff] }
 0x50d   : > { %v13078_v61 = vcombine.high %v1356_v29, %v1360_v31  ;;  %v13077_v8 = vcombine.low %v1356_v29, %v1360_v31  ;;  %v13079_v17 = vcombine.low %v1357_v57, %v1361_v58  ;;  %v1409_v29 = vld [vmem:[%s14108_s5 + $0x1ff8] sm:$0xff] }
 0x50f   : > { %11198 = vmatpush1.bf16.msra.mxu0 %v13021_v26  ;;  %11731 = vmatpush1.bf16.msra.mxu1 %v13023_v4  ;;  %v13080_v26 = vcombine.high %v1357_v57, %v1361_v58  ;;  %v1364_v4 = vld [vmem:[%s14108_s5 + $0x1e90] sm:$0xff] }
 0x510   : > { %11199 = vmatprep.subr.bf16.mxu0 %v13030_v56  ;;  %11732 = vmatprep.subr.bf16.mxu1 %v13032_v6  ;;  %v1368_v56 = vld [vmem:[%s14108_s5 + $0x1eb0] sm:$0xff]  ;;  %v1365_v6 = vld [vmem:[%s14108_s5 + $0x1e98] sm:$0xff] }
 0x511   : > { %v13086_v19 = vcombine.high %v1364_v4, %v1368_v56  ;;  %v13085_v20 = vcombine.low %v1364_v4, %v1368_v56  ;;  %v13087_v21 = vcombine.low %v1365_v6, %v1369_v39  ;;  %v1417_v4 = vld [vmem:[%s14108_s5 + $0x2038] sm:$0xff] }
 0x513   : > { %11200 = vmatpush1.bf16.msra.mxu0 %v13029_v34  ;;  %11733 = vmatpush1.bf16.msra.mxu1 %v13031_v38  ;;  %v13088_v34 = vcombine.high %v1365_v6, %v1369_v39  ;;  %v1372_v38 = vld [vmem:[%s14108_s5 + $0x1ed0] sm:$0xff] }
 0x514   : > { %11201 = vmatprep.subr.bf16.mxu0 %v13038_v14  ;;  %11734 = vmatprep.subr.bf16.mxu1 %v13040_v41  ;;  %v1376_v14 = vld [vmem:[%s14108_s5 + $0x1ef0] sm:$0xff]  ;;  %v1373_v41 = vld [vmem:[%s14108_s5 + $0x1ed8] sm:$0xff] }
 0x515   : > { %v13094_v22 = vcombine.high %v1372_v38, %v1376_v14  ;;  %v13093_v40 = vcombine.low %v1372_v38, %v1376_v14  ;;  %v13095_v51 = vcombine.low %v1373_v41, %v1377_v59  ;;  %v1425_v38 = vld [vmem:[%s14108_s5 + $0x2078] sm:$0xff] }
 0x517   : > { %11202 = vmatpush1.bf16.msra.mxu0 %v13037_v2  ;;  %11735 = vmatpush1.bf16.msra.mxu1 %v13039_v24  ;;  %v13096_v2 = vcombine.high %v1373_v41, %v1377_v59  ;;  %v1380_v24 = vld [vmem:[%s14108_s5 + $0x1f10] sm:$0xff] }
 0x518   : > { %11203 = vmatprep.subr.bf16.mxu0 %v13046_v36  ;;  %11736 = vmatprep.subr.bf16.mxu1 %v13048_v27  ;;  %v1384_v36 = vld [vmem:[%s14108_s5 + $0x1f30] sm:$0xff]  ;;  %v1381_v27 = vld [vmem:[%s14108_s5 + $0x1f18] sm:$0xff] }
 0x519   : > { %v13102_v33 = vcombine.high %v1380_v24, %v1384_v36  ;;  %v13101_v55 = vcombine.low %v1380_v24, %v1384_v36  ;;  %v13103_v16 = vcombine.low %v1381_v27, %v1385_v13  ;;  %v1433_v24 = vld [vmem:[%s14108_s5 + $0x20b8] sm:$0xff] }
 0x51b   : > { %11204 = vmatpush1.bf16.msra.mxu0 %v13045_v12  ;;  %11737 = vmatpush1.bf16.msra.mxu1 %v13047_v3  ;;  %v13104_v12 = vcombine.high %v1381_v27, %v1385_v13  ;;  %v1388_v3 = vld [vmem:[%s14108_s5 + $0x1f50] sm:$0xff] }
 0x51c   : > { %11205 = vmatprep.subr.bf16.mxu0 %v13054_v35  ;;  %11738 = vmatprep.subr.bf16.mxu1 %v13056_v62  ;;  %v1392_v35 = vld [vmem:[%s14108_s5 + $0x1f70] sm:$0xff]  ;;  %v1389_v62 = vld [vmem:[%s14108_s5 + $0x1f58] sm:$0xff] }
 0x51d   : > { %v13110_v5 = vcombine.high %v1388_v3, %v1392_v35  ;;  %v13109_v49 = vcombine.low %v1388_v3, %v1392_v35  ;;  %v13111_v9 = vcombine.low %v1389_v62, %v1393_v28  ;;  %v1441_v3 = vld [vmem:[%s14108_s5 + $0x20f8] sm:$0xff] }
 0x51f   : > { %11206 = vmatpush1.bf16.msra.mxu0 %v13053_v43  ;;  %11739 = vmatpush1.bf16.msra.mxu1 %v13055_v45  ;;  %v13112_v43 = vcombine.high %v1389_v62, %v1393_v28  ;;  %v1396_v45 = vld [vmem:[%s14108_s5 + $0x1f90] sm:$0xff] }
 0x520   : > { %11207 = vmatprep.subr.bf16.mxu0 %v13062_v46  ;;  %11740 = vmatprep.subr.bf16.mxu1 %v13064_v47  ;;  %v1400_v46 = vld [vmem:[%s14108_s5 + $0x1fb0] sm:$0xff]  ;;  %v1397_v47 = vld [vmem:[%s14108_s5 + $0x1f98] sm:$0xff] }
 0x521   : > { %v13118_v50 = vcombine.high %v1396_v45, %v1400_v46  ;;  %v13117_v31 = vcombine.low %v1396_v45, %v1400_v46  ;;  %v13119_v57 = vcombine.low %v1397_v47, %v1401_v0 }
 0x523   : > { %11208 = vmatpush1.bf16.msra.mxu0 %v13061_v52  ;;  %11741 = vmatpush1.bf16.msra.mxu1 %v13063_v10  ;;  %v13120_v52 = vcombine.high %v1397_v47, %v1401_v0  ;;  %v1404_v10 = vld [vmem:[%s14108_s5 + $0x1fd0] sm:$0xff] }
 0x524   : > { %11209 = vmatprep.subr.bf16.mxu0 %v13070_v54  ;;  %11742 = vmatprep.subr.bf16.mxu1 %v13072_v23  ;;  %v1408_v54 = vld [vmem:[%s14108_s5 + $0x1ff0] sm:$0xff]  ;;  %v1405_v23 = vld [vmem:[%s14108_s5 + $0x1fd8] sm:$0xff] }
 0x525   : > { %v13126_v58 = vcombine.high %v1404_v10, %v1408_v54  ;;  %v13125_v56 = vcombine.low %v1404_v10, %v1408_v54  ;;  %v13127_v6 = vcombine.low %v1405_v23, %v1409_v29  ;;  %v1452_v0 = vld [vmem:[%s14108_s5 + $0x2150] sm:$0xff] }
 0x527   : > { %11210 = vmatpush1.bf16.msra.mxu0 %v13069_v25  ;;  %11743 = vmatpush1.bf16.msra.mxu1 %v13071_v11  ;;  %v13128_v25 = vcombine.high %v1405_v23, %v1409_v29  ;;  %v1412_v11 = vld [vmem:[%s14108_s5 + $0x2010] sm:$0xff] }
 0x528   : > { %11211 = vmatprep.subr.bf16.mxu0 %v13078_v61  ;;  %11744 = vmatprep.subr.bf16.mxu1 %v13080_v26  ;;  %v1416_v61 = vld [vmem:[%s14108_s5 + $0x2030] sm:$0xff]  ;;  %v1413_v26 = vld [vmem:[%s14108_s5 + $0x2018] sm:$0xff] }
 0x529   : > { %v13134_v39 = vcombine.high %v1412_v11, %v1416_v61  ;;  %v13133_v14 = vcombine.low %v1412_v11, %v1416_v61  ;;  %v13135_v41 = vcombine.low %v1413_v26, %v1417_v4  ;;  %v1460_v29 = vld [vmem:[%s14108_s5 + $0x2190] sm:$0xff] }
 0x52b   : > { %11212 = vmatpush1.bf16.msra.mxu0 %v13077_v8  ;;  %11745 = vmatpush1.bf16.msra.mxu1 %v13079_v17  ;;  %v13136_v8 = vcombine.high %v1413_v26, %v1417_v4  ;;  %v1420_v17 = vld [vmem:[%s14108_s5 + $0x2050] sm:$0xff] }
 0x52c   : > { %11213 = vmatprep.subr.bf16.mxu0 %v13086_v19  ;;  %11746 = vmatprep.subr.bf16.mxu1 %v13088_v34  ;;  %v1424_v19 = vld [vmem:[%s14108_s5 + $0x2070] sm:$0xff]  ;;  %v1421_v34 = vld [vmem:[%s14108_s5 + $0x2058] sm:$0xff] }
 0x52d   : > { %v13142_v59 = vcombine.high %v1420_v17, %v1424_v19  ;;  %v13141_v36 = vcombine.low %v1420_v17, %v1424_v19  ;;  %v13143_v27 = vcombine.low %v1421_v34, %v1425_v38  ;;  %v1468_v4 = vld [vmem:[%s14108_s5 + $0x21d0] sm:$0xff] }
 0x52f   : > { %11214 = vmatpush1.bf16.msra.mxu0 %v13085_v20  ;;  %11747 = vmatpush1.bf16.msra.mxu1 %v13087_v21  ;;  %v13144_v20 = vcombine.high %v1421_v34, %v1425_v38  ;;  %v1428_v21 = vld [vmem:[%s14108_s5 + $0x2090] sm:$0xff] }
 0x530   : > { %11215 = vmatprep.subr.bf16.mxu0 %v13094_v22  ;;  %11748 = vmatprep.subr.bf16.mxu1 %v13096_v2  ;;  %v1432_v22 = vld [vmem:[%s14108_s5 + $0x20b0] sm:$0xff]  ;;  %v1429_v2 = vld [vmem:[%s14108_s5 + $0x2098] sm:$0xff] }
 0x531   : > { %v13150_v13 = vcombine.high %v1428_v21, %v1432_v22  ;;  %v13151_v35 = vcombine.low %v1429_v2, %v1433_v24  ;;  %v1476_v38 = vld [vmem:[%s14108_s5 + $0x2210] sm:$0xff] }
 0x533   : > { %11216 = vmatpush1.bf16.msra.mxu0 %v13093_v40  ;;  %11749 = vmatpush1.bf16.msra.mxu1 %v13095_v51  ;;  %v13152_v40 = vcombine.high %v1429_v2, %v1433_v24  ;;  %v1436_v51 = vld [vmem:[%s14108_s5 + $0x20d0] sm:$0xff] }
 0x534   : > { %11217 = vmatprep.subr.bf16.mxu0 %v13102_v33  ;;  %11750 = vmatprep.subr.bf16.mxu1 %v13104_v12  ;;  %v1440_v33 = vld [vmem:[%s14108_s5 + $0x20f0] sm:$0xff]  ;;  %v1437_v12 = vld [vmem:[%s14108_s5 + $0x20d8] sm:$0xff] }
 0x535   : > { %v13158_v62 = vcombine.high %v1436_v51, %v1440_v33  ;;  %v13160_v28 = vcombine.high %v1437_v12, %v1441_v3  ;;  %v13157_v45 = vcombine.low %v1436_v51, %v1440_v33  ;;  %v1484_v24 = vld [vmem:[%s14108_s5 + $0x2250] sm:$0xff] }
 0x537   : > { %11218 = vmatpush1.bf16.msra.mxu0 %v13101_v55  ;;  %11751 = vmatpush1.bf16.msra.mxu1 %v13103_v16  ;;  %v1444_v55 = vld [vmem:[%s14108_s5 + $0x2110] sm:$0xff] }
 0x538   : > { %11219 = vmatprep.subr.bf16.mxu0 %v13110_v5  ;;  %11752 = vmatprep.subr.bf16.mxu1 %v13112_v43  ;;  %v1448_v16 = vld [vmem:[%s14108_s5 + $0x2130] sm:$0xff]  ;;  %v1445_v5 = vld [vmem:[%s14108_s5 + $0x2118] sm:$0xff] }
 0x539   : > { %v1449_v43 = vld [vmem:[%s14108_s5 + $0x2138] sm:$0xff]  ;;  %v13166_v46 = vcombine.high %v1444_v55, %v1448_v16 }
 0x53a   : > { %v13168_v47 = vcombine.high %v1445_v5, %v1449_v43  ;;  %v13167_v10 = vcombine.low %v1445_v5, %v1449_v43  ;;  %v1500_v43 = vld [vmem:[%s14108_s5 + $0x22d0] sm:$0xff] }
 0x53b   : > { %11220 = vmatpush1.bf16.msra.mxu0 %v13109_v49  ;;  %11753 = vmatpush1.bf16.msra.mxu1 %v13111_v9  ;;  %v1456_v49 = vld [vmem:[%s14108_s5 + $0x2170] sm:$0xff]  ;;  %v1453_v9 = vld [vmem:[%s14108_s5 + $0x2158] sm:$0xff] }
 0x53c   : > { %11221 = vmatprep.subr.bf16.mxu0 %v13118_v50  ;;  %11754 = vmatprep.subr.bf16.mxu1 %v13120_v52  ;;  %v1457_v50 = vld [vmem:[%s14108_s5 + $0x2178] sm:$0xff]  ;;  %v13165_v52 = vcombine.low %v1444_v55, %v1448_v16  ;;  %v13174_v54 = vcombine.high %v1452_v0, %v1456_v49 }
 0x53d   : > { %v13176_v23 = vcombine.high %v1453_v9, %v1457_v50  ;;  %v13175_v11 = vcombine.low %v1453_v9, %v1457_v50  ;;  %v1508_v50 = vld [vmem:[%s14108_s5 + $0x2310] sm:$0xff] }
 0x53f   : > { %11222 = vmatpush1.bf16.msra.mxu0 %v13117_v31  ;;  %11755 = vmatpush1.bf16.msra.mxu1 %v13119_v57  ;;  %v1464_v31 = vld [vmem:[%s14108_s5 + $0x21b0] sm:$0xff]  ;;  %v1461_v57 = vld [vmem:[%s14108_s5 + $0x2198] sm:$0xff] }
 0x540   : > { %11223 = vmatprep.subr.bf16.mxu0 %v13126_v58  ;;  %11756 = vmatprep.subr.bf16.mxu1 %v13128_v25  ;;  %v1465_v58 = vld [vmem:[%s14108_s5 + $0x21b8] sm:$0xff]  ;;  %v13173_v25 = vcombine.low %v1452_v0, %v1456_v49  ;;  %v13182_v61 = vcombine.high %v1460_v29, %v1464_v31 }
 0x541   : > { %v13184_v26 = vcombine.high %v1461_v57, %v1465_v58  ;;  %v13183_v17 = vcombine.low %v1461_v57, %v1465_v58  ;;  %v1516_v58 = vld [vmem:[%s14108_s5 + $0x2350] sm:$0xff] }
 0x543   : > { %11224 = vmatpush1.bf16.msra.mxu0 %v13125_v56  ;;  %11757 = vmatpush1.bf16.msra.mxu1 %v13127_v6  ;;  %v1472_v56 = vld [vmem:[%s14108_s5 + $0x21f0] sm:$0xff]  ;;  %v1469_v6 = vld [vmem:[%s14108_s5 + $0x21d8] sm:$0xff] }
 0x544   : > { %11234 = vmatprep.subr.bf16.mxu0 %v13134_v39  ;;  %11767 = vmatprep.subr.bf16.mxu1 %v13136_v8  ;;  %v1473_v39 = vld [vmem:[%s14108_s5 + $0x21f8] sm:$0xff]  ;;  %v13181_v8 = vcombine.low %v1460_v29, %v1464_v31  ;;  %v13190_v19 = vcombine.high %v1468_v4, %v1472_v56 }
 0x545   : > { %v13192_v34 = vcombine.high %v1469_v6, %v1473_v39 }
 0x546   : > { %11226 = vmatmul.mubr.bf16.vlgmr.msra.gmra.mrb[4].mxu0 %v14796_v15  ;;  %11759 = vmatmul.mubr.bf16.vlgmr.msra.gmra.mrb[4].mxu1 %v14796_v15  ;;  %v13149_v15 = vcombine.low %v1428_v21, %v1432_v22  ;;  %v13191_v21 = vcombine.low %v1469_v6, %v1473_v39  ;;  %v1524_v39 = vld [vmem:[%s14108_s5 + $0x2390] sm:$0xff] }
 0x547   : > { %11235 = vmatpush1.bf16.msra.mxu0 %v13133_v14  ;;  %11768 = vmatpush1.bf16.msra.mxu1 %v13135_v41  ;;  %v1480_v14 = vld [vmem:[%s14108_s5 + $0x2230] sm:$0xff]  ;;  %v1477_v41 = vld [vmem:[%s14108_s5 + $0x2218] sm:$0xff] }
 0x548   : > { %11236 = vmatprep.subr.bf16.mxu0 %v13142_v59  ;;  %11769 = vmatprep.subr.bf16.mxu1 %v13144_v20  ;;  %v1481_v59 = vld [vmem:[%s14108_s5 + $0x2238] sm:$0xff]  ;;  %v13189_v20 = vcombine.low %v1468_v4, %v1472_v56  ;;  %v13198_v22 = vcombine.high %v1476_v38, %v1480_v14 }
 0x549   : > { %11266 = vmatprep.mubr.bf16.mxu0 %v14802_v32  ;;  %11799 = vmatprep.mubr.bf16.mxu1 %v14802_v32  ;;  %v13159_v32 = vcombine.low %v1437_v12, %v1441_v3  ;;  %v13200_v2 = vcombine.high %v1477_v41, %v1481_v59  ;;  %v13199_v51 = vcombine.low %v1477_v41, %v1481_v59  ;;  %v1492_v3 = vld [vmem:[%s14108_s5 + $0x2290] sm:$0xff] }
 0x54a   : > { %v1532_v59 = vld [vmem:[%s14108_s5 + $0x23d0] sm:$0xff] }
 0x54b   : > { %11237 = vmatpush1.bf16.msra.mxu0 %v13141_v36  ;;  %11770 = vmatpush1.bf16.msra.mxu1 %v13143_v27  ;;  %v1488_v36 = vld [vmem:[%s14108_s5 + $0x2270] sm:$0xff]  ;;  %v1485_v27 = vld [vmem:[%s14108_s5 + $0x2258] sm:$0xff] }
 0x54c   : > { %11238 = vmatprep.subr.bf16.mxu0 %v13150_v13  ;;  %11771 = vmatprep.subr.bf16.mxu1 %v13152_v40  ;;  %v1489_v13 = vld [vmem:[%s14108_s5 + $0x2278] sm:$0xff]  ;;  %v13197_v40 = vcombine.low %v1476_v38, %v1480_v14  ;;  %v13206_v33 = vcombine.high %v1484_v24, %v1488_v36 }
 0x54d   : > { %v13208_v12 = vcombine.high %v1485_v27, %v1489_v13  ;;  %v13207_v55 = vcombine.low %v1485_v27, %v1489_v13  ;;  %v1540_v13 = vld [vmem:[%s14108_s5 + $0x2410] sm:$0xff] }
 0x54f   : > { %11239 = vmatpush1.bf16.msra.mxu0 %v13149_v15  ;;  %11772 = vmatpush1.bf16.msra.mxu1 %v13151_v35  ;;  %v1496_v15 = vld [vmem:[%s14108_s5 + $0x22b0] sm:$0xff]  ;;  %v1493_v35 = vld [vmem:[%s14108_s5 + $0x2298] sm:$0xff] }
 0x550   : > { %11240 = vmatprep.subr.bf16.mxu0 %v13158_v62  ;;  %11773 = vmatprep.subr.bf16.mxu1 %v13160_v28  ;;  %v1497_v62 = vld [vmem:[%s14108_s5 + $0x22b8] sm:$0xff]  ;;  %v13205_v28 = vcombine.low %v1484_v24, %v1488_v36  ;;  %v13214_v16 = vcombine.high %v1492_v3, %v1496_v15 }
 0x551   : > { %v13216_v5 = vcombine.high %v1493_v35, %v1497_v62  ;;  %v13215_v0 = vcombine.low %v1493_v35, %v1497_v62  ;;  %v1548_v62 = vld [vmem:[%s14108_s5 + $0x2450] sm:$0xff] }
 0x553   : > { %11241 = vmatpush1.bf16.msra.mxu0 %v13157_v45  ;;  %11774 = vmatpush1.bf16.msra.mxu1 %v13159_v32  ;;  %v1504_v45 = vld [vmem:[%s14108_s5 + $0x22f0] sm:$0xff]  ;;  %v1501_v32 = vld [vmem:[%s14108_s5 + $0x22d8] sm:$0xff] }
 0x554   : > { %11242 = vmatprep.subr.bf16.mxu0 %v13166_v46  ;;  %11775 = vmatprep.subr.bf16.mxu1 %v13168_v47  ;;  %v1505_v46 = vld [vmem:[%s14108_s5 + $0x22f8] sm:$0xff]  ;;  %v13213_v47 = vcombine.low %v1492_v3, %v1496_v15  ;;  %v13222_v49 = vcombine.high %v1500_v43, %v1504_v45 }
 0x555   : > { %v13224_v9 = vcombine.high %v1501_v32, %v1505_v46  ;;  %v13223_v29 = vcombine.low %v1501_v32, %v1505_v46  ;;  %v1556_v46 = vld [vmem:[%s14108_s5 + $0x2490] sm:$0xff] }
 0x557   : > { %11243 = vmatpush1.bf16.msra.mxu0 %v13165_v52  ;;  %11776 = vmatpush1.bf16.msra.mxu1 %v13167_v10  ;;  %v1512_v52 = vld [vmem:[%s14108_s5 + $0x2330] sm:$0xff]  ;;  %v1509_v10 = vld [vmem:[%s14108_s5 + $0x2318] sm:$0xff] }
 0x558   : > { %11244 = vmatprep.subr.bf16.mxu0 %v13174_v54  ;;  %11777 = vmatprep.subr.bf16.mxu1 %v13176_v23  ;;  %v1513_v54 = vld [vmem:[%s14108_s5 + $0x2338] sm:$0xff]  ;;  %v13221_v23 = vcombine.low %v1500_v43, %v1504_v45  ;;  %v13230_v31 = vcombine.high %v1508_v50, %v1512_v52 }
 0x559   : > { %v13232_v57 = vcombine.high %v1509_v10, %v1513_v54  ;;  %v13231_v4 = vcombine.low %v1509_v10, %v1513_v54  ;;  %v1564_v54 = vld [vmem:[%s14108_s5 + $0x24d0] sm:$0xff] }
 0x55b   : > { %11245 = vmatpush1.bf16.msra.mxu0 %v13173_v25  ;;  %11778 = vmatpush1.bf16.msra.mxu1 %v13175_v11  ;;  %v1520_v25 = vld [vmem:[%s14108_s5 + $0x2370] sm:$0xff]  ;;  %v1517_v11 = vld [vmem:[%s14108_s5 + $0x2358] sm:$0xff] }
 0x55c   : > { %11246 = vmatprep.subr.bf16.mxu0 %v13182_v61  ;;  %11779 = vmatprep.subr.bf16.mxu1 %v13184_v26  ;;  %v1521_v61 = vld [vmem:[%s14108_s5 + $0x2378] sm:$0xff]  ;;  %v13229_v26 = vcombine.low %v1508_v50, %v1512_v52  ;;  %v13238_v56 = vcombine.high %v1516_v58, %v1520_v25 }
 0x55d   : > { %v13240_v6 = vcombine.high %v1517_v11, %v1521_v61  ;;  %v13239_v38 = vcombine.low %v1517_v11, %v1521_v61  ;;  %v1572_v11 = vld [vmem:[%s14108_s5 + $0x2510] sm:$0xff] }
 0x55e   : > { %v1576_v61 = vld [vmem:[%s14108_s5 + $0x2530] sm:$0xff] }
 0x55f   : > { %11247 = vmatpush1.bf16.msra.mxu0 %v13181_v8  ;;  %11780 = vmatpush1.bf16.msra.mxu1 %v13183_v17  ;;  %v1528_v8 = vld [vmem:[%s14108_s5 + $0x23b0] sm:$0xff]  ;;  %v1525_v17 = vld [vmem:[%s14108_s5 + $0x2398] sm:$0xff] }
 0x560   : > { %11248 = vmatprep.subr.bf16.mxu0 %v13190_v19  ;;  %11781 = vmatprep.subr.bf16.mxu1 %v13192_v34  ;;  %v1529_v19 = vld [vmem:[%s14108_s5 + $0x23b8] sm:$0xff]  ;;  %v13237_v34 = vcombine.low %v1516_v58, %v1520_v25  ;;  %v13246_v14 = vcombine.high %v1524_v39, %v1528_v8 }
 0x561   : > { %v13248_v41 = vcombine.high %v1525_v17, %v1529_v19  ;;  %v13247_v24 = vcombine.low %v1525_v17, %v1529_v19  ;;  %v1584_v17 = vld [vmem:[%s14108_s5 + $0x2570] sm:$0xff]  ;;  %v1581_v19 = vld [vmem:[%s14108_s5 + $0x2558] sm:$0xff] }
 0x563   : > { %11249 = vmatpush1.bf16.msra.mxu0 %v13189_v20  ;;  %11782 = vmatpush1.bf16.msra.mxu1 %v13191_v21  ;;  %v1536_v20 = vld [vmem:[%s14108_s5 + $0x23f0] sm:$0xff]  ;;  %v1533_v21 = vld [vmem:[%s14108_s5 + $0x23d8] sm:$0xff] }
 0x564   : > { %11250 = vmatprep.subr.bf16.mxu0 %v13198_v22  ;;  %11783 = vmatprep.subr.bf16.mxu1 %v13200_v2  ;;  %v1537_v22 = vld [vmem:[%s14108_s5 + $0x23f8] sm:$0xff]  ;;  %v13245_v2 = vcombine.low %v1524_v39, %v1528_v8  ;;  %v13254_v36 = vcombine.high %v1532_v59, %v1536_v20  ;;  %v1580_v8 = vld [vmem:[%s14108_s5 + $0x2550] sm:$0xff] }
 0x565   : > { %v13256_v27 = vcombine.high %v1533_v21, %v1537_v22  ;;  %v13255_v3 = vcombine.low %v1533_v21, %v1537_v22  ;;  %v1592_v21 = vld [vmem:[%s14108_s5 + $0x25b0] sm:$0xff]  ;;  %v1589_v22 = vld [vmem:[%s14108_s5 + $0x2598] sm:$0xff] }
 0x567   : > { %11251 = vmatpush1.bf16.msra.mxu0 %v13197_v40  ;;  %11784 = vmatpush1.bf16.msra.mxu1 %v13199_v51  ;;  %v1544_v40 = vld [vmem:[%s14108_s5 + $0x2430] sm:$0xff]  ;;  %v1541_v51 = vld [vmem:[%s14108_s5 + $0x2418] sm:$0xff] }
 0x568   : > { %11252 = vmatprep.subr.bf16.mxu0 %v13206_v33  ;;  %11785 = vmatprep.subr.bf16.mxu1 %v13208_v12  ;;  %v1545_v33 = vld [vmem:[%s14108_s5 + $0x2438] sm:$0xff]  ;;  %v13253_v12 = vcombine.low %v1532_v59, %v1536_v20  ;;  %v13262_v15 = vcombine.high %v1540_v13, %v1544_v40  ;;  %v1588_v20 = vld [vmem:[%s14108_s5 + $0x2590] sm:$0xff] }
 0x569   : > { %v13264_v35 = vcombine.high %v1541_v51, %v1545_v33  ;;  %v13263_v43 = vcombine.low %v1541_v51, %v1545_v33  ;;  %v1600_v51 = vld [vmem:[%s14108_s5 + $0x25f0] sm:$0xff]  ;;  %v1597_v33 = vld [vmem:[%s14108_s5 + $0x25d8] sm:$0xff] }
 0x56b   : > { %11253 = vmatpush1.bf16.msra.mxu0 %v13205_v28  ;;  %11786 = vmatpush1.bf16.msra.mxu1 %v13207_v55  ;;  %v1552_v28 = vld [vmem:[%s14108_s5 + $0x2470] sm:$0xff]  ;;  %v1549_v55 = vld [vmem:[%s14108_s5 + $0x2458] sm:$0xff] }
 0x56c   : > { %11254 = vmatprep.subr.bf16.mxu0 %v13214_v16  ;;  %11787 = vmatprep.subr.bf16.mxu1 %v13216_v5  ;;  %v1553_v16 = vld [vmem:[%s14108_s5 + $0x2478] sm:$0xff]  ;;  %v13261_v5 = vcombine.low %v1540_v13, %v1544_v40  ;;  %v13270_v45 = vcombine.high %v1548_v62, %v1552_v28  ;;  %v1596_v40 = vld [vmem:[%s14108_s5 + $0x25d0] sm:$0xff] }
 0x56d   : > { %v13272_v32 = vcombine.high %v1549_v55, %v1553_v16  ;;  %v13271_v50 = vcombine.low %v1549_v55, %v1553_v16  ;;  %v1608_v55 = vld [vmem:[%s14108_s5 + $0x2630] sm:$0xff]  ;;  %v1605_v16 = vld [vmem:[%s14108_s5 + $0x2618] sm:$0xff] }
 0x56f   : > { %11255 = vmatpush1.bf16.msra.mxu0 %v13213_v47  ;;  %11788 = vmatpush1.bf16.msra.mxu1 %v13215_v0  ;;  %v1560_v47 = vld [vmem:[%s14108_s5 + $0x24b0] sm:$0xff]  ;;  %v1557_v0 = vld [vmem:[%s14108_s5 + $0x2498] sm:$0xff] }
 0x570   : > { %11256 = vmatprep.subr.bf16.mxu0 %v13222_v49  ;;  %11789 = vmatprep.subr.bf16.mxu1 %v13224_v9  ;;  %v1561_v49 = vld [vmem:[%s14108_s5 + $0x24b8] sm:$0xff]  ;;  %v13269_v9 = vcombine.low %v1548_v62, %v1552_v28  ;;  %v13278_v52 = vcombine.high %v1556_v46, %v1560_v47  ;;  %v1604_v28 = vld [vmem:[%s14108_s5 + $0x2610] sm:$0xff] }
 0x571   : > { %v13280_v10 = vcombine.high %v1557_v0, %v1561_v49 }
 0x573   : > { %11257 = vmatpush1.bf16.msra.mxu0 %v13221_v23  ;;  %11790 = vmatpush1.bf16.msra.mxu1 %v13223_v29  ;;  %v1568_v23 = vld [vmem:[%s14108_s5 + $0x24f0] sm:$0xff]  ;;  %v1565_v29 = vld [vmem:[%s14108_s5 + $0x24d8] sm:$0xff] }
 0x574   : > { %11258 = vmatprep.subr.bf16.mxu0 %v13230_v31  ;;  %11791 = vmatprep.subr.bf16.mxu1 %v13232_v57  ;;  %v1569_v31 = vld [vmem:[%s14108_s5 + $0x24f8] sm:$0xff]  ;;  %v13279_v57 = vcombine.low %v1557_v0, %v1561_v49  ;;  %v13286_v58 = vcombine.high %v1564_v54, %v1568_v23  ;;  %v1616_v0 = vld [vmem:[%s14108_s5 + $0x2670] sm:$0xff] }
 0x575   : > { %v13288_v25 = vcombine.high %v1565_v29, %v1569_v31  ;;  %v1613_v49 = vld [vmem:[%s14108_s5 + $0x2658] sm:$0xff] }
 0x577   : > { %11259 = vmatpush1.bf16.msra.mxu0 %v13229_v26  ;;  %11792 = vmatpush1.bf16.msra.mxu1 %v13231_v4  ;;  %v1573_v26 = vld [vmem:[%s14108_s5 + $0x2518] sm:$0xff] }
 0x578   : > { %11260 = vmatprep.subr.bf16.mxu0 %v13238_v56  ;;  %11793 = vmatprep.subr.bf16.mxu1 %v13240_v6  ;;  %v1577_v4 = vld [vmem:[%s14108_s5 + $0x2538] sm:$0xff]  ;;  %v13285_v56 = vcombine.low %v1564_v54, %v1568_v23  ;;  %v13294_v6 = vcombine.high %v1572_v11, %v1576_v61  ;;  %v1620_v23 = vld [vmem:[%s14108_s5 + $0x2690] sm:$0xff] }
 0x579   : > { %v13296_v39 = vcombine.high %v1573_v26, %v1577_v4 }
 0x57b   : > { %11261 = vmatpush1.bf16.msra.mxu0 %v13237_v34  ;;  %11794 = vmatpush1.bf16.msra.mxu1 %v13239_v38  ;;  %v1585_v34 = vld [vmem:[%s14108_s5 + $0x2578] sm:$0xff]  ;;  %v13293_v38 = vcombine.low %v1572_v11, %v1576_v61  ;;  %v1628_v61 = vld [vmem:[%s14108_s5 + $0x26d0] sm:$0xff] }
 0x57c   : > { %11262 = vmatprep.subr.bf16.mxu0 %v13246_v14  ;;  %11795 = vmatprep.subr.bf16.mxu1 %v13248_v41  ;;  %v13295_v14 = vcombine.low %v1573_v26, %v1577_v4  ;;  %v13302_v41 = vcombine.high %v1580_v8, %v1584_v17  ;;  %v13304_v59 = vcombine.high %v1581_v19, %v1585_v34  ;;  %v1632_v26 = vld [vmem:[%s14108_s5 + $0x26f0] sm:$0xff]  ;;  %v1629_v4 = vld [vmem:[%s14108_s5 + $0x26d8] sm:$0xff] }
 0x57f   : > { %11263 = vmatpush1.bf16.msra.mxu0 %v13245_v2  ;;  %11796 = vmatpush1.bf16.msra.mxu1 %v13247_v24  ;;  %v1593_v2 = vld [vmem:[%s14108_s5 + $0x25b8] sm:$0xff]  ;;  %v13301_v24 = vcombine.low %v1580_v8, %v1584_v17  ;;  %v1636_v17 = vld [vmem:[%s14108_s5 + $0x2710] sm:$0xff] }
 0x580   : > { %11264 = vmatprep.subr.bf16.mxu0 %v13254_v36  ;;  %11797 = vmatprep.subr.bf16.mxu1 %v13256_v27  ;;  %v13303_v36 = vcombine.low %v1581_v19, %v1585_v34  ;;  %v13310_v27 = vcombine.high %v1588_v20, %v1592_v21  ;;  %v13312_v13 = vcombine.high %v1589_v22, %v1593_v2  ;;  %v1640_v19 = vld [vmem:[%s14108_s5 + $0x2730] sm:$0xff]  ;;  %v1637_v34 = vld [vmem:[%s14108_s5 + $0x2718] sm:$0xff] }
 0x583   : > { %11265 = vmatpush1.bf16.msra.mxu0 %v13253_v12  ;;  %11798 = vmatpush1.bf16.msra.mxu1 %v13255_v3  ;;  %v1601_v12 = vld [vmem:[%s14108_s5 + $0x25f8] sm:$0xff]  ;;  %v13309_v3 = vcombine.low %v1588_v20, %v1592_v21  ;;  %v1644_v21 = vld [vmem:[%s14108_s5 + $0x2750] sm:$0xff] }
 0x584   : > { %11275 = vmatprep.subr.bf16.mxu0 %v13262_v15  ;;  %11808 = vmatprep.subr.bf16.mxu1 %v13264_v35  ;;  %v13311_v15 = vcombine.low %v1589_v22, %v1593_v2  ;;  %v13318_v35 = vcombine.high %v1596_v40, %v1600_v51  ;;  %v13320_v62 = vcombine.high %v1597_v33, %v1601_v12  ;;  %v1648_v22 = vld [vmem:[%s14108_s5 + $0x2770] sm:$0xff]  ;;  %v1645_v2 = vld [vmem:[%s14108_s5 + $0x2758] sm:$0xff] }
 0x586   : > { %11267 = vmatmul.mubr.bf16.vlgmr.msra.gmra.mrb[4].mxu0 %v14877_v18  ;;  %11800 = vmatmul.mubr.bf16.vlgmr.msra.gmra.mrb[4].mxu1 %v14877_v18  ;;  %v13277_v18 = vcombine.low %v1556_v46, %v1560_v47  ;;  %v1612_v47 = vld [vmem:[%s14108_s5 + $0x2650] sm:$0xff] }
 0x587   : > { %11276 = vmatpush1.bf16.msra.mxu0 %v13261_v5  ;;  %11809 = vmatpush1.bf16.msra.mxu1 %v13263_v43  ;;  %v1609_v5 = vld [vmem:[%s14108_s5 + $0x2638] sm:$0xff]  ;;  %v13317_v43 = vcombine.low %v1596_v40, %v1600_v51  ;;  %v1652_v51 = vld [vmem:[%s14108_s5 + $0x2790] sm:$0xff] }
 0x588   : > { %11277 = vmatprep.subr.bf16.mxu0 %v13270_v45  ;;  %11810 = vmatprep.subr.bf16.mxu1 %v13272_v32  ;;  %v13319_v45 = vcombine.low %v1597_v33, %v1601_v12  ;;  %v13326_v32 = vcombine.high %v1604_v28, %v1608_v55  ;;  %v13328_v46 = vcombine.high %v1605_v16, %v1609_v5  ;;  %v1656_v33 = vld [vmem:[%s14108_s5 + $0x27b0] sm:$0xff]  ;;  %v1653_v12 = vld [vmem:[%s14108_s5 + $0x2798] sm:$0xff] }
 0x589   : > { %11307 = vmatprep.mubr.bf16.mxu0 %v14883_v63  ;;  %11840 = vmatprep.mubr.bf16.mxu1 %v14883_v63  ;;  %v13287_v63 = vcombine.low %v1565_v29, %v1569_v31  ;;  %v1624_v29 = vld [vmem:[%s14108_s5 + $0x26b0] sm:$0xff]  ;;  %v1621_v31 = vld [vmem:[%s14108_s5 + $0x2698] sm:$0xff] }
 0x58b   : > { %11278 = vmatpush1.bf16.msra.mxu0 %v13269_v9  ;;  %11811 = vmatpush1.bf16.msra.mxu1 %v13271_v50  ;;  %v1617_v9 = vld [vmem:[%s14108_s5 + $0x2678] sm:$0xff]  ;;  %v13325_v50 = vcombine.low %v1604_v28, %v1608_v55  ;;  %v1660_v55 = vld [vmem:[%s14108_s5 + $0x27d0] sm:$0xff] }
 0x58c   : > { %11279 = vmatprep.subr.bf16.mxu0 %v13278_v52  ;;  %11812 = vmatprep.subr.bf16.mxu1 %v13280_v10  ;;  %v13327_v52 = vcombine.low %v1605_v16, %v1609_v5  ;;  %v13334_v10 = vcombine.high %v1612_v47, %v1616_v0  ;;  %v13336_v54 = vcombine.high %v1613_v49, %v1617_v9  ;;  %v1664_v16 = vld [vmem:[%s14108_s5 + $0x27f0] sm:$0xff]  ;;  %v1661_v5 = vld [vmem:[%s14108_s5 + $0x27d8] sm:$0xff] }
 0x58f   : > { %11280 = vmatpush1.bf16.msra.mxu0 %v13277_v18  ;;  %11813 = vmatpush1.bf16.msra.mxu1 %v13279_v57  ;;  %v1625_v18 = vld [vmem:[%s14108_s5 + $0x26b8] sm:$0xff]  ;;  %v13333_v57 = vcombine.low %v1612_v47, %v1616_v0  ;;  %v1668_v0 = vld [vmem:[%s14108_s5 + $0x2810] sm:$0xff] }
 0x590   : > { %11281 = vmatprep.subr.bf16.mxu0 %v13286_v58  ;;  %11814 = vmatprep.subr.bf16.mxu1 %v13288_v25  ;;  %v13335_v58 = vcombine.low %v1613_v49, %v1617_v9  ;;  %v13342_v25 = vcombine.high %v1620_v23, %v1624_v29  ;;  %v13344_v11 = vcombine.high %v1621_v31, %v1625_v18  ;;  %v1672_v49 = vld [vmem:[%s14108_s5 + $0x2830] sm:$0xff]  ;;  %v1669_v9 = vld [vmem:[%s14108_s5 + $0x2818] sm:$0xff] }
 0x593   : > { %11282 = vmatpush1.bf16.msra.mxu0 %v13285_v56  ;;  %11815 = vmatpush1.bf16.msra.mxu1 %v13287_v63  ;;  %v1633_v56 = vld [vmem:[%s14108_s5 + $0x26f8] sm:$0xff]  ;;  %v13341_v63 = vcombine.low %v1620_v23, %v1624_v29  ;;  %v1676_v29 = vld [vmem:[%s14108_s5 + $0x2850] sm:$0xff] }
 0x594   : > { %11283 = vmatprep.subr.bf16.mxu0 %v13294_v6  ;;  %11816 = vmatprep.subr.bf16.mxu1 %v13296_v39  ;;  %v13343_v6 = vcombine.low %v1621_v31, %v1625_v18  ;;  %v13350_v39 = vcombine.high %v1628_v61, %v1632_v26  ;;  %v13352_v8 = vcombine.high %v1629_v4, %v1633_v56  ;;  %v1680_v31 = vld [vmem:[%s14108_s5 + $0x2870] sm:$0xff]  ;;  %v1677_v18 = vld [vmem:[%s14108_s5 + $0x2858] sm:$0xff] }
 0x597   : > { %11284 = vmatpush1.bf16.msra.mxu0 %v13293_v38  ;;  %11817 = vmatpush1.bf16.msra.mxu1 %v13295_v14  ;;  %v1641_v38 = vld [vmem:[%s14108_s5 + $0x2738] sm:$0xff]  ;;  %v13349_v14 = vcombine.low %v1628_v61, %v1632_v26  ;;  %v1684_v26 = vld [vmem:[%s14108_s5 + $0x2890] sm:$0xff] }
 0x598   : > { %11285 = vmatprep.subr.bf16.mxu0 %v13302_v41  ;;  %11818 = vmatprep.subr.bf16.mxu1 %v13304_v59  ;;  %v13351_v41 = vcombine.low %v1629_v4, %v1633_v56  ;;  %v13358_v59 = vcombine.high %v1636_v17, %v1640_v19  ;;  %v13360_v20 = vcombine.high %v1637_v34, %v1641_v38  ;;  %v1688_v4 = vld [vmem:[%s14108_s5 + $0x28b0] sm:$0xff]  ;;  %v1685_v56 = vld [vmem:[%s14108_s5 + $0x2898] sm:$0xff] }
 0x59b   : > { %11286 = vmatpush1.bf16.msra.mxu0 %v13301_v24  ;;  %11819 = vmatpush1.bf16.msra.mxu1 %v13303_v36  ;;  %v1649_v24 = vld [vmem:[%s14108_s5 + $0x2778] sm:$0xff]  ;;  %v13357_v36 = vcombine.low %v1636_v17, %v1640_v19  ;;  %v1692_v19 = vld [vmem:[%s14108_s5 + $0x28d0] sm:$0xff] }
 0x59c   : > { %11287 = vmatprep.subr.bf16.mxu0 %v13310_v27  ;;  %11820 = vmatprep.subr.bf16.mxu1 %v13312_v13  ;;  %v13359_v27 = vcombine.low %v1637_v34, %v1641_v38  ;;  %v13366_v13 = vcombine.high %v1644_v21, %v1648_v22  ;;  %v13368_v40 = vcombine.high %v1645_v2, %v1649_v24  ;;  %v1696_v34 = vld [vmem:[%s14108_s5 + $0x28f0] sm:$0xff]  ;;  %v1693_v38 = vld [vmem:[%s14108_s5 + $0x28d8] sm:$0xff] }
 0x59f   : > { %11288 = vmatpush1.bf16.msra.mxu0 %v13309_v3  ;;  %11821 = vmatpush1.bf16.msra.mxu1 %v13311_v15  ;;  %v1657_v3 = vld [vmem:[%s14108_s5 + $0x27b8] sm:$0xff]  ;;  %v13365_v15 = vcombine.low %v1644_v21, %v1648_v22  ;;  %v1700_v21 = vld [vmem:[%s14108_s5 + $0x2910] sm:$0xff] }
 0x5a0   : > { %11289 = vmatprep.subr.bf16.mxu0 %v13318_v35  ;;  %11822 = vmatprep.subr.bf16.mxu1 %v13320_v62  ;;  %v13367_v35 = vcombine.low %v1645_v2, %v1649_v24  ;;  %v13374_v62 = vcombine.high %v1652_v51, %v1656_v33  ;;  %v13376_v28 = vcombine.high %v1653_v12, %v1657_v3  ;;  %v1704_v22 = vld [vmem:[%s14108_s5 + $0x2930] sm:$0xff]  ;;  %v1701_v2 = vld [vmem:[%s14108_s5 + $0x2918] sm:$0xff] }
 0x5a1   : > { %v1705_v24 = vld [vmem:[%s14108_s5 + $0x2938] sm:$0xff] }
 0x5a3   : > { %11290 = vmatpush1.bf16.msra.mxu0 %v13317_v43  ;;  %11823 = vmatpush1.bf16.msra.mxu1 %v13319_v45  ;;  %v1665_v43 = vld [vmem:[%s14108_s5 + $0x27f8] sm:$0xff]  ;;  %v13373_v45 = vcombine.low %v1652_v51, %v1656_v33  ;;  %v1712_v51 = vld [vmem:[%s14108_s5 + $0x2970] sm:$0xff] }
 0x5a4   : > { %11291 = vmatprep.subr.bf16.mxu0 %v13326_v32  ;;  %11824 = vmatprep.subr.bf16.mxu1 %v13328_v46  ;;  %v13375_v32 = vcombine.low %v1653_v12, %v1657_v3  ;;  %v13382_v46 = vcombine.high %v1660_v55, %v1664_v16  ;;  %v13384_v47 = vcombine.high %v1661_v5, %v1665_v43  ;;  %v1709_v33 = vld [vmem:[%s14108_s5 + $0x2958] sm:$0xff] }
 0x5a5   : > { %v1713_v12 = vld [vmem:[%s14108_s5 + $0x2978] sm:$0xff]  ;;  %v13421_v3 = vcombine.low %v1700_v21, %v1704_v22 }
 0x5a7   : > { %11292 = vmatpush1.bf16.msra.mxu0 %v13325_v50  ;;  %11825 = vmatpush1.bf16.msra.mxu1 %v13327_v52  ;;  %v1673_v50 = vld [vmem:[%s14108_s5 + $0x2838] sm:$0xff]  ;;  %v13381_v52 = vcombine.low %v1660_v55, %v1664_v16  ;;  %v1720_v55 = vld [vmem:[%s14108_s5 + $0x29b0] sm:$0xff] }
 0x5a8   : > { %11293 = vmatprep.subr.bf16.mxu0 %v13334_v10  ;;  %11826 = vmatprep.subr.bf16.mxu1 %v13336_v54  ;;  %v13383_v10 = vcombine.low %v1661_v5, %v1665_v43  ;;  %v13390_v54 = vcombine.high %v1668_v0, %v1672_v49  ;;  %v13392_v23 = vcombine.high %v1669_v9, %v1673_v50  ;;  %v1717_v16 = vld [vmem:[%s14108_s5 + $0x2998] sm:$0xff] }
 0x5a9   : > { %v1721_v5 = vld [vmem:[%s14108_s5 + $0x29b8] sm:$0xff] }
 0x5ab   : > { %11294 = vmatpush1.bf16.msra.mxu0 %v13333_v57  ;;  %11827 = vmatpush1.bf16.msra.mxu1 %v13335_v58  ;;  %v1681_v57 = vld [vmem:[%s14108_s5 + $0x2878] sm:$0xff]  ;;  %v13389_v58 = vcombine.low %v1668_v0, %v1672_v49  ;;  %v1728_v0 = vld [vmem:[%s14108_s5 + $0x29f0] sm:$0xff] }
 0x5ac   : > { %11295 = vmatprep.subr.bf16.mxu0 %v13342_v25  ;;  %11828 = vmatprep.subr.bf16.mxu1 %v13344_v11  ;;  %v13391_v25 = vcombine.low %v1669_v9, %v1673_v50  ;;  %v13398_v11 = vcombine.high %v1676_v29, %v1680_v31  ;;  %v13400_v61 = vcombine.high %v1677_v18, %v1681_v57  ;;  %v1725_v49 = vld [vmem:[%s14108_s5 + $0x29d8] sm:$0xff] }
 0x5ad   : > { %v1729_v9 = vld [vmem:[%s14108_s5 + $0x29f8] sm:$0xff] }
 0x5af   : > { %11296 = vmatpush1.bf16.msra.mxu0 %v13341_v63  ;;  %11829 = vmatpush1.bf16.msra.mxu1 %v13343_v6  ;;  %v1689_v63 = vld [vmem:[%s14108_s5 + $0x28b8] sm:$0xff]  ;;  %v13397_v6 = vcombine.low %v1676_v29, %v1680_v31  ;;  %v1736_v29 = vld [vmem:[%s14108_s5 + $0x2a30] sm:$0xff] }
 0x5b0   : > { %11297 = vmatprep.subr.bf16.mxu0 %v13350_v39  ;;  %11830 = vmatprep.subr.bf16.mxu1 %v13352_v8  ;;  %v13399_v39 = vcombine.low %v1677_v18, %v1681_v57  ;;  %v13406_v8 = vcombine.high %v1684_v26, %v1688_v4  ;;  %v13408_v17 = vcombine.high %v1685_v56, %v1689_v63  ;;  %v1733_v31 = vld [vmem:[%s14108_s5 + $0x2a18] sm:$0xff] }
 0x5b1   : > { %v1737_v18 = vld [vmem:[%s14108_s5 + $0x2a38] sm:$0xff] }
 0x5b3   : > { %11298 = vmatpush1.bf16.msra.mxu0 %v13349_v14  ;;  %11831 = vmatpush1.bf16.msra.mxu1 %v13351_v41  ;;  %v1697_v14 = vld [vmem:[%s14108_s5 + $0x28f8] sm:$0xff]  ;;  %v13407_v41 = vcombine.low %v1685_v56, %v1689_v63 }
 0x5b4   : > { %11299 = vmatprep.subr.bf16.mxu0 %v13358_v59  ;;  %11832 = vmatprep.subr.bf16.mxu1 %v13360_v20  ;;  %v13414_v59 = vcombine.high %v1692_v19, %v1696_v34  ;;  %v13416_v20 = vcombine.high %v1693_v38, %v1697_v14  ;;  %v1745_v56 = vld [vmem:[%s14108_s5 + $0x2a78] sm:$0xff] }
 0x5b7   : > { %11300 = vmatpush1.bf16.msra.mxu0 %v13357_v36  ;;  %11833 = vmatpush1.bf16.msra.mxu1 %v13359_v27  ;;  %v13413_v36 = vcombine.low %v1692_v19, %v1696_v34  ;;  %v13422_v27 = vcombine.high %v1700_v21, %v1704_v22  ;;  %v1752_v19 = vld [vmem:[%s14108_s5 + $0x2ab0] sm:$0xff]  ;;  %v1749_v34 = vld [vmem:[%s14108_s5 + $0x2a98] sm:$0xff] }
 0x5b8   : > { %11301 = vmatprep.subr.bf16.mxu0 %v13366_v13  ;;  %11834 = vmatprep.subr.bf16.mxu1 %v13368_v40  ;;  %v13424_v13 = vcombine.high %v1701_v2, %v1705_v24  ;;  %v1708_v40 = vld [vmem:[%s14108_s5 + $0x2950] sm:$0xff]  ;;  %v1757_v22 = vld [vmem:[%s14108_s5 + $0x2ad8] sm:$0xff] }
 0x5b9   : > { %v13429_v43 = vcombine.low %v1708_v40, %v1712_v51  ;;  %v1760_v21 = vld [vmem:[%s14108_s5 + $0x2af0] sm:$0xff] }
 0x5bb   : > { %11302 = vmatpush1.bf16.msra.mxu0 %v13365_v15  ;;  %11835 = vmatpush1.bf16.msra.mxu1 %v13367_v35  ;;  %v13423_v15 = vcombine.low %v1701_v2, %v1705_v24  ;;  %v13430_v35 = vcombine.high %v1708_v40, %v1712_v51  ;;  %v1761_v2 = vld [vmem:[%s14108_s5 + $0x2af8] sm:$0xff]  ;;  %v1768_v40 = vld [vmem:[%s14108_s5 + $0x2b30] sm:$0xff] }
 0x5bc   : > { %11303 = vmatprep.subr.bf16.mxu0 %v13374_v62  ;;  %11836 = vmatprep.subr.bf16.mxu1 %v13376_v28  ;;  %v13432_v62 = vcombine.high %v1709_v33, %v1713_v12  ;;  %v1716_v28 = vld [vmem:[%s14108_s5 + $0x2990] sm:$0xff]  ;;  %v1765_v51 = vld [vmem:[%s14108_s5 + $0x2b18] sm:$0xff] }
 0x5bd   : > { %v13437_v50 = vcombine.low %v1716_v28, %v1720_v55 }
 0x5bf   : > { %11304 = vmatpush1.bf16.msra.mxu0 %v13373_v45  ;;  %11837 = vmatpush1.bf16.msra.mxu1 %v13375_v32  ;;  %v13431_v45 = vcombine.low %v1709_v33, %v1713_v12  ;;  %v13438_v32 = vcombine.high %v1716_v28, %v1720_v55  ;;  %v1769_v33 = vld [vmem:[%s14108_s5 + $0x2b38] sm:$0xff]  ;;  %v1776_v28 = vld [vmem:[%s14108_s5 + $0x2b70] sm:$0xff] }
 0x5c0   : > { %11305 = vmatprep.subr.bf16.mxu0 %v13382_v46  ;;  %11838 = vmatprep.subr.bf16.mxu1 %v13384_v47  ;;  %v13440_v46 = vcombine.high %v1717_v16, %v1721_v5  ;;  %v1724_v47 = vld [vmem:[%s14108_s5 + $0x29d0] sm:$0xff]  ;;  %v1773_v55 = vld [vmem:[%s14108_s5 + $0x2b58] sm:$0xff] }
 0x5c1   : > { %v13445_v57 = vcombine.low %v1724_v47, %v1728_v0 }
 0x5c3   : > { %11306 = vmatpush1.bf16.msra.mxu0 %v13381_v52  ;;  %11839 = vmatpush1.bf16.msra.mxu1 %v13383_v10  ;;  %v13439_v52 = vcombine.low %v1717_v16, %v1721_v5  ;;  %v13446_v10 = vcombine.high %v1724_v47, %v1728_v0  ;;  %v1777_v16 = vld [vmem:[%s14108_s5 + $0x2b78] sm:$0xff]  ;;  %v1784_v47 = vld [vmem:[%s14108_s5 + $0x2bb0] sm:$0xff] }
 0x5c4   : > { %11316 = vmatprep.subr.bf16.mxu0 %v13390_v54  ;;  %11849 = vmatprep.subr.bf16.mxu1 %v13392_v23  ;;  %v13448_v54 = vcombine.high %v1725_v49, %v1729_v9  ;;  %v1732_v23 = vld [vmem:[%s14108_s5 + $0x2a10] sm:$0xff]  ;;  %v1781_v0 = vld [vmem:[%s14108_s5 + $0x2b98] sm:$0xff] }
 0x5c5   : > { %v13453_v63 = vcombine.low %v1732_v23, %v1736_v29 }
 0x5c6   : > { %11308 = vmatmul.mubr.bf16.vlgmr.msra.gmra.mrb[4].mxu0 %v14962_v30  ;;  %11841 = vmatmul.mubr.bf16.vlgmr.msra.gmra.mrb[4].mxu1 %v14962_v30  ;;  %v13405_v30 = vcombine.low %v1684_v26, %v1688_v4  ;;  %v1744_v26 = vld [vmem:[%s14108_s5 + $0x2a70] sm:$0xff]  ;;  %v1741_v4 = vld [vmem:[%s14108_s5 + $0x2a58] sm:$0xff] }
 0x5c7   : > { %11317 = vmatpush1.bf16.msra.mxu0 %v13389_v58  ;;  %11850 = vmatpush1.bf16.msra.mxu1 %v13391_v25  ;;  %v13447_v58 = vcombine.low %v1725_v49, %v1729_v9  ;;  %v13454_v25 = vcombine.high %v1732_v23, %v1736_v29  ;;  %v1785_v49 = vld [vmem:[%s14108_s5 + $0x2bb8] sm:$0xff]  ;;  %v1792_v23 = vld [vmem:[%s14108_s5 + $0x2bf0] sm:$0xff] }
 0x5c8   : > { %11318 = vmatprep.subr.bf16.mxu0 %v13398_v11  ;;  %11851 = vmatprep.subr.bf16.mxu1 %v13400_v61  ;;  %v13456_v11 = vcombine.high %v1733_v31, %v1737_v18  ;;  %v1740_v61 = vld [vmem:[%s14108_s5 + $0x2a50] sm:$0xff]  ;;  %v1789_v29 = vld [vmem:[%s14108_s5 + $0x2bd8] sm:$0xff] }
 0x5c9   : > { %11348 = vmatprep.mubr.bf16.mxu0 %v14968_v42  ;;  %11881 = vmatprep.mubr.bf16.mxu1 %v14968_v42  ;;  %v13415_v42 = vcombine.low %v1693_v38, %v1697_v14  ;;  %v1753_v38 = vld [vmem:[%s14108_s5 + $0x2ab8] sm:$0xff]  ;;  %v13461_v14 = vcombine.low %v1740_v61, %v1744_v26 }
 0x5cb   : > { %11319 = vmatpush1.bf16.msra.mxu0 %v13397_v6  ;;  %11852 = vmatpush1.bf16.msra.mxu1 %v13399_v39  ;;  %v13455_v6 = vcombine.low %v1733_v31, %v1737_v18  ;;  %v13462_v39 = vcombine.high %v1740_v61, %v1744_v26  ;;  %v1793_v31 = vld [vmem:[%s14108_s5 + $0x2bf8] sm:$0xff]  ;;  %v1800_v61 = vld [vmem:[%s14108_s5 + $0x2c30] sm:$0xff] }
 0x5cc   : > { %11320 = vmatprep.subr.bf16.mxu0 %v13406_v8  ;;  %11853 = vmatprep.subr.bf16.mxu1 %v13408_v17  ;;  %v13464_v8 = vcombine.high %v1741_v4, %v1745_v56  ;;  %v1748_v17 = vld [vmem:[%s14108_s5 + $0x2a90] sm:$0xff]  ;;  %v1797_v26 = vld [vmem:[%s14108_s5 + $0x2c18] sm:$0xff] }
 0x5cd   : > { %v13469_v24 = vcombine.low %v1748_v17, %v1752_v19 }
 0x5cf   : > { %11321 = vmatpush1.bf16.msra.mxu0 %v13405_v30  ;;  %11854 = vmatpush1.bf16.msra.mxu1 %v13407_v41  ;;  %v13463_v30 = vcombine.low %v1741_v4, %v1745_v56  ;;  %v13470_v41 = vcombine.high %v1748_v17, %v1752_v19  ;;  %v1801_v4 = vld [vmem:[%s14108_s5 + $0x2c38] sm:$0xff]  ;;  %v1808_v17 = vld [vmem:[%s14108_s5 + $0x2c70] sm:$0xff] }
 0x5d0   : > { %11322 = vmatprep.subr.bf16.mxu0 %v13414_v59  ;;  %11855 = vmatprep.subr.bf16.mxu1 %v13416_v20  ;;  %v13472_v59 = vcombine.high %v1749_v34, %v1753_v38  ;;  %v1756_v20 = vld [vmem:[%s14108_s5 + $0x2ad0] sm:$0xff]  ;;  %v1805_v19 = vld [vmem:[%s14108_s5 + $0x2c58] sm:$0xff] }
 0x5d1   : > { %v13477_v12 = vcombine.low %v1756_v20, %v1760_v21 }
 0x5d3   : > { %11323 = vmatpush1.bf16.msra.mxu0 %v13413_v36  ;;  %11856 = vmatpush1.bf16.msra.mxu1 %v13415_v42  ;;  %v13471_v36 = vcombine.low %v1749_v34, %v1753_v38  ;;  %v13478_v42 = vcombine.high %v1756_v20, %v1760_v21  ;;  %v1809_v34 = vld [vmem:[%s14108_s5 + $0x2c78] sm:$0xff]  ;;  %v1816_v20 = vld [vmem:[%s14108_s5 + $0x2cb0] sm:$0xff] }
 0x5d4   : > { %11324 = vmatprep.subr.bf16.mxu0 %v13422_v27  ;;  %11857 = vmatprep.subr.bf16.mxu1 %v13424_v13  ;;  %v13480_v27 = vcombine.high %v1757_v22, %v1761_v2  ;;  %v1764_v13 = vld [vmem:[%s14108_s5 + $0x2b10] sm:$0xff]  ;;  %v1813_v21 = vld [vmem:[%s14108_s5 + $0x2c98] sm:$0xff] }
 0x5d5   : > { %v13485_v5 = vcombine.low %v1764_v13, %v1768_v40 }
 0x5d7   : > { %11325 = vmatpush1.bf16.msra.mxu0 %v13421_v3  ;;  %11858 = vmatpush1.bf16.msra.mxu1 %v13423_v15  ;;  %v13479_v3 = vcombine.low %v1757_v22, %v1761_v2  ;;  %v13486_v15 = vcombine.high %v1764_v13, %v1768_v40  ;;  %v1817_v22 = vld [vmem:[%s14108_s5 + $0x2cb8] sm:$0xff]  ;;  %v1824_v13 = vld [vmem:[%s14108_s5 + $0x2cf0] sm:$0xff] }
 0x5d8   : > { %11326 = vmatprep.subr.bf16.mxu0 %v13430_v35  ;;  %11859 = vmatprep.subr.bf16.mxu1 %v13432_v62  ;;  %v13488_v35 = vcombine.high %v1765_v51, %v1769_v33  ;;  %v1772_v62 = vld [vmem:[%s14108_s5 + $0x2b50] sm:$0xff]  ;;  %v1821_v40 = vld [vmem:[%s14108_s5 + $0x2cd8] sm:$0xff] }
 0x5d9   : > { %v13493_v9 = vcombine.low %v1772_v62, %v1776_v28 }
 0x5db   : > { %11327 = vmatpush1.bf16.msra.mxu0 %v13429_v43  ;;  %11860 = vmatpush1.bf16.msra.mxu1 %v13431_v45  ;;  %v13487_v43 = vcombine.low %v1765_v51, %v1769_v33  ;;  %v13494_v45 = vcombine.high %v1772_v62, %v1776_v28  ;;  %v1825_v51 = vld [vmem:[%s14108_s5 + $0x2cf8] sm:$0xff]  ;;  %v13535_v33 = vcombine.low %v1813_v21, %v1817_v22 }
 0x5dc   : > { %11328 = vmatprep.subr.bf16.mxu0 %v13438_v32  ;;  %11861 = vmatprep.subr.bf16.mxu1 %v13440_v46  ;;  %v13496_v32 = vcombine.high %v1773_v55, %v1777_v16  ;;  %v1780_v46 = vld [vmem:[%s14108_s5 + $0x2b90] sm:$0xff]  ;;  %v1829_v62 = vld [vmem:[%s14108_s5 + $0x2d18] sm:$0xff] }
 0x5dd   : > { %v13501_v18 = vcombine.low %v1780_v46, %v1784_v47  ;;  %v1833_v28 = vld [vmem:[%s14108_s5 + $0x2d38] sm:$0xff] }
 0x5df   : > { %11329 = vmatpush1.bf16.msra.mxu0 %v13437_v50  ;;  %11862 = vmatpush1.bf16.msra.mxu1 %v13439_v52  ;;  %v13495_v50 = vcombine.low %v1773_v55, %v1777_v16  ;;  %v13502_v52 = vcombine.high %v1780_v46, %v1784_v47  ;;  %v1841_v46 = vld [vmem:[%s14108_s5 + $0x2d78] sm:$0xff] }
 0x5e0   : > { %11330 = vmatprep.subr.bf16.mxu0 %v13446_v10  ;;  %11863 = vmatprep.subr.bf16.mxu1 %v13448_v54  ;;  %v13504_v10 = vcombine.high %v1781_v0, %v1785_v49  ;;  %v1788_v54 = vld [vmem:[%s14108_s5 + $0x2bd0] sm:$0xff] }
 0x5e1   : > { %v13509_v56 = vcombine.low %v1788_v54, %v1792_v23 }
 0x5e3   : > { %11331 = vmatpush1.bf16.msra.mxu0 %v13445_v57  ;;  %11864 = vmatpush1.bf16.msra.mxu1 %v13447_v58  ;;  %v13503_v57 = vcombine.low %v1781_v0, %v1785_v49  ;;  %v13510_v58 = vcombine.high %v1788_v54, %v1792_v23  ;;  %v13551_v0 = vcombine.low %v1829_v62, %v1833_v28  ;;  %v1849_v54 = vld [vmem:[%s14108_s5 + $0x2db8] sm:$0xff] }
 0x5e4   : > { %11332 = vmatprep.subr.bf16.mxu0 %v13454_v25  ;;  %11865 = vmatprep.subr.bf16.mxu1 %v13456_v11  ;;  %v13512_v25 = vcombine.high %v1789_v29, %v1793_v31  ;;  %v1796_v11 = vld [vmem:[%s14108_s5 + $0x2c10] sm:$0xff] }
 0x5e5   : > { %v13517_v38 = vcombine.low %v1796_v11, %v1800_v61 }
 0x5e7   : > { %11333 = vmatpush1.bf16.msra.mxu0 %v13453_v63  ;;  %11866 = vmatpush1.bf16.msra.mxu1 %v13455_v6  ;;  %v13511_v63 = vcombine.low %v1789_v29, %v1793_v31  ;;  %v13518_v6 = vcombine.high %v1796_v11, %v1800_v61  ;;  %v1857_v11 = vld [vmem:[%s14108_s5 + $0x2df8] sm:$0xff] }
 0x5e8   : > { %11334 = vmatprep.subr.bf16.mxu0 %v13462_v39  ;;  %11867 = vmatprep.subr.bf16.mxu1 %v13464_v8  ;;  %v13520_v39 = vcombine.high %v1797_v26, %v1801_v4  ;;  %v1804_v8 = vld [vmem:[%s14108_s5 + $0x2c50] sm:$0xff] }
 0x5e9   : > { %v13525_v2 = vcombine.low %v1804_v8, %v1808_v17 }
 0x5eb   : > { %11335 = vmatpush1.bf16.msra.mxu0 %v13461_v14  ;;  %11868 = vmatpush1.bf16.msra.mxu1 %v13463_v30  ;;  %v13519_v14 = vcombine.low %v1797_v26, %v1801_v4  ;;  %v13526_v30 = vcombine.high %v1804_v8, %v1808_v17  ;;  %v1865_v8 = vld [vmem:[%s14108_s5 + $0x2e38] sm:$0xff] }
 0x5ec   : > { %11336 = vmatprep.subr.bf16.mxu0 %v13470_v41  ;;  %11869 = vmatprep.subr.bf16.mxu1 %v13472_v59  ;;  %v13528_v41 = vcombine.high %v1805_v19, %v1809_v34  ;;  %v1812_v59 = vld [vmem:[%s14108_s5 + $0x2c90] sm:$0xff] }
 0x5ef   : > { %11337 = vmatpush1.bf16.msra.mxu0 %v13469_v24  ;;  %11870 = vmatpush1.bf16.msra.mxu1 %v13471_v36  ;;  %v13527_v24 = vcombine.low %v1805_v19, %v1809_v34  ;;  %v13534_v36 = vcombine.high %v1812_v59, %v1816_v20 }
 0x5f0   : > { %11338 = vmatprep.subr.bf16.mxu0 %v13478_v42  ;;  %11871 = vmatprep.subr.bf16.mxu1 %v13480_v27  ;;  %v13536_v42 = vcombine.high %v1813_v21, %v1817_v22  ;;  %v1820_v27 = vld [vmem:[%s14108_s5 + $0x2cd0] sm:$0xff] }
 0x5f1   : > { %v13541_v55 = vcombine.low %v1820_v27, %v1824_v13 }
 0x5f3   : > { %11339 = vmatpush1.bf16.msra.mxu0 %v13477_v12  ;;  %11872 = vmatpush1.bf16.msra.mxu1 %v13479_v3  ;;  %v13542_v12 = vcombine.high %v1820_v27, %v1824_v13  ;;  %v13544_v3 = vcombine.high %v1821_v40, %v1825_v51  ;;  %v1881_v27 = vld [vmem:[%s14108_s5 + $0x2eb8] sm:$0xff] }
 0x5f4   : > { %11340 = vmatprep.subr.bf16.mxu0 %v13486_v15  ;;  %11873 = vmatprep.subr.bf16.mxu1 %v13488_v35  ;;  %v1828_v15 = vld [vmem:[%s14108_s5 + $0x2d10] sm:$0xff] }
 0x5f5   : > { %v1832_v35 = vld [vmem:[%s14108_s5 + $0x2d30] sm:$0xff] }
 0x5f6   : > { %v13550_v16 = vcombine.high %v1828_v15, %v1832_v35  ;;  %v13549_v47 = vcombine.low %v1828_v15, %v1832_v35  ;;  %v1889_v15 = vld [vmem:[%s14108_s5 + $0x2ef8] sm:$0xff] }
 0x5f7   : > { %11341 = vmatpush1.bf16.msra.mxu0 %v13485_v5  ;;  %11874 = vmatpush1.bf16.msra.mxu1 %v13487_v43  ;;  %v13552_v5 = vcombine.high %v1829_v62, %v1833_v28  ;;  %v1836_v43 = vld [vmem:[%s14108_s5 + $0x2d50] sm:$0xff] }
 0x5f8   : > { %11342 = vmatprep.subr.bf16.mxu0 %v13494_v45  ;;  %11875 = vmatprep.subr.bf16.mxu1 %v13496_v32  ;;  %v1840_v45 = vld [vmem:[%s14108_s5 + $0x2d70] sm:$0xff]  ;;  %v1837_v32 = vld [vmem:[%s14108_s5 + $0x2d58] sm:$0xff] }
 0x5f9   : > { %v13558_v49 = vcombine.high %v1836_v43, %v1840_v45  ;;  %v13557_v23 = vcombine.low %v1836_v43, %v1840_v45  ;;  %v13559_v29 = vcombine.low %v1837_v32, %v1841_v46  ;;  %v1897_v43 = vld [vmem:[%s14108_s5 + $0x2f38] sm:$0xff] }
 0x5fb   : > { %11343 = vmatpush1.bf16.msra.mxu0 %v13493_v9  ;;  %11876 = vmatpush1.bf16.msra.mxu1 %v13495_v50  ;;  %v13560_v9 = vcombine.high %v1837_v32, %v1841_v46  ;;  %v1844_v50 = vld [vmem:[%s14108_s5 + $0x2d90] sm:$0xff] }
 0x5fc   : > { %11344 = vmatprep.subr.bf16.mxu0 %v13502_v52  ;;  %11877 = vmatprep.subr.bf16.mxu1 %v13504_v10  ;;  %v1848_v52 = vld [vmem:[%s14108_s5 + $0x2db0] sm:$0xff]  ;;  %v1845_v10 = vld [vmem:[%s14108_s5 + $0x2d98] sm:$0xff] }
 0x5fd   : > { %v13566_v31 = vcombine.high %v1844_v50, %v1848_v52  ;;  %v13565_v61 = vcombine.low %v1844_v50, %v1848_v52  ;;  %v13567_v26 = vcombine.low %v1845_v10, %v1849_v54  ;;  %v1905_v50 = vld [vmem:[%s14108_s5 + $0x2f78] sm:$0xff] }
 0x5ff   : > { %11345 = vmatpush1.bf16.msra.mxu0 %v13501_v18  ;;  %11878 = vmatpush1.bf16.msra.mxu1 %v13503_v57  ;;  %v13568_v18 = vcombine.high %v1845_v10, %v1849_v54  ;;  %v1852_v57 = vld [vmem:[%s14108_s5 + $0x2dd0] sm:$0xff] }
 0x600   : > { %11346 = vmatprep.subr.bf16.mxu0 %v13510_v58  ;;  %11879 = vmatprep.subr.bf16.mxu1 %v13512_v25  ;;  %v1856_v58 = vld [vmem:[%s14108_s5 + $0x2df0] sm:$0xff]  ;;  %v1853_v25 = vld [vmem:[%s14108_s5 + $0x2dd8] sm:$0xff] }
 0x601   : > { %v13574_v4 = vcombine.high %v1852_v57, %v1856_v58  ;;  %v13573_v17 = vcombine.low %v1852_v57, %v1856_v58  ;;  %v13575_v19 = vcombine.low %v1853_v25, %v1857_v11  ;;  %v1913_v57 = vld [vmem:[%s14108_s5 + $0x2fb8] sm:$0xff] }
 0x603   : > { %11347 = vmatpush1.bf16.msra.mxu0 %v13509_v56  ;;  %11880 = vmatpush1.bf16.msra.mxu1 %v13511_v63  ;;  %v13576_v56 = vcombine.high %v1853_v25, %v1857_v11  ;;  %v1860_v63 = vld [vmem:[%s14108_s5 + $0x2e10] sm:$0xff] }
 0x604   : > { %11357 = vmatprep.subr.bf16.mxu0 %v13518_v6  ;;  %11890 = vmatprep.subr.bf16.mxu1 %v13520_v39  ;;  %v1864_v6 = vld [vmem:[%s14108_s5 + $0x2e30] sm:$0xff]  ;;  %v1861_v39 = vld [vmem:[%s14108_s5 + $0x2e18] sm:$0xff] }
 0x605   : > { %v13582_v34 = vcombine.high %v1860_v63, %v1864_v6  ;;  %v13583_v21 = vcombine.low %v1861_v39, %v1865_v8 }
 0x606   : > { %11349 = vmatmul.mubr.bf16.vlgmr.msra.gmra.mrb[4].mxu0 %v15043_v48  ;;  %11882 = vmatmul.mubr.bf16.vlgmr.msra.gmra.mrb[4].mxu1 %v15043_v48  ;;  %v13533_v48 = vcombine.low %v1812_v59, %v1816_v20  ;;  %v1873_v59 = vld [vmem:[%s14108_s5 + $0x2e78] sm:$0xff]  ;;  %v13581_v20 = vcombine.low %v1860_v63, %v1864_v6 }
 0x607   : > { %11358 = vmatpush1.bf16.msra.mxu0 %v13517_v38  ;;  %11891 = vmatpush1.bf16.msra.mxu1 %v13519_v14  ;;  %v13584_v38 = vcombine.high %v1861_v39, %v1865_v8  ;;  %v1868_v14 = vld [vmem:[%s14108_s5 + $0x2e50] sm:$0xff]  ;;  %v1921_v63 = vld [vmem:[%s14108_s5 + $0x2ff8] sm:$0xff] }
 0x608   : > { %11359 = vmatprep.subr.bf16.mxu0 %v13526_v30  ;;  %11892 = vmatprep.subr.bf16.mxu1 %v13528_v41  ;;  %v1872_v30 = vld [vmem:[%s14108_s5 + $0x2e70] sm:$0xff]  ;;  %v1869_v41 = vld [vmem:[%s14108_s5 + $0x2e58] sm:$0xff] }
 0x609   : > { %11389 = vmatprep.mubr.bf16.mxu0 %v15049_v60  ;;  %11922 = vmatprep.mubr.bf16.mxu1 %v15049_v60  ;;  %v13543_v60 = vcombine.low %v1821_v40, %v1825_v51  ;;  %v13590_v22 = vcombine.high %v1868_v14, %v1872_v30  ;;  %v13589_v13 = vcombine.low %v1868_v14, %v1872_v30  ;;  %v1929_v14 = vld [vmem:[%s14108_s5 + $0x3038] sm:$0xff] }
 0x60a   : > { %v13591_v40 = vcombine.low %v1869_v41, %v1873_v59 }
 0x60b   : > { %11360 = vmatpush1.bf16.msra.mxu0 %v13525_v2  ;;  %11893 = vmatpush1.bf16.msra.mxu1 %v13527_v24  ;;  %v13592_v2 = vcombine.high %v1869_v41, %v1873_v59  ;;  %v1876_v24 = vld [vmem:[%s14108_s5 + $0x2e90] sm:$0xff] }
 0x60c   : > { %11361 = vmatprep.subr.bf16.mxu0 %v13534_v36  ;;  %11894 = vmatprep.subr.bf16.mxu1 %v13536_v42  ;;  %v1880_v36 = vld [vmem:[%s14108_s5 + $0x2eb0] sm:$0xff]  ;;  %v1877_v42 = vld [vmem:[%s14108_s5 + $0x2e98] sm:$0xff] }
 0x60d   : > { %v13598_v51 = vcombine.high %v1876_v24, %v1880_v36  ;;  %v13597_v35 = vcombine.low %v1876_v24, %v1880_v36  ;;  %v13599_v62 = vcombine.low %v1877_v42, %v1881_v27  ;;  %v1937_v24 = vld [vmem:[%s14108_s5 + $0x3078] sm:$0xff] }
 0x60f   : > { %11362 = vmatpush1.bf16.msra.mxu0 %v13533_v48  ;;  %11895 = vmatpush1.bf16.msra.mxu1 %v13535_v33  ;;  %v13600_v48 = vcombine.high %v1877_v42, %v1881_v27  ;;  %v1884_v33 = vld [vmem:[%s14108_s5 + $0x2ed0] sm:$0xff] }
 0x610   : > { %11363 = vmatprep.subr.bf16.mxu0 %v13542_v12  ;;  %11896 = vmatprep.subr.bf16.mxu1 %v13544_v3  ;;  %v1888_v12 = vld [vmem:[%s14108_s5 + $0x2ef0] sm:$0xff]  ;;  %v1885_v3 = vld [vmem:[%s14108_s5 + $0x2ed8] sm:$0xff] }
 0x611   : > { %v13606_v28 = vcombine.high %v1884_v33, %v1888_v12  ;;  %v13605_v45 = vcombine.low %v1884_v33, %v1888_v12  ;;  %v13607_v32 = vcombine.low %v1885_v3, %v1889_v15  ;;  %v1945_v33 = vld [vmem:[%s14108_s5 + $0x30b8] sm:$0xff] }
 0x613   : > { %11364 = vmatpush1.bf16.msra.mxu0 %v13541_v55  ;;  %11897 = vmatpush1.bf16.msra.mxu1 %v13543_v60  ;;  %v13608_v55 = vcombine.high %v1885_v3, %v1889_v15  ;;  %v1892_v60 = vld [vmem:[%s14108_s5 + $0x2f10] sm:$0xff] }
 0x614   : > { %11365 = vmatprep.subr.bf16.mxu0 %v13550_v16  ;;  %11898 = vmatprep.subr.bf16.mxu1 %v13552_v5  ;;  %v1896_v16 = vld [vmem:[%s14108_s5 + $0x2f30] sm:$0xff]  ;;  %v1893_v5 = vld [vmem:[%s14108_s5 + $0x2f18] sm:$0xff] }
 0x615   : > { %v13614_v46 = vcombine.high %v1892_v60, %v1896_v16  ;;  %v13613_v52 = vcombine.low %v1892_v60, %v1896_v16  ;;  %v13615_v10 = vcombine.low %v1893_v5, %v1897_v43  ;;  %v1953_v60 = vld [vmem:[%s14108_s5 + $0x30f8] sm:$0xff] }
 0x617   : > { %11366 = vmatpush1.bf16.msra.mxu0 %v13549_v47  ;;  %11899 = vmatpush1.bf16.msra.mxu1 %v13551_v0  ;;  %v13616_v47 = vcombine.high %v1893_v5, %v1897_v43  ;;  %v1900_v0 = vld [vmem:[%s14108_s5 + $0x2f50] sm:$0xff] }
 0x618   : > { %11367 = vmatprep.subr.bf16.mxu0 %v13558_v49  ;;  %11900 = vmatprep.subr.bf16.mxu1 %v13560_v9  ;;  %v1904_v49 = vld [vmem:[%s14108_s5 + $0x2f70] sm:$0xff]  ;;  %v1901_v9 = vld [vmem:[%s14108_s5 + $0x2f58] sm:$0xff] }
 0x619   : > { %v13622_v54 = vcombine.high %v1900_v0, %v1904_v49  ;;  %v13621_v58 = vcombine.low %v1900_v0, %v1904_v49  ;;  %v13623_v25 = vcombine.low %v1901_v9, %v1905_v50  ;;  %v1986_v0 = vsub.s32 7, %v14136_v44  ;;  %v13932_v49 = vld [vmem:[%s15377_s23] sm:$0xff] }
 0x61b   : > { %11368 = vmatpush1.bf16.msra.mxu0 %v13557_v23  ;;  %11901 = vmatpush1.bf16.msra.mxu1 %v13559_v29  ;;  %v13624_v23 = vcombine.high %v1901_v9, %v1905_v50  ;;  %v1908_v29 = vld [vmem:[%s14108_s5 + $0x2f90] sm:$0xff] }
 0x61c   : > { %11369 = vmatprep.subr.bf16.mxu0 %v13566_v31  ;;  %11902 = vmatprep.subr.bf16.mxu1 %v13568_v18  ;;  %v1912_v31 = vld [vmem:[%s14108_s5 + $0x2fb0] sm:$0xff]  ;;  %v1909_v18 = vld [vmem:[%s14108_s5 + $0x2f98] sm:$0xff] }
 0x61d   : > { %v13630_v11 = vcombine.high %v1908_v29, %v1912_v31  ;;  %v13629_v6 = vcombine.low %v1908_v29, %v1912_v31  ;;  %v13631_v39 = vcombine.low %v1909_v18, %v1913_v57 }
 0x61f   : > { %11370 = vmatpush1.bf16.msra.mxu0 %v13565_v61  ;;  %11903 = vmatpush1.bf16.msra.mxu1 %v13567_v26  ;;  %v13632_v61 = vcombine.high %v1909_v18, %v1913_v57  ;;  %v1916_v26 = vld [vmem:[%s14108_s5 + $0x2fd0] sm:$0xff] }
 0x620   : > { %11371 = vmatprep.subr.bf16.mxu0 %v13574_v4  ;;  %11904 = vmatprep.subr.bf16.mxu1 %v13576_v56  ;;  %v1920_v4 = vld [vmem:[%s14108_s5 + $0x2ff0] sm:$0xff]  ;;  %v1917_v56 = vld [vmem:[%s14108_s5 + $0x2fd8] sm:$0xff] }
 0x621   : > { %v13638_v8 = vcombine.high %v1916_v26, %v1920_v4  ;;  %v13637_v30 = vcombine.low %v1916_v26, %v1920_v4  ;;  %v13639_v41 = vcombine.low %v1917_v56, %v1921_v63 }
 0x623   : > { %11372 = vmatpush1.bf16.msra.mxu0 %v13573_v17  ;;  %11905 = vmatpush1.bf16.msra.mxu1 %v13575_v19  ;;  %v13640_v17 = vcombine.high %v1917_v56, %v1921_v63  ;;  %v1924_v19 = vld [vmem:[%s14108_s5 + $0x3010] sm:$0xff] }
 0x624   : > { %11373 = vmatprep.subr.bf16.mxu0 %v13582_v34  ;;  %11906 = vmatprep.subr.bf16.mxu1 %v13584_v38  ;;  %v1928_v34 = vld [vmem:[%s14108_s5 + $0x3030] sm:$0xff]  ;;  %v1925_v38 = vld [vmem:[%s14108_s5 + $0x3018] sm:$0xff] }
 0x625   : > { %v13646_v59 = vcombine.high %v1924_v19, %v1928_v34  ;;  %v13645_v36 = vcombine.low %v1924_v19, %v1928_v34  ;;  %v13647_v42 = vcombine.low %v1925_v38, %v1929_v14 }
 0x627   : > { %11374 = vmatpush1.bf16.msra.mxu0 %v13581_v20  ;;  %11907 = vmatpush1.bf16.msra.mxu1 %v13583_v21  ;;  %v13648_v20 = vcombine.high %v1925_v38, %v1929_v14  ;;  %v1932_v21 = vld [vmem:[%s14108_s5 + $0x3050] sm:$0xff] }
 0x628   : > { %11375 = vmatprep.subr.bf16.mxu0 %v13590_v22  ;;  %11908 = vmatprep.subr.bf16.mxu1 %v13592_v2  ;;  %v1936_v22 = vld [vmem:[%s14108_s5 + $0x3070] sm:$0xff]  ;;  %v1933_v2 = vld [vmem:[%s14108_s5 + $0x3058] sm:$0xff] }
 0x629   : > { %v13654_v27 = vcombine.high %v1932_v21, %v1936_v22  ;;  %v13653_v12 = vcombine.low %v1932_v21, %v1936_v22  ;;  %v13655_v3 = vcombine.low %v1933_v2, %v1937_v24 }
 0x62b   : > { %11376 = vmatpush1.bf16.msra.mxu0 %v13589_v13  ;;  %11909 = vmatpush1.bf16.msra.mxu1 %v13591_v40  ;;  %v13656_v13 = vcombine.high %v1933_v2, %v1937_v24  ;;  %v1940_v40 = vld [vmem:[%s14108_s5 + $0x3090] sm:$0xff] }
 0x62c   : > { %11377 = vmatprep.subr.bf16.mxu0 %v13598_v51  ;;  %11910 = vmatprep.subr.bf16.mxu1 %v13600_v48  ;;  %v1944_v51 = vld [vmem:[%s14108_s5 + $0x30b0] sm:$0xff]  ;;  %v1941_v48 = vld [vmem:[%s14108_s5 + $0x3098] sm:$0xff] }
 0x62d   : > { %v13662_v15 = vcombine.high %v1940_v40, %v1944_v51  ;;  %v13661_v16 = vcombine.low %v1940_v40, %v1944_v51 }
 0x62f   : > { %11378 = vmatpush1.bf16.msra.mxu0 %v13597_v35  ;;  %11911 = vmatpush1.bf16.msra.mxu1 %v13599_v62  ;;  %v13664_v35 = vcombine.high %v1941_v48, %v1945_v33  ;;  %v1948_v62 = vld [vmem:[%s14108_s5 + $0x30d0] sm:$0xff] }
 0x630   : > { %11379 = vmatprep.subr.bf16.mxu0 %v13606_v28  ;;  %11912 = vmatprep.subr.bf16.mxu1 %v13608_v55  ;;  %v1952_v28 = vld [vmem:[%s14108_s5 + $0x30f0] sm:$0xff]  ;;  %v1949_v55 = vld [vmem:[%s14108_s5 + $0x30d8] sm:$0xff] }
 0x631   : > { %v13670_v5 = vcombine.high %v1948_v62, %v1952_v28  ;;  %v13672_v43 = vcombine.high %v1949_v55, %v1953_v60 }
 0x633   : > { %11380 = vmatpush1.bf16.msra.mxu0 %v13605_v45  ;;  %11913 = vmatpush1.bf16.msra.mxu1 %v13607_v32  ;;  %v13669_v45 = vcombine.low %v1948_v62, %v1952_v28  ;;  %v13671_v32 = vcombine.low %v1949_v55, %v1953_v60 }
 0x634   : > { %11381 = vmatprep.subr.bf16.mxu0 %v13614_v46  ;;  %11914 = vmatprep.subr.bf16.mxu1 %v13616_v47  ;;  %v1982_v46 = vsub.s32 6, %v14136_v44  ;;  %v1978_v47 = vsub.s32 5, %v14136_v44 }
 0x636   : > { %v1983_v50 = vrot.slane %v13932_v49, %v1982_v46 }
 0x637   : > { %11382 = vmatpush1.bf16.msra.mxu0 %v13613_v52  ;;  %11915 = vmatpush1.bf16.msra.mxu1 %v13615_v10  ;;  %v1979_v52 = vrot.slane %v13932_v49, %v1978_v47  ;;  %v1987_v10 = vrot.slane %v13932_v49, %v1986_v0 }
 0x638   : > { %11383 = vmatprep.subr.bf16.mxu0 %v13622_v54  ;;  %11916 = vmatprep.subr.bf16.mxu1 %v13624_v23 }
 0x63b   : > { %11384 = vmatpush1.bf16.msra.mxu0 %v13621_v58  ;;  %11917 = vmatpush1.bf16.msra.mxu1 %v13623_v25 }
 0x63c   : > { %11385 = vmatprep.subr.bf16.mxu0 %v13630_v11  ;;  %11918 = vmatprep.subr.bf16.mxu1 %v13632_v61 }
 0x63f   : > { %11386 = vmatpush1.bf16.msra.mxu0 %v13629_v6  ;;  %11919 = vmatpush1.bf16.msra.mxu1 %v13631_v39 }
 0x640   : > { %11387 = vmatprep.subr.bf16.mxu0 %v13638_v8  ;;  %11920 = vmatprep.subr.bf16.mxu1 %v13640_v17 }
 0x643   : > { %11388 = vmatpush1.bf16.msra.mxu0 %v13637_v30  ;;  %11921 = vmatpush1.bf16.msra.mxu1 %v13639_v41 }
 0x644   : > { %11398 = vmatprep.subr.bf16.mxu0 %v13646_v59  ;;  %11931 = vmatprep.subr.bf16.mxu1 %v13648_v20 }
 0x646   : > { %11390 = vmatmul.mubr.bf16.vlgmr.msra.gmra.mrb[4].mxu0 %v15117_v7  ;;  %11923 = vmatmul.mubr.bf16.vlgmr.msra.gmra.mrb[4].mxu1 %v15117_v7  ;;  %v13663_v7 = vcombine.low %v1941_v48, %v1945_v33 }
 0x647   : > { %11399 = vmatpush1.bf16.msra.mxu0 %v13645_v36  ;;  %11932 = vmatpush1.bf16.msra.mxu1 %v13647_v42 }
 0x648   : > { %11400 = vmatprep.subr.bf16.mxu0 %v13654_v27  ;;  %11933 = vmatprep.subr.bf16.mxu1 %v13656_v13 }
 0x649   : > { %11430 = vmatprep.mubr.bf16.mxu0 %v14004_v37  ;;  %11963 = vmatprep.mubr.bf16.mxu1 %v14004_v37  ;;  %v1974_v37 = vsub.s32 4, %v14136_v44 }
 0x64b   : > { %11401 = vmatpush1.bf16.msra.mxu0 %v13653_v12  ;;  %11934 = vmatpush1.bf16.msra.mxu1 %v13655_v3  ;;  %v1975_v9 = vrot.slane %v13932_v49, %v1974_v37 }
 0x64c   : > { %11402 = vmatprep.subr.bf16.mxu0 %v13662_v15  ;;  %11935 = vmatprep.subr.bf16.mxu1 %v13664_v35 }
 0x64f   : > { %11403 = vmatpush1.bf16.msra.mxu0 %v13661_v16  ;;  %11936 = vmatpush1.bf16.msra.mxu1 %v13663_v7 }
 0x650   : > { %11404 = vmatprep.subr.bf16.mxu0 %v13670_v5  ;;  %11937 = vmatprep.subr.bf16.mxu1 %v13672_v43 }
 0x653   : > { %11405 = vmatpush1.bf16.msra.mxu0 %v13669_v45  ;;  %11938 = vmatpush1.bf16.msra.mxu1 %v13671_v32 }
 0x656   : > { %13675 = vmatmul.mubr.msk.bf16.vlgmr.msra.gmra.mrb[4].mxu0 %vm9836_vm0, %v15142_v1  ;;  %13676 = vmatmul.mubr.msk.bf16.vlgmr.msra.gmra.mrb[4].mxu1 %vm9836_vm0, %v15142_v1 }
 0x729   : > { %v11432_v54 = vpop.f32.mrb[4].mxu0  ;;  %v11965_v29 = vpop.f32.mrb[4].mxu1 }
 0x72a   : > { %v13684_v23 = vadd.f32 %v11432_v54, %v1975_v9  ;;  %v11434_v31 = vpop.f32.mrb[5].mxu0  ;;  %v13686_v18 = vadd.f32 %v11965_v29, %v1983_v50  ;;  %v11967_v57 = vpop.f32.mrb[5].mxu1 }
 0x72b   : > { %v13685_v1 = vadd.f32 %v11434_v31, %v1979_v52  ;;  %v11436_v58 = vpop.f32.mrb[6].mxu0  ;;  %v13687_v25 = vadd.f32 %v11967_v57, %v1987_v10  ;;  %v11969_v11 = vpop.f32.mrb[6].mxu1 }
 0x72c   : > { %v11437_v61 = vpop.f32.mrb[7].mxu0  ;;  %v11970_v4 = vpop.f32.mrb[7].mxu1 }
 0x72d   : > { %v11997_v26 = vcombine.low %v13684_v23, %v13685_v1  ;;  %v11998_v44 = vcombine.low %v13686_v18, %v13687_v25 }
 0x72f   : > { %v12005_v56 = vrot.slane %v11997_v26, %v14143_v53  ;;  %v12012_v63 = vrot.slane %v11998_v44, %v14143_v53 }
 0x731   : > { %v12013_v6 = vcombine.low %v12005_v56, %v12012_v63 }
 0x733   : > { %12017 = vst [vmem:[%s15406_s29 + $0x8] sm:$0xff] %v12013_v6 }
 0x734 PF: > { %p13_p8 = scmp.ge.s32.totalorder %s14045_s17, 12   ;;  %s16032_s12 = smov %s13989_s13 }
 0x735   : > { %s16033_s13 = smov %s13993_s14  ;;  %s16034_s14 = smov %s14055_s20 }
 0x736   : > { %s16035_s15 = smov %s14045_s17  ;;  %15 = sbr.rel (!%p13_p8) target bundleno = 3 (0x3), region = 75 }
 0x73d   :  { %12040 = vsyncpa [#allocation3], 1 }
 0x73e   :  { %12042 = vsyncpa [#allocation3 + $0x1], 1 }

</bundles_post_ra>
